<compile_context>
chip_gen: v7x
topology: tpu7x:2x2x1
jax: 0.10.0
libtpu: 0.0.40
codegen_flags: <defaults>
</compile_context>

<pallas_src>
import functools

import jax
import jax.numpy as jnp
import numpy as np
from jax.experimental import pallas as pl
from jax.experimental.pallas import tpu as pltpu

EPS = 1e-5
PAD_L = 128   # left lane margin of the conv scratch (keeps the activation store lane-aligned)
PAD_R = 128   # right lane margin (>= W+1 zeros for bottom-row taps)


# ------------------------------ parameters -----------------------------------

def _fold_bn(key, c):
    k1, k2, k3, k4 = jax.random.split(key, 4)
    gamma = 1.0 + 0.1 * jax.random.normal(k1, (c,), jnp.float32)
    beta = 0.1 * jax.random.normal(k2, (c,), jnp.float32)
    mean = 0.1 * jax.random.normal(k3, (c,), jnp.float32)
    var = 1.0 + 0.1 * jax.random.uniform(k4, (c,), jnp.float32)
    scale = gamma * jax.lax.rsqrt(var + EPS)
    bias = beta - mean * scale
    return scale.reshape(c, 1), bias.reshape(c, 1)


def _conv_w(key, cout, cin, k):
    fan = cin * k * k
    w = jax.random.normal(key, (cout, cin, k, k), jnp.float32) / np.sqrt(fan)
    return w.astype(jnp.bfloat16)


def _pack3x3(w):
    """(Cout, Cin, 3, 3) -> (Cout, 9*Cin); column block t = ky*3+kx holds w[:, :, ky, kx]."""
    cout, cin = w.shape[0], w.shape[1]
    return jnp.transpose(w, (0, 2, 3, 1)).reshape(cout, 9 * cin)


def make_params(key, growth_rate, block_config, num_classes, in_hw=16, in_ch=3):
    g = growth_rate
    nb = len(block_config)
    assert in_hw % (2 ** (nb - 1)) == 0 and in_hw // (2 ** (nb - 1)) >= 2
    keys = iter(jax.random.split(key, 256))
    nk = lambda: next(keys)

    hw_side = [in_hw // (2 ** i) for i in range(nb)]          # e.g. [16, 8, 4, 2]

    P = dict(growth_rate=g, block_config=tuple(block_config),
             num_classes=num_classes, in_hw=in_hw, in_ch=in_ch,
             hw_side=hw_side)

    # per-stage column-edge masks: row 0 = "not left edge", row 1 = "not right edge"
    masks = []
    for s in hw_side:
        col = np.arange(s * s) % s
        m = np.stack([(col != 0), (col != s - 1)]).astype(np.float32)
        masks.append(jnp.asarray(m))
    P['masks'] = masks

    # 2x2 average-pool operators (HW, HW/4), entries 0.25 (exact in bf16)
    pools = []
    for s in hw_side[:-1]:
        so = s // 2
        m = np.zeros((s * s, so * so), np.float32)
        for y in range(s):
            for x in range(s):
                m[y * s + x, (y // 2) * so + (x // 2)] = 0.25
        pools.append(jnp.asarray(m, jnp.bfloat16))

    # stem: 3x3 conv, input channels zero-padded to a sublane-friendly count
    c0 = 2 * g
    c0_pad = max(8, ((in_ch + 7) // 8) * 8)
    w1_raw = _conv_w(nk(), c0, in_ch, 3)                       # (2g, 3, 3, 3) bf16
    w1_pad = jnp.zeros((c0, c0_pad, 3, 3), jnp.bfloat16).at[:, :in_ch].set(w1_raw)
    P['conv1_w_raw'] = w1_raw
    P['conv1_wp'] = _pack3x3(w1_pad)                           # (2g, 9*c0_pad)
    P['c0_pad'] = c0_pad

    blocks, transitions = [], []
    c = c0
    for bi, nl in enumerate(block_config):
        layers = []
        for _ in range(nl):
            s1, b1 = _fold_bn(nk(), c)
            w1 = _conv_w(nk(), 4 * g, c, 1)[:, :, 0, 0]        # (4g, c) bf16
            s2, b2 = _fold_bn(nk(), 4 * g)
            w2 = _conv_w(nk(), g, 4 * g, 3)                    # (g, 4g, 3, 3) bf16
            layers.append(dict(s1=s1, b1=b1, w1=w1, s2=s2, b2=b2,
                               w2p=_pack3x3(w2), w2_raw=w2))
            c += g
        blocks.append(layers)
        if bi < nb - 1:
            s, b = _fold_bn(nk(), c)
            wt = _conv_w(nk(), c // 2, c, 1)[:, :, 0, 0]       # (c/2, c) bf16
            transitions.append(dict(s=s, b=b, w=wt, pool=pools[bi]))
            c //= 2
    P['blocks'] = blocks
    P['transitions'] = transitions
    P['num_features'] = c

    hs, hb = _fold_bn(nk(), c)
    P['head_s'], P['head_b'] = hs, hb
    P['fc_w'] = (jax.random.normal(nk(), (num_classes, c), jnp.float32)
                 / np.sqrt(c)).astype(jnp.bfloat16)
    P['fc_b'] = 0.1 * jax.random.normal(nk(), (num_classes, 1), jnp.float32)
    return P


def _flatten_params(P):
    flat = [P['conv1_wp']] + list(P['masks'])
    nb = len(P['block_config'])
    for bi in range(nb):
        for lp in P['blocks'][bi]:
            flat += [lp['s1'], lp['b1'], lp['w1'], lp['s2'], lp['b2'], lp['w2p']]
        if bi < nb - 1:
            tp = P['transitions'][bi]
            flat += [tp['s'], tp['b'], tp['w'], tp['pool']]
    flat += [P['head_s'], P['head_b'], P['fc_w'], P['fc_b']]
    return flat


# ------------------------------- kernel --------------------------------------

def _make_kernel(P):
    block_config = P['block_config']
    hw_side = P['hw_side']
    nstages = len(block_config)

    def kernel(*refs):
        x_ref = refs[0]
        o_ref = refs[-2]
        pad_ref = refs[-1]
        it = iter(refs[1:-2])

        def nxt():
            return next(it)[...]

        def clear_pad():
            pad_ref[...] = jnp.zeros(pad_ref.shape, jnp.float32)

        def conv3x3(hval, wp, side, mask):
            # hval: (Cin, HW) f32, wp: (Cout, 9*Cin) bf16, mask: (2, HW) f32
            cin, hw = hval.shape
            pad_ref[0:cin, PAD_L:PAD_L + hw] = hval            # margins stay zero
            not_left = mask[0:1, :]
            not_right = mask[1:2, :]
            taps = []
            for dy in (-1, 0, 1):
                for dx in (-1, 0, 1):
                    o = dy * side + dx
                    t = pad_ref[0:cin, PAD_L + o:PAD_L + o + hw]
                    if dx == -1:
                        t = t * not_left
                    elif dx == 1:
                        t = t * not_right
                    taps.append(t)
            patches = jnp.concatenate(taps, axis=0).astype(jnp.bfloat16)  # (9*Cin, HW)
            return jnp.dot(wp, patches, preferred_element_type=jnp.float32)

        conv1_wp = nxt()
        masks = [nxt() for _ in range(nstages)]

        # stem
        clear_pad()
        buf = conv3x3(x_ref[0], conv1_wp, hw_side[0], masks[0])   # (2g, HW0) f32

        for bi in range(nstages):
            side = hw_side[bi]
            for _ in range(block_config[bi]):
                s1, b1, w1, s2, b2, w2p = [nxt() for _ in range(6)]
                h = jnp.maximum(buf * s1 + b1, 0.0)
                m = jnp.dot(w1, h.astype(jnp.bfloat16),
                            preferred_element_type=jnp.float32)   # (4g, HW)
                m = jnp.maximum(m * s2 + b2, 0.0)
                new = conv3x3(m, w2p, side, masks[bi])             # (g, HW)
                buf = jnp.concatenate([buf, new], axis=0)
            if bi < nstages - 1:
                ts, tb, tw, tpool = [nxt() for _ in range(4)]
                h = jnp.maximum(buf * ts + tb, 0.0)
                y = jnp.dot(tw, h.astype(jnp.bfloat16),
                            preferred_element_type=jnp.float32)    # (c/2, HW)
                buf = jnp.dot(y.astype(jnp.bfloat16), tpool,
                              preferred_element_type=jnp.float32)  # (c/2, HW/4)
                clear_pad()   # next stage is smaller: re-zero scratch margins

        hs, hb, fcw, fcb = [nxt() for _ in range(4)]
        h = jnp.maximum(buf * hs + hb, 0.0)
        pooled = jnp.mean(h, axis=1, keepdims=True)                # (C, 1)
        o_ref[0] = (jnp.dot(fcw, pooled.astype(jnp.bfloat16),
                            preferred_element_type=jnp.float32) + fcb)

    return kernel


# ------------------------------- wrapper --------------------------------------

def densenet_forward(P, x_nchw):
    n, cin, h, w = x_nchw.shape
    assert h == w == P['in_hw'] and cin == P['in_ch']
    hw = h * w
    c0p = P['c0_pad']

    x = jnp.zeros((n, c0p, hw), jnp.float32).at[:, :cin, :].set(
        x_nchw.reshape(n, cin, hw).astype(jnp.float32))

    flat = _flatten_params(P)
    kernel = _make_kernel(P)

    pad_rows = max(c0p, 4 * P['growth_rate'])
    pad_cols = PAD_L + hw + PAD_R

    in_specs = [pl.BlockSpec((1, c0p, hw), lambda i: (i, 0, 0))]
    for a in flat:
        in_specs.append(pl.BlockSpec(a.shape, lambda i, _r=a.ndim: (0,) * _r))

    ncls = P['num_classes']
    out = pl.pallas_call(
        kernel,
        grid=(n,),
        out_shape=jax.ShapeDtypeStruct((n, ncls, 1), jnp.float32),
        in_specs=in_specs,
        out_specs=pl.BlockSpec((1, ncls, 1), lambda i: (i, 0, 0)),
        scratch_shapes=[pltpu.VMEM((pad_rows, pad_cols), jnp.float32)],
        compiler_params=pltpu.CompilerParams(
            dimension_semantics=("parallel",)),
    )(x, *flat)
    return out[:, :, 0]


# --------------------------- pure-JAX reference --------------------------------

def reference_forward(P, x_nchw):
    f32, bf16 = jnp.float32, jnp.bfloat16
    dn = ('NCHW', 'OIHW', 'NCHW')

    def conv(x, w, pad):
        return jax.lax.conv_general_dilated(
            x.astype(bf16), w.astype(bf16), (1, 1), ((pad, pad), (pad, pad)),
            dimension_numbers=dn, preferred_element_type=f32)

    def bn_relu(x, s, b):
        return jnp.maximum(x * s[:, 0][None, :, None, None]
                           + b[:, 0][None, :, None, None], 0.0)

    x = conv(x_nchw.astype(f32), P['conv1_w_raw'], 1)
    nb = len(P['block_config'])
    for bi in range(nb):
        for lp in P['blocks'][bi]:
            h = bn_relu(x, lp['s1'], lp['b1'])
            m = conv(h, lp['w1'][:, :, None, None], 0)
            m = bn_relu(m, lp['s2'], lp['b2'])
            out = conv(m, lp['w2_raw'], 1)
            x = jnp.concatenate([x, out], axis=1)
        if bi < nb - 1:
            tp = P['transitions'][bi]
            h = bn_relu(x, tp['s'], tp['b'])
            y = conv(h, tp['w'][:, :, None, None], 0)
            yb = y.astype(bf16).astype(f32)
            n_, c_, hh, ww = yb.shape
            x = yb.reshape(n_, c_, hh // 2, 2, ww // 2, 2).mean(axis=(3, 5))
    h = bn_relu(x, P['head_s'], P['head_b'])
    pooled = h.mean(axis=(2, 3))                                   # (N, C)
    logits = jnp.dot(pooled.astype(bf16), P['fc_w'].T,
                     preferred_element_type=f32) + P['fc_b'][:, 0][None, :]
    return logits


# ---------------------------------- main ---------------------------------------

if __name__ == "__main__":
    growth_rate = 8
    block_config = (2, 2, 2, 2)
    num_classes = 10
    in_hw = 16

    key = jax.random.PRNGKey(0)
    pkey, xkey = jax.random.split(key)
    params = make_params(pkey, growth_rate, block_config, num_classes, in_hw=in_hw)

    x = jax.random.normal(xkey, (2, 3, in_hw, in_hw), jnp.float32)

    fwd = jax.jit(functools.partial(densenet_forward, params))
    out = jax.block_until_ready(fwd(x))

    ref = jax.block_until_ready(
        jax.jit(functools.partial(reference_forward, params))(x))

    assert out.shape == (2, num_classes), out.shape
    assert bool(jnp.all(jnp.isfinite(out)))
    err = float(jnp.max(jnp.abs(out - ref)))
    assert err < 2e-2, f"kernel vs reference mismatch: max abs err = {err}"
    print("KERNEL_OK")
</pallas_src>

<mosaic_0001>
module attributes {stable_mosaic.version = 11 : i64} {
  func.func @kernel(%arg0: i32, %arg1: memref<1x8x256xf32, #tpu.memory_space<vmem>>, %arg2: memref<16x72xbf16, #tpu.memory_space<vmem>>, %arg3: memref<2x256xf32, #tpu.memory_space<vmem>>, %arg4: memref<2x64xf32, #tpu.memory_space<vmem>>, %arg5: memref<2x16xf32, #tpu.memory_space<vmem>>, %arg6: memref<2x4xf32, #tpu.memory_space<vmem>>, %arg7: memref<16x1xf32, #tpu.memory_space<vmem>>, %arg8: memref<16x1xf32, #tpu.memory_space<vmem>>, %arg9: memref<32x16xbf16, #tpu.memory_space<vmem>>, %arg10: memref<32x1xf32, #tpu.memory_space<vmem>>, %arg11: memref<32x1xf32, #tpu.memory_space<vmem>>, %arg12: memref<8x288xbf16, #tpu.memory_space<vmem>>, %arg13: memref<24x1xf32, #tpu.memory_space<vmem>>, %arg14: memref<24x1xf32, #tpu.memory_space<vmem>>, %arg15: memref<32x24xbf16, #tpu.memory_space<vmem>>, %arg16: memref<32x1xf32, #tpu.memory_space<vmem>>, %arg17: memref<32x1xf32, #tpu.memory_space<vmem>>, %arg18: memref<8x288xbf16, #tpu.memory_space<vmem>>, %arg19: memref<32x1xf32, #tpu.memory_space<vmem>>, %arg20: memref<32x1xf32, #tpu.memory_space<vmem>>, %arg21: memref<16x32xbf16, #tpu.memory_space<vmem>>, %arg22: memref<256x64xbf16, #tpu.memory_space<vmem>>, %arg23: memref<16x1xf32, #tpu.memory_space<vmem>>, %arg24: memref<16x1xf32, #tpu.memory_space<vmem>>, %arg25: memref<32x16xbf16, #tpu.memory_space<vmem>>, %arg26: memref<32x1xf32, #tpu.memory_space<vmem>>, %arg27: memref<32x1xf32, #tpu.memory_space<vmem>>, %arg28: memref<8x288xbf16, #tpu.memory_space<vmem>>, %arg29: memref<24x1xf32, #tpu.memory_space<vmem>>, %arg30: memref<24x1xf32, #tpu.memory_space<vmem>>, %arg31: memref<32x24xbf16, #tpu.memory_space<vmem>>, %arg32: memref<32x1xf32, #tpu.memory_space<vmem>>, %arg33: memref<32x1xf32, #tpu.memory_space<vmem>>, %arg34: memref<8x288xbf16, #tpu.memory_space<vmem>>, %arg35: memref<32x1xf32, #tpu.memory_space<vmem>>, %arg36: memref<32x1xf32, #tpu.memory_space<vmem>>, %arg37: memref<16x32xbf16, #tpu.memory_space<vmem>>, %arg38: memref<64x16xbf16, #tpu.memory_space<vmem>>, %arg39: memref<16x1xf32, #tpu.memory_space<vmem>>, %arg40: memref<16x1xf32, #tpu.memory_space<vmem>>, %arg41: memref<32x16xbf16, #tpu.memory_space<vmem>>, %arg42: memref<32x1xf32, #tpu.memory_space<vmem>>, %arg43: memref<32x1xf32, #tpu.memory_space<vmem>>, %arg44: memref<8x288xbf16, #tpu.memory_space<vmem>>, %arg45: memref<24x1xf32, #tpu.memory_space<vmem>>, %arg46: memref<24x1xf32, #tpu.memory_space<vmem>>, %arg47: memref<32x24xbf16, #tpu.memory_space<vmem>>, %arg48: memref<32x1xf32, #tpu.memory_space<vmem>>, %arg49: memref<32x1xf32, #tpu.memory_space<vmem>>, %arg50: memref<8x288xbf16, #tpu.memory_space<vmem>>, %arg51: memref<32x1xf32, #tpu.memory_space<vmem>>, %arg52: memref<32x1xf32, #tpu.memory_space<vmem>>, %arg53: memref<16x32xbf16, #tpu.memory_space<vmem>>, %arg54: memref<16x4xbf16, #tpu.memory_space<vmem>>, %arg55: memref<16x1xf32, #tpu.memory_space<vmem>>, %arg56: memref<16x1xf32, #tpu.memory_space<vmem>>, %arg57: memref<32x16xbf16, #tpu.memory_space<vmem>>, %arg58: memref<32x1xf32, #tpu.memory_space<vmem>>, %arg59: memref<32x1xf32, #tpu.memory_space<vmem>>, %arg60: memref<8x288xbf16, #tpu.memory_space<vmem>>, %arg61: memref<24x1xf32, #tpu.memory_space<vmem>>, %arg62: memref<24x1xf32, #tpu.memory_space<vmem>>, %arg63: memref<32x24xbf16, #tpu.memory_space<vmem>>, %arg64: memref<32x1xf32, #tpu.memory_space<vmem>>, %arg65: memref<32x1xf32, #tpu.memory_space<vmem>>, %arg66: memref<8x288xbf16, #tpu.memory_space<vmem>>, %arg67: memref<32x1xf32, #tpu.memory_space<vmem>>, %arg68: memref<32x1xf32, #tpu.memory_space<vmem>>, %arg69: memref<10x32xbf16, #tpu.memory_space<vmem>>, %arg70: memref<10x1xf32, #tpu.memory_space<vmem>>, %arg71: memref<1x10x1xf32, #tpu.memory_space<vmem>>, %arg72: memref<32x512xf32, #tpu.memory_space<vmem>>) attributes {dimension_semantics = [#tpu.dimension_semantics<parallel>], iteration_bounds = array<i64: 2>, scalar_prefetch = 0 : i64, scratch_operands = 1 : i64, tpu.core_type = #tpu.core_type<tc>, window_params = [{transform_indices = @transform_0, window_bounds = array<i64: 1, 8, 256>}, {pipeline_mode = #tpu.pipeline_mode<synchronous>, transform_indices = @transform_1, window_bounds = array<i64: 16, 72>}, {pipeline_mode = #tpu.pipeline_mode<synchronous>, transform_indices = @transform_2, window_bounds = array<i64: 2, 256>}, {pipeline_mode = #tpu.pipeline_mode<synchronous>, transform_indices = @transform_3, window_bounds = array<i64: 2, 64>}, {pipeline_mode = #tpu.pipeline_mode<synchronous>, transform_indices = @transform_4, window_bounds = array<i64: 2, 16>}, {pipeline_mode = #tpu.pipeline_mode<synchronous>, transform_indices = @transform_5, window_bounds = array<i64: 2, 4>}, {pipeline_mode = #tpu.pipeline_mode<synchronous>, transform_indices = @transform_6, window_bounds = array<i64: 16, 1>}, {pipeline_mode = #tpu.pipeline_mode<synchronous>, transform_indices = @transform_7, window_bounds = array<i64: 16, 1>}, {pipeline_mode = #tpu.pipeline_mode<synchronous>, transform_indices = @transform_8, window_bounds = array<i64: 32, 16>}, {pipeline_mode = #tpu.pipeline_mode<synchronous>, transform_indices = @transform_9, window_bounds = array<i64: 32, 1>}, {pipeline_mode = #tpu.pipeline_mode<synchronous>, transform_indices = @transform_10, window_bounds = array<i64: 32, 1>}, {pipeline_mode = #tpu.pipeline_mode<synchronous>, transform_indices = @transform_11, window_bounds = array<i64: 8, 288>}, {pipeline_mode = #tpu.pipeline_mode<synchronous>, transform_indices = @transform_12, window_bounds = array<i64: 24, 1>}, {pipeline_mode = #tpu.pipeline_mode<synchronous>, transform_indices = @transform_13, window_bounds = array<i64: 24, 1>}, {pipeline_mode = #tpu.pipeline_mode<synchronous>, transform_indices = @transform_14, window_bounds = array<i64: 32, 24>}, {pipeline_mode = #tpu.pipeline_mode<synchronous>, transform_indices = @transform_15, window_bounds = array<i64: 32, 1>}, {pipeline_mode = #tpu.pipeline_mode<synchronous>, transform_indices = @transform_16, window_bounds = array<i64: 32, 1>}, {pipeline_mode = #tpu.pipeline_mode<synchronous>, transform_indices = @transform_17, window_bounds = array<i64: 8, 288>}, {pipeline_mode = #tpu.pipeline_mode<synchronous>, transform_indices = @transform_18, window_bounds = array<i64: 32, 1>}, {pipeline_mode = #tpu.pipeline_mode<synchronous>, transform_indices = @transform_19, window_bounds = array<i64: 32, 1>}, {pipeline_mode = #tpu.pipeline_mode<synchronous>, transform_indices = @transform_20, window_bounds = array<i64: 16, 32>}, {pipeline_mode = #tpu.pipeline_mode<synchronous>, transform_indices = @transform_21, window_bounds = array<i64: 256, 64>}, {pipeline_mode = #tpu.pipeline_mode<synchronous>, transform_indices = @transform_22, window_bounds = array<i64: 16, 1>}, {pipeline_mode = #tpu.pipeline_mode<synchronous>, transform_indices = @transform_23, window_bounds = array<i64: 16, 1>}, {pipeline_mode = #tpu.pipeline_mode<synchronous>, transform_indices = @transform_24, window_bounds = array<i64: 32, 16>}, {pipeline_mode = #tpu.pipeline_mode<synchronous>, transform_indices = @transform_25, window_bounds = array<i64: 32, 1>}, {pipeline_mode = #tpu.pipeline_mode<synchronous>, transform_indices = @transform_26, window_bounds = array<i64: 32, 1>}, {pipeline_mode = #tpu.pipeline_mode<synchronous>, transform_indices = @transform_27, window_bounds = array<i64: 8, 288>}, {pipeline_mode = #tpu.pipeline_mode<synchronous>, transform_indices = @transform_28, window_bounds = array<i64: 24, 1>}, {pipeline_mode = #tpu.pipeline_mode<synchronous>, transform_indices = @transform_29, window_bounds = array<i64: 24, 1>}, {pipeline_mode = #tpu.pipeline_mode<synchronous>, transform_indices = @transform_30, window_bounds = array<i64: 32, 24>}, {pipeline_mode = #tpu.pipeline_mode<synchronous>, transform_indices = @transform_31, window_bounds = array<i64: 32, 1>}, {pipeline_mode = #tpu.pipeline_mode<synchronous>, transform_indices = @transform_32, window_bounds = array<i64: 32, 1>}, {pipeline_mode = #tpu.pipeline_mode<synchronous>, transform_indices = @transform_33, window_bounds = array<i64: 8, 288>}, {pipeline_mode = #tpu.pipeline_mode<synchronous>, transform_indices = @transform_34, window_bounds = array<i64: 32, 1>}, {pipeline_mode = #tpu.pipeline_mode<synchronous>, transform_indices = @transform_35, window_bounds = array<i64: 32, 1>}, {pipeline_mode = #tpu.pipeline_mode<synchronous>, transform_indices = @transform_36, window_bounds = array<i64: 16, 32>}, {pipeline_mode = #tpu.pipeline_mode<synchronous>, transform_indices = @transform_37, window_bounds = array<i64: 64, 16>}, {pipeline_mode = #tpu.pipeline_mode<synchronous>, transform_indices = @transform_38, window_bounds = array<i64: 16, 1>}, {pipeline_mode = #tpu.pipeline_mode<synchronous>, transform_indices = @transform_39, window_bounds = array<i64: 16, 1>}, {pipeline_mode = #tpu.pipeline_mode<synchronous>, transform_indices = @transform_40, window_bounds = array<i64: 32, 16>}, {pipeline_mode = #tpu.pipeline_mode<synchronous>, transform_indices = @transform_41, window_bounds = array<i64: 32, 1>}, {pipeline_mode = #tpu.pipeline_mode<synchronous>, transform_indices = @transform_42, window_bounds = array<i64: 32, 1>}, {pipeline_mode = #tpu.pipeline_mode<synchronous>, transform_indices = @transform_43, window_bounds = array<i64: 8, 288>}, {pipeline_mode = #tpu.pipeline_mode<synchronous>, transform_indices = @transform_44, window_bounds = array<i64: 24, 1>}, {pipeline_mode = #tpu.pipeline_mode<synchronous>, transform_indices = @transform_45, window_bounds = array<i64: 24, 1>}, {pipeline_mode = #tpu.pipeline_mode<synchronous>, transform_indices = @transform_46, window_bounds = array<i64: 32, 24>}, {pipeline_mode = #tpu.pipeline_mode<synchronous>, transform_indices = @transform_47, window_bounds = array<i64: 32, 1>}, {pipeline_mode = #tpu.pipeline_mode<synchronous>, transform_indices = @transform_48, window_bounds = array<i64: 32, 1>}, {pipeline_mode = #tpu.pipeline_mode<synchronous>, transform_indices = @transform_49, window_bounds = array<i64: 8, 288>}, {pipeline_mode = #tpu.pipeline_mode<synchronous>, transform_indices = @transform_50, window_bounds = array<i64: 32, 1>}, {pipeline_mode = #tpu.pipeline_mode<synchronous>, transform_indices = @transform_51, window_bounds = array<i64: 32, 1>}, {pipeline_mode = #tpu.pipeline_mode<synchronous>, transform_indices = @transform_52, window_bounds = array<i64: 16, 32>}, {pipeline_mode = #tpu.pipeline_mode<synchronous>, transform_indices = @transform_53, window_bounds = array<i64: 16, 4>}, {pipeline_mode = #tpu.pipeline_mode<synchronous>, transform_indices = @transform_54, window_bounds = array<i64: 16, 1>}, {pipeline_mode = #tpu.pipeline_mode<synchronous>, transform_indices = @transform_55, window_bounds = array<i64: 16, 1>}, {pipeline_mode = #tpu.pipeline_mode<synchronous>, transform_indices = @transform_56, window_bounds = array<i64: 32, 16>}, {pipeline_mode = #tpu.pipeline_mode<synchronous>, transform_indices = @transform_57, window_bounds = array<i64: 32, 1>}, {pipeline_mode = #tpu.pipeline_mode<synchronous>, transform_indices = @transform_58, window_bounds = array<i64: 32, 1>}, {pipeline_mode = #tpu.pipeline_mode<synchronous>, transform_indices = @transform_59, window_bounds = array<i64: 8, 288>}, {pipeline_mode = #tpu.pipeline_mode<synchronous>, transform_indices = @transform_60, window_bounds = array<i64: 24, 1>}, {pipeline_mode = #tpu.pipeline_mode<synchronous>, transform_indices = @transform_61, window_bounds = array<i64: 24, 1>}, {pipeline_mode = #tpu.pipeline_mode<synchronous>, transform_indices = @transform_62, window_bounds = array<i64: 32, 24>}, {pipeline_mode = #tpu.pipeline_mode<synchronous>, transform_indices = @transform_63, window_bounds = array<i64: 32, 1>}, {pipeline_mode = #tpu.pipeline_mode<synchronous>, transform_indices = @transform_64, window_bounds = array<i64: 32, 1>}, {pipeline_mode = #tpu.pipeline_mode<synchronous>, transform_indices = @transform_65, window_bounds = array<i64: 8, 288>}, {pipeline_mode = #tpu.pipeline_mode<synchronous>, transform_indices = @transform_66, window_bounds = array<i64: 32, 1>}, {pipeline_mode = #tpu.pipeline_mode<synchronous>, transform_indices = @transform_67, window_bounds = array<i64: 32, 1>}, {pipeline_mode = #tpu.pipeline_mode<synchronous>, transform_indices = @transform_68, window_bounds = array<i64: 10, 32>}, {pipeline_mode = #tpu.pipeline_mode<synchronous>, transform_indices = @transform_69, window_bounds = array<i64: 10, 1>}, {transform_indices = @transform_70, window_bounds = array<i64: 1, 10, 1>}]} {
    %c0 = arith.constant 0 : index
    %c0_0 = arith.constant 0 : index
    %0 = vector.load %arg2[%c0, %c0_0] : memref<16x72xbf16, #tpu.memory_space<vmem>>, vector<16x72xbf16>
    %c0_1 = arith.constant 0 : index
    %c0_2 = arith.constant 0 : index
    %1 = vector.load %arg3[%c0_1, %c0_2] : memref<2x256xf32, #tpu.memory_space<vmem>>, vector<2x256xf32>
    %c0_3 = arith.constant 0 : index
    %c0_4 = arith.constant 0 : index
    %2 = vector.load %arg4[%c0_3, %c0_4] : memref<2x64xf32, #tpu.memory_space<vmem>>, vector<2x64xf32>
    %c0_5 = arith.constant 0 : index
    %c0_6 = arith.constant 0 : index
    %3 = vector.load %arg5[%c0_5, %c0_6] : memref<2x16xf32, #tpu.memory_space<vmem>>, vector<2x16xf32>
    %c0_7 = arith.constant 0 : index
    %c0_8 = arith.constant 0 : index
    %4 = vector.load %arg6[%c0_7, %c0_8] : memref<2x4xf32, #tpu.memory_space<vmem>>, vector<2x4xf32>
    %cst = arith.constant 0.000000e+00 : f32
    %5 = vector.broadcast %cst : f32 to vector<32x512xf32>
    %c0_9 = arith.constant 0 : index
    %c0_10 = arith.constant 0 : index
    %6 = vector.load %arg72[%c0_9, %c0_10] : memref<32x512xf32, #tpu.memory_space<vmem>>, vector<32x512xf32>
    tpu.vector_store %arg72[%c0_9, %c0_10], %5 {strides = array<i32>} : memref<32x512xf32, #tpu.memory_space<vmem>>, vector<32x512xf32>,
    %c0_11 = arith.constant 0 : index
    %c0_12 = arith.constant 0 : index
    %c0_13 = arith.constant 0 : index
    %7 = vector.load %arg1[%c0_11, %c0_12, %c0_13] : memref<1x8x256xf32, #tpu.memory_space<vmem>>, vector<1x8x256xf32>
    %8 = vector.shape_cast %7 : vector<1x8x256xf32> to vector<8x256xf32>
    %c0_14 = arith.constant 0 : index
    %c128 = arith.constant 128 : index
    %9 = vector.load %arg72[%c0_14, %c128] : memref<32x512xf32, #tpu.memory_space<vmem>>, vector<8x256xf32>
    tpu.vector_store %arg72[%c0_14, %c128], %8 {strides = array<i32>} : memref<32x512xf32, #tpu.memory_space<vmem>>, vector<8x256xf32>,
    %10 = vector.extract_strided_slice %1 {offsets = [0, 0], sizes = [1, 256], strides = [1, 1]} : vector<2x256xf32> to vector<1x256xf32>
    %11 = vector.extract_strided_slice %1 {offsets = [1, 0], sizes = [1, 256], strides = [1, 1]} : vector<2x256xf32> to vector<1x256xf32>
    %c0_15 = arith.constant 0 : index
    %c111 = arith.constant 111 : index
    %12 = vector.load %arg72[%c0_15, %c111] : memref<32x512xf32, #tpu.memory_space<vmem>>, vector<8x256xf32>
    %13 = vector.broadcast %10 : vector<1x256xf32> to vector<8x256xf32>
    %14 = arith.mulf %12, %13 : vector<8x256xf32>
    %c0_16 = arith.constant 0 : index
    %c112 = arith.constant 112 : index
    %15 = vector.load %arg72[%c0_16, %c112] : memref<32x512xf32, #tpu.memory_space<vmem>>, vector<8x256xf32>
    %c0_17 = arith.constant 0 : index
    %c113 = arith.constant 113 : index
    %16 = vector.load %arg72[%c0_17, %c113] : memref<32x512xf32, #tpu.memory_space<vmem>>, vector<8x256xf32>
    %17 = vector.broadcast %11 : vector<1x256xf32> to vector<8x256xf32>
    %18 = arith.mulf %16, %17 : vector<8x256xf32>
    %c0_18 = arith.constant 0 : index
    %c127 = arith.constant 127 : index
    %19 = vector.load %arg72[%c0_18, %c127] : memref<32x512xf32, #tpu.memory_space<vmem>>, vector<8x256xf32>
    %20 = vector.broadcast %10 : vector<1x256xf32> to vector<8x256xf32>
    %21 = arith.mulf %19, %20 : vector<8x256xf32>
    %c0_19 = arith.constant 0 : index
    %c128_20 = arith.constant 128 : index
    %22 = vector.load %arg72[%c0_19, %c128_20] : memref<32x512xf32, #tpu.memory_space<vmem>>, vector<8x256xf32>
    %c0_21 = arith.constant 0 : index
    %c129 = arith.constant 129 : index
    %23 = vector.load %arg72[%c0_21, %c129] : memref<32x512xf32, #tpu.memory_space<vmem>>, vector<8x256xf32>
    %24 = vector.broadcast %11 : vector<1x256xf32> to vector<8x256xf32>
    %25 = arith.mulf %23, %24 : vector<8x256xf32>
    %c0_22 = arith.constant 0 : index
    %c143 = arith.constant 143 : index
    %26 = vector.load %arg72[%c0_22, %c143] : memref<32x512xf32, #tpu.memory_space<vmem>>, vector<8x256xf32>
    %27 = vector.broadcast %10 : vector<1x256xf32> to vector<8x256xf32>
    %28 = arith.mulf %26, %27 : vector<8x256xf32>
    %c0_23 = arith.constant 0 : index
    %c144 = arith.constant 144 : index
    %29 = vector.load %arg72[%c0_23, %c144] : memref<32x512xf32, #tpu.memory_space<vmem>>, vector<8x256xf32>
    %c0_24 = arith.constant 0 : index
    %c145 = arith.constant 145 : index
    %30 = vector.load %arg72[%c0_24, %c145] : memref<32x512xf32, #tpu.memory_space<vmem>>, vector<8x256xf32>
    %31 = vector.broadcast %11 : vector<1x256xf32> to vector<8x256xf32>
    %32 = arith.mulf %30, %31 : vector<8x256xf32>
    %33 = tpu.concatenate %14, %15, %18, %21, %22, %25, %28, %29, %32 in 0 : vector<8x256xf32>, vector<8x256xf32>, vector<8x256xf32>, vector<8x256xf32>, vector<8x256xf32>, vector<8x256xf32>, vector<8x256xf32>, vector<8x256xf32>, vector<8x256xf32> -> vector<72x256xf32>
    %34 = arith.truncf %33 : vector<72x256xf32> to vector<72x256xbf16>
    %cst_25 = arith.constant dense<0.000000e+00> : vector<16x256xf32>
    %35 = tpu.matmul %0, %34, %cst_25 {dimension_numbers = #tpu.dot_dimension_numbers<[1], [0], [0], [1], [0, 0, 1, 1], [], []>} : vector<16x72xbf16>, vector<72x256xbf16>, vector<16x256xf32> -> vector<16x256xf32>
    %c0_26 = arith.constant 0 : index
    %c0_27 = arith.constant 0 : index
    %36 = vector.load %arg7[%c0_26, %c0_27] : memref<16x1xf32, #tpu.memory_space<vmem>>, vector<16x1xf32>
    %c0_28 = arith.constant 0 : index
    %c0_29 = arith.constant 0 : index
    %37 = vector.load %arg8[%c0_28, %c0_29] : memref<16x1xf32, #tpu.memory_space<vmem>>, vector<16x1xf32>
    %c0_30 = arith.constant 0 : index
    %c0_31 = arith.constant 0 : index
    %38 = vector.load %arg9[%c0_30, %c0_31] : memref<32x16xbf16, #tpu.memory_space<vmem>>, vector<32x16xbf16>
    %c0_32 = arith.constant 0 : index
    %c0_33 = arith.constant 0 : index
    %39 = vector.load %arg10[%c0_32, %c0_33] : memref<32x1xf32, #tpu.memory_space<vmem>>, vector<32x1xf32>
    %c0_34 = arith.constant 0 : index
    %c0_35 = arith.constant 0 : index
    %40 = vector.load %arg11[%c0_34, %c0_35] : memref<32x1xf32, #tpu.memory_space<vmem>>, vector<32x1xf32>
    %c0_36 = arith.constant 0 : index
    %c0_37 = arith.constant 0 : index
    %41 = vector.load %arg12[%c0_36, %c0_37] : memref<8x288xbf16, #tpu.memory_space<vmem>>, vector<8x288xbf16>
    %42 = vector.broadcast %36 : vector<16x1xf32> to vector<16x256xf32>
    %43 = arith.mulf %35, %42 : vector<16x256xf32>
    %44 = vector.broadcast %37 : vector<16x1xf32> to vector<16x256xf32>
    %45 = arith.addf %43, %44 : vector<16x256xf32>
    %cst_38 = arith.constant 0.000000e+00 : f32
    %46 = vector.broadcast %cst_38 : f32 to vector<16x256xf32>
    %47 = arith.maximumf %45, %46 : vector<16x256xf32>
    %48 = arith.truncf %47 : vector<16x256xf32> to vector<16x256xbf16>
    %cst_39 = arith.constant dense<0.000000e+00> : vector<32x256xf32>
    %49 = tpu.matmul %38, %48, %cst_39 {dimension_numbers = #tpu.dot_dimension_numbers<[1], [0], [0], [1], [0, 0, 1, 1], [], []>} : vector<32x16xbf16>, vector<16x256xbf16>, vector<32x256xf32> -> vector<32x256xf32>
    %50 = vector.broadcast %39 : vector<32x1xf32> to vector<32x256xf32>
    %51 = arith.mulf %49, %50 : vector<32x256xf32>
    %52 = vector.broadcast %40 : vector<32x1xf32> to vector<32x256xf32>
    %53 = arith.addf %51, %52 : vector<32x256xf32>
    %cst_40 = arith.constant 0.000000e+00 : f32
    %54 = vector.broadcast %cst_40 : f32 to vector<32x256xf32>
    %55 = arith.maximumf %53, %54 : vector<32x256xf32>
    %c0_41 = arith.constant 0 : index
    %c128_42 = arith.constant 128 : index
    %56 = vector.load %arg72[%c0_41, %c128_42] : memref<32x512xf32, #tpu.memory_space<vmem>>, vector<32x256xf32>
    tpu.vector_store %arg72[%c0_41, %c128_42], %55 {strides = array<i32>} : memref<32x512xf32, #tpu.memory_space<vmem>>, vector<32x256xf32>,
    %57 = vector.extract_strided_slice %1 {offsets = [0, 0], sizes = [1, 256], strides = [1, 1]} : vector<2x256xf32> to vector<1x256xf32>
    %58 = vector.extract_strided_slice %1 {offsets = [1, 0], sizes = [1, 256], strides = [1, 1]} : vector<2x256xf32> to vector<1x256xf32>
    %c0_43 = arith.constant 0 : index
    %c111_44 = arith.constant 111 : index
    %59 = vector.load %arg72[%c0_43, %c111_44] : memref<32x512xf32, #tpu.memory_space<vmem>>, vector<32x256xf32>
    %60 = vector.broadcast %57 : vector<1x256xf32> to vector<32x256xf32>
    %61 = arith.mulf %59, %60 : vector<32x256xf32>
    %c0_45 = arith.constant 0 : index
    %c112_46 = arith.constant 112 : index
    %62 = vector.load %arg72[%c0_45, %c112_46] : memref<32x512xf32, #tpu.memory_space<vmem>>, vector<32x256xf32>
    %c0_47 = arith.constant 0 : index
    %c113_48 = arith.constant 113 : index
    %63 = vector.load %arg72[%c0_47, %c113_48] : memref<32x512xf32, #tpu.memory_space<vmem>>, vector<32x256xf32>
    %64 = vector.broadcast %58 : vector<1x256xf32> to vector<32x256xf32>
    %65 = arith.mulf %63, %64 : vector<32x256xf32>
    %c0_49 = arith.constant 0 : index
    %c127_50 = arith.constant 127 : index
    %66 = vector.load %arg72[%c0_49, %c127_50] : memref<32x512xf32, #tpu.memory_space<vmem>>, vector<32x256xf32>
    %67 = vector.broadcast %57 : vector<1x256xf32> to vector<32x256xf32>
    %68 = arith.mulf %66, %67 : vector<32x256xf32>
    %c0_51 = arith.constant 0 : index
    %c128_52 = arith.constant 128 : index
    %69 = vector.load %arg72[%c0_51, %c128_52] : memref<32x512xf32, #tpu.memory_space<vmem>>, vector<32x256xf32>
    %c0_53 = arith.constant 0 : index
    %c129_54 = arith.constant 129 : index
    %70 = vector.load %arg72[%c0_53, %c129_54] : memref<32x512xf32, #tpu.memory_space<vmem>>, vector<32x256xf32>
    %71 = vector.broadcast %58 : vector<1x256xf32> to vector<32x256xf32>
    %72 = arith.mulf %70, %71 : vector<32x256xf32>
    %c0_55 = arith.constant 0 : index
    %c143_56 = arith.constant 143 : index
    %73 = vector.load %arg72[%c0_55, %c143_56] : memref<32x512xf32, #tpu.memory_space<vmem>>, vector<32x256xf32>
    %74 = vector.broadcast %57 : vector<1x256xf32> to vector<32x256xf32>
    %75 = arith.mulf %73, %74 : vector<32x256xf32>
    %c0_57 = arith.constant 0 : index
    %c144_58 = arith.constant 144 : index
    %76 = vector.load %arg72[%c0_57, %c144_58] : memref<32x512xf32, #tpu.memory_space<vmem>>, vector<32x256xf32>
    %c0_59 = arith.constant 0 : index
    %c145_60 = arith.constant 145 : index
    %77 = vector.load %arg72[%c0_59, %c145_60] : memref<32x512xf32, #tpu.memory_space<vmem>>, vector<32x256xf32>
    %78 = vector.broadcast %58 : vector<1x256xf32> to vector<32x256xf32>
    %79 = arith.mulf %77, %78 : vector<32x256xf32>
    %80 = tpu.concatenate %61, %62, %65, %68, %69, %72, %75, %76, %79 in 0 : vector<32x256xf32>, vector<32x256xf32>, vector<32x256xf32>, vector<32x256xf32>, vector<32x256xf32>, vector<32x256xf32>, vector<32x256xf32>, vector<32x256xf32>, vector<32x256xf32> -> vector<288x256xf32>
    %81 = arith.truncf %80 : vector<288x256xf32> to vector<288x256xbf16>
    %cst_61 = arith.constant dense<0.000000e+00> : vector<8x256xf32>
    %82 = tpu.matmul %41, %81, %cst_61 {dimension_numbers = #tpu.dot_dimension_numbers<[1], [0], [0], [1], [0, 0, 1, 1], [], []>} : vector<8x288xbf16>, vector<288x256xbf16>, vector<8x256xf32> -> vector<8x256xf32>
    %83 = tpu.concatenate %35, %82 in 0 : vector<16x256xf32>, vector<8x256xf32> -> vector<24x256xf32>
    %c0_62 = arith.constant 0 : index
    %c0_63 = arith.constant 0 : index
    %84 = vector.load %arg13[%c0_62, %c0_63] : memref<24x1xf32, #tpu.memory_space<vmem>>, vector<24x1xf32>
    %c0_64 = arith.constant 0 : index
    %c0_65 = arith.constant 0 : index
    %85 = vector.load %arg14[%c0_64, %c0_65] : memref<24x1xf32, #tpu.memory_space<vmem>>, vector<24x1xf32>
    %c0_66 = arith.constant 0 : index
    %c0_67 = arith.constant 0 : index
    %86 = vector.load %arg15[%c0_66, %c0_67] : memref<32x24xbf16, #tpu.memory_space<vmem>>, vector<32x24xbf16>
    %c0_68 = arith.constant 0 : index
    %c0_69 = arith.constant 0 : index
    %87 = vector.load %arg16[%c0_68, %c0_69] : memref<32x1xf32, #tpu.memory_space<vmem>>, vector<32x1xf32>
    %c0_70 = arith.constant 0 : index
    %c0_71 = arith.constant 0 : index
    %88 = vector.load %arg17[%c0_70, %c0_71] : memref<32x1xf32, #tpu.memory_space<vmem>>, vector<32x1xf32>
    %c0_72 = arith.constant 0 : index
    %c0_73 = arith.constant 0 : index
    %89 = vector.load %arg18[%c0_72, %c0_73] : memref<8x288xbf16, #tpu.memory_space<vmem>>, vector<8x288xbf16>
    %90 = vector.broadcast %84 : vector<24x1xf32> to vector<24x256xf32>
    %91 = arith.mulf %83, %90 : vector<24x256xf32>
    %92 = vector.broadcast %85 : vector<24x1xf32> to vector<24x256xf32>
    %93 = arith.addf %91, %92 : vector<24x256xf32>
    %cst_74 = arith.constant 0.000000e+00 : f32
    %94 = vector.broadcast %cst_74 : f32 to vector<24x256xf32>
    %95 = arith.maximumf %93, %94 : vector<24x256xf32>
    %96 = arith.truncf %95 : vector<24x256xf32> to vector<24x256xbf16>
    %cst_75 = arith.constant dense<0.000000e+00> : vector<32x256xf32>
    %97 = tpu.matmul %86, %96, %cst_75 {dimension_numbers = #tpu.dot_dimension_numbers<[1], [0], [0], [1], [0, 0, 1, 1], [], []>} : vector<32x24xbf16>, vector<24x256xbf16>, vector<32x256xf32> -> vector<32x256xf32>
    %98 = vector.broadcast %87 : vector<32x1xf32> to vector<32x256xf32>
    %99 = arith.mulf %97, %98 : vector<32x256xf32>
    %100 = vector.broadcast %88 : vector<32x1xf32> to vector<32x256xf32>
    %101 = arith.addf %99, %100 : vector<32x256xf32>
    %cst_76 = arith.constant 0.000000e+00 : f32
    %102 = vector.broadcast %cst_76 : f32 to vector<32x256xf32>
    %103 = arith.maximumf %101, %102 : vector<32x256xf32>
    %c0_77 = arith.constant 0 : index
    %c128_78 = arith.constant 128 : index
    %104 = vector.load %arg72[%c0_77, %c128_78] : memref<32x512xf32, #tpu.memory_space<vmem>>, vector<32x256xf32>
    tpu.vector_store %arg72[%c0_77, %c128_78], %103 {strides = array<i32>} : memref<32x512xf32, #tpu.memory_space<vmem>>, vector<32x256xf32>,
    %105 = vector.extract_strided_slice %1 {offsets = [0, 0], sizes = [1, 256], strides = [1, 1]} : vector<2x256xf32> to vector<1x256xf32>
    %106 = vector.extract_strided_slice %1 {offsets = [1, 0], sizes = [1, 256], strides = [1, 1]} : vector<2x256xf32> to vector<1x256xf32>
    %c0_79 = arith.constant 0 : index
    %c111_80 = arith.constant 111 : index
    %107 = vector.load %arg72[%c0_79, %c111_80] : memref<32x512xf32, #tpu.memory_space<vmem>>, vector<32x256xf32>
    %108 = vector.broadcast %105 : vector<1x256xf32> to vector<32x256xf32>
    %109 = arith.mulf %107, %108 : vector<32x256xf32>
    %c0_81 = arith.constant 0 : index
    %c112_82 = arith.constant 112 : index
    %110 = vector.load %arg72[%c0_81, %c112_82] : memref<32x512xf32, #tpu.memory_space<vmem>>, vector<32x256xf32>
    %c0_83 = arith.constant 0 : index
    %c113_84 = arith.constant 113 : index
    %111 = vector.load %arg72[%c0_83, %c113_84] : memref<32x512xf32, #tpu.memory_space<vmem>>, vector<32x256xf32>
    %112 = vector.broadcast %106 : vector<1x256xf32> to vector<32x256xf32>
    %113 = arith.mulf %111, %112 : vector<32x256xf32>
    %c0_85 = arith.constant 0 : index
    %c127_86 = arith.constant 127 : index
    %114 = vector.load %arg72[%c0_85, %c127_86] : memref<32x512xf32, #tpu.memory_space<vmem>>, vector<32x256xf32>
    %115 = vector.broadcast %105 : vector<1x256xf32> to vector<32x256xf32>
    %116 = arith.mulf %114, %115 : vector<32x256xf32>
    %c0_87 = arith.constant 0 : index
    %c128_88 = arith.constant 128 : index
    %117 = vector.load %arg72[%c0_87, %c128_88] : memref<32x512xf32, #tpu.memory_space<vmem>>, vector<32x256xf32>
    %c0_89 = arith.constant 0 : index
    %c129_90 = arith.constant 129 : index
    %118 = vector.load %arg72[%c0_89, %c129_90] : memref<32x512xf32, #tpu.memory_space<vmem>>, vector<32x256xf32>
    %119 = vector.broadcast %106 : vector<1x256xf32> to vector<32x256xf32>
    %120 = arith.mulf %118, %119 : vector<32x256xf32>
    %c0_91 = arith.constant 0 : index
    %c143_92 = arith.constant 143 : index
    %121 = vector.load %arg72[%c0_91, %c143_92] : memref<32x512xf32, #tpu.memory_space<vmem>>, vector<32x256xf32>
    %122 = vector.broadcast %105 : vector<1x256xf32> to vector<32x256xf32>
    %123 = arith.mulf %121, %122 : vector<32x256xf32>
    %c0_93 = arith.constant 0 : index
    %c144_94 = arith.constant 144 : index
    %124 = vector.load %arg72[%c0_93, %c144_94] : memref<32x512xf32, #tpu.memory_space<vmem>>, vector<32x256xf32>
    %c0_95 = arith.constant 0 : index
    %c145_96 = arith.constant 145 : index
    %125 = vector.load %arg72[%c0_95, %c145_96] : memref<32x512xf32, #tpu.memory_space<vmem>>, vector<32x256xf32>
    %126 = vector.broadcast %106 : vector<1x256xf32> to vector<32x256xf32>
    %127 = arith.mulf %125, %126 : vector<32x256xf32>
    %128 = tpu.concatenate %109, %110, %113, %116, %117, %120, %123, %124, %127 in 0 : vector<32x256xf32>, vector<32x256xf32>, vector<32x256xf32>, vector<32x256xf32>, vector<32x256xf32>, vector<32x256xf32>, vector<32x256xf32>, vector<32x256xf32>, vector<32x256xf32> -> vector<288x256xf32>
    %129 = arith.truncf %128 : vector<288x256xf32> to vector<288x256xbf16>
    %cst_97 = arith.constant dense<0.000000e+00> : vector<8x256xf32>
    %130 = tpu.matmul %89, %129, %cst_97 {dimension_numbers = #tpu.dot_dimension_numbers<[1], [0], [0], [1], [0, 0, 1, 1], [], []>} : vector<8x288xbf16>, vector<288x256xbf16>, vector<8x256xf32> -> vector<8x256xf32>
    %131 = tpu.concatenate %83, %130 in 0 : vector<24x256xf32>, vector<8x256xf32> -> vector<32x256xf32>
    %c0_98 = arith.constant 0 : index
    %c0_99 = arith.constant 0 : index
    %132 = vector.load %arg19[%c0_98, %c0_99] : memref<32x1xf32, #tpu.memory_space<vmem>>, vector<32x1xf32>
    %c0_100 = arith.constant 0 : index
    %c0_101 = arith.constant 0 : index
    %133 = vector.load %arg20[%c0_100, %c0_101] : memref<32x1xf32, #tpu.memory_space<vmem>>, vector<32x1xf32>
    %c0_102 = arith.constant 0 : index
    %c0_103 = arith.constant 0 : index
    %134 = vector.load %arg21[%c0_102, %c0_103] : memref<16x32xbf16, #tpu.memory_space<vmem>>, vector<16x32xbf16>
    %c0_104 = arith.constant 0 : index
    %c0_105 = arith.constant 0 : index
    %135 = vector.load %arg22[%c0_104, %c0_105] : memref<256x64xbf16, #tpu.memory_space<vmem>>, vector<256x64xbf16>
    %136 = vector.broadcast %132 : vector<32x1xf32> to vector<32x256xf32>
    %137 = arith.mulf %131, %136 : vector<32x256xf32>
    %138 = vector.broadcast %133 : vector<32x1xf32> to vector<32x256xf32>
    %139 = arith.addf %137, %138 : vector<32x256xf32>
    %cst_106 = arith.constant 0.000000e+00 : f32
    %140 = vector.broadcast %cst_106 : f32 to vector<32x256xf32>
    %141 = arith.maximumf %139, %140 : vector<32x256xf32>
    %142 = arith.truncf %141 : vector<32x256xf32> to vector<32x256xbf16>
    %cst_107 = arith.constant dense<0.000000e+00> : vector<16x256xf32>
    %143 = tpu.matmul %134, %142, %cst_107 {dimension_numbers = #tpu.dot_dimension_numbers<[1], [0], [0], [1], [0, 0, 1, 1], [], []>} : vector<16x32xbf16>, vector<32x256xbf16>, vector<16x256xf32> -> vector<16x256xf32>
    %144 = arith.truncf %143 : vector<16x256xf32> to vector<16x256xbf16>
    %cst_108 = arith.constant dense<0.000000e+00> : vector<16x64xf32>
    %145 = tpu.matmul %144, %135, %cst_108 {dimension_numbers = #tpu.dot_dimension_numbers<[1], [0], [0], [1], [0, 0, 1, 1], [], []>} : vector<16x256xbf16>, vector<256x64xbf16>, vector<16x64xf32> -> vector<16x64xf32>
    %cst_109 = arith.constant 0.000000e+00 : f32
    %146 = vector.broadcast %cst_109 : f32 to vector<32x512xf32>
    %c0_110 = arith.constant 0 : index
    %c0_111 = arith.constant 0 : index
    %147 = vector.load %arg72[%c0_110, %c0_111] : memref<32x512xf32, #tpu.memory_space<vmem>>, vector<32x512xf32>
    tpu.vector_store %arg72[%c0_110, %c0_111], %146 {strides = array<i32>} : memref<32x512xf32, #tpu.memory_space<vmem>>, vector<32x512xf32>,
    %c0_112 = arith.constant 0 : index
    %c0_113 = arith.constant 0 : index
    %148 = vector.load %arg23[%c0_112, %c0_113] : memref<16x1xf32, #tpu.memory_space<vmem>>, vector<16x1xf32>
    %c0_114 = arith.constant 0 : index
    %c0_115 = arith.constant 0 : index
    %149 = vector.load %arg24[%c0_114, %c0_115] : memref<16x1xf32, #tpu.memory_space<vmem>>, vector<16x1xf32>
    %c0_116 = arith.constant 0 : index
    %c0_117 = arith.constant 0 : index
    %150 = vector.load %arg25[%c0_116, %c0_117] : memref<32x16xbf16, #tpu.memory_space<vmem>>, vector<32x16xbf16>
    %c0_118 = arith.constant 0 : index
    %c0_119 = arith.constant 0 : index
    %151 = vector.load %arg26[%c0_118, %c0_119] : memref<32x1xf32, #tpu.memory_space<vmem>>, vector<32x1xf32>
    %c0_120 = arith.constant 0 : index
    %c0_121 = arith.constant 0 : index
    %152 = vector.load %arg27[%c0_120, %c0_121] : memref<32x1xf32, #tpu.memory_space<vmem>>, vector<32x1xf32>
    %c0_122 = arith.constant 0 : index
    %c0_123 = arith.constant 0 : index
    %153 = vector.load %arg28[%c0_122, %c0_123] : memref<8x288xbf16, #tpu.memory_space<vmem>>, vector<8x288xbf16>
    %154 = vector.broadcast %148 : vector<16x1xf32> to vector<16x64xf32>
    %155 = arith.mulf %145, %154 : vector<16x64xf32>
    %156 = vector.broadcast %149 : vector<16x1xf32> to vector<16x64xf32>
    %157 = arith.addf %155, %156 : vector<16x64xf32>
    %cst_124 = arith.constant 0.000000e+00 : f32
    %158 = vector.broadcast %cst_124 : f32 to vector<16x64xf32>
    %159 = arith.maximumf %157, %158 : vector<16x64xf32>
    %160 = arith.truncf %159 : vector<16x64xf32> to vector<16x64xbf16>
    %cst_125 = arith.constant dense<0.000000e+00> : vector<32x64xf32>
    %161 = tpu.matmul %150, %160, %cst_125 {dimension_numbers = #tpu.dot_dimension_numbers<[1], [0], [0], [1], [0, 0, 1, 1], [], []>} : vector<32x16xbf16>, vector<16x64xbf16>, vector<32x64xf32> -> vector<32x64xf32>
    %162 = vector.broadcast %151 : vector<32x1xf32> to vector<32x64xf32>
    %163 = arith.mulf %161, %162 : vector<32x64xf32>
    %164 = vector.broadcast %152 : vector<32x1xf32> to vector<32x64xf32>
    %165 = arith.addf %163, %164 : vector<32x64xf32>
    %cst_126 = arith.constant 0.000000e+00 : f32
    %166 = vector.broadcast %cst_126 : f32 to vector<32x64xf32>
    %167 = arith.maximumf %165, %166 : vector<32x64xf32>
    %c0_127 = arith.constant 0 : index
    %c128_128 = arith.constant 128 : index
    %168 = vector.load %arg72[%c0_127, %c128_128] : memref<32x512xf32, #tpu.memory_space<vmem>>, vector<32x64xf32>
    tpu.vector_store %arg72[%c0_127, %c128_128], %167 {strides = array<i32>} : memref<32x512xf32, #tpu.memory_space<vmem>>, vector<32x64xf32>,
    %169 = vector.extract_strided_slice %2 {offsets = [0, 0], sizes = [1, 64], strides = [1, 1]} : vector<2x64xf32> to vector<1x64xf32>
    %170 = vector.extract_strided_slice %2 {offsets = [1, 0], sizes = [1, 64], strides = [1, 1]} : vector<2x64xf32> to vector<1x64xf32>
    %c0_129 = arith.constant 0 : index
    %c119 = arith.constant 119 : index
    %171 = vector.load %arg72[%c0_129, %c119] : memref<32x512xf32, #tpu.memory_space<vmem>>, vector<32x64xf32>
    %172 = vector.broadcast %169 : vector<1x64xf32> to vector<32x64xf32>
    %173 = arith.mulf %171, %172 : vector<32x64xf32>
    %c0_130 = arith.constant 0 : index
    %c120 = arith.constant 120 : index
    %174 = vector.load %arg72[%c0_130, %c120] : memref<32x512xf32, #tpu.memory_space<vmem>>, vector<32x64xf32>
    %c0_131 = arith.constant 0 : index
    %c121 = arith.constant 121 : index
    %175 = vector.load %arg72[%c0_131, %c121] : memref<32x512xf32, #tpu.memory_space<vmem>>, vector<32x64xf32>
    %176 = vector.broadcast %170 : vector<1x64xf32> to vector<32x64xf32>
    %177 = arith.mulf %175, %176 : vector<32x64xf32>
    %c0_132 = arith.constant 0 : index
    %c127_133 = arith.constant 127 : index
    %178 = vector.load %arg72[%c0_132, %c127_133] : memref<32x512xf32, #tpu.memory_space<vmem>>, vector<32x64xf32>
    %179 = vector.broadcast %169 : vector<1x64xf32> to vector<32x64xf32>
    %180 = arith.mulf %178, %179 : vector<32x64xf32>
    %c0_134 = arith.constant 0 : index
    %c128_135 = arith.constant 128 : index
    %181 = vector.load %arg72[%c0_134, %c128_135] : memref<32x512xf32, #tpu.memory_space<vmem>>, vector<32x64xf32>
    %c0_136 = arith.constant 0 : index
    %c129_137 = arith.constant 129 : index
    %182 = vector.load %arg72[%c0_136, %c129_137] : memref<32x512xf32, #tpu.memory_space<vmem>>, vector<32x64xf32>
    %183 = vector.broadcast %170 : vector<1x64xf32> to vector<32x64xf32>
    %184 = arith.mulf %182, %183 : vector<32x64xf32>
    %c0_138 = arith.constant 0 : index
    %c135 = arith.constant 135 : index
    %185 = vector.load %arg72[%c0_138, %c135] : memref<32x512xf32, #tpu.memory_space<vmem>>, vector<32x64xf32>
    %186 = vector.broadcast %169 : vector<1x64xf32> to vector<32x64xf32>
    %187 = arith.mulf %185, %186 : vector<32x64xf32>
    %c0_139 = arith.constant 0 : index
    %c136 = arith.constant 136 : index
    %188 = vector.load %arg72[%c0_139, %c136] : memref<32x512xf32, #tpu.memory_space<vmem>>, vector<32x64xf32>
    %c0_140 = arith.constant 0 : index
    %c137 = arith.constant 137 : index
    %189 = vector.load %arg72[%c0_140, %c137] : memref<32x512xf32, #tpu.memory_space<vmem>>, vector<32x64xf32>
    %190 = vector.broadcast %170 : vector<1x64xf32> to vector<32x64xf32>
    %191 = arith.mulf %189, %190 : vector<32x64xf32>
    %192 = tpu.concatenate %173, %174, %177, %180, %181, %184, %187, %188, %191 in 0 : vector<32x64xf32>, vector<32x64xf32>, vector<32x64xf32>, vector<32x64xf32>, vector<32x64xf32>, vector<32x64xf32>, vector<32x64xf32>, vector<32x64xf32>, vector<32x64xf32> -> vector<288x64xf32>
    %193 = arith.truncf %192 : vector<288x64xf32> to vector<288x64xbf16>
    %cst_141 = arith.constant dense<0.000000e+00> : vector<8x64xf32>
    %194 = tpu.matmul %153, %193, %cst_141 {dimension_numbers = #tpu.dot_dimension_numbers<[1], [0], [0], [1], [0, 0, 1, 1], [], []>} : vector<8x288xbf16>, vector<288x64xbf16>, vector<8x64xf32> -> vector<8x64xf32>
    %195 = tpu.concatenate %145, %194 in 0 : vector<16x64xf32>, vector<8x64xf32> -> vector<24x64xf32>
    %c0_142 = arith.constant 0 : index
    %c0_143 = arith.constant 0 : index
    %196 = vector.load %arg29[%c0_142, %c0_143] : memref<24x1xf32, #tpu.memory_space<vmem>>, vector<24x1xf32>
    %c0_144 = arith.constant 0 : index
    %c0_145 = arith.constant 0 : index
    %197 = vector.load %arg30[%c0_144, %c0_145] : memref<24x1xf32, #tpu.memory_space<vmem>>, vector<24x1xf32>
    %c0_146 = arith.constant 0 : index
    %c0_147 = arith.constant 0 : index
    %198 = vector.load %arg31[%c0_146, %c0_147] : memref<32x24xbf16, #tpu.memory_space<vmem>>, vector<32x24xbf16>
    %c0_148 = arith.constant 0 : index
    %c0_149 = arith.constant 0 : index
    %199 = vector.load %arg32[%c0_148, %c0_149] : memref<32x1xf32, #tpu.memory_space<vmem>>, vector<32x1xf32>
    %c0_150 = arith.constant 0 : index
    %c0_151 = arith.constant 0 : index
    %200 = vector.load %arg33[%c0_150, %c0_151] : memref<32x1xf32, #tpu.memory_space<vmem>>, vector<32x1xf32>
    %c0_152 = arith.constant 0 : index
    %c0_153 = arith.constant 0 : index
    %201 = vector.load %arg34[%c0_152, %c0_153] : memref<8x288xbf16, #tpu.memory_space<vmem>>, vector<8x288xbf16>
    %202 = vector.broadcast %196 : vector<24x1xf32> to vector<24x64xf32>
    %203 = arith.mulf %195, %202 : vector<24x64xf32>
    %204 = vector.broadcast %197 : vector<24x1xf32> to vector<24x64xf32>
    %205 = arith.addf %203, %204 : vector<24x64xf32>
    %cst_154 = arith.constant 0.000000e+00 : f32
    %206 = vector.broadcast %cst_154 : f32 to vector<24x64xf32>
    %207 = arith.maximumf %205, %206 : vector<24x64xf32>
    %208 = arith.truncf %207 : vector<24x64xf32> to vector<24x64xbf16>
    %cst_155 = arith.constant dense<0.000000e+00> : vector<32x64xf32>
    %209 = tpu.matmul %198, %208, %cst_155 {dimension_numbers = #tpu.dot_dimension_numbers<[1], [0], [0], [1], [0, 0, 1, 1], [], []>} : vector<32x24xbf16>, vector<24x64xbf16>, vector<32x64xf32> -> vector<32x64xf32>
    %210 = vector.broadcast %199 : vector<32x1xf32> to vector<32x64xf32>
    %211 = arith.mulf %209, %210 : vector<32x64xf32>
    %212 = vector.broadcast %200 : vector<32x1xf32> to vector<32x64xf32>
    %213 = arith.addf %211, %212 : vector<32x64xf32>
    %cst_156 = arith.constant 0.000000e+00 : f32
    %214 = vector.broadcast %cst_156 : f32 to vector<32x64xf32>
    %215 = arith.maximumf %213, %214 : vector<32x64xf32>
    %c0_157 = arith.constant 0 : index
    %c128_158 = arith.constant 128 : index
    %216 = vector.load %arg72[%c0_157, %c128_158] : memref<32x512xf32, #tpu.memory_space<vmem>>, vector<32x64xf32>
    tpu.vector_store %arg72[%c0_157, %c128_158], %215 {strides = array<i32>} : memref<32x512xf32, #tpu.memory_space<vmem>>, vector<32x64xf32>,
    %217 = vector.extract_strided_slice %2 {offsets = [0, 0], sizes = [1, 64], strides = [1, 1]} : vector<2x64xf32> to vector<1x64xf32>
    %218 = vector.extract_strided_slice %2 {offsets = [1, 0], sizes = [1, 64], strides = [1, 1]} : vector<2x64xf32> to vector<1x64xf32>
    %c0_159 = arith.constant 0 : index
    %c119_160 = arith.constant 119 : index
    %219 = vector.load %arg72[%c0_159, %c119_160] : memref<32x512xf32, #tpu.memory_space<vmem>>, vector<32x64xf32>
    %220 = vector.broadcast %217 : vector<1x64xf32> to vector<32x64xf32>
    %221 = arith.mulf %219, %220 : vector<32x64xf32>
    %c0_161 = arith.constant 0 : index
    %c120_162 = arith.constant 120 : index
    %222 = vector.load %arg72[%c0_161, %c120_162] : memref<32x512xf32, #tpu.memory_space<vmem>>, vector<32x64xf32>
    %c0_163 = arith.constant 0 : index
    %c121_164 = arith.constant 121 : index
    %223 = vector.load %arg72[%c0_163, %c121_164] : memref<32x512xf32, #tpu.memory_space<vmem>>, vector<32x64xf32>
    %224 = vector.broadcast %218 : vector<1x64xf32> to vector<32x64xf32>
    %225 = arith.mulf %223, %224 : vector<32x64xf32>
    %c0_165 = arith.constant 0 : index
    %c127_166 = arith.constant 127 : index
    %226 = vector.load %arg72[%c0_165, %c127_166] : memref<32x512xf32, #tpu.memory_space<vmem>>, vector<32x64xf32>
    %227 = vector.broadcast %217 : vector<1x64xf32> to vector<32x64xf32>
    %228 = arith.mulf %226, %227 : vector<32x64xf32>
    %c0_167 = arith.constant 0 : index
    %c128_168 = arith.constant 128 : index
    %229 = vector.load %arg72[%c0_167, %c128_168] : memref<32x512xf32, #tpu.memory_space<vmem>>, vector<32x64xf32>
    %c0_169 = arith.constant 0 : index
    %c129_170 = arith.constant 129 : index
    %230 = vector.load %arg72[%c0_169, %c129_170] : memref<32x512xf32, #tpu.memory_space<vmem>>, vector<32x64xf32>
    %231 = vector.broadcast %218 : vector<1x64xf32> to vector<32x64xf32>
    %232 = arith.mulf %230, %231 : vector<32x64xf32>
    %c0_171 = arith.constant 0 : index
    %c135_172 = arith.constant 135 : index
    %233 = vector.load %arg72[%c0_171, %c135_172] : memref<32x512xf32, #tpu.memory_space<vmem>>, vector<32x64xf32>
    %234 = vector.broadcast %217 : vector<1x64xf32> to vector<32x64xf32>
    %235 = arith.mulf %233, %234 : vector<32x64xf32>
    %c0_173 = arith.constant 0 : index
    %c136_174 = arith.constant 136 : index
    %236 = vector.load %arg72[%c0_173, %c136_174] : memref<32x512xf32, #tpu.memory_space<vmem>>, vector<32x64xf32>
    %c0_175 = arith.constant 0 : index
    %c137_176 = arith.constant 137 : index
    %237 = vector.load %arg72[%c0_175, %c137_176] : memref<32x512xf32, #tpu.memory_space<vmem>>, vector<32x64xf32>
    %238 = vector.broadcast %218 : vector<1x64xf32> to vector<32x64xf32>
    %239 = arith.mulf %237, %238 : vector<32x64xf32>
    %240 = tpu.concatenate %221, %222, %225, %228, %229, %232, %235, %236, %239 in 0 : vector<32x64xf32>, vector<32x64xf32>, vector<32x64xf32>, vector<32x64xf32>, vector<32x64xf32>, vector<32x64xf32>, vector<32x64xf32>, vector<32x64xf32>, vector<32x64xf32> -> vector<288x64xf32>
    %241 = arith.truncf %240 : vector<288x64xf32> to vector<288x64xbf16>
    %cst_177 = arith.constant dense<0.000000e+00> : vector<8x64xf32>
    %242 = tpu.matmul %201, %241, %cst_177 {dimension_numbers = #tpu.dot_dimension_numbers<[1], [0], [0], [1], [0, 0, 1, 1], [], []>} : vector<8x288xbf16>, vector<288x64xbf16>, vector<8x64xf32> -> vector<8x64xf32>
    %243 = tpu.concatenate %195, %242 in 0 : vector<24x64xf32>, vector<8x64xf32> -> vector<32x64xf32>
    %c0_178 = arith.constant 0 : index
    %c0_179 = arith.constant 0 : index
    %244 = vector.load %arg35[%c0_178, %c0_179] : memref<32x1xf32, #tpu.memory_space<vmem>>, vector<32x1xf32>
    %c0_180 = arith.constant 0 : index
    %c0_181 = arith.constant 0 : index
    %245 = vector.load %arg36[%c0_180, %c0_181] : memref<32x1xf32, #tpu.memory_space<vmem>>, vector<32x1xf32>
    %c0_182 = arith.constant 0 : index
    %c0_183 = arith.constant 0 : index
    %246 = vector.load %arg37[%c0_182, %c0_183] : memref<16x32xbf16, #tpu.memory_space<vmem>>, vector<16x32xbf16>
    %c0_184 = arith.constant 0 : index
    %c0_185 = arith.constant 0 : index
    %247 = vector.load %arg38[%c0_184, %c0_185] : memref<64x16xbf16, #tpu.memory_space<vmem>>, vector<64x16xbf16>
    %248 = vector.broadcast %244 : vector<32x1xf32> to vector<32x64xf32>
    %249 = arith.mulf %243, %248 : vector<32x64xf32>
    %250 = vector.broadcast %245 : vector<32x1xf32> to vector<32x64xf32>
    %251 = arith.addf %249, %250 : vector<32x64xf32>
    %cst_186 = arith.constant 0.000000e+00 : f32
    %252 = vector.broadcast %cst_186 : f32 to vector<32x64xf32>
    %253 = arith.maximumf %251, %252 : vector<32x64xf32>
    %254 = arith.truncf %253 : vector<32x64xf32> to vector<32x64xbf16>
    %cst_187 = arith.constant dense<0.000000e+00> : vector<16x64xf32>
    %255 = tpu.matmul %246, %254, %cst_187 {dimension_numbers = #tpu.dot_dimension_numbers<[1], [0], [0], [1], [0, 0, 1, 1], [], []>} : vector<16x32xbf16>, vector<32x64xbf16>, vector<16x64xf32> -> vector<16x64xf32>
    %256 = arith.truncf %255 : vector<16x64xf32> to vector<16x64xbf16>
    %cst_188 = arith.constant dense<0.000000e+00> : vector<16x16xf32>
    %257 = tpu.matmul %256, %247, %cst_188 {dimension_numbers = #tpu.dot_dimension_numbers<[1], [0], [0], [1], [0, 0, 1, 1], [], []>} : vector<16x64xbf16>, vector<64x16xbf16>, vector<16x16xf32> -> vector<16x16xf32>
    %cst_189 = arith.constant 0.000000e+00 : f32
    %258 = vector.broadcast %cst_189 : f32 to vector<32x512xf32>
    %c0_190 = arith.constant 0 : index
    %c0_191 = arith.constant 0 : index
    %259 = vector.load %arg72[%c0_190, %c0_191] : memref<32x512xf32, #tpu.memory_space<vmem>>, vector<32x512xf32>
    tpu.vector_store %arg72[%c0_190, %c0_191], %258 {strides = array<i32>} : memref<32x512xf32, #tpu.memory_space<vmem>>, vector<32x512xf32>,
    %c0_192 = arith.constant 0 : index
    %c0_193 = arith.constant 0 : index
    %260 = vector.load %arg39[%c0_192, %c0_193] : memref<16x1xf32, #tpu.memory_space<vmem>>, vector<16x1xf32>
    %c0_194 = arith.constant 0 : index
    %c0_195 = arith.constant 0 : index
    %261 = vector.load %arg40[%c0_194, %c0_195] : memref<16x1xf32, #tpu.memory_space<vmem>>, vector<16x1xf32>
    %c0_196 = arith.constant 0 : index
    %c0_197 = arith.constant 0 : index
    %262 = vector.load %arg41[%c0_196, %c0_197] : memref<32x16xbf16, #tpu.memory_space<vmem>>, vector<32x16xbf16>
    %c0_198 = arith.constant 0 : index
    %c0_199 = arith.constant 0 : index
    %263 = vector.load %arg42[%c0_198, %c0_199] : memref<32x1xf32, #tpu.memory_space<vmem>>, vector<32x1xf32>
    %c0_200 = arith.constant 0 : index
    %c0_201 = arith.constant 0 : index
    %264 = vector.load %arg43[%c0_200, %c0_201] : memref<32x1xf32, #tpu.memory_space<vmem>>, vector<32x1xf32>
    %c0_202 = arith.constant 0 : index
    %c0_203 = arith.constant 0 : index
    %265 = vector.load %arg44[%c0_202, %c0_203] : memref<8x288xbf16, #tpu.memory_space<vmem>>, vector<8x288xbf16>
    %266 = vector.broadcast %260 : vector<16x1xf32> to vector<16x16xf32>
    %267 = arith.mulf %257, %266 : vector<16x16xf32>
    %268 = vector.broadcast %261 : vector<16x1xf32> to vector<16x16xf32>
    %269 = arith.addf %267, %268 : vector<16x16xf32>
    %cst_204 = arith.constant 0.000000e+00 : f32
    %270 = vector.broadcast %cst_204 : f32 to vector<16x16xf32>
    %271 = arith.maximumf %269, %270 : vector<16x16xf32>
    %272 = arith.truncf %271 : vector<16x16xf32> to vector<16x16xbf16>
    %cst_205 = arith.constant dense<0.000000e+00> : vector<32x16xf32>
    %273 = tpu.matmul %262, %272, %cst_205 {dimension_numbers = #tpu.dot_dimension_numbers<[1], [0], [0], [1], [0, 0, 1, 1], [], []>} : vector<32x16xbf16>, vector<16x16xbf16>, vector<32x16xf32> -> vector<32x16xf32>
    %274 = vector.broadcast %263 : vector<32x1xf32> to vector<32x16xf32>
    %275 = arith.mulf %273, %274 : vector<32x16xf32>
    %276 = vector.broadcast %264 : vector<32x1xf32> to vector<32x16xf32>
    %277 = arith.addf %275, %276 : vector<32x16xf32>
    %cst_206 = arith.constant 0.000000e+00 : f32
    %278 = vector.broadcast %cst_206 : f32 to vector<32x16xf32>
    %279 = arith.maximumf %277, %278 : vector<32x16xf32>
    %c0_207 = arith.constant 0 : index
    %c128_208 = arith.constant 128 : index
    %280 = vector.load %arg72[%c0_207, %c128_208] : memref<32x512xf32, #tpu.memory_space<vmem>>, vector<32x16xf32>
    tpu.vector_store %arg72[%c0_207, %c128_208], %279 {strides = array<i32>} : memref<32x512xf32, #tpu.memory_space<vmem>>, vector<32x16xf32>,
    %281 = vector.extract_strided_slice %3 {offsets = [0, 0], sizes = [1, 16], strides = [1, 1]} : vector<2x16xf32> to vector<1x16xf32>
    %282 = vector.extract_strided_slice %3 {offsets = [1, 0], sizes = [1, 16], strides = [1, 1]} : vector<2x16xf32> to vector<1x16xf32>
    %c0_209 = arith.constant 0 : index
    %c123 = arith.constant 123 : index
    %283 = vector.load %arg72[%c0_209, %c123] : memref<32x512xf32, #tpu.memory_space<vmem>>, vector<32x16xf32>
    %284 = vector.broadcast %281 : vector<1x16xf32> to vector<32x16xf32>
    %285 = arith.mulf %283, %284 : vector<32x16xf32>
    %c0_210 = arith.constant 0 : index
    %c124 = arith.constant 124 : index
    %286 = vector.load %arg72[%c0_210, %c124] : memref<32x512xf32, #tpu.memory_space<vmem>>, vector<32x16xf32>
    %c0_211 = arith.constant 0 : index
    %c125 = arith.constant 125 : index
    %287 = vector.load %arg72[%c0_211, %c125] : memref<32x512xf32, #tpu.memory_space<vmem>>, vector<32x16xf32>
    %288 = vector.broadcast %282 : vector<1x16xf32> to vector<32x16xf32>
    %289 = arith.mulf %287, %288 : vector<32x16xf32>
    %c0_212 = arith.constant 0 : index
    %c127_213 = arith.constant 127 : index
    %290 = vector.load %arg72[%c0_212, %c127_213] : memref<32x512xf32, #tpu.memory_space<vmem>>, vector<32x16xf32>
    %291 = vector.broadcast %281 : vector<1x16xf32> to vector<32x16xf32>
    %292 = arith.mulf %290, %291 : vector<32x16xf32>
    %c0_214 = arith.constant 0 : index
    %c128_215 = arith.constant 128 : index
    %293 = vector.load %arg72[%c0_214, %c128_215] : memref<32x512xf32, #tpu.memory_space<vmem>>, vector<32x16xf32>
    %c0_216 = arith.constant 0 : index
    %c129_217 = arith.constant 129 : index
    %294 = vector.load %arg72[%c0_216, %c129_217] : memref<32x512xf32, #tpu.memory_space<vmem>>, vector<32x16xf32>
    %295 = vector.broadcast %282 : vector<1x16xf32> to vector<32x16xf32>
    %296 = arith.mulf %294, %295 : vector<32x16xf32>
    %c0_218 = arith.constant 0 : index
    %c131 = arith.constant 131 : index
    %297 = vector.load %arg72[%c0_218, %c131] : memref<32x512xf32, #tpu.memory_space<vmem>>, vector<32x16xf32>
    %298 = vector.broadcast %281 : vector<1x16xf32> to vector<32x16xf32>
    %299 = arith.mulf %297, %298 : vector<32x16xf32>
    %c0_219 = arith.constant 0 : index
    %c132 = arith.constant 132 : index
    %300 = vector.load %arg72[%c0_219, %c132] : memref<32x512xf32, #tpu.memory_space<vmem>>, vector<32x16xf32>
    %c0_220 = arith.constant 0 : index
    %c133 = arith.constant 133 : index
    %301 = vector.load %arg72[%c0_220, %c133] : memref<32x512xf32, #tpu.memory_space<vmem>>, vector<32x16xf32>
    %302 = vector.broadcast %282 : vector<1x16xf32> to vector<32x16xf32>
    %303 = arith.mulf %301, %302 : vector<32x16xf32>
    %304 = tpu.concatenate %285, %286, %289, %292, %293, %296, %299, %300, %303 in 0 : vector<32x16xf32>, vector<32x16xf32>, vector<32x16xf32>, vector<32x16xf32>, vector<32x16xf32>, vector<32x16xf32>, vector<32x16xf32>, vector<32x16xf32>, vector<32x16xf32> -> vector<288x16xf32>
    %305 = arith.truncf %304 : vector<288x16xf32> to vector<288x16xbf16>
    %cst_221 = arith.constant dense<0.000000e+00> : vector<8x16xf32>
    %306 = tpu.matmul %265, %305, %cst_221 {dimension_numbers = #tpu.dot_dimension_numbers<[1], [0], [0], [1], [0, 0, 1, 1], [], []>} : vector<8x288xbf16>, vector<288x16xbf16>, vector<8x16xf32> -> vector<8x16xf32>
    %307 = tpu.concatenate %257, %306 in 0 : vector<16x16xf32>, vector<8x16xf32> -> vector<24x16xf32>
    %c0_222 = arith.constant 0 : index
    %c0_223 = arith.constant 0 : index
    %308 = vector.load %arg45[%c0_222, %c0_223] : memref<24x1xf32, #tpu.memory_space<vmem>>, vector<24x1xf32>
    %c0_224 = arith.constant 0 : index
    %c0_225 = arith.constant 0 : index
    %309 = vector.load %arg46[%c0_224, %c0_225] : memref<24x1xf32, #tpu.memory_space<vmem>>, vector<24x1xf32>
    %c0_226 = arith.constant 0 : index
    %c0_227 = arith.constant 0 : index
    %310 = vector.load %arg47[%c0_226, %c0_227] : memref<32x24xbf16, #tpu.memory_space<vmem>>, vector<32x24xbf16>
    %c0_228 = arith.constant 0 : index
    %c0_229 = arith.constant 0 : index
    %311 = vector.load %arg48[%c0_228, %c0_229] : memref<32x1xf32, #tpu.memory_space<vmem>>, vector<32x1xf32>
    %c0_230 = arith.constant 0 : index
    %c0_231 = arith.constant 0 : index
    %312 = vector.load %arg49[%c0_230, %c0_231] : memref<32x1xf32, #tpu.memory_space<vmem>>, vector<32x1xf32>
    %c0_232 = arith.constant 0 : index
    %c0_233 = arith.constant 0 : index
    %313 = vector.load %arg50[%c0_232, %c0_233] : memref<8x288xbf16, #tpu.memory_space<vmem>>, vector<8x288xbf16>
    %314 = vector.broadcast %308 : vector<24x1xf32> to vector<24x16xf32>
    %315 = arith.mulf %307, %314 : vector<24x16xf32>
    %316 = vector.broadcast %309 : vector<24x1xf32> to vector<24x16xf32>
    %317 = arith.addf %315, %316 : vector<24x16xf32>
    %cst_234 = arith.constant 0.000000e+00 : f32
    %318 = vector.broadcast %cst_234 : f32 to vector<24x16xf32>
    %319 = arith.maximumf %317, %318 : vector<24x16xf32>
    %320 = arith.truncf %319 : vector<24x16xf32> to vector<24x16xbf16>
    %cst_235 = arith.constant dense<0.000000e+00> : vector<32x16xf32>
    %321 = tpu.matmul %310, %320, %cst_235 {dimension_numbers = #tpu.dot_dimension_numbers<[1], [0], [0], [1], [0, 0, 1, 1], [], []>} : vector<32x24xbf16>, vector<24x16xbf16>, vector<32x16xf32> -> vector<32x16xf32>
    %322 = vector.broadcast %311 : vector<32x1xf32> to vector<32x16xf32>
    %323 = arith.mulf %321, %322 : vector<32x16xf32>
    %324 = vector.broadcast %312 : vector<32x1xf32> to vector<32x16xf32>
    %325 = arith.addf %323, %324 : vector<32x16xf32>
    %cst_236 = arith.constant 0.000000e+00 : f32
    %326 = vector.broadcast %cst_236 : f32 to vector<32x16xf32>
    %327 = arith.maximumf %325, %326 : vector<32x16xf32>
    %c0_237 = arith.constant 0 : index
    %c128_238 = arith.constant 128 : index
    %328 = vector.load %arg72[%c0_237, %c128_238] : memref<32x512xf32, #tpu.memory_space<vmem>>, vector<32x16xf32>
    tpu.vector_store %arg72[%c0_237, %c128_238], %327 {strides = array<i32>} : memref<32x512xf32, #tpu.memory_space<vmem>>, vector<32x16xf32>,
    %329 = vector.extract_strided_slice %3 {offsets = [0, 0], sizes = [1, 16], strides = [1, 1]} : vector<2x16xf32> to vector<1x16xf32>
    %330 = vector.extract_strided_slice %3 {offsets = [1, 0], sizes = [1, 16], strides = [1, 1]} : vector<2x16xf32> to vector<1x16xf32>
    %c0_239 = arith.constant 0 : index
    %c123_240 = arith.constant 123 : index
    %331 = vector.load %arg72[%c0_239, %c123_240] : memref<32x512xf32, #tpu.memory_space<vmem>>, vector<32x16xf32>
    %332 = vector.broadcast %329 : vector<1x16xf32> to vector<32x16xf32>
    %333 = arith.mulf %331, %332 : vector<32x16xf32>
    %c0_241 = arith.constant 0 : index
    %c124_242 = arith.constant 124 : index
    %334 = vector.load %arg72[%c0_241, %c124_242] : memref<32x512xf32, #tpu.memory_space<vmem>>, vector<32x16xf32>
    %c0_243 = arith.constant 0 : index
    %c125_244 = arith.constant 125 : index
    %335 = vector.load %arg72[%c0_243, %c125_244] : memref<32x512xf32, #tpu.memory_space<vmem>>, vector<32x16xf32>
    %336 = vector.broadcast %330 : vector<1x16xf32> to vector<32x16xf32>
    %337 = arith.mulf %335, %336 : vector<32x16xf32>
    %c0_245 = arith.constant 0 : index
    %c127_246 = arith.constant 127 : index
    %338 = vector.load %arg72[%c0_245, %c127_246] : memref<32x512xf32, #tpu.memory_space<vmem>>, vector<32x16xf32>
    %339 = vector.broadcast %329 : vector<1x16xf32> to vector<32x16xf32>
    %340 = arith.mulf %338, %339 : vector<32x16xf32>
    %c0_247 = arith.constant 0 : index
    %c128_248 = arith.constant 128 : index
    %341 = vector.load %arg72[%c0_247, %c128_248] : memref<32x512xf32, #tpu.memory_space<vmem>>, vector<32x16xf32>
    %c0_249 = arith.constant 0 : index
    %c129_250 = arith.constant 129 : index
    %342 = vector.load %arg72[%c0_249, %c129_250] : memref<32x512xf32, #tpu.memory_space<vmem>>, vector<32x16xf32>
    %343 = vector.broadcast %330 : vector<1x16xf32> to vector<32x16xf32>
    %344 = arith.mulf %342, %343 : vector<32x16xf32>
    %c0_251 = arith.constant 0 : index
    %c131_252 = arith.constant 131 : index
    %345 = vector.load %arg72[%c0_251, %c131_252] : memref<32x512xf32, #tpu.memory_space<vmem>>, vector<32x16xf32>
    %346 = vector.broadcast %329 : vector<1x16xf32> to vector<32x16xf32>
    %347 = arith.mulf %345, %346 : vector<32x16xf32>
    %c0_253 = arith.constant 0 : index
    %c132_254 = arith.constant 132 : index
    %348 = vector.load %arg72[%c0_253, %c132_254] : memref<32x512xf32, #tpu.memory_space<vmem>>, vector<32x16xf32>
    %c0_255 = arith.constant 0 : index
    %c133_256 = arith.constant 133 : index
    %349 = vector.load %arg72[%c0_255, %c133_256] : memref<32x512xf32, #tpu.memory_space<vmem>>, vector<32x16xf32>
    %350 = vector.broadcast %330 : vector<1x16xf32> to vector<32x16xf32>
    %351 = arith.mulf %349, %350 : vector<32x16xf32>
    %352 = tpu.concatenate %333, %334, %337, %340, %341, %344, %347, %348, %351 in 0 : vector<32x16xf32>, vector<32x16xf32>, vector<32x16xf32>, vector<32x16xf32>, vector<32x16xf32>, vector<32x16xf32>, vector<32x16xf32>, vector<32x16xf32>, vector<32x16xf32> -> vector<288x16xf32>
    %353 = arith.truncf %352 : vector<288x16xf32> to vector<288x16xbf16>
    %cst_257 = arith.constant dense<0.000000e+00> : vector<8x16xf32>
    %354 = tpu.matmul %313, %353, %cst_257 {dimension_numbers = #tpu.dot_dimension_numbers<[1], [0], [0], [1], [0, 0, 1, 1], [], []>} : vector<8x288xbf16>, vector<288x16xbf16>, vector<8x16xf32> -> vector<8x16xf32>
    %355 = tpu.concatenate %307, %354 in 0 : vector<24x16xf32>, vector<8x16xf32> -> vector<32x16xf32>
    %c0_258 = arith.constant 0 : index
    %c0_259 = arith.constant 0 : index
    %356 = vector.load %arg51[%c0_258, %c0_259] : memref<32x1xf32, #tpu.memory_space<vmem>>, vector<32x1xf32>
    %c0_260 = arith.constant 0 : index
    %c0_261 = arith.constant 0 : index
    %357 = vector.load %arg52[%c0_260, %c0_261] : memref<32x1xf32, #tpu.memory_space<vmem>>, vector<32x1xf32>
    %c0_262 = arith.constant 0 : index
    %c0_263 = arith.constant 0 : index
    %358 = vector.load %arg53[%c0_262, %c0_263] : memref<16x32xbf16, #tpu.memory_space<vmem>>, vector<16x32xbf16>
    %c0_264 = arith.constant 0 : index
    %c0_265 = arith.constant 0 : index
    %359 = vector.load %arg54[%c0_264, %c0_265] : memref<16x4xbf16, #tpu.memory_space<vmem>>, vector<16x4xbf16>
    %360 = vector.broadcast %356 : vector<32x1xf32> to vector<32x16xf32>
    %361 = arith.mulf %355, %360 : vector<32x16xf32>
    %362 = vector.broadcast %357 : vector<32x1xf32> to vector<32x16xf32>
    %363 = arith.addf %361, %362 : vector<32x16xf32>
    %cst_266 = arith.constant 0.000000e+00 : f32
    %364 = vector.broadcast %cst_266 : f32 to vector<32x16xf32>
    %365 = arith.maximumf %363, %364 : vector<32x16xf32>
    %366 = arith.truncf %365 : vector<32x16xf32> to vector<32x16xbf16>
    %cst_267 = arith.constant dense<0.000000e+00> : vector<16x16xf32>
    %367 = tpu.matmul %358, %366, %cst_267 {dimension_numbers = #tpu.dot_dimension_numbers<[1], [0], [0], [1], [0, 0, 1, 1], [], []>} : vector<16x32xbf16>, vector<32x16xbf16>, vector<16x16xf32> -> vector<16x16xf32>
    %368 = arith.truncf %367 : vector<16x16xf32> to vector<16x16xbf16>
    %cst_268 = arith.constant dense<0.000000e+00> : vector<16x4xf32>
    %369 = tpu.matmul %368, %359, %cst_268 {dimension_numbers = #tpu.dot_dimension_numbers<[1], [0], [0], [1], [0, 0, 1, 1], [], []>} : vector<16x16xbf16>, vector<16x4xbf16>, vector<16x4xf32> -> vector<16x4xf32>
    %cst_269 = arith.constant 0.000000e+00 : f32
    %370 = vector.broadcast %cst_269 : f32 to vector<32x512xf32>
    %c0_270 = arith.constant 0 : index
    %c0_271 = arith.constant 0 : index
    %371 = vector.load %arg72[%c0_270, %c0_271] : memref<32x512xf32, #tpu.memory_space<vmem>>, vector<32x512xf32>
    tpu.vector_store %arg72[%c0_270, %c0_271], %370 {strides = array<i32>} : memref<32x512xf32, #tpu.memory_space<vmem>>, vector<32x512xf32>,
    %c0_272 = arith.constant 0 : index
    %c0_273 = arith.constant 0 : index
    %372 = vector.load %arg55[%c0_272, %c0_273] : memref<16x1xf32, #tpu.memory_space<vmem>>, vector<16x1xf32>
    %c0_274 = arith.constant 0 : index
    %c0_275 = arith.constant 0 : index
    %373 = vector.load %arg56[%c0_274, %c0_275] : memref<16x1xf32, #tpu.memory_space<vmem>>, vector<16x1xf32>
    %c0_276 = arith.constant 0 : index
    %c0_277 = arith.constant 0 : index
    %374 = vector.load %arg57[%c0_276, %c0_277] : memref<32x16xbf16, #tpu.memory_space<vmem>>, vector<32x16xbf16>
    %c0_278 = arith.constant 0 : index
    %c0_279 = arith.constant 0 : index
    %375 = vector.load %arg58[%c0_278, %c0_279] : memref<32x1xf32, #tpu.memory_space<vmem>>, vector<32x1xf32>
    %c0_280 = arith.constant 0 : index
    %c0_281 = arith.constant 0 : index
    %376 = vector.load %arg59[%c0_280, %c0_281] : memref<32x1xf32, #tpu.memory_space<vmem>>, vector<32x1xf32>
    %c0_282 = arith.constant 0 : index
    %c0_283 = arith.constant 0 : index
    %377 = vector.load %arg60[%c0_282, %c0_283] : memref<8x288xbf16, #tpu.memory_space<vmem>>, vector<8x288xbf16>
    %378 = vector.broadcast %372 : vector<16x1xf32> to vector<16x4xf32>
    %379 = arith.mulf %369, %378 : vector<16x4xf32>
    %380 = vector.broadcast %373 : vector<16x1xf32> to vector<16x4xf32>
    %381 = arith.addf %379, %380 : vector<16x4xf32>
    %cst_284 = arith.constant 0.000000e+00 : f32
    %382 = vector.broadcast %cst_284 : f32 to vector<16x4xf32>
    %383 = arith.maximumf %381, %382 : vector<16x4xf32>
    %384 = arith.truncf %383 : vector<16x4xf32> to vector<16x4xbf16>
    %cst_285 = arith.constant dense<0.000000e+00> : vector<32x4xf32>
    %385 = tpu.matmul %374, %384, %cst_285 {dimension_numbers = #tpu.dot_dimension_numbers<[1], [0], [0], [1], [0, 0, 1, 1], [], []>} : vector<32x16xbf16>, vector<16x4xbf16>, vector<32x4xf32> -> vector<32x4xf32>
    %386 = vector.broadcast %375 : vector<32x1xf32> to vector<32x4xf32>
    %387 = arith.mulf %385, %386 : vector<32x4xf32>
    %388 = vector.broadcast %376 : vector<32x1xf32> to vector<32x4xf32>
    %389 = arith.addf %387, %388 : vector<32x4xf32>
    %cst_286 = arith.constant 0.000000e+00 : f32
    %390 = vector.broadcast %cst_286 : f32 to vector<32x4xf32>
    %391 = arith.maximumf %389, %390 : vector<32x4xf32>
    %c0_287 = arith.constant 0 : index
    %c128_288 = arith.constant 128 : index
    %392 = vector.load %arg72[%c0_287, %c128_288] : memref<32x512xf32, #tpu.memory_space<vmem>>, vector<32x4xf32>
    tpu.vector_store %arg72[%c0_287, %c128_288], %391 {strides = array<i32>} : memref<32x512xf32, #tpu.memory_space<vmem>>, vector<32x4xf32>,
    %393 = vector.extract_strided_slice %4 {offsets = [0, 0], sizes = [1, 4], strides = [1, 1]} : vector<2x4xf32> to vector<1x4xf32>
    %394 = vector.extract_strided_slice %4 {offsets = [1, 0], sizes = [1, 4], strides = [1, 1]} : vector<2x4xf32> to vector<1x4xf32>
    %c0_289 = arith.constant 0 : index
    %c125_290 = arith.constant 125 : index
    %395 = vector.load %arg72[%c0_289, %c125_290] : memref<32x512xf32, #tpu.memory_space<vmem>>, vector<32x4xf32>
    %396 = vector.broadcast %393 : vector<1x4xf32> to vector<32x4xf32>
    %397 = arith.mulf %395, %396 : vector<32x4xf32>
    %c0_291 = arith.constant 0 : index
    %c126 = arith.constant 126 : index
    %398 = vector.load %arg72[%c0_291, %c126] : memref<32x512xf32, #tpu.memory_space<vmem>>, vector<32x4xf32>
    %c0_292 = arith.constant 0 : index
    %c127_293 = arith.constant 127 : index
    %399 = vector.load %arg72[%c0_292, %c127_293] : memref<32x512xf32, #tpu.memory_space<vmem>>, vector<32x4xf32>
    %400 = vector.broadcast %394 : vector<1x4xf32> to vector<32x4xf32>
    %401 = arith.mulf %399, %400 : vector<32x4xf32>
    %c0_294 = arith.constant 0 : index
    %c127_295 = arith.constant 127 : index
    %402 = vector.load %arg72[%c0_294, %c127_295] : memref<32x512xf32, #tpu.memory_space<vmem>>, vector<32x4xf32>
    %403 = vector.broadcast %393 : vector<1x4xf32> to vector<32x4xf32>
    %404 = arith.mulf %402, %403 : vector<32x4xf32>
    %c0_296 = arith.constant 0 : index
    %c128_297 = arith.constant 128 : index
    %405 = vector.load %arg72[%c0_296, %c128_297] : memref<32x512xf32, #tpu.memory_space<vmem>>, vector<32x4xf32>
    %c0_298 = arith.constant 0 : index
    %c129_299 = arith.constant 129 : index
    %406 = vector.load %arg72[%c0_298, %c129_299] : memref<32x512xf32, #tpu.memory_space<vmem>>, vector<32x4xf32>
    %407 = vector.broadcast %394 : vector<1x4xf32> to vector<32x4xf32>
    %408 = arith.mulf %406, %407 : vector<32x4xf32>
    %c0_300 = arith.constant 0 : index
    %c129_301 = arith.constant 129 : index
    %409 = vector.load %arg72[%c0_300, %c129_301] : memref<32x512xf32, #tpu.memory_space<vmem>>, vector<32x4xf32>
    %410 = vector.broadcast %393 : vector<1x4xf32> to vector<32x4xf32>
    %411 = arith.mulf %409, %410 : vector<32x4xf32>
    %c0_302 = arith.constant 0 : index
    %c130 = arith.constant 130 : index
    %412 = vector.load %arg72[%c0_302, %c130] : memref<32x512xf32, #tpu.memory_space<vmem>>, vector<32x4xf32>
    %c0_303 = arith.constant 0 : index
    %c131_304 = arith.constant 131 : index
    %413 = vector.load %arg72[%c0_303, %c131_304] : memref<32x512xf32, #tpu.memory_space<vmem>>, vector<32x4xf32>
    %414 = vector.broadcast %394 : vector<1x4xf32> to vector<32x4xf32>
    %415 = arith.mulf %413, %414 : vector<32x4xf32>
    %416 = tpu.concatenate %397, %398, %401, %404, %405, %408, %411, %412, %415 in 0 : vector<32x4xf32>, vector<32x4xf32>, vector<32x4xf32>, vector<32x4xf32>, vector<32x4xf32>, vector<32x4xf32>, vector<32x4xf32>, vector<32x4xf32>, vector<32x4xf32> -> vector<288x4xf32>
    %417 = arith.truncf %416 : vector<288x4xf32> to vector<288x4xbf16>
    %cst_305 = arith.constant dense<0.000000e+00> : vector<8x4xf32>
    %418 = tpu.matmul %377, %417, %cst_305 {dimension_numbers = #tpu.dot_dimension_numbers<[1], [0], [0], [1], [0, 0, 1, 1], [], []>} : vector<8x288xbf16>, vector<288x4xbf16>, vector<8x4xf32> -> vector<8x4xf32>
    %419 = tpu.concatenate %369, %418 in 0 : vector<16x4xf32>, vector<8x4xf32> -> vector<24x4xf32>
    %c0_306 = arith.constant 0 : index
    %c0_307 = arith.constant 0 : index
    %420 = vector.load %arg61[%c0_306, %c0_307] : memref<24x1xf32, #tpu.memory_space<vmem>>, vector<24x1xf32>
    %c0_308 = arith.constant 0 : index
    %c0_309 = arith.constant 0 : index
    %421 = vector.load %arg62[%c0_308, %c0_309] : memref<24x1xf32, #tpu.memory_space<vmem>>, vector<24x1xf32>
    %c0_310 = arith.constant 0 : index
    %c0_311 = arith.constant 0 : index
    %422 = vector.load %arg63[%c0_310, %c0_311] : memref<32x24xbf16, #tpu.memory_space<vmem>>, vector<32x24xbf16>
    %c0_312 = arith.constant 0 : index
    %c0_313 = arith.constant 0 : index
    %423 = vector.load %arg64[%c0_312, %c0_313] : memref<32x1xf32, #tpu.memory_space<vmem>>, vector<32x1xf32>
    %c0_314 = arith.constant 0 : index
    %c0_315 = arith.constant 0 : index
    %424 = vector.load %arg65[%c0_314, %c0_315] : memref<32x1xf32, #tpu.memory_space<vmem>>, vector<32x1xf32>
    %c0_316 = arith.constant 0 : index
    %c0_317 = arith.constant 0 : index
    %425 = vector.load %arg66[%c0_316, %c0_317] : memref<8x288xbf16, #tpu.memory_space<vmem>>, vector<8x288xbf16>
    %426 = vector.broadcast %420 : vector<24x1xf32> to vector<24x4xf32>
    %427 = arith.mulf %419, %426 : vector<24x4xf32>
    %428 = vector.broadcast %421 : vector<24x1xf32> to vector<24x4xf32>
    %429 = arith.addf %427, %428 : vector<24x4xf32>
    %cst_318 = arith.constant 0.000000e+00 : f32
    %430 = vector.broadcast %cst_318 : f32 to vector<24x4xf32>
    %431 = arith.maximumf %429, %430 : vector<24x4xf32>
    %432 = arith.truncf %431 : vector<24x4xf32> to vector<24x4xbf16>
    %cst_319 = arith.constant dense<0.000000e+00> : vector<32x4xf32>
    %433 = tpu.matmul %422, %432, %cst_319 {dimension_numbers = #tpu.dot_dimension_numbers<[1], [0], [0], [1], [0, 0, 1, 1], [], []>} : vector<32x24xbf16>, vector<24x4xbf16>, vector<32x4xf32> -> vector<32x4xf32>
    %434 = vector.broadcast %423 : vector<32x1xf32> to vector<32x4xf32>
    %435 = arith.mulf %433, %434 : vector<32x4xf32>
    %436 = vector.broadcast %424 : vector<32x1xf32> to vector<32x4xf32>
    %437 = arith.addf %435, %436 : vector<32x4xf32>
    %cst_320 = arith.constant 0.000000e+00 : f32
    %438 = vector.broadcast %cst_320 : f32 to vector<32x4xf32>
    %439 = arith.maximumf %437, %438 : vector<32x4xf32>
    %c0_321 = arith.constant 0 : index
    %c128_322 = arith.constant 128 : index
    %440 = vector.load %arg72[%c0_321, %c128_322] : memref<32x512xf32, #tpu.memory_space<vmem>>, vector<32x4xf32>
    tpu.vector_store %arg72[%c0_321, %c128_322], %439 {strides = array<i32>} : memref<32x512xf32, #tpu.memory_space<vmem>>, vector<32x4xf32>,
    %441 = vector.extract_strided_slice %4 {offsets = [0, 0], sizes = [1, 4], strides = [1, 1]} : vector<2x4xf32> to vector<1x4xf32>
    %442 = vector.extract_strided_slice %4 {offsets = [1, 0], sizes = [1, 4], strides = [1, 1]} : vector<2x4xf32> to vector<1x4xf32>
    %c0_323 = arith.constant 0 : index
    %c125_324 = arith.constant 125 : index
    %443 = vector.load %arg72[%c0_323, %c125_324] : memref<32x512xf32, #tpu.memory_space<vmem>>, vector<32x4xf32>
    %444 = vector.broadcast %441 : vector<1x4xf32> to vector<32x4xf32>
    %445 = arith.mulf %443, %444 : vector<32x4xf32>
    %c0_325 = arith.constant 0 : index
    %c126_326 = arith.constant 126 : index
    %446 = vector.load %arg72[%c0_325, %c126_326] : memref<32x512xf32, #tpu.memory_space<vmem>>, vector<32x4xf32>
    %c0_327 = arith.constant 0 : index
    %c127_328 = arith.constant 127 : index
    %447 = vector.load %arg72[%c0_327, %c127_328] : memref<32x512xf32, #tpu.memory_space<vmem>>, vector<32x4xf32>
    %448 = vector.broadcast %442 : vector<1x4xf32> to vector<32x4xf32>
    %449 = arith.mulf %447, %448 : vector<32x4xf32>
    %c0_329 = arith.constant 0 : index
    %c127_330 = arith.constant 127 : index
    %450 = vector.load %arg72[%c0_329, %c127_330] : memref<32x512xf32, #tpu.memory_space<vmem>>, vector<32x4xf32>
    %451 = vector.broadcast %441 : vector<1x4xf32> to vector<32x4xf32>
    %452 = arith.mulf %450, %451 : vector<32x4xf32>
    %c0_331 = arith.constant 0 : index
    %c128_332 = arith.constant 128 : index
    %453 = vector.load %arg72[%c0_331, %c128_332] : memref<32x512xf32, #tpu.memory_space<vmem>>, vector<32x4xf32>
    %c0_333 = arith.constant 0 : index
    %c129_334 = arith.constant 129 : index
    %454 = vector.load %arg72[%c0_333, %c129_334] : memref<32x512xf32, #tpu.memory_space<vmem>>, vector<32x4xf32>
    %455 = vector.broadcast %442 : vector<1x4xf32> to vector<32x4xf32>
    %456 = arith.mulf %454, %455 : vector<32x4xf32>
    %c0_335 = arith.constant 0 : index
    %c129_336 = arith.constant 129 : index
    %457 = vector.load %arg72[%c0_335, %c129_336] : memref<32x512xf32, #tpu.memory_space<vmem>>, vector<32x4xf32>
    %458 = vector.broadcast %441 : vector<1x4xf32> to vector<32x4xf32>
    %459 = arith.mulf %457, %458 : vector<32x4xf32>
    %c0_337 = arith.constant 0 : index
    %c130_338 = arith.constant 130 : index
    %460 = vector.load %arg72[%c0_337, %c130_338] : memref<32x512xf32, #tpu.memory_space<vmem>>, vector<32x4xf32>
    %c0_339 = arith.constant 0 : index
    %c131_340 = arith.constant 131 : index
    %461 = vector.load %arg72[%c0_339, %c131_340] : memref<32x512xf32, #tpu.memory_space<vmem>>, vector<32x4xf32>
    %462 = vector.broadcast %442 : vector<1x4xf32> to vector<32x4xf32>
    %463 = arith.mulf %461, %462 : vector<32x4xf32>
    %464 = tpu.concatenate %445, %446, %449, %452, %453, %456, %459, %460, %463 in 0 : vector<32x4xf32>, vector<32x4xf32>, vector<32x4xf32>, vector<32x4xf32>, vector<32x4xf32>, vector<32x4xf32>, vector<32x4xf32>, vector<32x4xf32>, vector<32x4xf32> -> vector<288x4xf32>
    %465 = arith.truncf %464 : vector<288x4xf32> to vector<288x4xbf16>
    %cst_341 = arith.constant dense<0.000000e+00> : vector<8x4xf32>
    %466 = tpu.matmul %425, %465, %cst_341 {dimension_numbers = #tpu.dot_dimension_numbers<[1], [0], [0], [1], [0, 0, 1, 1], [], []>} : vector<8x288xbf16>, vector<288x4xbf16>, vector<8x4xf32> -> vector<8x4xf32>
    %467 = tpu.concatenate %419, %466 in 0 : vector<24x4xf32>, vector<8x4xf32> -> vector<32x4xf32>
    %c0_342 = arith.constant 0 : index
    %c0_343 = arith.constant 0 : index
    %468 = vector.load %arg67[%c0_342, %c0_343] : memref<32x1xf32, #tpu.memory_space<vmem>>, vector<32x1xf32>
    %c0_344 = arith.constant 0 : index
    %c0_345 = arith.constant 0 : index
    %469 = vector.load %arg68[%c0_344, %c0_345] : memref<32x1xf32, #tpu.memory_space<vmem>>, vector<32x1xf32>
    %c0_346 = arith.constant 0 : index
    %c0_347 = arith.constant 0 : index
    %470 = vector.load %arg69[%c0_346, %c0_347] : memref<10x32xbf16, #tpu.memory_space<vmem>>, vector<10x32xbf16>
    %c0_348 = arith.constant 0 : index
    %c0_349 = arith.constant 0 : index
    %471 = vector.load %arg70[%c0_348, %c0_349] : memref<10x1xf32, #tpu.memory_space<vmem>>, vector<10x1xf32>
    %472 = vector.broadcast %468 : vector<32x1xf32> to vector<32x4xf32>
    %473 = arith.mulf %467, %472 : vector<32x4xf32>
    %474 = vector.broadcast %469 : vector<32x1xf32> to vector<32x4xf32>
    %475 = arith.addf %473, %474 : vector<32x4xf32>
    %cst_350 = arith.constant 0.000000e+00 : f32
    %476 = vector.broadcast %cst_350 : f32 to vector<32x4xf32>
    %477 = arith.maximumf %475, %476 : vector<32x4xf32>
    %cst_351 = arith.constant dense<0.000000e+00> : vector<32xf32>
    %478 = vector.multi_reduction <add>, %477, %cst_351 [1] : vector<32x4xf32> to vector<32xf32>
    %479 = vector.shape_cast %478 : vector<32xf32> to vector<32x1xf32>
    %cst_352 = arith.constant 4.000000e+00 : f32
    %480 = vector.broadcast %cst_352 : f32 to vector<32x1xf32>
    %481 = arith.divf %479, %480 : vector<32x1xf32>
    %482 = arith.truncf %481 : vector<32x1xf32> to vector<32x1xbf16>
    %cst_353 = arith.constant dense<0.000000e+00> : vector<10x1xf32>
    %483 = tpu.matmul %470, %482, %cst_353 {dimension_numbers = #tpu.dot_dimension_numbers<[1], [0], [0], [1], [0, 0, 1, 1], [], []>} : vector<10x32xbf16>, vector<32x1xbf16>, vector<10x1xf32> -> vector<10x1xf32>
    %484 = arith.addf %483, %471 : vector<10x1xf32>
    %c0_354 = arith.constant 0 : index
    %c0_355 = arith.constant 0 : index
    %c0_356 = arith.constant 0 : index
    %485 = vector.load %arg71[%c0_354, %c0_355, %c0_356] : memref<1x10x1xf32, #tpu.memory_space<vmem>>, vector<1x10x1xf32>
    %486 = vector.shape_cast %485 : vector<1x10x1xf32> to vector<10x1xf32>
    %487 = vector.shape_cast %484 : vector<10x1xf32> to vector<1x10x1xf32>
    tpu.vector_store %arg71[%c0_354, %c0_355, %c0_356], %487 {strides = array<i32>} : memref<1x10x1xf32, #tpu.memory_space<vmem>>, vector<1x10x1xf32>,
    return
  }
  func.func @transform_0(%arg0: i32) -> (i32, i32, i32) {
    %c0_i32 = arith.constant 0 : i32
    %c0_i32_0 = arith.constant 0 : i32
    %c0_i32_1 = arith.constant 0 : i32
    return %arg0, %c0_i32, %c0_i32_0 : i32, i32, i32
  }
  func.func @transform_1(%arg0: i32) -> (i32, i32) {
    %c0_i32 = arith.constant 0 : i32
    %c0_i32_0 = arith.constant 0 : i32
    %c0_i32_1 = arith.constant 0 : i32
    return %c0_i32, %c0_i32_0 : i32, i32
  }
  func.func @transform_2(%arg0: i32) -> (i32, i32) {
    %c0_i32 = arith.constant 0 : i32
    %c0_i32_0 = arith.constant 0 : i32
    %c0_i32_1 = arith.constant 0 : i32
    return %c0_i32, %c0_i32_0 : i32, i32
  }
  func.func @transform_3(%arg0: i32) -> (i32, i32) {
    %c0_i32 = arith.constant 0 : i32
    %c0_i32_0 = arith.constant 0 : i32
    %c0_i32_1 = arith.constant 0 : i32
    return %c0_i32, %c0_i32_0 : i32, i32
  }
  func.func @transform_4(%arg0: i32) -> (i32, i32) {
    %c0_i32 = arith.constant 0 : i32
    %c0_i32_0 = arith.constant 0 : i32
    %c0_i32_1 = arith.constant 0 : i32
    return %c0_i32, %c0_i32_0 : i32, i32
  }
  func.func @transform_5(%arg0: i32) -> (i32, i32) {
    %c0_i32 = arith.constant 0 : i32
    %c0_i32_0 = arith.constant 0 : i32
    %c0_i32_1 = arith.constant 0 : i32
    return %c0_i32, %c0_i32_0 : i32, i32
  }
  func.func @transform_6(%arg0: i32) -> (i32, i32) {
    %c0_i32 = arith.constant 0 : i32
    %c0_i32_0 = arith.constant 0 : i32
    %c0_i32_1 = arith.constant 0 : i32
    return %c0_i32, %c0_i32_0 : i32, i32
  }
  func.func @transform_7(%arg0: i32) -> (i32, i32) {
    %c0_i32 = arith.constant 0 : i32
    %c0_i32_0 = arith.constant 0 : i32
    %c0_i32_1 = arith.constant 0 : i32
    return %c0_i32, %c0_i32_0 : i32, i32
  }
  func.func @transform_8(%arg0: i32) -> (i32, i32) {
    %c0_i32 = arith.constant 0 : i32
    %c0_i32_0 = arith.constant 0 : i32
    %c0_i32_1 = arith.constant 0 : i32
    return %c0_i32, %c0_i32_0 : i32, i32
  }
  func.func @transform_9(%arg0: i32) -> (i32, i32) {
    %c0_i32 = arith.constant 0 : i32
    %c0_i32_0 = arith.constant 0 : i32
    %c0_i32_1 = arith.constant 0 : i32
    return %c0_i32, %c0_i32_0 : i32, i32
  }
  func.func @transform_10(%arg0: i32) -> (i32, i32) {
    %c0_i32 = arith.constant 0 : i32
    %c0_i32_0 = arith.constant 0 : i32
    %c0_i32_1 = arith.constant 0 : i32
    return %c0_i32, %c0_i32_0 : i32, i32
  }
  func.func @transform_11(%arg0: i32) -> (i32, i32) {
    %c0_i32 = arith.constant 0 : i32
    %c0_i32_0 = arith.constant 0 : i32
    %c0_i32_1 = arith.constant 0 : i32
    return %c0_i32, %c0_i32_0 : i32, i32
  }
  func.func @transform_12(%arg0: i32) -> (i32, i32) {
    %c0_i32 = arith.constant 0 : i32
    %c0_i32_0 = arith.constant 0 : i32
    %c0_i32_1 = arith.constant 0 : i32
    return %c0_i32, %c0_i32_0 : i32, i32
  }
  func.func @transform_13(%arg0: i32) -> (i32, i32) {
    %c0_i32 = arith.constant 0 : i32
    %c0_i32_0 = arith.constant 0 : i32
    %c0_i32_1 = arith.constant 0 : i32
    return %c0_i32, %c0_i32_0 : i32, i32
  }
  func.func @transform_14(%arg0: i32) -> (i32, i32) {
    %c0_i32 = arith.constant 0 : i32
    %c0_i32_0 = arith.constant 0 : i32
    %c0_i32_1 = arith.constant 0 : i32
    return %c0_i32, %c0_i32_0 : i32, i32
  }
  func.func @transform_15(%arg0: i32) -> (i32, i32) {
    %c0_i32 = arith.constant 0 : i32
    %c0_i32_0 = arith.constant 0 : i32
    %c0_i32_1 = arith.constant 0 : i32
    return %c0_i32, %c0_i32_0 : i32, i32
  }
  func.func @transform_16(%arg0: i32) -> (i32, i32) {
    %c0_i32 = arith.constant 0 : i32
    %c0_i32_0 = arith.constant 0 : i32
    %c0_i32_1 = arith.constant 0 : i32
    return %c0_i32, %c0_i32_0 : i32, i32
  }
  func.func @transform_17(%arg0: i32) -> (i32, i32) {
    %c0_i32 = arith.constant 0 : i32
    %c0_i32_0 = arith.constant 0 : i32
    %c0_i32_1 = arith.constant 0 : i32
    return %c0_i32, %c0_i32_0 : i32, i32
  }
  func.func @transform_18(%arg0: i32) -> (i32, i32) {
    %c0_i32 = arith.constant 0 : i32
    %c0_i32_0 = arith.constant 0 : i32
    %c0_i32_1 = arith.constant 0 : i32
    return %c0_i32, %c0_i32_0 : i32, i32
  }
  func.func @transform_19(%arg0: i32) -> (i32, i32) {
    %c0_i32 = arith.constant 0 : i32
    %c0_i32_0 = arith.constant 0 : i32
    %c0_i32_1 = arith.constant 0 : i32
    return %c0_i32, %c0_i32_0 : i32, i32
  }
  func.func @transform_20(%arg0: i32) -> (i32, i32) {
    %c0_i32 = arith.constant 0 : i32
    %c0_i32_0 = arith.constant 0 : i32
    %c0_i32_1 = arith.constant 0 : i32
    return %c0_i32, %c0_i32_0 : i32, i32
  }
  func.func @transform_21(%arg0: i32) -> (i32, i32) {
    %c0_i32 = arith.constant 0 : i32
    %c0_i32_0 = arith.constant 0 : i32
    %c0_i32_1 = arith.constant 0 : i32
    return %c0_i32, %c0_i32_0 : i32, i32
  }
  func.func @transform_22(%arg0: i32) -> (i32, i32) {
    %c0_i32 = arith.constant 0 : i32
    %c0_i32_0 = arith.constant 0 : i32
    %c0_i32_1 = arith.constant 0 : i32
    return %c0_i32, %c0_i32_0 : i32, i32
  }
  func.func @transform_23(%arg0: i32) -> (i32, i32) {
    %c0_i32 = arith.constant 0 : i32
    %c0_i32_0 = arith.constant 0 : i32
    %c0_i32_1 = arith.constant 0 : i32
    return %c0_i32, %c0_i32_0 : i32, i32
  }
  func.func @transform_24(%arg0: i32) -> (i32, i32) {
    %c0_i32 = arith.constant 0 : i32
    %c0_i32_0 = arith.constant 0 : i32
    %c0_i32_1 = arith.constant 0 : i32
    return %c0_i32, %c0_i32_0 : i32, i32
  }
  func.func @transform_25(%arg0: i32) -> (i32, i32) {
    %c0_i32 = arith.constant 0 : i32
    %c0_i32_0 = arith.constant 0 : i32
    %c0_i32_1 = arith.constant 0 : i32
    return %c0_i32, %c0_i32_0 : i32, i32
  }
  func.func @transform_26(%arg0: i32) -> (i32, i32) {
    %c0_i32 = arith.constant 0 : i32
    %c0_i32_0 = arith.constant 0 : i32
    %c0_i32_1 = arith.constant 0 : i32
    return %c0_i32, %c0_i32_0 : i32, i32
  }
  func.func @transform_27(%arg0: i32) -> (i32, i32) {
    %c0_i32 = arith.constant 0 : i32
    %c0_i32_0 = arith.constant 0 : i32
    %c0_i32_1 = arith.constant 0 : i32
    return %c0_i32, %c0_i32_0 : i32, i32
  }
  func.func @transform_28(%arg0: i32) -> (i32, i32) {
    %c0_i32 = arith.constant 0 : i32
    %c0_i32_0 = arith.constant 0 : i32
    %c0_i32_1 = arith.constant 0 : i32
    return %c0_i32, %c0_i32_0 : i32, i32
  }
  func.func @transform_29(%arg0: i32) -> (i32, i32) {
    %c0_i32 = arith.constant 0 : i32
    %c0_i32_0 = arith.constant 0 : i32
    %c0_i32_1 = arith.constant 0 : i32
    return %c0_i32, %c0_i32_0 : i32, i32
  }
  func.func @transform_30(%arg0: i32) -> (i32, i32) {
    %c0_i32 = arith.constant 0 : i32
    %c0_i32_0 = arith.constant 0 : i32
    %c0_i32_1 = arith.constant 0 : i32
    return %c0_i32, %c0_i32_0 : i32, i32
  }
  func.func @transform_31(%arg0: i32) -> (i32, i32) {
    %c0_i32 = arith.constant 0 : i32
    %c0_i32_0 = arith.constant 0 : i32
    %c0_i32_1 = arith.constant 0 : i32
    return %c0_i32, %c0_i32_0 : i32, i32
  }
  func.func @transform_32(%arg0: i32) -> (i32, i32) {
    %c0_i32 = arith.constant 0 : i32
    %c0_i32_0 = arith.constant 0 : i32
    %c0_i32_1 = arith.constant 0 : i32
    return %c0_i32, %c0_i32_0 : i32, i32
  }
  func.func @transform_33(%arg0: i32) -> (i32, i32) {
    %c0_i32 = arith.constant 0 : i32
    %c0_i32_0 = arith.constant 0 : i32
    %c0_i32_1 = arith.constant 0 : i32
    return %c0_i32, %c0_i32_0 : i32, i32
  }
  func.func @transform_34(%arg0: i32) -> (i32, i32) {
    %c0_i32 = arith.constant 0 : i32
    %c0_i32_0 = arith.constant 0 : i32
    %c0_i32_1 = arith.constant 0 : i32
    return %c0_i32, %c0_i32_0 : i32, i32
  }
  func.func @transform_35(%arg0: i32) -> (i32, i32) {
    %c0_i32 = arith.constant 0 : i32
    %c0_i32_0 = arith.constant 0 : i32
    %c0_i32_1 = arith.constant 0 : i32
    return %c0_i32, %c0_i32_0 : i32, i32
  }
  func.func @transform_36(%arg0: i32) -> (i32, i32) {
    %c0_i32 = arith.constant 0 : i32
    %c0_i32_0 = arith.constant 0 : i32
    %c0_i32_1 = arith.constant 0 : i32
    return %c0_i32, %c0_i32_0 : i32, i32
  }
  func.func @transform_37(%arg0: i32) -> (i32, i32) {
    %c0_i32 = arith.constant 0 : i32
    %c0_i32_0 = arith.constant 0 : i32
    %c0_i32_1 = arith.constant 0 : i32
    return %c0_i32, %c0_i32_0 : i32, i32
  }
  func.func @transform_38(%arg0: i32) -> (i32, i32) {
    %c0_i32 = arith.constant 0 : i32
    %c0_i32_0 = arith.constant 0 : i32
    %c0_i32_1 = arith.constant 0 : i32
    return %c0_i32, %c0_i32_0 : i32, i32
  }
  func.func @transform_39(%arg0: i32) -> (i32, i32) {
    %c0_i32 = arith.constant 0 : i32
    %c0_i32_0 = arith.constant 0 : i32
    %c0_i32_1 = arith.constant 0 : i32
    return %c0_i32, %c0_i32_0 : i32, i32
  }
  func.func @transform_40(%arg0: i32) -> (i32, i32) {
    %c0_i32 = arith.constant 0 : i32
    %c0_i32_0 = arith.constant 0 : i32
    %c0_i32_1 = arith.constant 0 : i32
    return %c0_i32, %c0_i32_0 : i32, i32
  }
  func.func @transform_41(%arg0: i32) -> (i32, i32) {
    %c0_i32 = arith.constant 0 : i32
    %c0_i32_0 = arith.constant 0 : i32
    %c0_i32_1 = arith.constant 0 : i32
    return %c0_i32, %c0_i32_0 : i32, i32
  }
  func.func @transform_42(%arg0: i32) -> (i32, i32) {
    %c0_i32 = arith.constant 0 : i32
    %c0_i32_0 = arith.constant 0 : i32
    %c0_i32_1 = arith.constant 0 : i32
    return %c0_i32, %c0_i32_0 : i32, i32
  }
  func.func @transform_43(%arg0: i32) -> (i32, i32) {
    %c0_i32 = arith.constant 0 : i32
    %c0_i32_0 = arith.constant 0 : i32
    %c0_i32_1 = arith.constant 0 : i32
    return %c0_i32, %c0_i32_0 : i32, i32
  }
  func.func @transform_44(%arg0: i32) -> (i32, i32) {
    %c0_i32 = arith.constant 0 : i32
    %c0_i32_0 = arith.constant 0 : i32
    %c0_i32_1 = arith.constant 0 : i32
    return %c0_i32, %c0_i32_0 : i32, i32
  }
  func.func @transform_45(%arg0: i32) -> (i32, i32) {
    %c0_i32 = arith.constant 0 : i32
    %c0_i32_0 = arith.constant 0 : i32
    %c0_i32_1 = arith.constant 0 : i32
    return %c0_i32, %c0_i32_0 : i32, i32
  }
  func.func @transform_46(%arg0: i32) -> (i32, i32) {
    %c0_i32 = arith.constant 0 : i32
    %c0_i32_0 = arith.constant 0 : i32
    %c0_i32_1 = arith.constant 0 : i32
    return %c0_i32, %c0_i32_0 : i32, i32
  }
  func.func @transform_47(%arg0: i32) -> (i32, i32) {
    %c0_i32 = arith.constant 0 : i32
    %c0_i32_0 = arith.constant 0 : i32
    %c0_i32_1 = arith.constant 0 : i32
    return %c0_i32, %c0_i32_0 : i32, i32
  }
  func.func @transform_48(%arg0: i32) -> (i32, i32) {
    %c0_i32 = arith.constant 0 : i32
    %c0_i32_0 = arith.constant 0 : i32
    %c0_i32_1 = arith.constant 0 : i32
    return %c0_i32, %c0_i32_0 : i32, i32
  }
  func.func @transform_49(%arg0: i32) -> (i32, i32) {
    %c0_i32 = arith.constant 0 : i32
    %c0_i32_0 = arith.constant 0 : i32
    %c0_i32_1 = arith.constant 0 : i32
    return %c0_i32, %c0_i32_0 : i32, i32
  }
  func.func @transform_50(%arg0: i32) -> (i32, i32) {
    %c0_i32 = arith.constant 0 : i32
    %c0_i32_0 = arith.constant 0 : i32
    %c0_i32_1 = arith.constant 0 : i32
    return %c0_i32, %c0_i32_0 : i32, i32
  }
  func.func @transform_51(%arg0: i32) -> (i32, i32) {
    %c0_i32 = arith.constant 0 : i32
    %c0_i32_0 = arith.constant 0 : i32
    %c0_i32_1 = arith.constant 0 : i32
    return %c0_i32, %c0_i32_0 : i32, i32
  }
  func.func @transform_52(%arg0: i32) -> (i32, i32) {
    %c0_i32 = arith.constant 0 : i32
    %c0_i32_0 = arith.constant 0 : i32
    %c0_i32_1 = arith.constant 0 : i32
    return %c0_i32, %c0_i32_0 : i32, i32
  }
  func.func @transform_53(%arg0: i32) -> (i32, i32) {
    %c0_i32 = arith.constant 0 : i32
    %c0_i32_0 = arith.constant 0 : i32
    %c0_i32_1 = arith.constant 0 : i32
    return %c0_i32, %c0_i32_0 : i32, i32
  }
  func.func @transform_54(%arg0: i32) -> (i32, i32) {
    %c0_i32 = arith.constant 0 : i32
    %c0_i32_0 = arith.constant 0 : i32
    %c0_i32_1 = arith.constant 0 : i32
    return %c0_i32, %c0_i32_0 : i32, i32
  }
  func.func @transform_55(%arg0: i32) -> (i32, i32) {
    %c0_i32 = arith.constant 0 : i32
    %c0_i32_0 = arith.constant 0 : i32
    %c0_i32_1 = arith.constant 0 : i32
    return %c0_i32, %c0_i32_0 : i32, i32
  }
  func.func @transform_56(%arg0: i32) -> (i32, i32) {
    %c0_i32 = arith.constant 0 : i32
    %c0_i32_0 = arith.constant 0 : i32
    %c0_i32_1 = arith.constant 0 : i32
    return %c0_i32, %c0_i32_0 : i32, i32
  }
  func.func @transform_57(%arg0: i32) -> (i32, i32) {
    %c0_i32 = arith.constant 0 : i32
    %c0_i32_0 = arith.constant 0 : i32
    %c0_i32_1 = arith.constant 0 : i32
    return %c0_i32, %c0_i32_0 : i32, i32
  }
  func.func @transform_58(%arg0: i32) -> (i32, i32) {
    %c0_i32 = arith.constant 0 : i32
    %c0_i32_0 = arith.constant 0 : i32
    %c0_i32_1 = arith.constant 0 : i32
    return %c0_i32, %c0_i32_0 : i32, i32
  }
  func.func @transform_59(%arg0: i32) -> (i32, i32) {
    %c0_i32 = arith.constant 0 : i32
    %c0_i32_0 = arith.constant 0 : i32
    %c0_i32_1 = arith.constant 0 : i32
    return %c0_i32, %c0_i32_0 : i32, i32
  }
  func.func @transform_60(%arg0: i32) -> (i32, i32) {
    %c0_i32 = arith.constant 0 : i32
    %c0_i32_0 = arith.constant 0 : i32
    %c0_i32_1 = arith.constant 0 : i32
    return %c0_i32, %c0_i32_0 : i32, i32
  }
  func.func @transform_61(%arg0: i32) -> (i32, i32) {
    %c0_i32 = arith.constant 0 : i32
    %c0_i32_0 = arith.constant 0 : i32
    %c0_i32_1 = arith.constant 0 : i32
    return %c0_i32, %c0_i32_0 : i32, i32
  }
  func.func @transform_62(%arg0: i32) -> (i32, i32) {
    %c0_i32 = arith.constant 0 : i32
    %c0_i32_0 = arith.constant 0 : i32
    %c0_i32_1 = arith.constant 0 : i32
    return %c0_i32, %c0_i32_0 : i32, i32
  }
  func.func @transform_63(%arg0: i32) -> (i32, i32) {
    %c0_i32 = arith.constant 0 : i32
    %c0_i32_0 = arith.constant 0 : i32
    %c0_i32_1 = arith.constant 0 : i32
    return %c0_i32, %c0_i32_0 : i32, i32
  }
  func.func @transform_64(%arg0: i32) -> (i32, i32) {
    %c0_i32 = arith.constant 0 : i32
    %c0_i32_0 = arith.constant 0 : i32
    %c0_i32_1 = arith.constant 0 : i32
    return %c0_i32, %c0_i32_0 : i32, i32
  }
  func.func @transform_65(%arg0: i32) -> (i32, i32) {
    %c0_i32 = arith.constant 0 : i32
    %c0_i32_0 = arith.constant 0 : i32
    %c0_i32_1 = arith.constant 0 : i32
    return %c0_i32, %c0_i32_0 : i32, i32
  }
  func.func @transform_66(%arg0: i32) -> (i32, i32) {
    %c0_i32 = arith.constant 0 : i32
    %c0_i32_0 = arith.constant 0 : i32
    %c0_i32_1 = arith.constant 0 : i32
    return %c0_i32, %c0_i32_0 : i32, i32
  }
  func.func @transform_67(%arg0: i32) -> (i32, i32) {
    %c0_i32 = arith.constant 0 : i32
    %c0_i32_0 = arith.constant 0 : i32
    %c0_i32_1 = arith.constant 0 : i32
    return %c0_i32, %c0_i32_0 : i32, i32
  }
  func.func @transform_68(%arg0: i32) -> (i32, i32) {
    %c0_i32 = arith.constant 0 : i32
    %c0_i32_0 = arith.constant 0 : i32
    %c0_i32_1 = arith.constant 0 : i32
    return %c0_i32, %c0_i32_0 : i32, i32
  }
  func.func @transform_69(%arg0: i32) -> (i32, i32) {
    %c0_i32 = arith.constant 0 : i32
    %c0_i32_0 = arith.constant 0 : i32
    %c0_i32_1 = arith.constant 0 : i32
    return %c0_i32, %c0_i32_0 : i32, i32
  }
  func.func @transform_70(%arg0: i32) -> (i32, i32, i32) {
    %c0_i32 = arith.constant 0 : i32
    %c0_i32_0 = arith.constant 0 : i32
    %c0_i32_1 = arith.constant 0 : i32
    return %arg0, %c0_i32, %c0_i32_0 : i32, i32, i32
  }
}

</mosaic_0001>

<bundles_post_ra>
// kernel: densenet_forward.1
= control target key start
LH: loop header
LB: loop body
LE: loop exit
PB: predicated region body
PF: predicated region fallthrough
CT: control target
= control target key end

     0   :  { %s14548_s6 = smov 1   ;;  %s14549_s10 = smov 2   ;;  %s18574_s0 = inlined_call_operand.smem [shape: u32[71], index: -1, kind: input, shape index: {}] }
   0x1   :  { %s14711_s5 = sld [smem:[%s18574_s0]]   ;;  %s14550_s14 = smov 3  }
   0x2   :  { %s14716_s9 = sld [smem:[%s18574_s0 + %s14548_s6]]   ;;  %s14551_s18 = smov 4  }
   0x3   :  { %s14721_s13 = sld [smem:[%s18574_s0 + %s14549_s10]]   ;;  %s14552_s22 = smov 5  }
   0x4   :  { %s14726_s17 = sld [smem:[%s18574_s0 + %s14550_s14]]   ;;  %s14553_s26 = smov 6  }
   0x5   :  { %s14731_s21 = sld [smem:[%s18574_s0 + %s14551_s18]]   ;;  %s14554_s30 = smov 7  }
   0x6   :  { %s14736_s25 = sld [smem:[%s18574_s0 + %s14552_s22]]   ;;  %s14555_s4 = smov 8  }
   0x7   :  { %18724 = sst [smem:[#allocation113_spill]] %s14711_s5  ;;  %s14556_s10 = smov 9  }
   0x8   :  { %18725 = sst [smem:[#allocation114_spill]] %s14716_s9  ;;  %s14557_s15 = smov 10  }
   0x9   :  { %18726 = sst [smem:[#allocation115_spill]] %s14721_s13  ;;  %s14558_s20 = smov 11  }
   0xa   :  { %18727 = sst [smem:[#allocation116_spill]] %s14726_s17  ;;  %s14560_s1 = smov 13  }
   0xb   :  { %s14741_s29 = sld [smem:[%s18574_s0 + %s14553_s26]]   ;;  %s14559_s26 = smov 12  }
   0xc   :  { %18728 = sst [smem:[#allocation117_spill]] %s14736_s25  ;;  %s14561_s7 = smov 14  }
   0xd   :  { %s14746_s3 = sld [smem:[%s18574_s0 + %s14554_s30]]   ;;  %s14563_s22 = smov 16  }
   0xe   :  { %s14751_s8 = sld [smem:[%s18574_s0 + %s14555_s4]]   ;;  %s14564_s28 = smov 17  }
   0xf   :  { %s14756_s14 = sld [smem:[%s18574_s0 + %s14556_s10]]  }
  0x10   :  { %s14761_s19 = sld [smem:[%s18574_s0 + %s14557_s15]]   ;;  %s14562_s15 = smov 15  }
  0x11   :  { %s14766_s24 = sld [smem:[%s18574_s0 + %s14558_s20]]  }
  0x12   :  { %s14771_s30 = sld [smem:[%s18574_s0 + %s14559_s26]]  }
  0x13   :  { %18729 = sst [smem:[#allocation118_spill]] %s14746_s3 }
  0x14   :  { %18730 = sst [smem:[#allocation119_spill]] %s14751_s8 }
  0x15   :  { %18731 = sst [smem:[#allocation120_spill]] %s14756_s14 }
  0x16   :  { %s14776_s6 = sld [smem:[%s18574_s0 + %s14560_s1]]  }
  0x17   :  { %18732 = sst [smem:[#allocation121_spill]] %s14766_s24 }
  0x18   :  { %s14781_s12 = sld [smem:[%s18574_s0 + %s14561_s7]]   ;;  %s14565_s7 = smov 18  }
  0x19   :  { %s14786_s20 = sld [smem:[%s18574_s0 + %s14562_s15]]   ;;  %s14566_s15 = smov 19  }
  0x1a   :  { %s14791_s27 = sld [smem:[%s18574_s0 + %s14563_s22]]   ;;  %s14567_s22 = smov 20  }
  0x1b   :  { %s14796_s4 = sld [smem:[%s18574_s0 + %s14564_s28]]   ;;  %s14568_s28 = smov 21  }
  0x1c   :  { %18733 = sst [smem:[#allocation122_spill]] %s14776_s6 }
  0x1d   :  { %s14801_s5 = sld [smem:[%s18574_s0 + %s14565_s7]]   ;;  %s14569_s7 = smov 22  }
  0x1e   :  { %18734 = sst [smem:[#allocation123_spill]] %s14781_s12 }
  0x1f   :  { %18735 = sst [smem:[#allocation124_spill]] %s14786_s20 }
  0x20   :  { %s14806_s20 = sld [smem:[%s18574_s0 + %s14566_s15]]   ;;  %s14570_s15 = smov 23  }
  0x21   :  { %18736 = sst [smem:[#allocation125_spill]] %s14796_s4 }
  0x22   :  { %s14811_s6 = sld [smem:[%s18574_s0 + %s14567_s22]]   ;;  %s14571_s22 = smov 24  }
  0x23   :  { %18737 = sst [smem:[#allocation126_spill]] %s14801_s5 }
  0x24   :  { %s14816_s4 = sld [smem:[%s18574_s0 + %s14568_s28]]   ;;  %s14572_s28 = smov 25  }
  0x25   :  { %s14821_s24 = sld [smem:[%s18574_s0 + %s14569_s7]]   ;;  %s14573_s7 = smov 26  }
  0x26   :  { %18738 = sst [smem:[#allocation127_spill]] %s14806_s20 }
  0x27   :  { %s14826_s20 = sld [smem:[%s18574_s0 + %s14570_s15]]   ;;  %s14574_s15 = smov 27  }
  0x28   :  { %18739 = sst [smem:[#allocation128_spill]] %s14811_s6 }
  0x29   :  { %s14831_s14 = sld [smem:[%s18574_s0 + %s14571_s22]]   ;;  %s14575_s22 = smov 28  }
  0x2a   :  { %18740 = sst [smem:[#allocation129_spill]] %s14816_s4 }
  0x2b   :  { %18741 = sst [smem:[#allocation130_spill]] %s14821_s24 }
  0x2c   :  { %s14836_s4 = sld [smem:[%s18574_s0 + %s14572_s28]]   ;;  %s14576_s28 = smov 29  }
  0x2d   :  { %s14841_s24 = sld [smem:[%s18574_s0 + %s14573_s7]]   ;;  %s14577_s7 = smov 30  }
  0x2e   :  { %s14846_s3 = sld [smem:[%s18574_s0 + %s14574_s15]]   ;;  %s14578_s15 = smov 31  }
  0x2f   :  { %18742 = sst [smem:[#allocation131_spill]] %s14831_s14 }
  0x30   :  { %s14851_s14 = sld [smem:[%s18574_s0 + %s14575_s22]]   ;;  %s14579_s22 = smov 32  }
  0x31   :  { %s14856_s25 = sld [smem:[%s18574_s0 + %s14576_s28]]   ;;  %s14580_s28 = smov 33  }
  0x32   :  { %18743 = sst [smem:[#allocation132_spill]] %s14836_s4 }
  0x33   :  { %18744 = sst [smem:[#allocation133_spill]] %s14841_s24 }
  0x34   :  { %18745 = sst [smem:[#allocation134_spill]] %s14846_s3 }
  0x35   :  { %s14861_s24 = sld [smem:[%s18574_s0 + %s14577_s7]]   ;;  %s14581_s7 = smov 34  }
  0x36   :  { %18746 = sst [smem:[#allocation135_spill]] %s14851_s14 }
  0x37   :  { %s14866_s17 = sld [smem:[%s18574_s0 + %s14578_s15]]   ;;  %s14582_s15 = smov 35  }
  0x38   :  { %s14871_s14 = sld [smem:[%s18574_s0 + %s14579_s22]]   ;;  %s14583_s22 = smov 36  }
  0x39   :  { %s14876_s9 = sld [smem:[%s18574_s0 + %s14580_s28]]   ;;  %s14584_s28 = smov 37  }
  0x3b   :  { %18747 = sst [smem:[#allocation136_spill]] %s14861_s24 }
  0x3c   :  { %s14881_s24 = sld [smem:[%s18574_s0 + %s14581_s7]]   ;;  %s14585_s7 = smov 38  }
  0x3d   :  { %18748 = sst [smem:[#allocation137_spill]] %s14866_s17 }
  0x3e   :  { %18749 = sst [smem:[#allocation138_spill]] %s14871_s14 }
  0x3f   :  { %18750 = sst [smem:[#allocation139_spill]] %s14876_s9 }
  0x40   :  { %s14886_s17 = sld [smem:[%s18574_s0 + %s14582_s15]]   ;;  %s14586_s15 = smov 39  }
  0x41   :  { %s14891_s14 = sld [smem:[%s18574_s0 + %s14583_s22]]   ;;  %s14587_s22 = smov 40  }
  0x42   :  { %18751 = sst [smem:[#allocation140_spill]] %s14881_s24 }
  0x43   :  { %s14896_s9 = sld [smem:[%s18574_s0 + %s14584_s28]]   ;;  %s14588_s28 = smov 41  }
  0x44   :  { %s14901_s24 = sld [smem:[%s18574_s0 + %s14585_s7]]   ;;  %s14589_s7 = smov 42  }
  0x46   :  { %18752 = sst [smem:[#allocation141_spill]] %s14886_s17 }
  0x47   :  { %18753 = sst [smem:[#allocation142_spill]] %s14891_s14 }
  0x48   :  { %s14906_s17 = sld [smem:[%s18574_s0 + %s14586_s15]]   ;;  %s14590_s15 = smov 43  }
  0x49   :  { %18754 = sst [smem:[#allocation143_spill]] %s14896_s9 }
  0x4a   :  { %18755 = sst [smem:[#allocation144_spill]] %s14901_s24 }
  0x4b   :  { %s14911_s14 = sld [smem:[%s18574_s0 + %s14587_s22]]   ;;  %s14591_s22 = smov 44  }
  0x4c   :  { %s14916_s9 = sld [smem:[%s18574_s0 + %s14588_s28]]   ;;  %s14592_s28 = smov 45  }
  0x4d   :  { %s14921_s24 = sld [smem:[%s18574_s0 + %s14589_s7]]   ;;  %s14593_s7 = smov 46  }
  0x4e   :  { %18756 = sst [smem:[#allocation145_spill]] %s14906_s17 }
  0x4f   :  { %s14926_s17 = sld [smem:[%s18574_s0 + %s14590_s15]]   ;;  %s14594_s15 = smov 47  }
  0x51   :  { %18757 = sst [smem:[#allocation146_spill]] %s14911_s14 }
  0x52   :  { %18758 = sst [smem:[#allocation147_spill]] %s14916_s9 }
  0x53   :  { %18759 = sst [smem:[#allocation148_spill]] %s14921_s24 }
  0x54   :  { %s14931_s14 = sld [smem:[%s18574_s0 + %s14591_s22]]   ;;  %s14595_s22 = smov 48  }
  0x55   :  { %18760 = sst [smem:[#allocation149_spill]] %s14926_s17 }
  0x56   :  { %s14936_s9 = sld [smem:[%s18574_s0 + %s14592_s28]]   ;;  %s14596_s28 = smov 49  }
  0x57   :  { %s14941_s24 = sld [smem:[%s18574_s0 + %s14593_s7]]   ;;  %s14597_s7 = smov 50  }
  0x58   :  { %s14946_s17 = sld [smem:[%s18574_s0 + %s14594_s15]]   ;;  %s14598_s15 = smov 51  }
  0x5a   :  { %18761 = sst [smem:[#allocation150_spill]] %s14931_s14 }
  0x5b   :  { %s14951_s14 = sld [smem:[%s18574_s0 + %s14595_s22]]   ;;  %s14599_s22 = smov 52  }
  0x5c   :  { %18762 = sst [smem:[#allocation151_spill]] %s14936_s9 }
  0x5d   :  { %18763 = sst [smem:[#allocation152_spill]] %s14941_s24 }
  0x5e   :  { %18764 = sst [smem:[#allocation153_spill]] %s14946_s17 }
  0x5f   :  { %s14956_s9 = sld [smem:[%s18574_s0 + %s14596_s28]]   ;;  %s14600_s28 = smov 53  }
  0x60   :  { %s14961_s24 = sld [smem:[%s18574_s0 + %s14597_s7]]   ;;  %s14601_s7 = smov 54  }
  0x61   :  { %18765 = sst [smem:[#allocation154_spill]] %s14951_s14 }
  0x62   :  { %s14966_s17 = sld [smem:[%s18574_s0 + %s14598_s15]]   ;;  %s14602_s15 = smov 55  }
  0x63   :  { %s14971_s14 = sld [smem:[%s18574_s0 + %s14599_s22]]   ;;  %s14603_s22 = smov 56  }
  0x65   :  { %18766 = sst [smem:[#allocation155_spill]] %s14956_s9 }
  0x66   :  { %18767 = sst [smem:[#allocation156_spill]] %s14961_s24 }
  0x67   :  { %s14976_s9 = sld [smem:[%s18574_s0 + %s14600_s28]]   ;;  %s14604_s28 = smov 57  }
  0x68   :  { %18768 = sst [smem:[#allocation157_spill]] %s14966_s17 }
  0x69   :  { %18769 = sst [smem:[#allocation158_spill]] %s14971_s14 }
  0x6a   :  { %s14981_s24 = sld [smem:[%s18574_s0 + %s14601_s7]]   ;;  %s14605_s7 = smov 58  }
  0x6b   :  { %s14986_s17 = sld [smem:[%s18574_s0 + %s14602_s15]]   ;;  %s14606_s15 = smov 59  }
  0x6c   :  { %s14991_s14 = sld [smem:[%s18574_s0 + %s14603_s22]]   ;;  %s14607_s22 = smov 60  }
  0x6d   :  { %18770 = sst [smem:[#allocation159_spill]] %s14976_s9 }
  0x6e   :  { %s14996_s9 = sld [smem:[%s18574_s0 + %s14604_s28]]   ;;  %s14608_s28 = smov 61  }
  0x70   :  { %18771 = sst [smem:[#allocation160_spill]] %s14981_s24 }
  0x71   :  { %18772 = sst [smem:[#allocation161_spill]] %s14986_s17 }
  0x72   :  { %18773 = sst [smem:[#allocation162_spill]] %s14991_s14 }
  0x73   :  { %s15001_s24 = sld [smem:[%s18574_s0 + %s14605_s7]]   ;;  %s14609_s7 = smov 62  }
  0x74   :  { %18774 = sst [smem:[#allocation163_spill]] %s14996_s9 }
  0x75   :  { %s15006_s17 = sld [smem:[%s18574_s0 + %s14606_s15]]   ;;  %s14610_s15 = smov 63  }
  0x76   :  { %s15011_s14 = sld [smem:[%s18574_s0 + %s14607_s22]]   ;;  %s14611_s22 = smov 64  }
  0x77   :  { %s15016_s9 = sld [smem:[%s18574_s0 + %s14608_s28]]   ;;  %s14612_s28 = smov 65  }
  0x79   :  { %18775 = sst [smem:[#allocation164_spill]] %s15001_s24 }
  0x7a   :  { %s15021_s24 = sld [smem:[%s18574_s0 + %s14609_s7]]   ;;  %s14613_s7 = smov 66  }
  0x7b   :  { %18776 = sst [smem:[#allocation165_spill]] %s15006_s17 }
  0x7c   :  { %18777 = sst [smem:[#allocation166_spill]] %s15011_s14 }
  0x7d   :  { %18778 = sst [smem:[#allocation167_spill]] %s15016_s9 }
  0x7e   :  { %s15026_s17 = sld [smem:[%s18574_s0 + %s14610_s15]]   ;;  %s14614_s15 = smov 67  }
  0x7f   :  { %s15031_s14 = sld [smem:[%s18574_s0 + %s14611_s22]]   ;;  %s14615_s22 = smov 68  }
  0x80   :  { %18779 = sst [smem:[#allocation168_spill]] %s15021_s24 }
  0x81   :  { %s15036_s9 = sld [smem:[%s18574_s0 + %s14612_s28]]   ;;  %s14616_s28 = smov 69  }
  0x82   :  { %s15041_s24 = sld [smem:[%s18574_s0 + %s14613_s7]]   ;;  %s14617_s7 = smov 70  }
  0x84   :  { %18780 = sst [smem:[#allocation169_spill]] %s15026_s17 }
  0x85   :  { %18781 = sst [smem:[#allocation170_spill]] %s15031_s14 }
  0x86   :  { %s15046_s17 = sld [smem:[%s18574_s0 + %s14614_s15]]  }
  0x87   :  { %18782 = sst [smem:[#allocation171_spill]] %s15036_s9 }
  0x88   :  { %18783 = sst [smem:[#allocation172_spill]] %s15041_s24 }
  0x89   :  { %s15051_s14 = sld [smem:[%s18574_s0 + %s14615_s22]]  }
  0x8a   :  { %s15056_s9 = sld [smem:[%s18574_s0 + %s14616_s28]]  }
  0x8b   :  { %s15061_s24 = sld [smem:[%s18574_s0 + %s14617_s7]]  }
  0x8c   :  { %146 = vsyncpa [#allocation4], 0 }
  0x8d   :  { %147 = vsyncpa [#allocation6], 0 }
  0x8e   :  { %148 = vsyncpa [#allocation9], 0 }
  0x8f   :  { %149 = vsyncpa [#allocation12], 0 }
  0x90   :  { %150 = vsyncpa [#allocation15], 0 }
  0x91   :  { %151 = vsyncpa [#allocation18], 0 }
  0x92   :  { %152 = vsyncpa [#allocation21], 0 }
  0x93   :  { %153 = vsyncpa [#allocation24], 0 }
  0x94   :  { %154 = vsyncpa [#allocation27], 0 }
  0x95   :  { %155 = vsyncpa [#allocation30], 0 }
  0x96   :  { %156 = vsyncpa [#allocation33], 0 }
  0x97   :  { %157 = vsyncpa [#allocation36], 0 }
  0x98   :  { %158 = vsyncpa [#allocation39], 0 }
  0x99   :  { %159 = vsyncpa [#allocation42], 0 }
  0x9a   :  { %160 = vsyncpa [#allocation45], 0 }
  0x9b   :  { %161 = vsyncpa [#allocation48], 0 }
  0x9c   :  { %162 = vsyncpa [#allocation51], 0 }
  0x9d   :  { %163 = vsyncpa [#allocation54], 0 }
  0x9e   :  { %164 = vsyncpa [#allocation57], 0 }
  0x9f   :  { %165 = vsyncpa [#allocation60], 0 }
  0xa0   :  { %166 = vsyncpa [#allocation63], 0 }
  0xa1   :  { %167 = vsyncpa [#allocation66], 0 }
  0xa2   :  { %168 = vsyncpa [#allocation69], 0 }
  0xa3   :  { %169 = vsyncpa [#allocation72], 0 }
  0xa4   :  { %170 = vsyncpa [#allocation75], 0 }
  0xa5   :  { %171 = vsyncpa [#allocation78], 0 }
  0xa6   :  { %172 = vsyncpa [#allocation81], 0 }
  0xa7   :  { %173 = vsyncpa [#allocation84], 0  ;;  %s15063_s0 = smov 0  }
  0xa8 LB: > { %s18784_s13 = sld [smem:[#allocation115_spill]]  ;;  %s18786_s8 = sld [smem:[#allocation119_spill]]  ;;  %s14546_s0 = sphi %s15063_s0, %s179_s0  }
  0xa9   : > { %s18785_s12 = sld [smem:[#allocation123_spill]]  ;;  %s18787_s6 = sld [smem:[#allocation128_spill]] }
  0xaa   : > { %s18788_s4 = sld [smem:[#allocation132_spill]]  ;;  %s18789_s3 = sld [smem:[#allocation134_spill]] }
  0xab   : > { %s18790_s5 = sld [smem:[#allocation126_spill]]  ;;  %s15069_s15 = sadd.s32 4294967295, %s14546_s0  }
  0xac   : > { %p10732_p0 = scmp.ge.s32.totalorder %s14546_s0, 1  ;;  %p1685_p1 = scmp.lt.s32.totalorder %s14546_s0, 3 }
  0xae   : > { %p15073_p2 = pnand %p10732_p0, %p1685_p1 }
  0xaf   : > { %p11518_p3 = scmp.eq.s32.totalorder (!%p15073_p2), %s15069_s15, 0  ;;  %s14618_s18 = smov (!%p15073_p2), [#allocation5]  }
  0xb0   : > { %1689 = sbr.rel (%p15073_p2) target bundleno = 1515 (0x5eb), region = 12  ;;  %s1711_s22 = sshll.u32 (!%p15073_p2), %s14618_s18, 4  ;;  %s1712_s22 = int_to_ptr.vmem [resolvable:$true] %s1711_s22 }
  0xb1   : > { %s14619_s23 = smov (!%p15073_p2), [#allocation8]   ;;  %s13024_s28 = scalar_lea.hbm (!%p15073_p2), %s18784_s13, 64 }
  0xb2   : > { %s1733_s26 = sshll.u32 (!%p15073_p2), %s14619_s23, 4  ;;  %p13025_p4 = scmp.ne.s32.totalorder (!%p15073_p2), %s18784_s13, %s13024_s28  ;;  %s1734_s26 = int_to_ptr.vmem [resolvable:$true] %s1733_s26 }
  0xb3   : > { %p13030_p7 = scmp.lt.u32.totalorder (!%p15073_p2), %s13024_s28, %s18784_s13 }
  0xb4   : > { %p13026_p5 = pnand (!%p15073_p2), %p13025_p4, %p11518_p3 }
  0xb6   : > { %p13027_p6 = pneg (!%p15073_p2), %p13026_p5 }
  0xb8   : > { %p13032_p8 = pnand %p13030_p7, %p13027_p6 }
  0xba   : > { %13035 = shalt.err (!%p13032_p8)
}
  0xbb   : > { %s13036_s1 = scalar_lea.vmem %s1712_s22, 64  ;;  %p13043_p12 = scmp.lt.s32.totalorder %s1712_s22, %s1712_s22 }
  0xbc   : > { %p13037_p9 = scmp.ne.s32.totalorder %s1712_s22, %s13036_s1  ;;  %p13044_p13 = scmp.lt.s32.totalorder %s13036_s1, %s13036_s1 }
  0xbe   : > { %p13038_p10 = pnand %p13037_p9, %p11518_p3  ;;  %p13045_p0 = por %p13044_p13, %p13043_p12 }
  0xc0   : > { %p13039_p11 = pneg %p13038_p10 }
  0xc2   : > { %p13046_p1 = pnand %p13045_p0, %p13039_p11 }
  0xc4   : > { %13049 = shalt.err (!%p13046_p1)
}
  0xc5   : > { %11305 = dma.hbm_to_vmem [thread:$0]  (%p11518_p3), %s18784_s13, 64, %s1712_s22, [#allocation6]  }
  0xc6   : > { %s13050_s2 = scalar_lea.hbm %s14731_s21, 32 }
  0xc7   : > { %p13051_p4 = scmp.ne.s32.totalorder %s14731_s21, %s13050_s2  ;;  %p13056_p7 = scmp.lt.u32.totalorder %s13050_s2, %s14731_s21 }
  0xc9   : > { %p13052_p5 = pnand %p13051_p4, %p11518_p3 }
  0xcb   : > { %p13053_p6 = pneg %p13052_p5 }
  0xcd   : > { %p13058_p8 = pnand %p13056_p7, %p13053_p6 }
  0xcf   : > { %13061 = shalt.err (!%p13058_p8)
}
  0xd0   : > { %s13062_s7 = scalar_lea.vmem %s1734_s26, 32  ;;  %p13069_p12 = scmp.lt.s32.totalorder %s1734_s26, %s1734_s26 }
  0xd1   : > { %p13063_p9 = scmp.ne.s32.totalorder %s1734_s26, %s13062_s7  ;;  %p13070_p13 = scmp.lt.s32.totalorder %s13062_s7, %s13062_s7 }
  0xd3   : > { %p13064_p10 = pnand %p13063_p9, %p11518_p3  ;;  %p13071_p0 = por %p13070_p13, %p13069_p12 }
  0xd5   : > { %p13065_p11 = pneg %p13064_p10 }
  0xd7   : > { %p13072_p1 = pnand %p13071_p0, %p13065_p11 }
  0xd9   : > { %13075 = shalt.err (!%p13072_p1)
}
  0xda   : > { %11309 = dma.hbm_to_vmem [thread:$0]  (%p11518_p3), %s14731_s21, 32, %s1734_s26, [#allocation9]  }
  0xdb   : > { %s14620_s10 = smov [#allocation11]   ;;  %s13076_s18 = scalar_lea.hbm %s14741_s29, 256 }
  0xdc   : > { %s1754_s11 = sshll.u32 %s14620_s10, 4  ;;  %p13077_p4 = scmp.ne.s32.totalorder %s14741_s29, %s13076_s18  ;;  %s1755_s11 = int_to_ptr.vmem [resolvable:$true] %s1754_s11 }
  0xdd   : > { %p13082_p7 = scmp.lt.u32.totalorder %s13076_s18, %s14741_s29 }
  0xde   : > { %p13078_p5 = pnand %p13077_p4, %p11518_p3 }
  0xe0   : > { %p13079_p6 = pneg %p13078_p5 }
  0xe2   : > { %p13084_p8 = pnand %p13082_p7, %p13079_p6 }
  0xe4   : > { %13087 = shalt.err (!%p13084_p8)
}
  0xe5   : > { %s13088_s22 = scalar_lea.vmem %s1755_s11, 256  ;;  %p13095_p12 = scmp.lt.s32.totalorder %s1755_s11, %s1755_s11 }
  0xe6   : > { %p13089_p9 = scmp.ne.s32.totalorder %s1755_s11, %s13088_s22  ;;  %p13096_p13 = scmp.lt.s32.totalorder %s13088_s22, %s13088_s22 }
  0xe8   : > { %p13090_p10 = pnand %p13089_p9, %p11518_p3  ;;  %p13097_p0 = por %p13096_p13, %p13095_p12 }
  0xea   : > { %p13091_p11 = pneg %p13090_p10 }
  0xec   : > { %p13098_p1 = pnand %p13097_p0, %p13091_p11 }
  0xee   : > { %13101 = shalt.err (!%p13098_p1)
}
  0xef   : > { %s18628_s23 = smov 128   ;;  %s18635_s26 = smov 8  }
  0xf0   : > { %11313 = dma.hbm_to_vmem [thread:$0]  (%p11518_p3), %s14741_s29, 256, %s1755_s11, [#allocation12], %s18628_s23, %s18628_s23, %s18635_s26  }
  0xf1   : > { %s14623_s28 = smov [#allocation14]   ;;  %s14624_s2 = smov [#allocation17]  }
  0xf2   : > { %s1780_s1 = sshll.u32 %s14623_s28, 4  ;;  %s1806_s7 = sshll.u32 %s14624_s2, 4  ;;  %s1781_s1 = int_to_ptr.vmem [resolvable:$true] %s1780_s1  ;;  %s15113_s7 = int_to_ptr.vmem [resolvable:$true] %s1806_s7 }
  0xf3   : > { %s13102_s10 = scalar_lea.hbm %s18786_s8, 256 }
  0xf4   : > { %p13103_p4 = scmp.ne.s32.totalorder %s18786_s8, %s13102_s10  ;;  %p13108_p7 = scmp.lt.u32.totalorder %s13102_s10, %s18786_s8 }
  0xf6   : > { %p13104_p5 = pnand %p13103_p4, %p11518_p3 }
  0xf8   : > { %p13105_p6 = pneg %p13104_p5 }
  0xfa   : > { %p13110_p8 = pnand %p13108_p7, %p13105_p6 }
  0xfc   : > { %13113 = shalt.err (!%p13110_p8)
}
  0xfd   : > { %s13114_s18 = scalar_lea.vmem %s1781_s1, 256  ;;  %p13121_p12 = scmp.lt.s32.totalorder %s1781_s1, %s1781_s1 }
  0xfe   : > { %p13115_p9 = scmp.ne.s32.totalorder %s1781_s1, %s13114_s18  ;;  %p13122_p13 = scmp.lt.s32.totalorder %s13114_s18, %s13114_s18 }
 0x100   : > { %p13116_p10 = pnand %p13115_p9, %p11518_p3  ;;  %p13123_p0 = por %p13122_p13, %p13121_p12 }
 0x102   : > { %p13117_p11 = pneg %p13116_p10 }
 0x104   : > { %p13124_p1 = pnand %p13123_p0, %p13117_p11 }
 0x106   : > { %13127 = shalt.err (!%p13124_p1)
}
 0x107   : > { %s18626_s11 = smov 64   ;;  %s18630_s22 = smov 4  }
 0x108   : > { %11317 = dma.hbm_to_vmem [thread:$0]  (%p11518_p3), %s18786_s8, 256, %s1781_s1, [#allocation15], %s18626_s11, %s18626_s11, %s18630_s22  }
 0x109   : > { %s13128_s28 = scalar_lea.hbm %s14761_s19, 512 }
 0x10a   : > { %p13129_p4 = scmp.ne.s32.totalorder %s14761_s19, %s13128_s28  ;;  %p13134_p7 = scmp.lt.u32.totalorder %s13128_s28, %s14761_s19 }
 0x10c   : > { %p13130_p5 = pnand %p13129_p4, %p11518_p3 }
 0x10e   : > { %p13131_p6 = pneg %p13130_p5 }
 0x110   : > { %p13136_p8 = pnand %p13134_p7, %p13131_p6 }
 0x112   : > { %13139 = shalt.err (!%p13136_p8)
}
 0x113   : > { %s13140_s2 = scalar_lea.vmem %s15113_s7, 512  ;;  %p13147_p12 = scmp.lt.s32.totalorder %s15113_s7, %s15113_s7 }
 0x114   : > { %p13141_p9 = scmp.ne.s32.totalorder %s15113_s7, %s13140_s2  ;;  %p13148_p13 = scmp.lt.s32.totalorder %s13140_s2, %s13140_s2 }
 0x116   : > { %p13142_p10 = pnand %p13141_p9, %p11518_p3  ;;  %p13149_p0 = por %p13148_p13, %p13147_p12 }
 0x118   : > { %p13143_p11 = pneg %p13142_p10 }
 0x11a   : > { %p13150_p1 = pnand %p13149_p0, %p13143_p11 }
 0x11c   : > { %13153 = shalt.err (!%p13150_p1)
}
 0x11d   : > { %11321 = dma.hbm_to_vmem [thread:$0]  (%p11518_p3), %s14761_s19, 512, %s15113_s7, [#allocation18], %s18628_s23, %s18628_s23, %s18635_s26  }
 0x11e   : > { %s14627_s1 = smov [#allocation20]   ;;  %s14628_s18 = smov [#allocation23]  }
 0x11f   : > { %s1830_s10 = sshll.u32 %s14627_s1, 4  ;;  %s1856_s28 = sshll.u32 %s14628_s18, 4  ;;  %s1831_s10 = int_to_ptr.vmem [resolvable:$true] %s1830_s10  ;;  %s15146_s28 = int_to_ptr.vmem [resolvable:$true] %s1856_s28 }
 0x120   : > { %s13154_s2 = scalar_lea.hbm %s14771_s30, 384 }
 0x121   : > { %p13155_p4 = scmp.ne.s32.totalorder %s14771_s30, %s13154_s2  ;;  %p13160_p7 = scmp.lt.u32.totalorder %s13154_s2, %s14771_s30 }
 0x123   : > { %p13156_p5 = pnand %p13155_p4, %p11518_p3 }
 0x125   : > { %p13157_p6 = pneg %p13156_p5 }
 0x127   : > { %p13162_p8 = pnand %p13160_p7, %p13157_p6 }
 0x129   : > { %13165 = shalt.err (!%p13162_p8)
}
 0x12a   : > { %s13166_s11 = scalar_lea.vmem %s1831_s10, 384  ;;  %p13173_p12 = scmp.lt.s32.totalorder %s1831_s10, %s1831_s10 }
 0x12b   : > { %p13167_p9 = scmp.ne.s32.totalorder %s1831_s10, %s13166_s11  ;;  %p13174_p13 = scmp.lt.s32.totalorder %s13166_s11, %s13166_s11 }
 0x12d   : > { %p13168_p10 = pnand %p13167_p9, %p11518_p3  ;;  %p13175_p0 = por %p13174_p13, %p13173_p12 }
 0x12f   : > { %p13169_p11 = pneg %p13168_p10 }
 0x131   : > { %p13176_p1 = pnand %p13175_p0, %p13169_p11 }
 0x133   : > { %13179 = shalt.err (!%p13176_p1)
}
 0x134   : > { %11325 = dma.hbm_to_vmem [thread:$0]  (%p11518_p3), %s14771_s30, 384, %s1831_s10, [#allocation21], %s18628_s23, %s18628_s23, %s18635_s26  }
 0x135   : > { %s13180_s7 = scalar_lea.hbm %s18785_s12, 256 }
 0x136   : > { %p13181_p4 = scmp.ne.s32.totalorder %s18785_s12, %s13180_s7  ;;  %p13186_p7 = scmp.lt.u32.totalorder %s13180_s7, %s18785_s12 }
 0x138   : > { %p13182_p5 = pnand %p13181_p4, %p11518_p3 }
 0x13a   : > { %p13183_p6 = pneg %p13182_p5 }
 0x13c   : > { %p13188_p8 = pnand %p13186_p7, %p13183_p6 }
 0x13e   : > { %13191 = shalt.err (!%p13188_p8)
}
 0x13f   : > { %s13192_s11 = scalar_lea.vmem %s15146_s28, 256  ;;  %p13199_p12 = scmp.lt.s32.totalorder %s15146_s28, %s15146_s28 }
 0x140   : > { %p13193_p9 = scmp.ne.s32.totalorder %s15146_s28, %s13192_s11  ;;  %p13200_p13 = scmp.lt.s32.totalorder %s13192_s11, %s13192_s11 }
 0x142   : > { %p13194_p10 = pnand %p13193_p9, %p11518_p3  ;;  %p13201_p0 = por %p13200_p13, %p13199_p12 }
 0x144   : > { %p13195_p11 = pneg %p13194_p10 }
 0x146   : > { %p13202_p1 = pnand %p13201_p0, %p13195_p11 }
 0x148   : > { %13205 = shalt.err (!%p13202_p1)
}
 0x149   : > { %s18792_s1 = smov 64   ;;  %s14629_s10 = smov [#allocation26]  }
 0x14a   : > { %11329 = dma.hbm_to_vmem [thread:$0]  (%p11518_p3), %s18785_s12, 256, %s15146_s28, [#allocation24], %s18792_s1, %s18792_s1, %s18630_s22  }
 0x14b   : > { %s1882_s18 = sshll.u32 %s14629_s10, 4  ;;  %s14630_s2 = smov [#allocation29]   ;;  %s1883_s18 = int_to_ptr.vmem [resolvable:$true] %s1882_s18 }
 0x14c   : > { %s1906_s7 = sshll.u32 %s14630_s2, 4  ;;  %s13206_s11 = scalar_lea.hbm %s14791_s27, 512  ;;  %s15179_s7 = int_to_ptr.vmem [resolvable:$true] %s1906_s7 }
 0x14d   : > { %p13207_p4 = scmp.ne.s32.totalorder %s14791_s27, %s13206_s11  ;;  %p13212_p7 = scmp.lt.u32.totalorder %s13206_s11, %s14791_s27 }
 0x14f   : > { %p13208_p5 = pnand %p13207_p4, %p11518_p3 }
 0x151   : > { %p13209_p6 = pneg %p13208_p5 }
 0x153   : > { %p13214_p8 = pnand %p13212_p7, %p13209_p6 }
 0x155   : > { %13217 = shalt.err (!%p13214_p8)
}
 0x156   : > { %s13218_s23 = scalar_lea.vmem %s1883_s18, 512  ;;  %p13225_p12 = scmp.lt.s32.totalorder %s1883_s18, %s1883_s18 }
 0x157   : > { %p13219_p9 = scmp.ne.s32.totalorder %s1883_s18, %s13218_s23  ;;  %p13226_p13 = scmp.lt.s32.totalorder %s13218_s23, %s13218_s23 }
 0x159   : > { %p13220_p10 = pnand %p13219_p9, %p11518_p3  ;;  %p13227_p0 = por %p13226_p13, %p13225_p12 }
 0x15b   : > { %p13221_p11 = pneg %p13220_p10 }
 0x15d   : > { %p13228_p1 = pnand %p13227_p0, %p13221_p11 }
 0x15f   : > { %13231 = shalt.err (!%p13228_p1)
}
 0x160   : > { %s18793_s28 = smov 128   ;;  %s13232_s10 = scalar_lea.hbm %s18790_s5, 512 }
 0x161   : > { %11333 = dma.hbm_to_vmem [thread:$0]  (%p11518_p3), %s14791_s27, 512, %s1883_s18, [#allocation27], %s18793_s28, %s18793_s28, %s18635_s26  }
 0x162   : > { %p13233_p4 = scmp.ne.s32.totalorder %s18790_s5, %s13232_s10  ;;  %p13238_p7 = scmp.lt.u32.totalorder %s13232_s10, %s18790_s5 }
 0x164   : > { %p13234_p5 = pnand %p13233_p4, %p11518_p3 }
 0x166   : > { %p13235_p6 = pneg %p13234_p5 }
 0x168   : > { %p13240_p8 = pnand %p13238_p7, %p13235_p6 }
 0x16a   : > { %13243 = shalt.err (!%p13240_p8)
}
 0x16b   : > { %s13244_s23 = scalar_lea.vmem %s15179_s7, 512  ;;  %p13251_p12 = scmp.lt.s32.totalorder %s15179_s7, %s15179_s7 }
 0x16c   : > { %p13245_p9 = scmp.ne.s32.totalorder %s15179_s7, %s13244_s23  ;;  %p13252_p13 = scmp.lt.s32.totalorder %s13244_s23, %s13244_s23 }
 0x16e   : > { %p13246_p10 = pnand %p13245_p9, %p11518_p3  ;;  %p13253_p0 = por %p13252_p13, %p13251_p12 }
 0x170   : > { %p13247_p11 = pneg %p13246_p10 }
 0x172   : > { %p13254_p1 = pnand %p13253_p0, %p13247_p11 }
 0x174   : > { %13257 = shalt.err (!%p13254_p1)
}
 0x175   : > { %11337 = dma.hbm_to_vmem [thread:$0]  (%p11518_p3), %s18790_s5, 512, %s15179_s7, [#allocation30], %s18793_s28, %s18793_s28, %s18635_s26  }
 0x176   : > { %s14631_s18 = smov [#allocation32]   ;;  %s14632_s11 = smov [#allocation35]  }
 0x177   : > { %s1932_s2 = sshll.u32 %s14631_s18, 4  ;;  %s1961_s10 = sshll.u32 %s14632_s11, 4  ;;  %s1933_s2 = int_to_ptr.vmem [resolvable:$true] %s1932_s2  ;;  %s15212_s10 = int_to_ptr.vmem [resolvable:$true] %s1961_s10 }
 0x178   : > { %s13258_s23 = scalar_lea.hbm %s18787_s6, 128 }
 0x179   : > { %p13259_p4 = scmp.ne.s32.totalorder %s18787_s6, %s13258_s23  ;;  %p13264_p7 = scmp.lt.u32.totalorder %s13258_s23, %s18787_s6 }
 0x17b   : > { %p13260_p5 = pnand %p13259_p4, %p11518_p3 }
 0x17d   : > { %p13261_p6 = pneg %p13260_p5 }
 0x17f   : > { %p13266_p8 = pnand %p13264_p7, %p13261_p6 }
 0x181   : > { %13269 = shalt.err (!%p13266_p8)
}
 0x182   : > { %s13270_s22 = scalar_lea.vmem %s1933_s2, 128  ;;  %p13277_p12 = scmp.lt.s32.totalorder %s1933_s2, %s1933_s2 }
 0x183   : > { %p13271_p9 = scmp.ne.s32.totalorder %s1933_s2, %s13270_s22  ;;  %p13278_p13 = scmp.lt.s32.totalorder %s13270_s22, %s13270_s22 }
 0x185   : > { %p13272_p10 = pnand %p13271_p9, %p11518_p3  ;;  %p13279_p0 = por %p13278_p13, %p13277_p12 }
 0x187   : > { %p13273_p11 = pneg %p13272_p10 }
 0x189   : > { %p13280_p1 = pnand %p13279_p0, %p13273_p11 }
 0x18b   : > { %13283 = shalt.err (!%p13280_p1)
}
 0x18c   : > { %s18794_s7 = smov 4   ;;  %s13284_s18 = scalar_lea.hbm %s14826_s20, 256 }
 0x18d   : > { %11341 = dma.hbm_to_vmem [thread:$0]  (%p11518_p3), %s18787_s6, 128, %s1933_s2, [#allocation33], %s18792_s1, %s18792_s1, %s18794_s7  }
 0x18e   : > { %p13285_p4 = scmp.ne.s32.totalorder %s14826_s20, %s13284_s18  ;;  %p13290_p7 = scmp.lt.u32.totalorder %s13284_s18, %s14826_s20 }
 0x190   : > { %p13286_p5 = pnand %p13285_p4, %p11518_p3 }
 0x192   : > { %p13287_p6 = pneg %p13286_p5 }
 0x194   : > { %p13292_p8 = pnand %p13290_p7, %p13287_p6 }
 0x196   : > { %13295 = shalt.err (!%p13292_p8)
}
 0x197   : > { %s13296_s22 = scalar_lea.vmem %s15212_s10, 256  ;;  %p13303_p12 = scmp.lt.s32.totalorder %s15212_s10, %s15212_s10 }
 0x198   : > { %p13297_p9 = scmp.ne.s32.totalorder %s15212_s10, %s13296_s22  ;;  %p13304_p13 = scmp.lt.s32.totalorder %s13296_s22, %s13296_s22 }
 0x19a   : > { %p13298_p10 = pnand %p13297_p9, %p11518_p3  ;;  %p13305_p0 = por %p13304_p13, %p13303_p12 }
 0x19c   : > { %p13299_p11 = pneg %p13298_p10 }
 0x19e   : > { %p13306_p1 = pnand %p13305_p0, %p13299_p11 }
 0x1a0   : > { %13309 = shalt.err (!%p13306_p1)
}
 0x1a1   : > { %11345 = dma.hbm_to_vmem [thread:$0]  (%p11518_p3), %s14826_s20, 256, %s15212_s10, [#allocation36], %s18793_s28, %s18793_s28, %s18635_s26  }
 0x1a2   : > { %s14633_s2 = smov [#allocation38]   ;;  %s14634_s23 = smov [#allocation41]  }
 0x1a3   : > { %s1987_s11 = sshll.u32 %s14633_s2, 4  ;;  %s2014_s18 = sshll.u32 %s14634_s23, 4  ;;  %s1988_s11 = int_to_ptr.vmem [resolvable:$true] %s1987_s11  ;;  %s15245_s18 = int_to_ptr.vmem [resolvable:$true] %s2014_s18 }
 0x1a4   : > { %s13310_s22 = scalar_lea.hbm %s18788_s4, 512 }
 0x1a5   : > { %p13311_p4 = scmp.ne.s32.totalorder %s18788_s4, %s13310_s22  ;;  %p13316_p7 = scmp.lt.u32.totalorder %s13310_s22, %s18788_s4 }
 0x1a7   : > { %p13312_p5 = pnand %p13311_p4, %p11518_p3 }
 0x1a9   : > { %p13313_p6 = pneg %p13312_p5 }
 0x1ab   : > { %p13318_p8 = pnand %p13316_p7, %p13313_p6 }
 0x1ad   : > { %13321 = shalt.err (!%p13318_p8)
}
 0x1ae   : > { %s13322_s5 = scalar_lea.vmem %s1988_s11, 512  ;;  %p13329_p12 = scmp.lt.s32.totalorder %s1988_s11, %s1988_s11 }
 0x1af   : > { %p13323_p9 = scmp.ne.s32.totalorder %s1988_s11, %s13322_s5  ;;  %p13330_p13 = scmp.lt.s32.totalorder %s13322_s5, %s13322_s5 }
 0x1b1   : > { %p13324_p10 = pnand %p13323_p9, %p11518_p3  ;;  %p13331_p0 = por %p13330_p13, %p13329_p12 }
 0x1b3   : > { %p13325_p11 = pneg %p13324_p10 }
 0x1b5   : > { %p13332_p1 = pnand %p13331_p0, %p13325_p11 }
 0x1b7   : > { %13335 = shalt.err (!%p13332_p1)
}
 0x1b8   : > { %11349 = dma.hbm_to_vmem [thread:$0]  (%p11518_p3), %s18788_s4, 512, %s1988_s11, [#allocation39], %s18793_s28, %s18793_s28, %s18635_s26  }
 0x1b9   : > { %s13336_s10 = scalar_lea.hbm %s18789_s3, 192 }
 0x1ba   : > { %p13337_p4 = scmp.ne.s32.totalorder %s18789_s3, %s13336_s10  ;;  %p13342_p7 = scmp.lt.u32.totalorder %s13336_s10, %s18789_s3 }
 0x1bc   : > { %p13338_p5 = pnand %p13337_p4, %p11518_p3 }
 0x1be   : > { %p13339_p6 = pneg %p13338_p5 }
 0x1c0   : > { %p13344_p8 = pnand %p13342_p7, %p13339_p6 }
 0x1c2   : > { %13347 = shalt.err (!%p13344_p8)
}
 0x1c3   : > { %s13348_s5 = scalar_lea.vmem %s15245_s18, 192  ;;  %p13355_p12 = scmp.lt.s32.totalorder %s15245_s18, %s15245_s18 }
 0x1c4   : > { %p13349_p9 = scmp.ne.s32.totalorder %s15245_s18, %s13348_s5  ;;  %p13356_p13 = scmp.lt.s32.totalorder %s13348_s5, %s13348_s5 }
 0x1c6   : > { %p13350_p10 = pnand %p13349_p9, %p11518_p3  ;;  %p13357_p0 = por %p13356_p13, %p13355_p12 }
 0x1c8   : > { %p13351_p11 = pneg %p13350_p10 }
 0x1ca   : > { %p13358_p1 = pnand %p13357_p0, %p13351_p11 }
 0x1cc   : > { %13361 = shalt.err (!%p13358_p1)
}
 0x1cd   : > { %11353 = dma.hbm_to_vmem [thread:$0]  (%p11518_p3), %s18789_s3, 192, %s15245_s18, [#allocation42]  }
 0x1ce   : > { %s14635_s2 = smov [#allocation44]   ;;  %s14636_s23 = smov [#allocation47]  }
 0x1cf   : > { %s2037_s11 = sshll.u32 %s14635_s2, 4  ;;  %s2066_s22 = sshll.u32 %s14636_s23, 4  ;;  %s2038_s11 = int_to_ptr.vmem [resolvable:$true] %s2037_s11  ;;  %s15275_s22 = int_to_ptr.vmem [resolvable:$true] %s2066_s22 }
 0x1d0   : > { %s13362_s10 = scalar_lea.hbm %s14856_s25, 384 }
 0x1d1   : > { %p13363_p4 = scmp.ne.s32.totalorder %s14856_s25, %s13362_s10  ;;  %p13368_p7 = scmp.lt.u32.totalorder %s13362_s10, %s14856_s25 }
 0x1d3   : > { %p13364_p5 = pnand %p13363_p4, %p11518_p3 }
 0x1d5   : > { %p13365_p6 = pneg %p13364_p5 }
 0x1d7   : > { %p13370_p8 = pnand %p13368_p7, %p13365_p6 }
 0x1d9   : > { %13373 = shalt.err (!%p13370_p8)
}
 0x1da   : > { %s13374_s5 = scalar_lea.vmem %s2038_s11, 384  ;;  %p13381_p12 = scmp.lt.s32.totalorder %s2038_s11, %s2038_s11 }
 0x1db   : > { %p13375_p9 = scmp.ne.s32.totalorder %s2038_s11, %s13374_s5  ;;  %p13382_p13 = scmp.lt.s32.totalorder %s13374_s5, %s13374_s5 }
 0x1dd   : > { %p13376_p10 = pnand %p13375_p9, %p11518_p3  ;;  %p13383_p0 = por %p13382_p13, %p13381_p12 }
 0x1df   : > { %p13377_p11 = pneg %p13376_p10 }
 0x1e1   : > { %p13384_p1 = pnand %p13383_p0, %p13377_p11 }
 0x1e3   : > { %13387 = shalt.err (!%p13384_p1)
}
 0x1e4   : > { %s18795_s18 = sld [smem:[#allocation138_spill]] }
 0x1e5   : > { %11357 = dma.hbm_to_vmem [thread:$0]  (%p11518_p3), %s14856_s25, 384, %s2038_s11, [#allocation45], %s18793_s28, %s18793_s28, %s18635_s26  }
 0x1ea   : > { %s13388_s2 = scalar_lea.hbm %s18795_s18, 512 }
 0x1eb   : > { %p13389_p4 = scmp.ne.s32.totalorder %s18795_s18, %s13388_s2  ;;  %p13394_p7 = scmp.lt.u32.totalorder %s13388_s2, %s18795_s18 }
 0x1ed   : > { %p13390_p5 = pnand %p13389_p4, %p11518_p3 }
 0x1ef   : > { %p13391_p6 = pneg %p13390_p5 }
 0x1f1   : > { %p13396_p8 = pnand %p13394_p7, %p13391_p6 }
 0x1f3   : > { %13399 = shalt.err (!%p13396_p8)
}
 0x1f4   : > { %s13400_s23 = scalar_lea.vmem %s15275_s22, 512  ;;  %p13407_p12 = scmp.lt.s32.totalorder %s15275_s22, %s15275_s22 }
 0x1f5   : > { %p13401_p9 = scmp.ne.s32.totalorder %s15275_s22, %s13400_s23  ;;  %p13408_p13 = scmp.lt.s32.totalorder %s13400_s23, %s13400_s23 }
 0x1f7   : > { %p13402_p10 = pnand %p13401_p9, %p11518_p3  ;;  %p13409_p0 = por %p13408_p13, %p13407_p12 }
 0x1f9   : > { %p13403_p11 = pneg %p13402_p10 }
 0x1fb   : > { %p13410_p1 = pnand %p13409_p0, %p13403_p11 }
 0x1fd   : > { %13413 = shalt.err (!%p13410_p1)
}
 0x1fe   : > { %s18796_s11 = sld [smem:[#allocation140_spill]]  ;;  %s14637_s10 = smov [#allocation50]  }
 0x1ff   : > { %11361 = dma.hbm_to_vmem [thread:$0]  (%p11518_p3), %s18795_s18, 512, %s15275_s22, [#allocation48], %s18793_s28, %s18793_s28, %s18635_s26  }
 0x200   : > { %s2090_s5 = sshll.u32 %s14637_s10, 4  ;;  %s14638_s2 = smov [#allocation53]   ;;  %s2091_s5 = int_to_ptr.vmem [resolvable:$true] %s2090_s5 }
 0x201   : > { %s2116_s3 = sshll.u32 %s14638_s2, 4  ;;  %s15308_s3 = int_to_ptr.vmem [resolvable:$true] %s2116_s3 }
 0x204   : > { %s13414_s23 = scalar_lea.hbm %s18796_s11, 512 }
 0x205   : > { %p13415_p4 = scmp.ne.s32.totalorder %s18796_s11, %s13414_s23  ;;  %p13420_p7 = scmp.lt.u32.totalorder %s13414_s23, %s18796_s11 }
 0x207   : > { %p13416_p5 = pnand %p13415_p4, %p11518_p3 }
 0x209   : > { %p13417_p6 = pneg %p13416_p5 }
 0x20b   : > { %p13422_p8 = pnand %p13420_p7, %p13417_p6 }
 0x20d   : > { %13425 = shalt.err (!%p13422_p8)
}
 0x20e   : > { %s13426_s4 = scalar_lea.vmem %s2091_s5, 512  ;;  %p13433_p12 = scmp.lt.s32.totalorder %s2091_s5, %s2091_s5 }
 0x20f   : > { %p13427_p9 = scmp.ne.s32.totalorder %s2091_s5, %s13426_s4  ;;  %p13434_p13 = scmp.lt.s32.totalorder %s13426_s4, %s13426_s4 }
 0x211   : > { %p13428_p10 = pnand %p13427_p9, %p11518_p3  ;;  %p13435_p0 = por %p13434_p13, %p13433_p12 }
 0x213   : > { %p13429_p11 = pneg %p13428_p10 }
 0x215   : > { %p13436_p1 = pnand %p13435_p0, %p13429_p11 }
 0x217   : > { %13439 = shalt.err (!%p13436_p1)
}
 0x218   : > { %s18797_s22 = sld [smem:[#allocation142_spill]] }
 0x219   : > { %11365 = dma.hbm_to_vmem [thread:$0]  (%p11518_p3), %s18796_s11, 512, %s2091_s5, [#allocation51], %s18793_s28, %s18793_s28, %s18635_s26  }
 0x21e   : > { %s13440_s10 = scalar_lea.hbm %s18797_s22, 128 }
 0x21f   : > { %p13441_p4 = scmp.ne.s32.totalorder %s18797_s22, %s13440_s10  ;;  %p13446_p7 = scmp.lt.u32.totalorder %s13440_s10, %s18797_s22 }
 0x221   : > { %p13442_p5 = pnand %p13441_p4, %p11518_p3 }
 0x223   : > { %p13443_p6 = pneg %p13442_p5 }
 0x225   : > { %p13448_p8 = pnand %p13446_p7, %p13443_p6 }
 0x227   : > { %13451 = shalt.err (!%p13448_p8)
}
 0x228   : > { %s13452_s4 = scalar_lea.vmem %s15308_s3, 128  ;;  %p13459_p12 = scmp.lt.s32.totalorder %s15308_s3, %s15308_s3 }
 0x229   : > { %p13453_p9 = scmp.ne.s32.totalorder %s15308_s3, %s13452_s4  ;;  %p13460_p13 = scmp.lt.s32.totalorder %s13452_s4, %s13452_s4 }
 0x22b   : > { %p13454_p10 = pnand %p13453_p9, %p11518_p3  ;;  %p13461_p0 = por %p13460_p13, %p13459_p12 }
 0x22d   : > { %p13455_p11 = pneg %p13454_p10 }
 0x22f   : > { %p13462_p1 = pnand %p13461_p0, %p13455_p11 }
 0x231   : > { %13465 = shalt.err (!%p13462_p1)
}
 0x232   : > { %s18798_s5 = sld [smem:[#allocation145_spill]]  ;;  %s14639_s2 = smov [#allocation56]  }
 0x233   : > { %11369 = dma.hbm_to_vmem [thread:$0]  (%p11518_p3), %s18797_s22, 128, %s15308_s3, [#allocation54], %s18792_s1, %s18792_s1, %s18794_s7  }
 0x234   : > { %s2145_s23 = sshll.u32 %s14639_s2, 4  ;;  %s14640_s10 = smov [#allocation59]   ;;  %s2146_s23 = int_to_ptr.vmem [resolvable:$true] %s2145_s23 }
 0x235   : > { %s2174_s26 = sshll.u32 %s14640_s10, 4  ;;  %s15341_s26 = int_to_ptr.vmem [resolvable:$true] %s2174_s26 }
 0x238   : > { %s13466_s4 = scalar_lea.hbm %s18798_s5, 256 }
 0x239   : > { %p13467_p4 = scmp.ne.s32.totalorder %s18798_s5, %s13466_s4  ;;  %p13472_p7 = scmp.lt.u32.totalorder %s13466_s4, %s18798_s5 }
 0x23b   : > { %p13468_p5 = pnand %p13467_p4, %p11518_p3 }
 0x23d   : > { %p13469_p6 = pneg %p13468_p5 }
 0x23f   : > { %p13474_p8 = pnand %p13472_p7, %p13469_p6 }
 0x241   : > { %13477 = shalt.err (!%p13474_p8)
}
 0x242   : > { %s13478_s6 = scalar_lea.vmem %s2146_s23, 256  ;;  %p13485_p12 = scmp.lt.s32.totalorder %s2146_s23, %s2146_s23 }
 0x243   : > { %p13479_p9 = scmp.ne.s32.totalorder %s2146_s23, %s13478_s6  ;;  %p13486_p13 = scmp.lt.s32.totalorder %s13478_s6, %s13478_s6 }
 0x245   : > { %p13480_p10 = pnand %p13479_p9, %p11518_p3  ;;  %p13487_p0 = por %p13486_p13, %p13485_p12 }
 0x247   : > { %p13481_p11 = pneg %p13480_p10 }
 0x249   : > { %p13488_p1 = pnand %p13487_p0, %p13481_p11 }
 0x24b   : > { %13491 = shalt.err (!%p13488_p1)
}
 0x24c   : > { %s18799_s3 = smov 8   ;;  %s18800_s2 = sld [smem:[#allocation148_spill]] }
 0x24d   : > { %11373 = dma.hbm_to_vmem [thread:$0]  (%p11518_p3), %s18798_s5, 256, %s2146_s23, [#allocation57], %s18793_s28, %s18793_s28, %s18799_s3  }
 0x252   : > { %s13492_s10 = scalar_lea.hbm %s18800_s2, 512 }
 0x253   : > { %p13493_p4 = scmp.ne.s32.totalorder %s18800_s2, %s13492_s10  ;;  %p13498_p7 = scmp.lt.u32.totalorder %s13492_s10, %s18800_s2 }
 0x255   : > { %p13494_p5 = pnand %p13493_p4, %p11518_p3 }
 0x257   : > { %p13495_p6 = pneg %p13494_p5 }
 0x259   : > { %p13500_p8 = pnand %p13498_p7, %p13495_p6 }
 0x25b   : > { %13503 = shalt.err (!%p13500_p8)
}
 0x25c   : > { %s13504_s6 = scalar_lea.vmem %s15341_s26, 512  ;;  %p13511_p12 = scmp.lt.s32.totalorder %s15341_s26, %s15341_s26 }
 0x25d   : > { %p13505_p9 = scmp.ne.s32.totalorder %s15341_s26, %s13504_s6  ;;  %p13512_p13 = scmp.lt.s32.totalorder %s13504_s6, %s13504_s6 }
 0x25f   : > { %p13506_p10 = pnand %p13505_p9, %p11518_p3  ;;  %p13513_p0 = por %p13512_p13, %p13511_p12 }
 0x261   : > { %p13507_p11 = pneg %p13506_p10 }
 0x263   : > { %p13514_p1 = pnand %p13513_p0, %p13507_p11 }
 0x265   : > { %13517 = shalt.err (!%p13514_p1)
}
 0x266   : > { %s18801_s23 = sld [smem:[#allocation150_spill]]  ;;  %s14641_s4 = smov [#allocation62]  }
 0x267   : > { %11377 = dma.hbm_to_vmem [thread:$0]  (%p11518_p3), %s18800_s2, 512, %s15341_s26, [#allocation60], %s18793_s28, %s18793_s28, %s18799_s3  }
 0x268   : > { %s2198_s10 = sshll.u32 %s14641_s4, 4  ;;  %s14642_s5 = smov [#allocation65]   ;;  %s2199_s10 = int_to_ptr.vmem [resolvable:$true] %s2198_s10 }
 0x269   : > { %s2227_s8 = sshll.u32 %s14642_s5, 4  ;;  %s15374_s8 = int_to_ptr.vmem [resolvable:$true] %s2227_s8 }
 0x26c   : > { %s13518_s6 = scalar_lea.hbm %s18801_s23, 384 }
 0x26d   : > { %p13519_p4 = scmp.ne.s32.totalorder %s18801_s23, %s13518_s6  ;;  %p13524_p7 = scmp.lt.u32.totalorder %s13518_s6, %s18801_s23 }
 0x26f   : > { %p13520_p5 = pnand %p13519_p4, %p11518_p3 }
 0x271   : > { %p13521_p6 = pneg %p13520_p5 }
 0x273   : > { %p13526_p8 = pnand %p13524_p7, %p13521_p6 }
 0x275   : > { %13529 = shalt.err (!%p13526_p8)
}
 0x276   : > { %s13530_s11 = scalar_lea.vmem %s2199_s10, 384  ;;  %p13537_p12 = scmp.lt.s32.totalorder %s2199_s10, %s2199_s10 }
 0x277   : > { %p13531_p9 = scmp.ne.s32.totalorder %s2199_s10, %s13530_s11  ;;  %p13538_p13 = scmp.lt.s32.totalorder %s13530_s11, %s13530_s11 }
 0x279   : > { %p13532_p10 = pnand %p13531_p9, %p11518_p3  ;;  %p13539_p0 = por %p13538_p13, %p13537_p12 }
 0x27b   : > { %p13533_p11 = pneg %p13532_p10 }
 0x27d   : > { %p13540_p1 = pnand %p13539_p0, %p13533_p11 }
 0x27f   : > { %13543 = shalt.err (!%p13540_p1)
}
 0x280   : > { %s18802_s26 = sld [smem:[#allocation153_spill]] }
 0x281   : > { %11381 = dma.hbm_to_vmem [thread:$0]  (%p11518_p3), %s18801_s23, 384, %s2199_s10, [#allocation63], %s18793_s28, %s18793_s28, %s18799_s3  }
 0x286   : > { %s13544_s5 = scalar_lea.hbm %s18802_s26, 512 }
 0x287   : > { %p13545_p4 = scmp.ne.s32.totalorder %s18802_s26, %s13544_s5  ;;  %p13550_p7 = scmp.lt.u32.totalorder %s13544_s5, %s18802_s26 }
 0x289   : > { %p13546_p5 = pnand %p13545_p4, %p11518_p3 }
 0x28b   : > { %p13547_p6 = pneg %p13546_p5 }
 0x28d   : > { %p13552_p8 = pnand %p13550_p7, %p13547_p6 }
 0x28f   : > { %13555 = shalt.err (!%p13552_p8)
}
 0x290   : > { %s13556_s11 = scalar_lea.vmem %s15374_s8, 512  ;;  %p13563_p12 = scmp.lt.s32.totalorder %s15374_s8, %s15374_s8 }
 0x291   : > { %p13557_p9 = scmp.ne.s32.totalorder %s15374_s8, %s13556_s11  ;;  %p13564_p13 = scmp.lt.s32.totalorder %s13556_s11, %s13556_s11 }
 0x293   : > { %p13558_p10 = pnand %p13557_p9, %p11518_p3  ;;  %p13565_p0 = por %p13564_p13, %p13563_p12 }
 0x295   : > { %p13559_p11 = pneg %p13558_p10 }
 0x297   : > { %p13566_p1 = pnand %p13565_p0, %p13559_p11 }
 0x299   : > { %13569 = shalt.err (!%p13566_p1)
}
 0x29a   : > { %s18803_s4 = sld [smem:[#allocation155_spill]]  ;;  %s14643_s10 = smov [#allocation68]  }
 0x29b   : > { %11385 = dma.hbm_to_vmem [thread:$0]  (%p11518_p3), %s18802_s26, 512, %s15374_s8, [#allocation66], %s18793_s28, %s18793_s28, %s18799_s3  }
 0x29c   : > { %s2254_s6 = sshll.u32 %s14643_s10, 4  ;;  %s14644_s5 = smov [#allocation71]   ;;  %s2255_s6 = int_to_ptr.vmem [resolvable:$true] %s2254_s6 }
 0x29d   : > { %s2277_s2 = sshll.u32 %s14644_s5, 4  ;;  %s15407_s2 = int_to_ptr.vmem [resolvable:$true] %s2277_s2 }
 0x2a0   : > { %s13570_s11 = scalar_lea.hbm %s18803_s4, 192 }
 0x2a1   : > { %p13571_p4 = scmp.ne.s32.totalorder %s18803_s4, %s13570_s11  ;;  %p13576_p7 = scmp.lt.u32.totalorder %s13570_s11, %s18803_s4 }
 0x2a3   : > { %p13572_p5 = pnand %p13571_p4, %p11518_p3 }
 0x2a5   : > { %p13573_p6 = pneg %p13572_p5 }
 0x2a7   : > { %p13578_p8 = pnand %p13576_p7, %p13573_p6 }
 0x2a9   : > { %13581 = shalt.err (!%p13578_p8)
}
 0x2aa   : > { %s13582_s12 = scalar_lea.vmem %s2255_s6, 192  ;;  %p13589_p12 = scmp.lt.s32.totalorder %s2255_s6, %s2255_s6 }
 0x2ab   : > { %p13583_p9 = scmp.ne.s32.totalorder %s2255_s6, %s13582_s12  ;;  %p13590_p13 = scmp.lt.s32.totalorder %s13582_s12, %s13582_s12 }
 0x2ad   : > { %p13584_p10 = pnand %p13583_p9, %p11518_p3  ;;  %p13591_p0 = por %p13590_p13, %p13589_p12 }
 0x2af   : > { %p13585_p11 = pneg %p13584_p10 }
 0x2b1   : > { %p13592_p1 = pnand %p13591_p0, %p13585_p11 }
 0x2b3   : > { %13595 = shalt.err (!%p13592_p1)
}
 0x2b4   : > { %s18804_s8 = sld [smem:[#allocation157_spill]] }
 0x2b5   : > { %11389 = dma.hbm_to_vmem [thread:$0]  (%p11518_p3), %s18803_s4, 192, %s2255_s6, [#allocation69]  }
 0x2ba   : > { %s13596_s10 = scalar_lea.hbm %s18804_s8, 512 }
 0x2bb   : > { %p13597_p4 = scmp.ne.s32.totalorder %s18804_s8, %s13596_s10  ;;  %p13602_p7 = scmp.lt.u32.totalorder %s13596_s10, %s18804_s8 }
 0x2bd   : > { %p13598_p5 = pnand %p13597_p4, %p11518_p3 }
 0x2bf   : > { %p13599_p6 = pneg %p13598_p5 }
 0x2c1   : > { %p13604_p8 = pnand %p13602_p7, %p13599_p6 }
 0x2c3   : > { %13607 = shalt.err (!%p13604_p8)
}
 0x2c4   : > { %s13608_s12 = scalar_lea.vmem %s15407_s2, 512  ;;  %p13615_p12 = scmp.lt.s32.totalorder %s15407_s2, %s15407_s2 }
 0x2c5   : > { %p13609_p9 = scmp.ne.s32.totalorder %s15407_s2, %s13608_s12  ;;  %p13616_p13 = scmp.lt.s32.totalorder %s13608_s12, %s13608_s12 }
 0x2c7   : > { %p13610_p10 = pnand %p13609_p9, %p11518_p3  ;;  %p13617_p0 = por %p13616_p13, %p13615_p12 }
 0x2c9   : > { %p13611_p11 = pneg %p13610_p10 }
 0x2cb   : > { %p13618_p1 = pnand %p13617_p0, %p13611_p11 }
 0x2cd   : > { %13621 = shalt.err (!%p13618_p1)
}
 0x2ce   : > { %s18805_s6 = sld [smem:[#allocation160_spill]]  ;;  %s14645_s5 = smov [#allocation74]  }
 0x2cf   : > { %11393 = dma.hbm_to_vmem [thread:$0]  (%p11518_p3), %s18804_s8, 512, %s15407_s2, [#allocation72], %s18793_s28, %s18793_s28, %s18799_s3  }
 0x2d0   : > { %s2306_s11 = sshll.u32 %s14645_s5, 4  ;;  %s14646_s10 = smov [#allocation77]   ;;  %s2307_s11 = int_to_ptr.vmem [resolvable:$true] %s2306_s11 }
 0x2d1   : > { %s2342_s4 = sshll.u32 %s14646_s10, 4  ;;  %s15437_s4 = int_to_ptr.vmem [resolvable:$true] %s2342_s4 }
 0x2d4   : > { %s13622_s12 = scalar_lea.hbm %s18805_s6, 256 }
 0x2d5   : > { %p13623_p4 = scmp.ne.s32.totalorder %s18805_s6, %s13622_s12  ;;  %p13628_p7 = scmp.lt.u32.totalorder %s13622_s12, %s18805_s6 }
 0x2d7   : > { %p13624_p5 = pnand %p13623_p4, %p11518_p3 }
 0x2d9   : > { %p13625_p6 = pneg %p13624_p5 }
 0x2db   : > { %p13630_p8 = pnand %p13628_p7, %p13625_p6 }
 0x2dd   : > { %13633 = shalt.err (!%p13630_p8)
}
 0x2de   : > { %s13634_s13 = scalar_lea.vmem %s2307_s11, 256  ;;  %p13641_p12 = scmp.lt.s32.totalorder %s2307_s11, %s2307_s11 }
 0x2df   : > { %p13635_p9 = scmp.ne.s32.totalorder %s2307_s11, %s13634_s13  ;;  %p13642_p13 = scmp.lt.s32.totalorder %s13634_s13, %s13634_s13 }
 0x2e1   : > { %p13636_p10 = pnand %p13635_p9, %p11518_p3  ;;  %p13643_p0 = por %p13642_p13, %p13641_p12 }
 0x2e3   : > { %p13637_p11 = pneg %p13636_p10 }
 0x2e5   : > { %p13644_p1 = pnand %p13643_p0, %p13637_p11 }
 0x2e7   : > { %13647 = shalt.err (!%p13644_p1)
}
 0x2e8   : > { %s18806_s2 = sld [smem:[#allocation165_spill]] }
 0x2e9   : > { %11397 = dma.hbm_to_vmem [thread:$0]  (%p11518_p3), %s18805_s6, 256, %s2307_s11, [#allocation75], %s18793_s28, %s18793_s28, %s18799_s3  }
 0x2ee   : > { %s13648_s5 = scalar_lea.hbm %s18806_s2, 192 }
 0x2ef   : > { %p13649_p4 = scmp.ne.s32.totalorder %s18806_s2, %s13648_s5  ;;  %p13654_p7 = scmp.lt.u32.totalorder %s13648_s5, %s18806_s2 }
 0x2f1   : > { %p13650_p5 = pnand %p13649_p4, %p11518_p3 }
 0x2f3   : > { %p13651_p6 = pneg %p13650_p5 }
 0x2f5   : > { %p13656_p8 = pnand %p13654_p7, %p13651_p6 }
 0x2f7   : > { %13659 = shalt.err (!%p13656_p8)
}
 0x2f8   : > { %s13660_s13 = scalar_lea.vmem %s15437_s4, 192  ;;  %p13667_p12 = scmp.lt.s32.totalorder %s15437_s4, %s15437_s4 }
 0x2f9   : > { %p13661_p9 = scmp.ne.s32.totalorder %s15437_s4, %s13660_s13  ;;  %p13668_p13 = scmp.lt.s32.totalorder %s13660_s13, %s13660_s13 }
 0x2fb   : > { %p13662_p10 = pnand %p13661_p9, %p11518_p3  ;;  %p13669_p0 = por %p13668_p13, %p13667_p12 }
 0x2fd   : > { %p13663_p11 = pneg %p13662_p10 }
 0x2ff   : > { %p13670_p1 = pnand %p13669_p0, %p13663_p11 }
 0x301   : > { %13673 = shalt.err (!%p13670_p1)
}
 0x302   : > { %s18807_s11 = sld [smem:[#allocation171_spill]]  ;;  %s14647_s10 = smov [#allocation80]  }
 0x303   : > { %11401 = dma.hbm_to_vmem [thread:$0]  (%p11518_p3), %s18806_s2, 192, %s15437_s4, [#allocation78]  }
 0x304   : > { %s2378_s12 = sshll.u32 %s14647_s10, 4  ;;  %s14648_s5 = smov [#allocation3]   ;;  %s2379_s12 = int_to_ptr.vmem [resolvable:$true] %s2378_s12 }
 0x305   : > { %s1697_s6 = sshll.u32 %s14648_s5, 4  ;;  %s1698_s6 = int_to_ptr.vmem [resolvable:$true] %s1697_s6 }
 0x308   : > { %s13674_s8 = scalar_lea.hbm %s18807_s11, 192 }
 0x309   : > { %p13675_p4 = scmp.ne.s32.totalorder %s18807_s11, %s13674_s8  ;;  %p13680_p7 = scmp.lt.u32.totalorder %s13674_s8, %s18807_s11 }
 0x30b   : > { %p13676_p5 = pnand %p13675_p4, %p11518_p3 }
 0x30d   : > { %p13677_p6 = pneg %p13676_p5 }
 0x30f   : > { %p13682_p8 = pnand %p13680_p7, %p13677_p6 }
 0x311   : > { %13685 = shalt.err (!%p13682_p8)
}
 0x312   : > { %s13686_s13 = scalar_lea.vmem %s2379_s12, 192  ;;  %p13693_p12 = scmp.lt.s32.totalorder %s2379_s12, %s2379_s12 }
 0x313   : > { %p13687_p9 = scmp.ne.s32.totalorder %s2379_s12, %s13686_s13  ;;  %p13694_p13 = scmp.lt.s32.totalorder %s13686_s13, %s13686_s13 }
 0x315   : > { %p13688_p10 = pnand %p13687_p9, %p11518_p3  ;;  %p13695_p0 = por %p13694_p13, %p13693_p12 }
 0x317   : > { %p13689_p11 = pneg %p13688_p10 }
 0x319   : > { %p13696_p1 = pnand %p13695_p0, %p13689_p11 }
 0x31b   : > { %13699 = shalt.err (!%p13696_p1)
}
 0x31c   : > { %s18808_s4 = sld [smem:[#allocation114_spill]] }
 0x31d   : > { %11405 = dma.hbm_to_vmem [thread:$0]  (%p11518_p3), %s18807_s11, 192, %s2379_s12, [#allocation81]  }
 0x322   : > { %s13700_s8 = scalar_lea.hbm %s18808_s4, 128 }
 0x323   : > { %p13701_p4 = scmp.ne.s32.totalorder %s18808_s4, %s13700_s8  ;;  %p13706_p7 = scmp.lt.u32.totalorder %s13700_s8, %s18808_s4 }
 0x325   : > { %p13702_p5 = pnand %p13701_p4, %p11518_p3 }
 0x327   : > { %p13703_p6 = pneg %p13702_p5 }
 0x329   : > { %p13708_p8 = pnand %p13706_p7, %p13703_p6 }
 0x32b   : > { %13711 = shalt.err (!%p13708_p8)
}
 0x32c   : > { %s13712_s10 = scalar_lea.vmem %s1698_s6, 128  ;;  %p13719_p12 = scmp.lt.s32.totalorder %s1698_s6, %s1698_s6 }
 0x32d   : > { %p13713_p9 = scmp.ne.s32.totalorder %s1698_s6, %s13712_s10  ;;  %p13720_p13 = scmp.lt.s32.totalorder %s13712_s10, %s13712_s10 }
 0x32f   : > { %p13714_p10 = pnand %p13713_p9, %p11518_p3  ;;  %p13721_p0 = por %p13720_p13, %p13719_p12 }
 0x331   : > { %p13715_p11 = pneg %p13714_p10 }
 0x333   : > { %p13722_p1 = pnand %p13721_p0, %p13715_p11 }
 0x335   : > { %13725 = shalt.err (!%p13722_p1)
}
 0x336   : > { %s18809_s12 = sld [smem:[#allocation116_spill]]  ;;  %s14649_s5 = smov [#allocation7]  }
 0x337   : > { %11303 = dma.hbm_to_vmem [thread:$0]  (%p11518_p3), %s18808_s4, 128, %s1698_s6, [#allocation4], %s18792_s1, %s18792_s1, %s18794_s7  }
 0x338   : > { %s1722_s13 = sshll.u32 %s14649_s5, 4  ;;  %s14650_s8 = smov [#allocation10]   ;;  %s1723_s13 = int_to_ptr.vmem [resolvable:$true] %s1722_s13 }
 0x339   : > { %s1744_s2 = sshll.u32 %s14650_s8, 4  ;;  %s1745_s2 = int_to_ptr.vmem [resolvable:$true] %s1744_s2 }
 0x33c   : > { %s13726_s10 = scalar_lea.hbm %s18809_s12, 32 }
 0x33d   : > { %p13727_p4 = scmp.ne.s32.totalorder %s18809_s12, %s13726_s10  ;;  %p13732_p7 = scmp.lt.u32.totalorder %s13726_s10, %s18809_s12 }
 0x33f   : > { %p13728_p5 = pnand %p13727_p4, %p11518_p3 }
 0x341   : > { %p13729_p6 = pneg %p13728_p5 }
 0x343   : > { %p13734_p8 = pnand %p13732_p7, %p13729_p6 }
 0x345   : > { %13737 = shalt.err (!%p13734_p8)
}
 0x346   : > { %s13738_s11 = scalar_lea.vmem %s1723_s13, 32  ;;  %p13745_p12 = scmp.lt.s32.totalorder %s1723_s13, %s1723_s13 }
 0x347   : > { %p13739_p9 = scmp.ne.s32.totalorder %s1723_s13, %s13738_s11  ;;  %p13746_p13 = scmp.lt.s32.totalorder %s13738_s11, %s13738_s11 }
 0x349   : > { %p13740_p10 = pnand %p13739_p9, %p11518_p3  ;;  %p13747_p0 = por %p13746_p13, %p13745_p12 }
 0x34b   : > { %p13741_p11 = pneg %p13740_p10 }
 0x34d   : > { %p13748_p1 = pnand %p13747_p0, %p13741_p11 }
 0x34f   : > { %13751 = shalt.err (!%p13748_p1)
}
 0x350   : > { %s18810_s6 = sld [smem:[#allocation117_spill]] }
 0x351   : > { %11307 = dma.hbm_to_vmem [thread:$0]  (%p11518_p3), %s18809_s12, 32, %s1723_s13, [#allocation6]  }
 0x356   : > { %s13752_s5 = scalar_lea.hbm %s18810_s6, 32 }
 0x357   : > { %p13753_p4 = scmp.ne.s32.totalorder %s18810_s6, %s13752_s5  ;;  %p13758_p7 = scmp.lt.u32.totalorder %s13752_s5, %s18810_s6 }
 0x359   : > { %p13754_p5 = pnand %p13753_p4, %p11518_p3 }
 0x35b   : > { %p13755_p6 = pneg %p13754_p5 }
 0x35d   : > { %p13760_p8 = pnand %p13758_p7, %p13755_p6 }
 0x35f   : > { %13763 = shalt.err (!%p13760_p8)
}
 0x360   : > { %s13764_s11 = scalar_lea.vmem %s1745_s2, 32  ;;  %p13771_p12 = scmp.lt.s32.totalorder %s1745_s2, %s1745_s2 }
 0x361   : > { %p13765_p9 = scmp.ne.s32.totalorder %s1745_s2, %s13764_s11  ;;  %p13772_p13 = scmp.lt.s32.totalorder %s13764_s11, %s13764_s11 }
 0x363   : > { %p13766_p10 = pnand %p13765_p9, %p11518_p3  ;;  %p13773_p0 = por %p13772_p13, %p13771_p12 }
 0x365   : > { %p13767_p11 = pneg %p13766_p10 }
 0x367   : > { %p13774_p1 = pnand %p13773_p0, %p13767_p11 }
 0x369   : > { %13777 = shalt.err (!%p13774_p1)
}
 0x36a   : > { %s18811_s13 = sld [smem:[#allocation118_spill]]  ;;  %s14651_s8 = smov [#allocation13]  }
 0x36b   : > { %11311 = dma.hbm_to_vmem [thread:$0]  (%p11518_p3), %s18810_s6, 32, %s1745_s2, [#allocation9]  }
 0x36c   : > { %s1767_s10 = sshll.u32 %s14651_s8, 4  ;;  %s14652_s5 = smov [#allocation16]   ;;  %s1768_s10 = int_to_ptr.vmem [resolvable:$true] %s1767_s10 }
 0x36d   : > { %s1793_s4 = sshll.u32 %s14652_s5, 4  ;;  %s1794_s4 = int_to_ptr.vmem [resolvable:$true] %s1793_s4 }
 0x370   : > { %s13778_s12 = scalar_lea.hbm %s18811_s13, 256 }
 0x371   : > { %p13779_p4 = scmp.ne.s32.totalorder %s18811_s13, %s13778_s12  ;;  %p13784_p7 = scmp.lt.u32.totalorder %s13778_s12, %s18811_s13 }
 0x373   : > { %p13780_p5 = pnand %p13779_p4, %p11518_p3 }
 0x375   : > { %p13781_p6 = pneg %p13780_p5 }
 0x377   : > { %p13786_p8 = pnand %p13784_p7, %p13781_p6 }
 0x379   : > { %13789 = shalt.err (!%p13786_p8)
}
 0x37a   : > { %s13790_s11 = scalar_lea.vmem %s1768_s10, 256  ;;  %p13797_p12 = scmp.lt.s32.totalorder %s1768_s10, %s1768_s10 }
 0x37b   : > { %p13791_p9 = scmp.ne.s32.totalorder %s1768_s10, %s13790_s11  ;;  %p13798_p13 = scmp.lt.s32.totalorder %s13790_s11, %s13790_s11 }
 0x37d   : > { %p13792_p10 = pnand %p13791_p9, %p11518_p3  ;;  %p13799_p0 = por %p13798_p13, %p13797_p12 }
 0x37f   : > { %p13793_p11 = pneg %p13792_p10 }
 0x381   : > { %p13800_p1 = pnand %p13799_p0, %p13793_p11 }
 0x383   : > { %13803 = shalt.err (!%p13800_p1)
}
 0x384   : > { %s18812_s2 = sld [smem:[#allocation120_spill]] }
 0x385   : > { %11315 = dma.hbm_to_vmem [thread:$0]  (%p11518_p3), %s18811_s13, 256, %s1768_s10, [#allocation12], %s18793_s28, %s18793_s28, %s18799_s3  }
 0x38a   : > { %s13804_s12 = scalar_lea.hbm %s18812_s2, 512 }
 0x38b   : > { %p13805_p4 = scmp.ne.s32.totalorder %s18812_s2, %s13804_s12  ;;  %p13810_p7 = scmp.lt.u32.totalorder %s13804_s12, %s18812_s2 }
 0x38d   : > { %p13806_p5 = pnand %p13805_p4, %p11518_p3 }
 0x38f   : > { %p13807_p6 = pneg %p13806_p5 }
 0x391   : > { %p13812_p8 = pnand %p13810_p7, %p13807_p6 }
 0x393   : > { %13815 = shalt.err (!%p13812_p8)
}
 0x394   : > { %s13816_s8 = scalar_lea.vmem %s1794_s4, 512  ;;  %p13823_p12 = scmp.lt.s32.totalorder %s1794_s4, %s1794_s4 }
 0x395   : > { %p13817_p9 = scmp.ne.s32.totalorder %s1794_s4, %s13816_s8  ;;  %p13824_p13 = scmp.lt.s32.totalorder %s13816_s8, %s13816_s8 }
 0x397   : > { %p13818_p10 = pnand %p13817_p9, %p11518_p3  ;;  %p13825_p0 = por %p13824_p13, %p13823_p12 }
 0x399   : > { %p13819_p11 = pneg %p13818_p10 }
 0x39b   : > { %p13826_p1 = pnand %p13825_p0, %p13819_p11 }
 0x39d   : > { %13829 = shalt.err (!%p13826_p1)
}
 0x39e   : > { %s18813_s10 = sld [smem:[#allocation121_spill]]  ;;  %s14653_s5 = smov [#allocation19]  }
 0x39f   : > { %11319 = dma.hbm_to_vmem [thread:$0]  (%p11518_p3), %s18812_s2, 512, %s1794_s4, [#allocation15], %s18793_s28, %s18793_s28, %s18799_s3  }
 0x3a0   : > { %s1820_s11 = sshll.u32 %s14653_s5, 4  ;;  %s14654_s12 = smov [#allocation22]   ;;  %s1821_s11 = int_to_ptr.vmem [resolvable:$true] %s1820_s11 }
 0x3a1   : > { %s1843_s6 = sshll.u32 %s14654_s12, 4  ;;  %s1844_s6 = int_to_ptr.vmem [resolvable:$true] %s1843_s6 }
 0x3a4   : > { %s13830_s8 = scalar_lea.hbm %s18813_s10, 192 }
 0x3a5   : > { %p13831_p4 = scmp.ne.s32.totalorder %s18813_s10, %s13830_s8  ;;  %p13836_p7 = scmp.lt.u32.totalorder %s13830_s8, %s18813_s10 }
 0x3a7   : > { %p13832_p5 = pnand %p13831_p4, %p11518_p3 }
 0x3a9   : > { %p13833_p6 = pneg %p13832_p5 }
 0x3ab   : > { %p13838_p8 = pnand %p13836_p7, %p13833_p6 }
 0x3ad   : > { %13841 = shalt.err (!%p13838_p8)
}
 0x3ae   : > { %s13842_s13 = scalar_lea.vmem %s1821_s11, 192  ;;  %p13849_p12 = scmp.lt.s32.totalorder %s1821_s11, %s1821_s11 }
 0x3af   : > { %p13843_p9 = scmp.ne.s32.totalorder %s1821_s11, %s13842_s13  ;;  %p13850_p13 = scmp.lt.s32.totalorder %s13842_s13, %s13842_s13 }
 0x3b1   : > { %p13844_p10 = pnand %p13843_p9, %p11518_p3  ;;  %p13851_p0 = por %p13850_p13, %p13849_p12 }
 0x3b3   : > { %p13845_p11 = pneg %p13844_p10 }
 0x3b5   : > { %p13852_p1 = pnand %p13851_p0, %p13845_p11 }
 0x3b7   : > { %13855 = shalt.err (!%p13852_p1)
}
 0x3b8   : > { %s18814_s4 = sld [smem:[#allocation122_spill]] }
 0x3b9   : > { %11323 = dma.hbm_to_vmem [thread:$0]  (%p11518_p3), %s18813_s10, 192, %s1821_s11, [#allocation18]  }
 0x3be   : > { %s13856_s5 = scalar_lea.hbm %s18814_s4, 384 }
 0x3bf   : > { %p13857_p4 = scmp.ne.s32.totalorder %s18814_s4, %s13856_s5  ;;  %p13862_p7 = scmp.lt.u32.totalorder %s13856_s5, %s18814_s4 }
 0x3c1   : > { %p13858_p5 = pnand %p13857_p4, %p11518_p3 }
 0x3c3   : > { %p13859_p6 = pneg %p13858_p5 }
 0x3c5   : > { %p13864_p8 = pnand %p13862_p7, %p13859_p6 }
 0x3c7   : > { %13867 = shalt.err (!%p13864_p8)
}
 0x3c8   : > { %s13868_s13 = scalar_lea.vmem %s1844_s6, 384  ;;  %p13875_p12 = scmp.lt.s32.totalorder %s1844_s6, %s1844_s6 }
 0x3c9   : > { %p13869_p9 = scmp.ne.s32.totalorder %s1844_s6, %s13868_s13  ;;  %p13876_p13 = scmp.lt.s32.totalorder %s13868_s13, %s13868_s13 }
 0x3cb   : > { %p13870_p10 = pnand %p13869_p9, %p11518_p3  ;;  %p13877_p0 = por %p13876_p13, %p13875_p12 }
 0x3cd   : > { %p13871_p11 = pneg %p13870_p10 }
 0x3cf   : > { %p13878_p1 = pnand %p13877_p0, %p13871_p11 }
 0x3d1   : > { %13881 = shalt.err (!%p13878_p1)
}
 0x3d2   : > { %s18815_s11 = sld [smem:[#allocation124_spill]]  ;;  %s14655_s12 = smov [#allocation25]  }
 0x3d3   : > { %11327 = dma.hbm_to_vmem [thread:$0]  (%p11518_p3), %s18814_s4, 384, %s1844_s6, [#allocation21], %s18793_s28, %s18793_s28, %s18799_s3  }
 0x3d4   : > { %s1869_s8 = sshll.u32 %s14655_s12, 4  ;;  %s14656_s5 = smov [#allocation28]   ;;  %s1870_s8 = int_to_ptr.vmem [resolvable:$true] %s1869_s8 }
 0x3d5   : > { %s1896_s2 = sshll.u32 %s14656_s5, 4  ;;  %s1897_s2 = int_to_ptr.vmem [resolvable:$true] %s1896_s2 }
 0x3d8   : > { %s13882_s13 = scalar_lea.hbm %s18815_s11, 512 }
 0x3d9   : > { %p13883_p4 = scmp.ne.s32.totalorder %s18815_s11, %s13882_s13  ;;  %p13888_p7 = scmp.lt.u32.totalorder %s13882_s13, %s18815_s11 }
 0x3db   : > { %p13884_p5 = pnand %p13883_p4, %p11518_p3 }
 0x3dd   : > { %p13885_p6 = pneg %p13884_p5 }
 0x3df   : > { %p13890_p8 = pnand %p13888_p7, %p13885_p6 }
 0x3e1   : > { %13893 = shalt.err (!%p13890_p8)
}
 0x3e2   : > { %s13894_s10 = scalar_lea.vmem %s1870_s8, 512  ;;  %p13901_p12 = scmp.lt.s32.totalorder %s1870_s8, %s1870_s8 }
 0x3e3   : > { %p13895_p9 = scmp.ne.s32.totalorder %s1870_s8, %s13894_s10  ;;  %p13902_p13 = scmp.lt.s32.totalorder %s13894_s10, %s13894_s10 }
 0x3e5   : > { %p13896_p10 = pnand %p13895_p9, %p11518_p3  ;;  %p13903_p0 = por %p13902_p13, %p13901_p12 }
 0x3e7   : > { %p13897_p11 = pneg %p13896_p10 }
 0x3e9   : > { %p13904_p1 = pnand %p13903_p0, %p13897_p11 }
 0x3eb   : > { %13907 = shalt.err (!%p13904_p1)
}
 0x3ec   : > { %s18816_s6 = sld [smem:[#allocation125_spill]] }
 0x3ed   : > { %11331 = dma.hbm_to_vmem [thread:$0]  (%p11518_p3), %s18815_s11, 512, %s1870_s8, [#allocation24], %s18793_s28, %s18793_s28, %s18799_s3  }
 0x3f2   : > { %s13908_s12 = scalar_lea.hbm %s18816_s6, 192 }
 0x3f3   : > { %p13909_p4 = scmp.ne.s32.totalorder %s18816_s6, %s13908_s12  ;;  %p13914_p7 = scmp.lt.u32.totalorder %s13908_s12, %s18816_s6 }
 0x3f5   : > { %p13910_p5 = pnand %p13909_p4, %p11518_p3 }
 0x3f7   : > { %p13911_p6 = pneg %p13910_p5 }
 0x3f9   : > { %p13916_p8 = pnand %p13914_p7, %p13911_p6 }
 0x3fb   : > { %13919 = shalt.err (!%p13916_p8)
}
 0x3fc   : > { %s13920_s10 = scalar_lea.vmem %s1897_s2, 192  ;;  %p13927_p12 = scmp.lt.s32.totalorder %s1897_s2, %s1897_s2 }
 0x3fd   : > { %p13921_p9 = scmp.ne.s32.totalorder %s1897_s2, %s13920_s10  ;;  %p13928_p13 = scmp.lt.s32.totalorder %s13920_s10, %s13920_s10 }
 0x3ff   : > { %p13922_p10 = pnand %p13921_p9, %p11518_p3  ;;  %p13929_p0 = por %p13928_p13, %p13927_p12 }
 0x401   : > { %p13923_p11 = pneg %p13922_p10 }
 0x403   : > { %p13930_p1 = pnand %p13929_p0, %p13923_p11 }
 0x405   : > { %13933 = shalt.err (!%p13930_p1)
}
 0x406   : > { %s18817_s8 = sld [smem:[#allocation127_spill]]  ;;  %s14657_s5 = smov [#allocation31]  }
 0x407   : > { %11335 = dma.hbm_to_vmem [thread:$0]  (%p11518_p3), %s18816_s6, 192, %s1897_s2, [#allocation27]  }
 0x408   : > { %s1919_s13 = sshll.u32 %s14657_s5, 4  ;;  %s14658_s12 = smov [#allocation34]   ;;  %s1920_s13 = int_to_ptr.vmem [resolvable:$true] %s1919_s13 }
 0x409   : > { %s1948_s4 = sshll.u32 %s14658_s12, 4  ;;  %s1949_s4 = int_to_ptr.vmem [resolvable:$true] %s1948_s4 }
 0x40c   : > { %s13934_s11 = scalar_lea.hbm %s18817_s8, 512 }
 0x40d   : > { %p13935_p4 = scmp.ne.s32.totalorder %s18817_s8, %s13934_s11  ;;  %p13940_p7 = scmp.lt.u32.totalorder %s13934_s11, %s18817_s8 }
 0x40f   : > { %p13936_p5 = pnand %p13935_p4, %p11518_p3 }
 0x411   : > { %p13937_p6 = pneg %p13936_p5 }
 0x413   : > { %p13942_p8 = pnand %p13940_p7, %p13937_p6 }
 0x415   : > { %13945 = shalt.err (!%p13942_p8)
}
 0x416   : > { %s13946_s10 = scalar_lea.vmem %s1920_s13, 512  ;;  %p13953_p12 = scmp.lt.s32.totalorder %s1920_s13, %s1920_s13 }
 0x417   : > { %p13947_p9 = scmp.ne.s32.totalorder %s1920_s13, %s13946_s10  ;;  %p13954_p13 = scmp.lt.s32.totalorder %s13946_s10, %s13946_s10 }
 0x419   : > { %p13948_p10 = pnand %p13947_p9, %p11518_p3  ;;  %p13955_p0 = por %p13954_p13, %p13953_p12 }
 0x41b   : > { %p13949_p11 = pneg %p13948_p10 }
 0x41d   : > { %p13956_p1 = pnand %p13955_p0, %p13949_p11 }
 0x41f   : > { %13959 = shalt.err (!%p13956_p1)
}
 0x420   : > { %s18818_s2 = sld [smem:[#allocation130_spill]] }
 0x421   : > { %11339 = dma.hbm_to_vmem [thread:$0]  (%p11518_p3), %s18817_s8, 512, %s1920_s13, [#allocation30], %s18793_s28, %s18793_s28, %s18799_s3  }
 0x426   : > { %s13960_s11 = scalar_lea.hbm %s18818_s2, 256 }
 0x427   : > { %p13961_p4 = scmp.ne.s32.totalorder %s18818_s2, %s13960_s11  ;;  %p13966_p7 = scmp.lt.u32.totalorder %s13960_s11, %s18818_s2 }
 0x429   : > { %p13962_p5 = pnand %p13961_p4, %p11518_p3 }
 0x42b   : > { %p13963_p6 = pneg %p13962_p5 }
 0x42d   : > { %p13968_p8 = pnand %p13966_p7, %p13963_p6 }
 0x42f   : > { %13971 = shalt.err (!%p13968_p8)
}
 0x430   : > { %s13972_s5 = scalar_lea.vmem %s1949_s4, 256  ;;  %p13979_p12 = scmp.lt.s32.totalorder %s1949_s4, %s1949_s4 }
 0x431   : > { %p13973_p9 = scmp.ne.s32.totalorder %s1949_s4, %s13972_s5  ;;  %p13980_p13 = scmp.lt.s32.totalorder %s13972_s5, %s13972_s5 }
 0x433   : > { %p13974_p10 = pnand %p13973_p9, %p11518_p3  ;;  %p13981_p0 = por %p13980_p13, %p13979_p12 }
 0x435   : > { %p13975_p11 = pneg %p13974_p10 }
 0x437   : > { %p13982_p1 = pnand %p13981_p0, %p13975_p11 }
 0x439   : > { %13985 = shalt.err (!%p13982_p1)
}
 0x43a   : > { %s18819_s13 = sld [smem:[#allocation131_spill]]  ;;  %s14659_s12 = smov [#allocation37]  }
 0x43b   : > { %11343 = dma.hbm_to_vmem [thread:$0]  (%p11518_p3), %s18818_s2, 256, %s1949_s4, [#allocation33], %s18793_s28, %s18793_s28, %s18799_s3  }
 0x43c   : > { %s1974_s10 = sshll.u32 %s14659_s12, 4  ;;  %s14660_s11 = smov [#allocation40]   ;;  %s1975_s10 = int_to_ptr.vmem [resolvable:$true] %s1974_s10 }
 0x43d   : > { %s2000_s6 = sshll.u32 %s14660_s11, 4  ;;  %s2001_s6 = int_to_ptr.vmem [resolvable:$true] %s2000_s6 }
 0x440   : > { %s13986_s5 = scalar_lea.hbm %s18819_s13, 256 }
 0x441   : > { %p13987_p4 = scmp.ne.s32.totalorder %s18819_s13, %s13986_s5  ;;  %p13992_p7 = scmp.lt.u32.totalorder %s13986_s5, %s18819_s13 }
 0x443   : > { %p13988_p5 = pnand %p13987_p4, %p11518_p3 }
 0x445   : > { %p13989_p6 = pneg %p13988_p5 }
 0x447   : > { %p13994_p8 = pnand %p13992_p7, %p13989_p6 }
 0x449   : > { %13997 = shalt.err (!%p13994_p8)
}
 0x44a   : > { %s13998_s8 = scalar_lea.vmem %s1975_s10, 256  ;;  %p14005_p12 = scmp.lt.s32.totalorder %s1975_s10, %s1975_s10 }
 0x44b   : > { %p13999_p9 = scmp.ne.s32.totalorder %s1975_s10, %s13998_s8  ;;  %p14006_p13 = scmp.lt.s32.totalorder %s13998_s8, %s13998_s8 }
 0x44d   : > { %p14000_p10 = pnand %p13999_p9, %p11518_p3  ;;  %p14007_p0 = por %p14006_p13, %p14005_p12 }
 0x44f   : > { %p14001_p11 = pneg %p14000_p10 }
 0x451   : > { %p14008_p1 = pnand %p14007_p0, %p14001_p11 }
 0x453   : > { %14011 = shalt.err (!%p14008_p1)
}
 0x454   : > { %s18820_s4 = sld [smem:[#allocation133_spill]] }
 0x455   : > { %11347 = dma.hbm_to_vmem [thread:$0]  (%p11518_p3), %s18819_s13, 256, %s1975_s10, [#allocation36], %s18792_s1, %s18792_s1, %s18794_s7  }
 0x45a   : > { %s14012_s12 = scalar_lea.hbm %s18820_s4, 512 }
 0x45b   : > { %p14013_p4 = scmp.ne.s32.totalorder %s18820_s4, %s14012_s12  ;;  %p14018_p7 = scmp.lt.u32.totalorder %s14012_s12, %s18820_s4 }
 0x45d   : > { %p14014_p5 = pnand %p14013_p4, %p11518_p3 }
 0x45f   : > { %p14015_p6 = pneg %p14014_p5 }
 0x461   : > { %p14020_p8 = pnand %p14018_p7, %p14015_p6 }
 0x463   : > { %14023 = shalt.err (!%p14020_p8)
}
 0x464   : > { %s14024_s8 = scalar_lea.vmem %s2001_s6, 512  ;;  %p14031_p12 = scmp.lt.s32.totalorder %s2001_s6, %s2001_s6 }
 0x465   : > { %p14025_p9 = scmp.ne.s32.totalorder %s2001_s6, %s14024_s8  ;;  %p14032_p13 = scmp.lt.s32.totalorder %s14024_s8, %s14024_s8 }
 0x467   : > { %p14026_p10 = pnand %p14025_p9, %p11518_p3  ;;  %p14033_p0 = por %p14032_p13, %p14031_p12 }
 0x469   : > { %p14027_p11 = pneg %p14026_p10 }
 0x46b   : > { %p14034_p1 = pnand %p14033_p0, %p14027_p11 }
 0x46d   : > { %14037 = shalt.err (!%p14034_p1)
}
 0x46e   : > { %s18821_s10 = sld [smem:[#allocation135_spill]]  ;;  %s14661_s11 = smov [#allocation43]  }
 0x46f   : > { %11351 = dma.hbm_to_vmem [thread:$0]  (%p11518_p3), %s18820_s4, 512, %s2001_s6, [#allocation39], %s18793_s28, %s18793_s28, %s18799_s3  }
 0x470   : > { %s2024_s5 = sshll.u32 %s14661_s11, 4  ;;  %s14662_s12 = smov [#allocation46]   ;;  %s2025_s5 = int_to_ptr.vmem [resolvable:$true] %s2024_s5 }
 0x471   : > { %s2053_s2 = sshll.u32 %s14662_s12, 4  ;;  %s2054_s2 = int_to_ptr.vmem [resolvable:$true] %s2053_s2 }
 0x474   : > { %s14038_s8 = scalar_lea.hbm %s18821_s10, 384 }
 0x475   : > { %p14039_p4 = scmp.ne.s32.totalorder %s18821_s10, %s14038_s8  ;;  %p14044_p7 = scmp.lt.u32.totalorder %s14038_s8, %s18821_s10 }
 0x477   : > { %p14040_p5 = pnand %p14039_p4, %p11518_p3 }
 0x479   : > { %p14041_p6 = pneg %p14040_p5 }
 0x47b   : > { %p14046_p8 = pnand %p14044_p7, %p14041_p6 }
 0x47d   : > { %14049 = shalt.err (!%p14046_p8)
}
 0x47e   : > { %s14050_s13 = scalar_lea.vmem %s2025_s5, 384  ;;  %p14057_p12 = scmp.lt.s32.totalorder %s2025_s5, %s2025_s5 }
 0x47f   : > { %p14051_p9 = scmp.ne.s32.totalorder %s2025_s5, %s14050_s13  ;;  %p14058_p13 = scmp.lt.s32.totalorder %s14050_s13, %s14050_s13 }
 0x481   : > { %p14052_p10 = pnand %p14051_p9, %p11518_p3  ;;  %p14059_p0 = por %p14058_p13, %p14057_p12 }
 0x483   : > { %p14053_p11 = pneg %p14052_p10 }
 0x485   : > { %p14060_p1 = pnand %p14059_p0, %p14053_p11 }
 0x487   : > { %14063 = shalt.err (!%p14060_p1)
}
 0x488   : > { %s18822_s6 = sld [smem:[#allocation137_spill]] }
 0x489   : > { %11355 = dma.hbm_to_vmem [thread:$0]  (%p11518_p3), %s18821_s10, 384, %s2025_s5, [#allocation42], %s18793_s28, %s18793_s28, %s18799_s3  }
 0x48e   : > { %s14064_s11 = scalar_lea.hbm %s18822_s6, 512 }
 0x48f   : > { %p14065_p4 = scmp.ne.s32.totalorder %s18822_s6, %s14064_s11  ;;  %p14070_p7 = scmp.lt.u32.totalorder %s14064_s11, %s18822_s6 }
 0x491   : > { %p14066_p5 = pnand %p14065_p4, %p11518_p3 }
 0x493   : > { %p14067_p6 = pneg %p14066_p5 }
 0x495   : > { %p14072_p8 = pnand %p14070_p7, %p14067_p6 }
 0x497   : > { %14075 = shalt.err (!%p14072_p8)
}
 0x498   : > { %s14076_s13 = scalar_lea.vmem %s2054_s2, 512  ;;  %p14083_p12 = scmp.lt.s32.totalorder %s2054_s2, %s2054_s2 }
 0x499   : > { %p14077_p9 = scmp.ne.s32.totalorder %s2054_s2, %s14076_s13  ;;  %p14084_p13 = scmp.lt.s32.totalorder %s14076_s13, %s14076_s13 }
 0x49b   : > { %p14078_p10 = pnand %p14077_p9, %p11518_p3  ;;  %p14085_p0 = por %p14084_p13, %p14083_p12 }
 0x49d   : > { %p14079_p11 = pneg %p14078_p10 }
 0x49f   : > { %p14086_p1 = pnand %p14085_p0, %p14079_p11 }
 0x4a1   : > { %14089 = shalt.err (!%p14086_p1)
}
 0x4a2   : > { %s18823_s5 = sld [smem:[#allocation139_spill]]  ;;  %s14663_s12 = smov [#allocation49]  }
 0x4a3   : > { %11359 = dma.hbm_to_vmem [thread:$0]  (%p11518_p3), %s18822_s6, 512, %s2054_s2, [#allocation45], %s18793_s28, %s18793_s28, %s18799_s3  }
 0x4a4   : > { %s2080_s8 = sshll.u32 %s14663_s12, 4  ;;  %s14664_s11 = smov [#allocation52]   ;;  %s2081_s8 = int_to_ptr.vmem [resolvable:$true] %s2080_s8 }
 0x4a5   : > { %s2103_s4 = sshll.u32 %s14664_s11, 4  ;;  %s2104_s4 = int_to_ptr.vmem [resolvable:$true] %s2103_s4 }
 0x4a8   : > { %s14090_s13 = scalar_lea.hbm %s18823_s5, 192 }
 0x4a9   : > { %p14091_p4 = scmp.ne.s32.totalorder %s18823_s5, %s14090_s13  ;;  %p14096_p7 = scmp.lt.u32.totalorder %s14090_s13, %s18823_s5 }
 0x4ab   : > { %p14092_p5 = pnand %p14091_p4, %p11518_p3 }
 0x4ad   : > { %p14093_p6 = pneg %p14092_p5 }
 0x4af   : > { %p14098_p8 = pnand %p14096_p7, %p14093_p6 }
 0x4b1   : > { %14101 = shalt.err (!%p14098_p8)
}
 0x4b2   : > { %s14102_s10 = scalar_lea.vmem %s2081_s8, 192  ;;  %p14109_p12 = scmp.lt.s32.totalorder %s2081_s8, %s2081_s8 }
 0x4b3   : > { %p14103_p9 = scmp.ne.s32.totalorder %s2081_s8, %s14102_s10  ;;  %p14110_p13 = scmp.lt.s32.totalorder %s14102_s10, %s14102_s10 }
 0x4b5   : > { %p14104_p10 = pnand %p14103_p9, %p11518_p3  ;;  %p14111_p0 = por %p14110_p13, %p14109_p12 }
 0x4b7   : > { %p14105_p11 = pneg %p14104_p10 }
 0x4b9   : > { %p14112_p1 = pnand %p14111_p0, %p14105_p11 }
 0x4bb   : > { %14115 = shalt.err (!%p14112_p1)
}
 0x4bc   : > { %s18824_s2 = sld [smem:[#allocation141_spill]] }
 0x4bd   : > { %11363 = dma.hbm_to_vmem [thread:$0]  (%p11518_p3), %s18823_s5, 192, %s2081_s8, [#allocation48]  }
 0x4c2   : > { %s14116_s12 = scalar_lea.hbm %s18824_s2, 512 }
 0x4c3   : > { %p14117_p4 = scmp.ne.s32.totalorder %s18824_s2, %s14116_s12  ;;  %p14122_p7 = scmp.lt.u32.totalorder %s14116_s12, %s18824_s2 }
 0x4c5   : > { %p14118_p5 = pnand %p14117_p4, %p11518_p3 }
 0x4c7   : > { %p14119_p6 = pneg %p14118_p5 }
 0x4c9   : > { %p14124_p8 = pnand %p14122_p7, %p14119_p6 }
 0x4cb   : > { %14127 = shalt.err (!%p14124_p8)
}
 0x4cc   : > { %s14128_s10 = scalar_lea.vmem %s2104_s4, 512  ;;  %p14135_p12 = scmp.lt.s32.totalorder %s2104_s4, %s2104_s4 }
 0x4cd   : > { %p14129_p9 = scmp.ne.s32.totalorder %s2104_s4, %s14128_s10  ;;  %p14136_p13 = scmp.lt.s32.totalorder %s14128_s10, %s14128_s10 }
 0x4cf   : > { %p14130_p10 = pnand %p14129_p9, %p11518_p3  ;;  %p14137_p0 = por %p14136_p13, %p14135_p12 }
 0x4d1   : > { %p14131_p11 = pneg %p14130_p10 }
 0x4d3   : > { %p14138_p1 = pnand %p14137_p0, %p14131_p11 }
 0x4d5   : > { %14141 = shalt.err (!%p14138_p1)
}
 0x4d6   : > { %s18825_s8 = sld [smem:[#allocation144_spill]]  ;;  %s14665_s11 = smov [#allocation55]  }
 0x4d7   : > { %11367 = dma.hbm_to_vmem [thread:$0]  (%p11518_p3), %s18824_s2, 512, %s2104_s4, [#allocation51], %s18793_s28, %s18793_s28, %s18799_s3  }
 0x4d8   : > { %s2132_s13 = sshll.u32 %s14665_s11, 4  ;;  %s14666_s12 = smov [#allocation58]   ;;  %s2133_s13 = int_to_ptr.vmem [resolvable:$true] %s2132_s13 }
 0x4d9   : > { %s2161_s5 = sshll.u32 %s14666_s12, 4  ;;  %s2162_s5 = int_to_ptr.vmem [resolvable:$true] %s2161_s5 }
 0x4dc   : > { %s14142_s10 = scalar_lea.hbm %s18825_s8, 256 }
 0x4dd   : > { %p14143_p4 = scmp.ne.s32.totalorder %s18825_s8, %s14142_s10  ;;  %p14148_p7 = scmp.lt.u32.totalorder %s14142_s10, %s18825_s8 }
 0x4df   : > { %p14144_p5 = pnand %p14143_p4, %p11518_p3 }
 0x4e1   : > { %p14145_p6 = pneg %p14144_p5 }
 0x4e3   : > { %p14150_p8 = pnand %p14148_p7, %p14145_p6 }
 0x4e5   : > { %14153 = shalt.err (!%p14150_p8)
}
 0x4e6   : > { %s14154_s6 = scalar_lea.vmem %s2133_s13, 256  ;;  %p14161_p12 = scmp.lt.s32.totalorder %s2133_s13, %s2133_s13 }
 0x4e7   : > { %p14155_p9 = scmp.ne.s32.totalorder %s2133_s13, %s14154_s6  ;;  %p14162_p13 = scmp.lt.s32.totalorder %s14154_s6, %s14154_s6 }
 0x4e9   : > { %p14156_p10 = pnand %p14155_p9, %p11518_p3  ;;  %p14163_p0 = por %p14162_p13, %p14161_p12 }
 0x4eb   : > { %p14157_p11 = pneg %p14156_p10 }
 0x4ed   : > { %p14164_p1 = pnand %p14163_p0, %p14157_p11 }
 0x4ef   : > { %14167 = shalt.err (!%p14164_p1)
}
 0x4f0   : > { %s18826_s4 = sld [smem:[#allocation147_spill]] }
 0x4f1   : > { %11371 = dma.hbm_to_vmem [thread:$0]  (%p11518_p3), %s18825_s8, 256, %s2133_s13, [#allocation54], %s18793_s28, %s18793_s28, %s18799_s3  }
 0x4f6   : > { %s14168_s11 = scalar_lea.hbm %s18826_s4, 512 }
 0x4f7   : > { %p14169_p4 = scmp.ne.s32.totalorder %s18826_s4, %s14168_s11  ;;  %p14174_p7 = scmp.lt.u32.totalorder %s14168_s11, %s18826_s4 }
 0x4f9   : > { %p14170_p5 = pnand %p14169_p4, %p11518_p3 }
 0x4fb   : > { %p14171_p6 = pneg %p14170_p5 }
 0x4fd   : > { %p14176_p8 = pnand %p14174_p7, %p14171_p6 }
 0x4ff   : > { %14179 = shalt.err (!%p14176_p8)
}
 0x500   : > { %s14180_s6 = scalar_lea.vmem %s2162_s5, 512  ;;  %p14187_p12 = scmp.lt.s32.totalorder %s2162_s5, %s2162_s5 }
 0x501   : > { %p14181_p9 = scmp.ne.s32.totalorder %s2162_s5, %s14180_s6  ;;  %p14188_p13 = scmp.lt.s32.totalorder %s14180_s6, %s14180_s6 }
 0x503   : > { %p14182_p10 = pnand %p14181_p9, %p11518_p3  ;;  %p14189_p0 = por %p14188_p13, %p14187_p12 }
 0x505   : > { %p14183_p11 = pneg %p14182_p10 }
 0x507   : > { %p14190_p1 = pnand %p14189_p0, %p14183_p11 }
 0x509   : > { %14193 = shalt.err (!%p14190_p1)
}
 0x50a   : > { %s18827_s13 = sld [smem:[#allocation149_spill]]  ;;  %s14667_s12 = smov [#allocation61]  }
 0x50b   : > { %11375 = dma.hbm_to_vmem [thread:$0]  (%p11518_p3), %s18826_s4, 512, %s2162_s5, [#allocation57], %s18793_s28, %s18793_s28, %s18799_s3  }
 0x50c   : > { %s2188_s10 = sshll.u32 %s14667_s12, 4  ;;  %s14668_s11 = smov [#allocation64]   ;;  %s2189_s10 = int_to_ptr.vmem [resolvable:$true] %s2188_s10 }
 0x50d   : > { %s2211_s2 = sshll.u32 %s14668_s11, 4  ;;  %s2212_s2 = int_to_ptr.vmem [resolvable:$true] %s2211_s2 }
 0x510   : > { %s14194_s6 = scalar_lea.hbm %s18827_s13, 192 }
 0x511   : > { %p14195_p4 = scmp.ne.s32.totalorder %s18827_s13, %s14194_s6  ;;  %p14200_p7 = scmp.lt.u32.totalorder %s14194_s6, %s18827_s13 }
 0x513   : > { %p14196_p5 = pnand %p14195_p4, %p11518_p3 }
 0x515   : > { %p14197_p6 = pneg %p14196_p5 }
 0x517   : > { %p14202_p8 = pnand %p14200_p7, %p14197_p6 }
 0x519   : > { %14205 = shalt.err (!%p14202_p8)
}
 0x51a   : > { %s14206_s8 = scalar_lea.vmem %s2189_s10, 192  ;;  %p14213_p12 = scmp.lt.s32.totalorder %s2189_s10, %s2189_s10 }
 0x51b   : > { %p14207_p9 = scmp.ne.s32.totalorder %s2189_s10, %s14206_s8  ;;  %p14214_p13 = scmp.lt.s32.totalorder %s14206_s8, %s14206_s8 }
 0x51d   : > { %p14208_p10 = pnand %p14207_p9, %p11518_p3  ;;  %p14215_p0 = por %p14214_p13, %p14213_p12 }
 0x51f   : > { %p14209_p11 = pneg %p14208_p10 }
 0x521   : > { %p14216_p1 = pnand %p14215_p0, %p14209_p11 }
 0x523   : > { %14219 = shalt.err (!%p14216_p1)
}
 0x524   : > { %s18828_s5 = sld [smem:[#allocation151_spill]] }
 0x525   : > { %11379 = dma.hbm_to_vmem [thread:$0]  (%p11518_p3), %s18827_s13, 192, %s2189_s10, [#allocation60]  }
 0x52a   : > { %s14220_s12 = scalar_lea.hbm %s18828_s5, 384 }
 0x52b   : > { %p14221_p4 = scmp.ne.s32.totalorder %s18828_s5, %s14220_s12  ;;  %p14226_p7 = scmp.lt.u32.totalorder %s14220_s12, %s18828_s5 }
 0x52d   : > { %p14222_p5 = pnand %p14221_p4, %p11518_p3 }
 0x52f   : > { %p14223_p6 = pneg %p14222_p5 }
 0x531   : > { %p14228_p8 = pnand %p14226_p7, %p14223_p6 }
 0x533   : > { %14231 = shalt.err (!%p14228_p8)
}
 0x534   : > { %s14232_s8 = scalar_lea.vmem %s2212_s2, 384  ;;  %p14239_p12 = scmp.lt.s32.totalorder %s2212_s2, %s2212_s2 }
 0x535   : > { %p14233_p9 = scmp.ne.s32.totalorder %s2212_s2, %s14232_s8  ;;  %p14240_p13 = scmp.lt.s32.totalorder %s14232_s8, %s14232_s8 }
 0x537   : > { %p14234_p10 = pnand %p14233_p9, %p11518_p3  ;;  %p14241_p0 = por %p14240_p13, %p14239_p12 }
 0x539   : > { %p14235_p11 = pneg %p14234_p10 }
 0x53b   : > { %p14242_p1 = pnand %p14241_p0, %p14235_p11 }
 0x53d   : > { %14245 = shalt.err (!%p14242_p1)
}
 0x53e   : > { %s18829_s10 = sld [smem:[#allocation154_spill]]  ;;  %s14669_s11 = smov [#allocation67]  }
 0x53f   : > { %11383 = dma.hbm_to_vmem [thread:$0]  (%p11518_p3), %s18828_s5, 384, %s2212_s2, [#allocation63], %s18793_s28, %s18793_s28, %s18799_s3  }
 0x540   : > { %s2240_s6 = sshll.u32 %s14669_s11, 4  ;;  %s14670_s12 = smov [#allocation70]   ;;  %s2241_s6 = int_to_ptr.vmem [resolvable:$true] %s2240_s6 }
 0x541   : > { %s2264_s4 = sshll.u32 %s14670_s12, 4  ;;  %s2265_s4 = int_to_ptr.vmem [resolvable:$true] %s2264_s4 }
 0x544   : > { %s14246_s8 = scalar_lea.hbm %s18829_s10, 512 }
 0x545   : > { %p14247_p4 = scmp.ne.s32.totalorder %s18829_s10, %s14246_s8  ;;  %p14252_p7 = scmp.lt.u32.totalorder %s14246_s8, %s18829_s10 }
 0x547   : > { %p14248_p5 = pnand %p14247_p4, %p11518_p3 }
 0x549   : > { %p14249_p6 = pneg %p14248_p5 }
 0x54b   : > { %p14254_p8 = pnand %p14252_p7, %p14249_p6 }
 0x54d   : > { %14257 = shalt.err (!%p14254_p8)
}
 0x54e   : > { %s14258_s13 = scalar_lea.vmem %s2241_s6, 512  ;;  %p14265_p12 = scmp.lt.s32.totalorder %s2241_s6, %s2241_s6 }
 0x54f   : > { %p14259_p9 = scmp.ne.s32.totalorder %s2241_s6, %s14258_s13  ;;  %p14266_p13 = scmp.lt.s32.totalorder %s14258_s13, %s14258_s13 }
 0x551   : > { %p14260_p10 = pnand %p14259_p9, %p11518_p3  ;;  %p14267_p0 = por %p14266_p13, %p14265_p12 }
 0x553   : > { %p14261_p11 = pneg %p14260_p10 }
 0x555   : > { %p14268_p1 = pnand %p14267_p0, %p14261_p11 }
 0x557   : > { %14271 = shalt.err (!%p14268_p1)
}
 0x558   : > { %s18830_s2 = sld [smem:[#allocation156_spill]] }
 0x559   : > { %11387 = dma.hbm_to_vmem [thread:$0]  (%p11518_p3), %s18829_s10, 512, %s2241_s6, [#allocation66], %s18793_s28, %s18793_s28, %s18799_s3  }
 0x55e   : > { %s14272_s11 = scalar_lea.hbm %s18830_s2, 512 }
 0x55f   : > { %p14273_p4 = scmp.ne.s32.totalorder %s18830_s2, %s14272_s11  ;;  %p14278_p7 = scmp.lt.u32.totalorder %s14272_s11, %s18830_s2 }
 0x561   : > { %p14274_p5 = pnand %p14273_p4, %p11518_p3 }
 0x563   : > { %p14275_p6 = pneg %p14274_p5 }
 0x565   : > { %p14280_p8 = pnand %p14278_p7, %p14275_p6 }
 0x567   : > { %14283 = shalt.err (!%p14280_p8)
}
 0x568   : > { %s14284_s13 = scalar_lea.vmem %s2265_s4, 512  ;;  %p14291_p12 = scmp.lt.s32.totalorder %s2265_s4, %s2265_s4 }
 0x569   : > { %p14285_p9 = scmp.ne.s32.totalorder %s2265_s4, %s14284_s13  ;;  %p14292_p13 = scmp.lt.s32.totalorder %s14284_s13, %s14284_s13 }
 0x56b   : > { %p14286_p10 = pnand %p14285_p9, %p11518_p3  ;;  %p14293_p0 = por %p14292_p13, %p14291_p12 }
 0x56d   : > { %p14287_p11 = pneg %p14286_p10 }
 0x56f   : > { %p14294_p1 = pnand %p14293_p0, %p14287_p11 }
 0x571   : > { %14297 = shalt.err (!%p14294_p1)
}
 0x572   : > { %s18831_s6 = sld [smem:[#allocation158_spill]]  ;;  %s14671_s12 = smov [#allocation73]  }
 0x573   : > { %11391 = dma.hbm_to_vmem [thread:$0]  (%p11518_p3), %s18830_s2, 512, %s2265_s4, [#allocation69], %s18793_s28, %s18793_s28, %s18799_s3  }
 0x574   : > { %s2290_s8 = sshll.u32 %s14671_s12, 4  ;;  %s14672_s11 = smov [#allocation76]   ;;  %s2291_s8 = int_to_ptr.vmem [resolvable:$true] %s2290_s8 }
 0x575   : > { %s2319_s5 = sshll.u32 %s14672_s11, 4  ;;  %s2320_s5 = int_to_ptr.vmem [resolvable:$true] %s2319_s5 }
 0x578   : > { %s14298_s13 = scalar_lea.hbm %s18831_s6, 128 }
 0x579   : > { %p14299_p4 = scmp.ne.s32.totalorder %s18831_s6, %s14298_s13  ;;  %p14304_p7 = scmp.lt.u32.totalorder %s14298_s13, %s18831_s6 }
 0x57b   : > { %p14300_p5 = pnand %p14299_p4, %p11518_p3 }
 0x57d   : > { %p14301_p6 = pneg %p14300_p5 }
 0x57f   : > { %p14306_p8 = pnand %p14304_p7, %p14301_p6 }
 0x581   : > { %14309 = shalt.err (!%p14306_p8)
}
 0x582   : > { %s14310_s10 = scalar_lea.vmem %s2291_s8, 128  ;;  %p14317_p12 = scmp.lt.s32.totalorder %s2291_s8, %s2291_s8 }
 0x583   : > { %p14311_p9 = scmp.ne.s32.totalorder %s2291_s8, %s14310_s10  ;;  %p14318_p13 = scmp.lt.s32.totalorder %s14310_s10, %s14310_s10 }
 0x585   : > { %p14312_p10 = pnand %p14311_p9, %p11518_p3  ;;  %p14319_p0 = por %p14318_p13, %p14317_p12 }
 0x587   : > { %p14313_p11 = pneg %p14312_p10 }
 0x589   : > { %p14320_p1 = pnand %p14319_p0, %p14313_p11 }
 0x58b   : > { %14323 = shalt.err (!%p14320_p1)
}
 0x58c   : > { %s18832_s4 = sld [smem:[#allocation161_spill]] }
 0x58d   : > { %11395 = dma.hbm_to_vmem [thread:$0]  (%p11518_p3), %s18831_s6, 128, %s2291_s8, [#allocation72], %s18792_s1, %s18792_s1, %s18794_s7  }
 0x592   : > { %s14324_s12 = scalar_lea.hbm %s18832_s4, 256 }
 0x593   : > { %p14325_p4 = scmp.ne.s32.totalorder %s18832_s4, %s14324_s12  ;;  %p14330_p7 = scmp.lt.u32.totalorder %s14324_s12, %s18832_s4 }
 0x595   : > { %p14326_p5 = pnand %p14325_p4, %p11518_p3 }
 0x597   : > { %p14327_p6 = pneg %p14326_p5 }
 0x599   : > { %p14332_p8 = pnand %p14330_p7, %p14327_p6 }
 0x59b   : > { %14335 = shalt.err (!%p14332_p8)
}
 0x59c   : > { %s14336_s10 = scalar_lea.vmem %s2320_s5, 256  ;;  %p14343_p12 = scmp.lt.s32.totalorder %s2320_s5, %s2320_s5 }
 0x59d   : > { %p14337_p9 = scmp.ne.s32.totalorder %s2320_s5, %s14336_s10  ;;  %p14344_p13 = scmp.lt.s32.totalorder %s14336_s10, %s14336_s10 }
 0x59f   : > { %p14338_p10 = pnand %p14337_p9, %p11518_p3  ;;  %p14345_p0 = por %p14344_p13, %p14343_p12 }
 0x5a1   : > { %p14339_p11 = pneg %p14338_p10 }
 0x5a3   : > { %p14346_p1 = pnand %p14345_p0, %p14339_p11 }
 0x5a5   : > { %14349 = shalt.err (!%p14346_p1)
}
 0x5a6   : > { %s18833_s8 = sld [smem:[#allocation166_spill]]  ;;  %s14673_s11 = smov [#allocation79]  }
 0x5a7   : > { %11399 = dma.hbm_to_vmem [thread:$0]  (%p11518_p3), %s18832_s4, 256, %s2320_s5, [#allocation75], %s18793_s28, %s18793_s28, %s18799_s3  }
 0x5a8   : > { %s2352_s13 = sshll.u32 %s14673_s11, 4  ;;  %s14674_s12 = smov [#allocation82]   ;;  %s2353_s13 = int_to_ptr.vmem [resolvable:$true] %s2352_s13 }
 0x5a9   : > { %s2394_s2 = sshll.u32 %s14674_s12, 4  ;;  %s2395_s2 = int_to_ptr.vmem [resolvable:$true] %s2394_s2 }
 0x5ac   : > { %s14350_s10 = scalar_lea.hbm %s18833_s8, 384 }
 0x5ad   : > { %p14351_p4 = scmp.ne.s32.totalorder %s18833_s8, %s14350_s10  ;;  %p14356_p7 = scmp.lt.u32.totalorder %s14350_s10, %s18833_s8 }
 0x5af   : > { %p14352_p5 = pnand %p14351_p4, %p11518_p3 }
 0x5b1   : > { %p14353_p6 = pneg %p14352_p5 }
 0x5b3   : > { %p14358_p8 = pnand %p14356_p7, %p14353_p6 }
 0x5b5   : > { %14361 = shalt.err (!%p14358_p8)
}
 0x5b6   : > { %s14362_s6 = scalar_lea.vmem %s2353_s13, 384  ;;  %p14369_p12 = scmp.lt.s32.totalorder %s2353_s13, %s2353_s13 }
 0x5b7   : > { %p14363_p9 = scmp.ne.s32.totalorder %s2353_s13, %s14362_s6  ;;  %p14370_p13 = scmp.lt.s32.totalorder %s14362_s6, %s14362_s6 }
 0x5b9   : > { %p14364_p10 = pnand %p14363_p9, %p11518_p3  ;;  %p14371_p0 = por %p14370_p13, %p14369_p12 }
 0x5bb   : > { %p14365_p11 = pneg %p14364_p10 }
 0x5bd   : > { %p14372_p1 = pnand %p14371_p0, %p14365_p11 }
 0x5bf   : > { %14375 = shalt.err (!%p14372_p1)
}
 0x5c0   : > { %11403 = dma.hbm_to_vmem [thread:$0]  (%p11518_p3), %s18833_s8, 384, %s2353_s13, [#allocation78], %s18793_s28, %s18793_s28, %s18799_s3  }
 0x5c1   : > { %s14376_s5 = scalar_lea.hbm %s15051_s14, 128 }
 0x5c2   : > { %p14377_p4 = scmp.ne.s32.totalorder %s15051_s14, %s14376_s5  ;;  %p14382_p7 = scmp.lt.u32.totalorder %s14376_s5, %s15051_s14 }
 0x5c4   : > { %p14378_p5 = pnand %p14377_p4, %p11518_p3 }
 0x5c6   : > { %p14379_p6 = pneg %p14378_p5 }
 0x5c8   : > { %p14384_p8 = pnand %p14382_p7, %p14379_p6 }
 0x5ca   : > { %14387 = shalt.err (!%p14384_p8)
}
 0x5cb   : > { %s14388_s6 = scalar_lea.vmem %s2395_s2, 128  ;;  %p14395_p12 = scmp.lt.s32.totalorder %s2395_s2, %s2395_s2 }
 0x5cc   : > { %p14389_p9 = scmp.ne.s32.totalorder %s2395_s2, %s14388_s6  ;;  %p14396_p13 = scmp.lt.s32.totalorder %s14388_s6, %s14388_s6 }
 0x5ce   : > { %p14390_p10 = pnand %p14389_p9, %p11518_p3  ;;  %p14397_p0 = por %p14396_p13, %p14395_p12 }
 0x5d0   : > { %p14391_p11 = pneg %p14390_p10 }
 0x5d2   : > { %p14398_p1 = pnand %p14397_p0, %p14391_p11 }
 0x5d4   : > { %14401 = shalt.err (!%p14398_p1)
}
 0x5d5   : > { %11407 = dma.hbm_to_vmem [thread:$0]  (%p11518_p3), %s15051_s14, 128, %s2395_s2, [#allocation81], %s18792_s1, %s18792_s1, %s18794_s7  }
 0x5d6   : > { %s14675_s11 = smov [#allocation83]   ;;  %s14402_s12 = scalar_lea.hbm %s15056_s9, 256 }
 0x5d7   : > { %s2407_s13 = sshll.u32 %s14675_s11, 4  ;;  %p14403_p4 = scmp.ne.s32.totalorder %s15056_s9, %s14402_s12  ;;  %s2408_s13 = int_to_ptr.vmem [resolvable:$true] %s2407_s13 }
 0x5d8   : > { %p14408_p7 = scmp.lt.u32.totalorder %s14402_s12, %s15056_s9 }
 0x5d9   : > { %p14404_p5 = pnand %p14403_p4, %p11518_p3 }
 0x5db   : > { %p14405_p6 = pneg %p14404_p5 }
 0x5dd   : > { %p14410_p8 = pnand %p14408_p7, %p14405_p6 }
 0x5df   : > { %14413 = shalt.err (!%p14410_p8)
}
 0x5e0   : > { %s14414_s10 = scalar_lea.vmem %s2408_s13, 256  ;;  %p14421_p12 = scmp.lt.s32.totalorder %s2408_s13, %s2408_s13 }
 0x5e1   : > { %p14415_p9 = scmp.ne.s32.totalorder %s2408_s13, %s14414_s10  ;;  %p14422_p13 = scmp.lt.s32.totalorder %s14414_s10, %s14414_s10 }
 0x5e3   : > { %p14416_p10 = pnand %p14415_p9, %p11518_p3  ;;  %p14423_p0 = por %p14422_p13, %p14421_p12 }
 0x5e5   : > { %p14417_p11 = pneg %p14416_p10 }
 0x5e7   : > { %p14424_p1 = pnand %p14423_p0, %p14417_p11 }
 0x5e9   : > { %14427 = shalt.err (!%p14424_p1)
}
 0x5ea   : > { %11409 = dma.hbm_to_vmem [thread:$0]  (%p11518_p3), %s15056_s9, 256, %s2408_s13, [#allocation84], %s18793_s28, %s18793_s28, %s18799_s3  }
 0x5eb PF: > { %2431 = sbr.rel (%p15073_p2) target bundleno = 10092 (0x276c), region = 300 }
 0x5f2   : > { %p11572_p4 = scmp.eq.s32.totalorder %s15069_s15, 0 }
 0x5f4   : > { %14433 = dma.done.wait (%p11572_p4), [#allocation4], 128  }
 0x5f5   : > { %14435 = vsyncadd (%p11572_p4), [#allocation4], 4294967168 }
 0x5f6   : > { %14437 = dma.done.wait (%p11572_p4), [#allocation6], 96  }
 0x5f7   : > { %14439 = vsyncadd (%p11572_p4), [#allocation6], 4294967200 }
 0x5f8   : > { %14441 = dma.done.wait (%p11572_p4), [#allocation9], 64  }
 0x5f9   : > { %14443 = vsyncadd (%p11572_p4), [#allocation9], 4294967232 }
 0x5fa   : > { %14445 = dma.done.wait (%p11572_p4), [#allocation12], 512  }
 0x5fb   : > { %14447 = vsyncadd (%p11572_p4), [#allocation12], 4294966784 }
 0x5fc   : > { %14449 = dma.done.wait (%p11572_p4), [#allocation15], 768  }
 0x5fd   : > { %14451 = vsyncadd (%p11572_p4), [#allocation15], 4294966528 }
 0x5fe   : > { %14453 = dma.done.wait (%p11572_p4), [#allocation18], 704  }
 0x5ff   : > { %14455 = vsyncadd (%p11572_p4), [#allocation18], 4294966592 }
 0x600   : > { %14457 = dma.done.wait (%p11572_p4), [#allocation21], 768  }
 0x601   : > { %14459 = vsyncadd (%p11572_p4), [#allocation21], 4294966528 }
 0x602   : > { %14461 = dma.done.wait (%p11572_p4), [#allocation24], 768  }
 0x603   : > { %14463 = vsyncadd (%p11572_p4), [#allocation24], 4294966528 }
 0x604   : > { %14465 = dma.done.wait (%p11572_p4), [#allocation27], 704  }
 0x605   : > { %14467 = vsyncadd (%p11572_p4), [#allocation27], 4294966592 }
 0x606   : > { %14469 = dma.done.wait (%p11572_p4), [#allocation30], 1024  }
 0x607   : > { %14471 = vsyncadd (%p11572_p4), [#allocation30], 4294966272 }
 0x608   : > { %14473 = dma.done.wait (%p11572_p4), [#allocation33], 384  }
 0x609   : > { %14475 = vsyncadd (%p11572_p4), [#allocation33], 4294966912 }
 0x60a   : > { %14477 = dma.done.wait (%p11572_p4), [#allocation36], 512  }
 0x60b   : > { %14479 = vsyncadd (%p11572_p4), [#allocation36], 4294966784 }
 0x60c   : > { %14481 = dma.done.wait (%p11572_p4), [#allocation39], 1024  }
 0x60d   : > { %14483 = vsyncadd (%p11572_p4), [#allocation39], 4294966272 }
 0x60e   : > { %14485 = dma.done.wait (%p11572_p4), [#allocation42], 576  }
 0x60f   : > { %14487 = vsyncadd (%p11572_p4), [#allocation42], 4294966720 }
 0x610   : > { %14489 = dma.done.wait (%p11572_p4), [#allocation45], 896  }
 0x611   : > { %14491 = vsyncadd (%p11572_p4), [#allocation45], 4294966400 }
 0x612   : > { %14493 = dma.done.wait (%p11572_p4), [#allocation48], 704  }
 0x613   : > { %14495 = vsyncadd (%p11572_p4), [#allocation48], 4294966592 }
 0x614   : > { %14497 = dma.done.wait (%p11572_p4), [#allocation51], 1024  }
 0x615   : > { %14499 = vsyncadd (%p11572_p4), [#allocation51], 4294966272 }
 0x616   : > { %14501 = dma.done.wait (%p11572_p4), [#allocation54], 384  }
 0x617   : > { %14503 = vsyncadd (%p11572_p4), [#allocation54], 4294966912 }
 0x618   : > { %14505 = dma.done.wait (%p11572_p4), [#allocation57], 768  }
 0x619   : > { %14507 = vsyncadd (%p11572_p4), [#allocation57], 4294966528 }
 0x61a   : > { %14509 = dma.done.wait (%p11572_p4), [#allocation60], 704  }
 0x61b   : > { %14511 = vsyncadd (%p11572_p4), [#allocation60], 4294966592 }
 0x61c   : > { %14513 = dma.done.wait (%p11572_p4), [#allocation63], 768  }
 0x61d   : > { %14515 = vsyncadd (%p11572_p4), [#allocation63], 4294966528 }
 0x61e   : > { %14517 = dma.done.wait (%p11572_p4), [#allocation66], 1024  }
 0x61f   : > { %14519 = vsyncadd (%p11572_p4), [#allocation66], 4294966272 }
 0x620   : > { %14521 = dma.done.wait (%p11572_p4), [#allocation69], 704  }
 0x621   : > { %14523 = vsyncadd (%p11572_p4), [#allocation69], 4294966592 }
 0x622   : > { %14525 = dma.done.wait (%p11572_p4), [#allocation72], 640  }
 0x623   : > { %14527 = vsyncadd (%p11572_p4), [#allocation72], 4294966656 }
 0x624   : > { %14529 = dma.done.wait (%p11572_p4), [#allocation75], 512  }
 0x625   : > { %14531 = vsyncadd (%p11572_p4), [#allocation75], 4294966784 }
 0x626   : > { %14533 = dma.done.wait (%p11572_p4), [#allocation78], 576  }
 0x627   : > { %14535 = vsyncadd (%p11572_p4), [#allocation78], 4294966720 }
 0x628   : > { %14537 = dma.done.wait (%p11572_p4), [#allocation81], 320  }
 0x629   : > { %14539 = vsyncadd (%p11572_p4), [#allocation81], 4294966976 }
 0x62a   : > { %14541 = dma.done.wait (%p11572_p4), [#allocation84], 256  }
 0x62b   : > { %14543 = vsyncadd (%p11572_p4), [#allocation84], 4294967040  ;;  %v2842_v0 = vlaneseq  ;;  %v14676_v1 = vmov 0.0   ;;  %v2814_v7 = vld [vmem:[#allocation5] sm:$0xf]  ;;  %p2801_p2 = scmp.lt.s32.totalorder %s15069_s15, 1 }
 0x62c   : > { %8666 = vst [vmem:[#allocation2 + $0x18] sm:$0xff] %v14676_v1  ;;  %5729 = vst [vmem:[#allocation2 + $0x28] sm:$0xff] %v14676_v1  ;;  %s14677_s16 = smov 113   ;;  %s18836_s1 = sld [smem:[#allocation113_spill]]  ;;  %vm2910_vm0 = vcmask 1039360   ;;  %vm2898_vm1 = vcmask 924672  }
 0x62d   : > { %5725 = vst [vmem:[#allocation2 + $0x8] sm:$0xff] %v14676_v1  ;;  %5733 = vst [vmem:[#allocation2 + $0x48] sm:$0xff] %v14676_v1  ;;  %v2843_v2 = vshrl.u32 %v2842_v0, 7  ;;  %s18716_s28 = smov 127   ;;  %s18884_s15 = smov (!%p2801_p2, %s15069_s15), 1  ;;  %vm2923_vm2 = vcmask 7168  }
 0x62e   : > { %5737 = vst [vmem:[#allocation2 + $0x68] sm:$0xff] %v14676_v1  ;;  %s18701_s7 = smov 1   ;;  %s18692_s3 = sshll.u32 %s18884_s15, 4  ;;  %vm2935_vm3 = vcmask 121856   ;;  %vm2947_vm4 = vcmask 138240   ;;  %vm2866_vm5 = vcmask 908288  }
 0x62f   : > { %v15943_v3 = vsub.s32 1, %v2843_v2  ;;  %v15945_v4 = vsub.s32 0, %v2843_v2  ;;  %v2880_v5 = vsub.s32 3, %v2843_v2  ;;  %v2848_v6 = vsub.s32 2, %v2843_v2  ;;  %s14680_s2 = smov 15   ;;  %s14681_s6 = smov 17  }
 0x630   : > { %s14682_s11 = smov 111   ;;  %s14683_s13 = smov 112   ;;  %vm2978_vm6 = vcmask 1031168   ;;  %vm2993_vm7 = vcmask 916480   ;;  %vm3016_vm8 = vcmask 900096   ;;  %vm3031_vm9 = vcmask 785408  }
 0x631   : > { %18834 = vst [vmem:[#allocation173_spill] sm:$0xff] %v15943_v3  ;;  %18835 = vst [vmem:[#allocation174_spill] sm:$0xff] %v15945_v4  ;;  %v2877_v8 = vrot.slane %v2814_v7, %v15943_v3  ;;  %v2845_v9 = vrot.slane %v2814_v7, %v15945_v4  ;;  %v2881_v10 = vrot.slane %v2814_v7, %v2880_v5  ;;  %s18713_s12 = smov 126   ;;  %s14685_s10 = smov 95   ;;  %vm3044_vm10 = vcmask 777216  }
 0x632   : > { %v2849_v11 = vrot.slane %v2814_v7, %v2848_v6  ;;  %s2805_s5 = scalar_lea.vmem %s18836_s1, %s18692_s3  ;;  %s14687_s1 = smov 96   ;;  %v18673_v6 = vmov 0   ;;  %vm3059_vm11 = vcmask 769024   ;;  %vm3153_vm12 = vcmask 1043456  }
 0x633   : > { %v2887_v12 = vrot.slane %v2877_v8, %v15943_v3  ;;  %v2855_v13 = vrot.slane %v2845_v9, %v15945_v4  ;;  %v2891_v14 = vrot.slane %v2881_v10, %v15943_v3  ;;  %v15965_v16 = vld [vmem:[%s2805_s5] sm:$0xff]  ;;  %v15967_v17 = vld [vmem:[%s2805_s5 + $0x8] sm:$0xff]  ;;  %11830 = vset.pattern.permute.xlu1 %v18673_v6  ;;  %11829 = vset.pattern.permute.xlu0 %v18673_v6  ;;  %vm3149_vm13 = vcmask 588800   ;;  %s18854_s5 = sld [smem:[#allocation129_spill]]  ;;  %s18857_s3 = sld [smem:[#allocation136_spill]] }
 0x634   : > { %v2859_v15 = vrot.slane %v2849_v11, %v15945_v4  ;;  %v11789_v18 = vpack.i.bf16 %v15967_v17, %v15965_v16  ;;  %3192 = vmatprep.mubr.bf16.mxu0 %v18673_v6  ;;  %3304 = vmatprep.mubr.bf16.mxu1 %v18673_v6  ;;  %vm3265_vm14 = vcmask 130048   ;;  %vm4215_vm15 = vcmask 261120   ;;  %s18876_s4 = sld [smem:[#allocation167_spill]] }
 0x635   : > { %2894 = vrot.lane.b32.xlu0 %v2887_v12, %s14677_s16  ;;  %2906 = vrot.lane.b32.xlu1 %v2855_v13, %s18716_s28 }
 0x639   : > { %2896 = vrot.lane.b32.xlu0 %v2891_v14, %s14677_s16  ;;  %2908 = vrot.lane.b32.xlu1 %v2859_v15, %s18716_s28  ;;  %s14686_s16 = smov 110  }
 0x63d   : > { %2919 = vrot.lane.b32.xlu0 %v2887_v12, %s18701_s7  ;;  %2921 = vrot.lane.b32.xlu1 %v2891_v14, %s18701_s7 }
 0x641   : > { %2931 = vrot.lane.b32.xlu0 %v2855_v13, %s14680_s2  ;;  %2933 = vrot.lane.b32.xlu1 %v2859_v15, %s14680_s2  ;;  %s14688_s2 = smov 94  }
 0x645   : > { %2943 = vrot.lane.b32.xlu0 %v2887_v12, %s14681_s6  ;;  %2945 = vrot.lane.b32.xlu1 %v2891_v14, %s14681_s6 }
 0x649   : > { %2862 = vrot.lane.b32.xlu0 %v2855_v13, %s14682_s11  ;;  %2864 = vrot.lane.b32.xlu1 %v2859_v15, %s14682_s11 }
 0x64d   : > { %11790 = vrot.lane.b32.xlu0 %v11789_v18, %s18716_s28  ;;  %2958 = vrot.lane.b32.xlu1 %v14676_v1, %s18716_s28 }
 0x651   : > { %11795 = vrot.lane.b32.xlu0 %v11789_v18, %s14682_s11 }
 0x6a7   : > { %v15979_v19 = vpop.permute.xlu0 %2894  ;;  %v15981_v20 = vpop.permute.xlu1 %2906 }
 0x6a8   : > { %v15984_v21 = vmul.f32 0.0, %v15981_v20  ;;  %v15987_v22 = vmul.f32 0.0, %v15979_v19 }
 0x6aa   : > { %2987 = vrot.lane.b32.xlu1 %v15984_v21, %s14683_s13  ;;  %2972 = vrot.lane.b32.xlu0 %v15987_v22, %s18713_s12 }
 0x6ab   : > { %v15993_v23 = vpop.permute.xlu0 %2896  ;;  %v15995_v24 = vpop.permute.xlu1 %2908 }
 0x6ac   : > { %v16000_v25 = vsel %vm2910_vm0, %v15981_v20, %v15995_v24  ;;  %v2917_v26 = vmul.f32 %v15995_v24, %v15967_v17  ;;  %v16008_v28 = vsel %vm2898_vm1, %v15979_v19, %v15993_v23  ;;  %v2905_v32 = vmul.f32 %v15993_v23, %v15967_v17 }
 0x6ad   : > { %v2916_v27 = vmul.f32 %v16000_v25, %v15965_v16  ;;  %v2904_v34 = vmul.f32 %v16008_v28, %v15965_v16  ;;  %vm4383_vm1 = vcmask 195584  }
 0x6ae   : > { %11805 = vrot.lane.b32.xlu1 %v11789_v18, %s14685_s10 }
 0x6af   : > { %v16011_v29 = vpop.permute.xlu0 %2919  ;;  %v16013_v30 = vpop.permute.xlu1 %2921  ;;  %v11809_v31 = vpack.i.bf16 %v2917_v26, %v2916_v27  ;;  %v11799_v41 = vpack.i.bf16 %v2905_v32, %v2904_v34 }
 0x6b0   : > { %18837 = vst [vmem:[#allocation175_spill] sm:$0xff] %v16013_v30  ;;  %v16018_v33 = vmul.f32 0.0, %v16013_v30  ;;  %v16025_v35 = vsel %vm2923_vm2, %v16011_v29, %v16013_v30  ;;  %v2928_v36 = vmul.f32 %v16011_v29, %v15965_v16 }
 0x6b1   : > { %v2929_v37 = vmul.f32 %v16025_v35, %v15967_v17 }
 0x6b2   : > { %11810 = vrot.lane.b32.xlu1 %v11809_v31, %s14683_s13  ;;  %3014 = vrot.lane.b32.xlu0 %v16018_v33, %s14686_s16 }
 0x6b3   : > { %v16034_v38 = vpop.permute.xlu0 %2931  ;;  %v16036_v39 = vpop.permute.xlu1 %2933  ;;  %v11814_v40 = vpack.i.bf16 %v2929_v37, %v2928_v36 }
 0x6b4   : > { %18838 = vst [vmem:[#allocation176_spill] sm:$0xff] %v16036_v39  ;;  %v16040_v42 = vsel %vm2935_vm3, %v16034_v38, %v16036_v39  ;;  %v2940_v43 = vmul.f32 %v16034_v38, %v15965_v16  ;;  %v16053_v48 = vmul.f32 0.0, %v16036_v39  ;;  %vm5902_vm3 = vcmask 523264  }
 0x6b5   : > { %v2941_v44 = vmul.f32 %v16040_v42, %v15967_v17 }
 0x6b6   : > { %11800 = vrot.lane.b32.xlu0 %v11799_v41, %s18713_s12  ;;  %11815 = vrot.lane.b32.xlu1 %v11814_v40, %s14686_s16 }
 0x6b7   : > { %v16048_v45 = vpop.permute.xlu0 %2943  ;;  %v16050_v46 = vpop.permute.xlu1 %2945  ;;  %v11819_v47 = vpack.i.bf16 %v2941_v44, %v2940_v43 }
 0x6b8   : > { %18839 = vst [vmem:[#allocation177_spill] sm:$0xff] %v16048_v45  ;;  %18840 = vst [vmem:[#allocation178_spill] sm:$0xff] %v16050_v46  ;;  %v16058_v49 = vsel %vm2947_vm4, %v16048_v45, %v16050_v46  ;;  %v2952_v50 = vmul.f32 %v16048_v45, %v15965_v16  ;;  %v2954_v60 = vmul.f32 0.0, %v16050_v46 }
 0x6b9   : > { %18841 = vst [vmem:[#allocation179_spill] sm:$0xff] %v16058_v49  ;;  %v2953_v51 = vmul.f32 %v16058_v49, %v15967_v17 }
 0x6ba   : > { %3029 = vrot.lane.b32.xlu0 %v16053_v48, %s14687_s1  ;;  %11820 = vrot.lane.b32.xlu1 %v11819_v47, %s14687_s1 }
 0x6bb   : > { %v11824_v52 = vpack.i.bf16 %v2953_v51, %v2952_v50  ;;  %v16067_v53 = vpop.permute.xlu0 %2862  ;;  %v16069_v54 = vpop.permute.xlu1 %2864 }
 0x6bc   : > { %18842 = vst [vmem:[#allocation180_spill] sm:$0xff] %v16069_v54  ;;  %v16074_v55 = vsel %vm2866_vm5, %v16067_v53, %v16069_v54  ;;  %v2873_v56 = vmul.f32 %v16069_v54, %v15967_v17  ;;  %v16085_v63 = vmul.f32 0.0, %v16067_v53 }
 0x6bd   : > { %18843 = vst [vmem:[#allocation181_spill] sm:$0xff] %v16074_v55  ;;  %v2872_v58 = vmul.f32 %v16074_v55, %v15965_v16 }
 0x6be   : > { %3042 = vrot.lane.b32.xlu0 %v14676_v1, %s14685_s10  ;;  %11825 = vrot.lane.b32.xlu1 %v11824_v52, %s14688_s2 }
 0x6bf   : > { %v11791_v57 = vpop.permute.xlu0 %11790  ;;  %v2959_v59 = vpop.permute.xlu1 %2958 }
 0x6c0   : > { %v11793_v61 = vunpack.i.h.bf16 %v11791_v57  ;;  %v11792_v62 = vunpack.i.l.bf16 %v11791_v57 }
 0x6c2   : > { %3057 = vrot.lane.b32.xlu0 %v2954_v60, %s14688_s2  ;;  %v2965_v0 = vsel %vm2910_vm0, %v11792_v62, %v11793_v61  ;;  %v2964_v2 = vsel %vm2910_vm0, %v2959_v59, %v11792_v62  ;;  %v3067_v5 = vpack.c.bf16 %v11793_v61, %v2873_v56 }
 0x6c3   : > { %v3066_v7 = vpack.c.bf16 %v2965_v0, %v2872_v58  ;;  %v3065_v8 = vpack.c.bf16 %v2964_v2, %v16085_v63  ;;  %v11796_v9 = vpop.permute.xlu0 %11795 }
 0x6c4   : > { %v11797_v36 = vunpack.i.l.bf16 %v11796_v9  ;;  %v11798_v57 = vunpack.i.h.bf16 %v11796_v9 }
 0x6c5   : > { %3102 = vrot.lane.b32.xlu1 %v3066_v7, %s14681_s6 }
 0x6c6   : > { %3104 = vrot.lane.b32.xlu0 %v3067_v5, %s14681_s6  ;;  %v3003_v7 = vsel %vm2866_vm5, %v11797_v36, %v11798_v57 }
 0x6c9   : > { %3100 = vrot.lane.b32.xlu1 %v3065_v8, %s14681_s6 }
 0x71c   : > { %v2988_v10 = vpop.permute.xlu1 %2987  ;;  %v2973_v11 = vpop.permute.xlu0 %2972 }
 0x720   : > { %v16098_v12 = vpop.permute.xlu1 %11805 }
 0x721   : > { %v11807_v37 = vunpack.i.l.bf16 %v16098_v12  ;;  %v11808_v2 = vunpack.i.h.bf16 %v16098_v12 }
 0x724   : > { %v3015_v13 = vpop.permute.xlu0 %3014  ;;  %v11811_v14 = vpop.permute.xlu1 %11810 }
 0x725   : > { %v11813_v17 = vunpack.i.h.bf16 %v11811_v14  ;;  %v11812_v41 = vunpack.i.l.bf16 %v11811_v14 }
 0x727   : > { %v2995_v58 = vsel %vm2993_vm7, %v11812_v41, %v11813_v17  ;;  %v2994_v8 = vsel %vm2993_vm7, %v2988_v10, %v11812_v41  ;;  %v3045_v41 = vsel %vm3044_vm10, %v11807_v37, %v11808_v2 }
 0x728   : > { %v11801_v15 = vpop.permute.xlu0 %11800  ;;  %v11816_v16 = vpop.permute.xlu1 %11815 }
 0x729   : > { %v11803_v18 = vunpack.i.h.bf16 %v11801_v15  ;;  %v11817_v26 = vunpack.i.l.bf16 %v11816_v16  ;;  %v11802_v31 = vunpack.i.l.bf16 %v11801_v15  ;;  %v11818_v47 = vunpack.i.h.bf16 %v11816_v16 }
 0x72b   : > { %v3070_v27 = vpack.c.bf16 %v11813_v17, %v11803_v18  ;;  %v3071_v43 = vpack.c.bf16 %v11817_v26, %v11797_v36  ;;  %v2980_v52 = vsel %vm2978_vm6, %v11802_v31, %v11803_v18  ;;  %v3017_v62 = vsel %vm3016_vm8, %v11817_v26, %v11818_v47 }
 0x72c   : > { %v3030_v32 = vpop.permute.xlu0 %3029  ;;  %v11821_v34 = vpop.permute.xlu1 %11820  ;;  %v3069_v60 = vpack.c.bf16 %v2995_v58, %v2980_v52  ;;  %v2979_v0 = vsel %vm2978_vm6, %v2973_v11, %v11802_v31  ;;  %v3072_v9 = vpack.c.bf16 %v3017_v62, %v3003_v7  ;;  %v3018_v11 = vsel %vm3016_vm8, %v11818_v47, %v3015_v13  ;;  %v3204_v47 = vld [vmem:[#allocation11 + $0x8] sm:$0xff]  ;;  %v3211_v52 = vld [vmem:[#allocation16] sm:$0xff]  ;;  %v3212_v58 = vld [vmem:[#allocation16 + $0x8] sm:$0xff] }
 0x72d   : > { %v11822_v40 = vunpack.i.l.bf16 %v11821_v34  ;;  %3110 = vrot.lane.b32.xlu1 %v3070_v27, %s14681_s6  ;;  %v11823_v5 = vunpack.i.h.bf16 %v11821_v34  ;;  %v3068_v14 = vpack.c.bf16 %v2994_v8, %v2979_v0  ;;  %v3073_v27 = vpack.c.bf16 %v3018_v11, %v11798_v57  ;;  %v3215_v57 = vld [vmem:[#allocation17] sm:$0xff]  ;;  %v3218_v62 = vld [vmem:[#allocation17 + $0x18] sm:$0xff] }
 0x72e   : > { %v11841_v0 = vpack.i.bf16 %v15987_v22, %v15987_v22 }
 0x72f   : > { %v3074_v44 = vpack.c.bf16 %v11807_v37, %v11822_v40  ;;  %v3033_v10 = vsel %vm3031_vm9, %v11823_v5, %v3030_v32  ;;  %v3032_v36 = vsel %vm3031_vm9, %v11822_v40, %v11823_v5  ;;  %v3205_v40 = vld [vmem:[#allocation13] sm:$0xff]  ;;  %v3206_v37 = vld [vmem:[#allocation13 + $0x8] sm:$0xff]  ;;  %v3917_v5 = vpack.c.bf16 %v16085_v63, %v16085_v63 }
 0x730   : > { %v3043_v50 = vpop.permute.xlu0 %3042  ;;  %v11826_v51 = vpop.permute.xlu1 %11825 }
 0x731   : > { %v11827_v56 = vunpack.i.l.bf16 %v11826_v51  ;;  %3112 = vrot.lane.b32.xlu1 %v3071_v43, %s14681_s6  ;;  %3118 = vrot.lane.b32.xlu0 %v3074_v44, %s14681_s6  ;;  %v3046_v16 = vsel %vm3044_vm10, %v11808_v2, %v3043_v50  ;;  %v11828_v17 = vunpack.i.h.bf16 %v11826_v51  ;;  %v3075_v44 = vpack.c.bf16 %v3045_v41, %v3032_v36  ;;  %v3203_v51 = vld [vmem:[#allocation11] sm:$0xff] }
 0x732   : > { %v3076_v26 = vpack.c.bf16 %v3046_v16, %v3033_v10  ;;  %v11851_v2 = vpack.i.bf16 %v15984_v21, %v15984_v21 }
 0x733   : > { %v3077_v59 = vpack.c.bf16 %v11827_v56, %v11827_v56  ;;  %v3060_v32 = vsel %vm3059_vm11, %v11827_v56, %v11828_v17  ;;  %v3213_v56 = vld [vmem:[#allocation16 + $0x10] sm:$0xff] }
 0x734   : > { %v3058_v61 = vpop.permute.xlu0 %3057  ;;  %v3078_v50 = vpack.c.bf16 %v3060_v32, %v3060_v32 }
 0x735   : > { %3124 = vrot.lane.b32.xlu1 %v3077_v59, %s14681_s6  ;;  %3108 = vrot.lane.b32.xlu0 %v3069_v60, %s14681_s6  ;;  %v3061_v34 = vsel %vm3059_vm11, %v11828_v17, %v3058_v61  ;;  %v3216_v59 = vld [vmem:[#allocation17 + $0x8] sm:$0xff]  ;;  %v3217_v60 = vld [vmem:[#allocation17 + $0x10] sm:$0xff]  ;;  %v3214_v61 = vld [vmem:[#allocation16 + $0x18] sm:$0xff] }
 0x736   : > { %v3079_v43 = vpack.c.bf16 %v3061_v34, %v3061_v34 }
 0x737   : > { %v3103_v15 = vpop.permute.xlu1 %3102 }
 0x738   : > { %v3105_v18 = vpop.permute.xlu0 %3104 }
 0x739   : > { %3114 = vrot.lane.b32.xlu1 %v3072_v9, %s14681_s6  ;;  %3106 = vrot.lane.b32.xlu0 %v3068_v14, %s14681_s6  ;;  %v3132_v12 = vsel %vm2947_vm4, %v3103_v15, %v3105_v18 }
 0x73a   : > { %3160 = vmatprep.subr.bf16.mxu0 %v3132_v12 }
 0x73b   : > { %v3101_v31 = vpop.permute.xlu1 %3100 }
 0x73c   : > { %v3131_v13 = vsel %vm2947_vm4, %v3101_v31, %v3103_v15 }
 0x73d   : > { %3122 = vrot.lane.b32.xlu1 %v3076_v26, %s14681_s6  ;;  %3116 = vrot.lane.b32.xlu0 %v3073_v27, %s14681_s6 }
 0x73e   : > { %3161 = vmatpush1.bf16.msra.mxu0 %v3131_v13 }
 0x741   : > { %3128 = vrot.lane.b32.xlu1 %v3079_v43, %s14681_s6  ;;  %3120 = vrot.lane.b32.xlu0 %v3075_v44, %s14681_s6  ;;  %v12951_v43 = vld [vmem:[#allocation3] sm:$0xff]  }
 0x745   : > { %3228 = vperm.xlu1 %11830, %v3204_v47   ;;  %3126 = vrot.lane.b32.xlu0 %v3078_v50, %s14681_s6 }
 0x749   : > { %3237 = vperm.xlu1 %11830, %v3205_v40   ;;  %3223 = vperm.xlu0 %11829, %v3203_v51  }
 0x74d   : > { %3327 = vperm.xlu1 %11830, %v3211_v52   ;;  %3242 = vperm.xlu0 %11829, %v3206_v37  }
 0x751   : > { %3355 = vperm.xlu1 %11830, %v3215_v57   ;;  %3332 = vperm.xlu0 %11829, %v3212_v58  }
 0x755   : > { %3337 = vperm.xlu1 %11830, %v3213_v56   ;;  %3360 = vperm.xlu0 %11829, %v3216_v59  }
 0x759   : > { %3365 = vperm.xlu1 %11830, %v3217_v60   ;;  %3342 = vperm.xlu0 %11829, %v3214_v61  }
 0x75d   : > { %11832 = vrot.lane.b32.xlu1 %v14676_v1, %s18716_s28  ;;  %3370 = vperm.xlu0 %11829, %v3218_v62  }
 0x761   : > { %11842 = vrot.lane.b32.xlu1 %v11841_v0, %s18713_s12  ;;  %11837 = vrot.lane.b32.xlu0 %v14676_v1, %s18716_s28 }
 0x765   : > { %11852 = vrot.lane.b32.xlu1 %v11851_v2, %s14683_s13  ;;  %11847 = vrot.lane.b32.xlu0 %v11841_v0, %s18713_s12 }
 0x769   : > { %4035 = vrot.lane.b32.xlu1 %v3917_v5, %s14681_s6  ;;  %11857 = vrot.lane.b32.xlu0 %v11851_v2, %s14683_s13 }
 0x76d   : > { %4041 = vrot.lane.b32.xlu0 %v3917_v5, %s14681_s6 }
 0x79f   : > { %v3111_v22 = vpop.permute.xlu1 %3110 }
 0x7a3   : > { %v3113_v7 = vpop.permute.xlu1 %3112  ;;  %v3119_v8 = vpop.permute.xlu0 %3118 }
 0x7a7   : > { %v3125_v9 = vpop.permute.xlu1 %3124  ;;  %v3109_v14 = vpop.permute.xlu0 %3108 }
 0x7a8   : > { %v3134_v21 = vsel %vm2947_vm4, %v3109_v14, %v3111_v22 }
 0x7a9   : > { %3162 = vmatprep.subr.bf16.mxu0 %v3134_v21  ;;  %v12953_v21 = vld [vmem:[#allocation14 + $0x8] sm:$0xff]  }
 0x7ab   : > { %v3115_v15 = vpop.permute.xlu1 %3114  ;;  %v3107_v16 = vpop.permute.xlu0 %3106 }
 0x7ac   : > { %v3133_v17 = vsel %vm2947_vm4, %v3107_v16, %v3109_v14  ;;  %v3135_v12 = vsel %vm2947_vm4, %v3113_v7, %v3115_v15  ;;  %v12952_v14 = vld [vmem:[#allocation14] sm:$0xff]  }
 0x7ad   : > { %3163 = vmatpush1.bf16.msra.mxu0 %v3133_v17 }
 0x7af   : > { %v3117_v63 = vpop.permute.xlu0 %3116  ;;  %v3123_v18 = vpop.permute.xlu1 %3122 }
 0x7b0   : > { %v3136_v11 = vsel %vm2947_vm4, %v3115_v15, %v3117_v63 }
 0x7b1   : > { %3164 = vmatprep.subr.bf16.mxu0 %v3136_v11 }
 0x7b2   : > { %3165 = vmatpush1.bf16.msra.mxu0 %v3135_v12 }
 0x7b3   : > { %v3121_v10 = vpop.permute.xlu0 %3120  ;;  %v3129_v31 = vpop.permute.xlu1 %3128 }
 0x7b4   : > { %v3138_v26 = vsel %vm2947_vm4, %v3121_v10, %v3123_v18  ;;  %v3137_v27 = vsel %vm2947_vm4, %v3119_v8, %v3121_v10 }
 0x7b5   : > { %3166 = vmatprep.subr.bf16.mxu0 %v3138_v26 }
 0x7b6   : > { %3167 = vmatpush1.bf16.msra.mxu0 %v3137_v27 }
 0x7b7   : > { %v3127_v34 = vpop.permute.xlu0 %3126 }
 0x7b8   : > { %v3140_v36 = vsel %vm2947_vm4, %v3127_v34, %v3129_v31  ;;  %v3139_v13 = vsel %vm2947_vm4, %v3125_v9, %v3127_v34 }
 0x7b9   : > { %10848 = vmatprep.subr.msk.bf16.mxu0 %vm3153_vm12, %v3140_v36  ;;  %v3155_v41 = vsel %vm3153_vm12, %v3139_v13, 0 }
 0x7ba   : > { %3169 = vmatpush1.bf16.msra.mxu0 %v3155_v41 }
 0x7bd   : > { %10849 = vmatmul.mubr.msk.bf16.vlgmr.msra.gmra.mrb[0].mxu0 %vm3149_vm13, %v12951_v43 }
 0x7be   : > { %4428 = vmatprep.mubr.bf16.mxu0 %v18673_v6 }
 0x7c4   : > { %v3229_v44 = vpop.permute.xlu1 %3228 }
 0x7c8   : > { %v3224_v32 = vpop.permute.xlu0 %3223  ;;  %v3238_v51 = vpop.permute.xlu1 %3237 }
 0x7cc   : > { %v3243_v59 = vpop.permute.xlu0 %3242  ;;  %v3328_v15 = vpop.permute.xlu1 %3327 }
 0x7d0   : > { %v3333_v16 = vpop.permute.xlu0 %3332  ;;  %v3356_v17 = vpop.permute.xlu1 %3355 }
 0x7d4   : > { %v3361_v63 = vpop.permute.xlu0 %3360  ;;  %v3338_v36 = vpop.permute.xlu1 %3337 }
 0x890   : > { %v16156_v47 = vpop.f32.mrb[0].mxu0 }
 0x891   : > { %v3231_v50 = vmul.f32 %v3224_v32, %v16156_v47  ;;  %v16159_v40 = vpop.f32.mrb[1].mxu0 }
 0x892   : > { %v3232_v52 = vmul.f32 %v3224_v32, %v16159_v40  ;;  %v16162_v37 = vpop.f32.mrb[2].mxu0  ;;  %v3343_v32 = vpop.permute.xlu0 %3342 }
 0x893   : > { %v3233_v57 = vmul.f32 %v3229_v44, %v16162_v37  ;;  %v16165_v58 = vpop.f32.mrb[3].mxu0  ;;  %v3245_v56 = vadd.f32 %v3238_v51, %v3231_v50 }
 0x894   : > { %v3234_v60 = vmul.f32 %v3229_v44, %v16165_v58  ;;  %v3246_v61 = vadd.f32 %v3238_v51, %v3232_v52 }
 0x895   : > { %v3247_v62 = vadd.f32 %v3243_v59, %v3233_v57  ;;  %v3249_v2 = vmax.f32 %v3245_v56, 0.0 }
 0x896   : > { %v3248_v0 = vadd.f32 %v3243_v59, %v3234_v60  ;;  %v3250_v22 = vmax.f32 %v3246_v61, 0.0 }
 0x897   : > { %v3251_v5 = vmax.f32 %v3247_v62, 0.0 }
 0x898   : > { %v3252_v7 = vmax.f32 %v3248_v0, 0.0 }
 0x899   : > { %v3253_v8 = vpack.c.bf16 %v3251_v5, %v3249_v2 }
 0x89a   : > { %v3254_v9 = vpack.c.bf16 %v3252_v7, %v3250_v22 }
 0x89c   : > { %3272 = vmatprep.subr.bf16.mxu1 %v3254_v9 }
 0x89d   : > { %3273 = vmatpush1.bf16.msra.mxu1 %v3253_v8  ;;  %v3366_v8 = vpop.permute.xlu1 %3365 }
 0x8a0   : > { %10852 = vmatmul.mubr.msk.bf16.vlgmr.msra.gmra.mrb[0].mxu1 %vm3265_vm14, %v12952_v14 }
 0x8a1   : > { %3314 = vmatprep.mubr.bf16.mxu1 %v18673_v6 }
 0x8a8   : > { %10853 = vmatmul.mubr.msk.bf16.gmra.mrb[4].mxu1 %vm3265_vm14, %v12953_v21 }
 0x973   : > { %v3306_v11 = vpop.f32.mrb[0].mxu1 }
 0x974   : > { %v3345_v18 = vmul.f32 %v3328_v15, %v3306_v11  ;;  %v3308_v12 = vpop.f32.mrb[1].mxu1  ;;  %v3371_v11 = vpop.permute.xlu0 %3370 }
 0x975   : > { %v3346_v10 = vmul.f32 %v3328_v15, %v3308_v12  ;;  %v3310_v26 = vpop.f32.mrb[2].mxu1 }
 0x976   : > { %v3373_v27 = vadd.f32 %v3356_v17, %v3345_v18  ;;  %v3347_v31 = vmul.f32 %v3333_v16, %v3310_v26  ;;  %v3312_v34 = vpop.f32.mrb[3].mxu1 }
 0x977   : > { %v3374_v13 = vadd.f32 %v3356_v17, %v3346_v10  ;;  %v3348_v41 = vmul.f32 %v3333_v16, %v3312_v34 }
 0x978   : > { %v16171_v43 = vmax.f32 %v3373_v27, 0.0  ;;  %v3375_v44 = vadd.f32 %v3361_v63, %v3347_v31 }
 0x979   : > { %v16173_v50 = vmax.f32 %v3374_v13, 0.0  ;;  %v3376_v51 = vadd.f32 %v3361_v63, %v3348_v41 }
 0x97a   : > { %v16175_v52 = vmax.f32 %v3375_v44, 0.0  ;;  %v16179_v57 = vmul.f32 %v16171_v43, %v16008_v28  ;;  %v16183_v56 = vmul.f32 %v16171_v43, %v16000_v25  ;;  %v16199_v7 = vmul.f32 %v16171_v43, %v16011_v29 }
 0x97b   : > { %v16185_v59 = vmax.f32 %v3376_v51, 0.0  ;;  %v3316_v60 = vpop.f32.mrb[4].mxu1  ;;  %v11861_v61 = vpack.i.bf16 %v16173_v50, %v16171_v43  ;;  %v3423_v62 = vmul.f32 %v16173_v50, %v15993_v23  ;;  %v16193_v0 = vmul.f32 %v16173_v50, %v15995_v24 }
 0x97c   : > { %v3349_v2 = vmul.f32 %v3338_v36, %v3316_v60  ;;  %v3318_v5 = vpop.f32.mrb[5].mxu1  ;;  %v11876_v22 = vpack.i.bf16 %v16175_v52, %v14676_v1  ;;  %v3458_v10 = vmul.f32 %v16173_v50, %v16025_v35  ;;  %v16212_v26 = vmul.f32 %v16175_v52, %v16008_v28 }
 0x97d   : > { %v3350_v9 = vmul.f32 %v3338_v36, %v3318_v5  ;;  %v3320_v14 = vpop.f32.mrb[6].mxu1  ;;  %11862 = vrot.lane.b32.xlu1 %v11861_v61, %s18716_s28  ;;  %v11881_v21 = vpack.i.bf16 %v16185_v59, %v16175_v52  ;;  %v11886_v15 = vpack.i.bf16 %v3423_v62, %v16179_v57  ;;  %v11891_v16 = vpack.i.bf16 %v16193_v0, %v16183_v56 }
 0x97e   : > { %v3377_v17 = vadd.f32 %v3366_v8, %v3349_v2  ;;  %v3351_v63 = vmul.f32 %v3343_v32, %v3320_v14  ;;  %v3322_v1 = vpop.f32.mrb[7].mxu1  ;;  %11877 = vrot.lane.b32.xlu0 %v11876_v22, %s14685_s10  ;;  %v3426_v34 = vmul.f32 %v16185_v59, %v15993_v23  ;;  %v16218_v36 = vmul.f32 %v16171_v43, %v16034_v38 }
 0x97f   : > { %v3378_v18 = vadd.f32 %v3366_v8, %v3350_v9  ;;  %v3352_v12 = vmul.f32 %v3343_v32, %v3322_v1  ;;  %v11901_v44 = vpack.i.bf16 %v3458_v10, %v16199_v7  ;;  %v3470_v32 = vmul.f32 %v16173_v50, %v16040_v42 }
 0x980   : > { %v3385_v27 = vmax.f32 %v3377_v17, 0.0  ;;  %v3379_v31 = vadd.f32 %v3371_v11, %v3351_v63  ;;  %v11926_v51 = vpack.i.bf16 %v3426_v34, %v16212_v26  ;;  %v3437_v57 = vmul.f32 %v16175_v52, %v16000_v25 }
 0x981   : > { %v3386_v13 = vmax.f32 %v3378_v18, 0.0  ;;  %v3380_v41 = vadd.f32 %v3371_v11, %v3352_v12  ;;  %11867 = vrot.lane.b32.xlu1 %v11861_v61, %s14682_s11  ;;  %v3438_v56 = vmul.f32 %v16185_v59, %v15995_v24  ;;  %v3460_v0 = vmul.f32 %v16175_v52, %v16011_v29 }
 0x982   : > { %11882 = vrot.lane.b32.xlu0 %v11881_v21, %s18716_s28  ;;  %v16230_v60 = vmax.f32 %v3379_v31, 0.0  ;;  %v11906_v2 = vpack.i.bf16 %v3470_v32, %v16218_v36  ;;  %v3411_v22 = vmul.f32 %v16173_v50, %v16069_v54  ;;  %v3414_v7 = vmul.f32 %v16185_v59, %v16069_v54 }
 0x983   : > { %v16232_v62 = vmax.f32 %v3380_v41, 0.0  ;;  %v11931_v5 = vpack.i.bf16 %v3438_v56, %v3437_v57  ;;  %v11946_v8 = vpack.i.bf16 %v3386_v13, %v3385_v27  ;;  %v3410_v9 = vmul.f32 %v16171_v43, %v16074_v55 }
 0x984   : > { %v3413_v14 = vmul.f32 %v16175_v52, %v16074_v55  ;;  %v3428_v17 = vmul.f32 %v3385_v27, %v16008_v28  ;;  %v3919_v63 = vpack.c.bf16 %v3414_v7, %v3411_v22  ;;  %v3429_v1 = vmul.f32 %v3386_v13, %v15993_v23 }
 0x985   : > { %11872 = vrot.lane.b32.xlu1 %v11861_v61, %s14685_s10  ;;  %v3440_v11 = vmul.f32 %v3385_v27, %v16000_v25  ;;  %v11916_v18 = vpack.i.bf16 %v3460_v0, %v16018_v33  ;;  %v3472_v61 = vmul.f32 %v16175_v52, %v16034_v38  ;;  %v3441_v10 = vmul.f32 %v3386_v13, %v15995_v24 }
 0x986   : > { %11897 = vrot.lane.b32.xlu0 %v11881_v21, %s14682_s11  ;;  %v3918_v12 = vpack.c.bf16 %v3413_v14, %v3410_v9  ;;  %v11971_v26 = vpack.i.bf16 %v3429_v1, %v3428_v17  ;;  %v11981_v31 = vpack.i.bf16 %v16232_v62, %v16230_v60  ;;  %v3463_v34 = vmul.f32 %v3385_v27, %v16011_v29 }
 0x987   : > { %v3464_v21 = vmul.f32 %v3386_v13, %v16025_v35  ;;  %v11976_v36 = vpack.i.bf16 %v3441_v10, %v3440_v11  ;;  %v3475_v41 = vmul.f32 %v3385_v27, %v16034_v38  ;;  %v3476_v32 = vmul.f32 %v3386_v13, %v16040_v42 }
 0x988   : > { %v3431_v56 = vmul.f32 %v16230_v60, %v16008_v28  ;;  %v3432_v22 = vmul.f32 %v16232_v62, %v15993_v23  ;;  %v11921_v7 = vpack.i.bf16 %v3472_v61, %v16053_v48  ;;  %v3482_v9 = vmul.f32 %v16173_v50, %v16058_v49 }
 0x989   : > { %11887 = vrot.lane.b32.xlu1 %v11886_v15, %s18713_s12  ;;  %v11986_v57 = vpack.i.bf16 %v3464_v21, %v3463_v34  ;;  %v11991_v0 = vpack.i.bf16 %v3476_v32, %v3475_v41  ;;  %v3481_v15 = vmul.f32 %v16171_v43, %v16048_v45  ;;  %v3443_v17 = vmul.f32 %v16230_v60, %v16000_v25 }
 0x98a   : > { %11917 = vrot.lane.b32.xlu0 %v11916_v18, %s14686_s16  ;;  %v12011_v14 = vpack.i.bf16 %v3432_v22, %v3431_v56  ;;  %v3444_v1 = vmul.f32 %v16232_v62, %v15995_v24  ;;  %v16278_v61 = vmul.f32 %v3385_v27, %v16048_v45  ;;  %v3488_v43 = vmul.f32 %v3386_v13, %v16058_v49 }
 0x98b   : > { %v12016_v11 = vpack.i.bf16 %v3482_v9, %v3481_v15  ;;  %v3416_v50 = vmul.f32 %v3385_v27, %v16074_v55  ;;  %v3417_v21 = vmul.f32 %v3386_v13, %v16069_v54  ;;  %v3420_v41 = vmul.f32 %v16232_v62, %v16069_v54  ;;  %v16292_v27 = vld [vmem:[#allocation2 + $0x18] sm:$0xff] }
 0x98c   : > { %v12026_v18 = vpack.i.bf16 %v3444_v1, %v3443_v17  ;;  %v12036_v10 = vpack.i.bf16 %v3488_v43, %v16278_v61  ;;  %v3461_v56 = vmul.f32 %v16185_v59, %v16025_v35  ;;  %v3484_v22 = vmul.f32 %v16175_v52, %v16048_v45 }
 0x98d   : > { %11892 = vrot.lane.b32.xlu1 %v11891_v16, %s14683_s13  ;;  %v3419_v16 = vmul.f32 %v16230_v60, %v16074_v55  ;;  %v3922_v32 = vpack.c.bf16 %v3420_v41, %v3417_v21  ;;  %v3467_v15 = vmul.f32 %v16232_v62, %v16025_v35  ;;  %v3485_v52 = vmul.f32 %v16185_v59, %v16058_v49 }
 0x98e   : > { %11922 = vrot.lane.b32.xlu0 %v11921_v7, %s14687_s1  ;;  %v11936_v13 = vpack.i.bf16 %v16018_v33, %v3461_v56  ;;  %v3490_v7 = vmul.f32 %v16230_v60, %v16048_v45  ;;  %v3491_v1 = vmul.f32 %v16232_v62, %v16058_v49 }
 0x98f   : > { %v3921_v34 = vpack.c.bf16 %v3419_v16, %v3416_v50  ;;  %v12046_v9 = vpack.i.bf16 %v16018_v33, %v3467_v15 }
 0x991   : > { %11902 = vrot.lane.b32.xlu1 %v11901_v44, %s14686_s16  ;;  %v11911_v44 = vpack.i.bf16 %v16292_v27, %v16185_v59 }
 0x992   : > { %11927 = vrot.lane.b32.xlu0 %v11926_v51, %s18713_s12  ;;  %v3473_v51 = vmul.f32 %v16185_v59, %v16040_v42  ;;  %v11833_v59 = vpop.permute.xlu1 %11832 }
 0x995   : > { %11907 = vrot.lane.b32.xlu1 %v11906_v2, %s14687_s1  ;;  %v11941_v2 = vpack.i.bf16 %v16053_v48, %v3473_v51 }
 0x996   : > { %11932 = vrot.lane.b32.xlu0 %v11931_v5, %s14683_s13  ;;  %v11961_v5 = vpack.i.bf16 %v16230_v60, %v16292_v27 }
 0x999   : > { %11912 = vrot.lane.b32.xlu1 %v11911_v44, %s14685_s10  ;;  %v11834_v44 = vunpack.i.l.bf16 %v11833_v59 }
 0x99a   : > { %4039 = vrot.lane.b32.xlu0 %v3919_v63, %s14681_s6  ;;  %v3466_v63 = vmul.f32 %v16230_v60, %v16011_v29 }
 0x99d   : > { %11937 = vrot.lane.b32.xlu1 %v11936_v13, %s14686_s16 }
 0x99e   : > { %11947 = vrot.lane.b32.xlu0 %v11946_v8, %s18716_s28 }
 0x9a1   : > { %11942 = vrot.lane.b32.xlu1 %v11941_v2, %s14687_s1 }
 0x9a2   : > { %11957 = vrot.lane.b32.xlu0 %v11946_v8, %s14685_s10 }
 0x9a5   : > { %4037 = vrot.lane.b32.xlu1 %v3918_v12, %s14681_s6  ;;  %v12001_v12 = vpack.i.bf16 %v3466_v63, %v16018_v33 }
 0x9a6   : > { %11972 = vrot.lane.b32.xlu0 %v11971_v26, %s18713_s12 }
 0x9a9   : > { %11952 = vrot.lane.b32.xlu1 %v11946_v8, %s14682_s11  ;;  %v3478_v8 = vmul.f32 %v16230_v60, %v16034_v38  ;;  %v3479_v60 = vmul.f32 %v16232_v62, %v16040_v42 }
 0x9aa   : > { %11977 = vrot.lane.b32.xlu0 %v11976_v36, %s14683_s13  ;;  %v11996_v36 = vpack.i.bf16 %v16292_v27, %v16232_v62 }
 0x9ab   : > { %v12006_v26 = vpack.i.bf16 %v3478_v8, %v16053_v48  ;;  %v12051_v17 = vpack.i.bf16 %v16053_v48, %v3479_v60  ;;  %v11843_v48 = vpop.permute.xlu1 %11842 }
 0x9ad   : > { %11962 = vrot.lane.b32.xlu1 %v11961_v5, %s14685_s10 }
 0x9ae   : > { %11982 = vrot.lane.b32.xlu0 %v11981_v31, %s14682_s11 }
 0x9af   : > { %v16362_v61 = vpop.permute.xlu1 %11852 }
 0x9b1   : > { %11967 = vrot.lane.b32.xlu1 %v11981_v31, %s18716_s28  ;;  %v3483_v31 = vmul.f32 %v16292_v27, %v16050_v46 }
 0x9b2   : > { %11987 = vrot.lane.b32.xlu0 %v11986_v57, %s14686_s16 }
 0x9b3   : > { %v12021_v57 = vpack.i.bf16 %v3484_v22, %v3483_v31  ;;  %v12056_v33 = vpack.i.bf16 %v3483_v31, %v3491_v1  ;;  %v16366_v62 = vpop.permute.xlu1 %4035 }
 0x9b5   : > { %12002 = vrot.lane.b32.xlu1 %v12001_v12, %s14686_s16 }
 0x9b6   : > { %11992 = vrot.lane.b32.xlu0 %v11991_v0, %s14687_s1  ;;  %v12041_v0 = vpack.i.bf16 %v3490_v7, %v3483_v31 }
 0x9b9   : > { %12007 = vrot.lane.b32.xlu1 %v12006_v26, %s14687_s1 }
 0x9ba   : > { %11997 = vrot.lane.b32.xlu0 %v11996_v36, %s14685_s10 }
 0x9bd   : > { %12012 = vrot.lane.b32.xlu1 %v12011_v14, %s18713_s12  ;;  %v12031_v14 = vpack.i.bf16 %v3483_v31, %v3485_v52 }
 0x9be   : > { %12022 = vrot.lane.b32.xlu0 %v12021_v57, %s14688_s2 }
 0x9c1   : > { %12017 = vrot.lane.b32.xlu1 %v12016_v11, %s14688_s2  ;;  %v16358_v11 = vpop.permute.xlu0 %11837 }
 0x9c2   : > { %12042 = vrot.lane.b32.xlu0 %v12041_v0, %s14688_s2 }
 0x9c5   : > { %12027 = vrot.lane.b32.xlu1 %v12026_v18, %s14683_s13  ;;  %v16360_v18 = vpop.permute.xlu0 %11847 }
 0x9c6   : > { %12047 = vrot.lane.b32.xlu0 %v12046_v9, %s14686_s16 }
 0x9c9   : > { %12032 = vrot.lane.b32.xlu1 %v12031_v14, %s14688_s2  ;;  %v16364_v43 = vpop.permute.xlu0 %11857 }
 0x9ca   : > { %12052 = vrot.lane.b32.xlu0 %v12051_v17, %s14687_s1 }
 0x9cd   : > { %12037 = vrot.lane.b32.xlu1 %v12036_v10, %s14688_s2  ;;  %v16368_v50 = vpop.permute.xlu0 %4041 }
 0x9ce   : > { %4043 = vrot.lane.b32.xlu0 %v3921_v34, %s14681_s6 }
 0x9d1   : > { %12057 = vrot.lane.b32.xlu1 %v12056_v33, %s14688_s2 }
 0x9d5   : > { %4045 = vrot.lane.b32.xlu1 %v3922_v32, %s14681_s6  ;;  %v11835_v32 = vunpack.i.h.bf16 %v11833_v59 }
 0x9ef   : > { %v11863_v16 = vpop.permute.xlu1 %11862 }
 0x9f0   : > { %v16370_v10 = vpop.permute.xlu0 %11877  ;;  %v11864_v34 = vunpack.i.l.bf16 %v11863_v16  ;;  %v11865_v31 = vunpack.i.h.bf16 %v11863_v16 }
 0x9f2   : > { %v3529_v13 = vsel %vm2910_vm0, %v11834_v44, %v11864_v34  ;;  %v3530_v9 = vsel %vm2910_vm0, %v11864_v34, %v11865_v31  ;;  %v11844_v34 = vunpack.i.l.bf16 %v11843_v48 }
 0x9f3   : > { %v11868_v21 = vpop.permute.xlu1 %11867 }
 0x9f4   : > { %v11883_v41 = vpop.permute.xlu0 %11882  ;;  %v11870_v5 = vunpack.i.h.bf16 %v11868_v21  ;;  %v11869_v8 = vunpack.i.l.bf16 %v11868_v21 }
 0x9f5   : > { %v11884_v56 = vunpack.i.l.bf16 %v11883_v41  ;;  %v11885_v26 = vunpack.i.h.bf16 %v11883_v41 }
 0x9f6   : > { %v3677_v59 = vsel %vm2866_vm5, %v11869_v8, %v11870_v5 }
 0x9f7   : > { %v3531_v51 = vsel %vm2910_vm0, %v11835_v32, %v11884_v56  ;;  %v16374_v2 = vpop.permute.xlu1 %11872  ;;  %v3532_v52 = vsel %vm2910_vm0, %v11884_v56, %v11885_v26  ;;  %v3925_v60 = vpack.c.bf16 %v11885_v26, %v11865_v31  ;;  %v11845_v32 = vunpack.i.h.bf16 %v11843_v48 }
 0x9f8   : > { %v11898_v63 = vpop.permute.xlu0 %11897  ;;  %v3923_v12 = vpack.c.bf16 %v3531_v51, %v3529_v13  ;;  %v3924_v33 = vpack.c.bf16 %v3532_v52, %v3530_v9 }
 0x9f9   : > { %v11900_v36 = vunpack.i.h.bf16 %v11898_v63  ;;  %v11899_v22 = vunpack.i.l.bf16 %v11898_v63 }
 0x9fa   : > { %4047 = vrot.lane.b32.xlu0 %v3923_v12, %s14681_s6 }
 0x9fb   : > { %v3943_v57 = vpack.c.bf16 %v11900_v36, %v11870_v5  ;;  %v3941_v7 = vpack.c.bf16 %v11899_v22, %v11869_v8  ;;  %v11888_v0 = vpop.permute.xlu1 %11887  ;;  %v3678_v17 = vsel %vm2866_vm5, %v11899_v22, %v11900_v36  ;;  %v11855_v36 = vunpack.i.h.bf16 %v16362_v61 }
 0x9fc   : > { %v16377_v15 = vpop.permute.xlu0 %11917  ;;  %v11889_v16 = vunpack.i.l.bf16 %v11888_v0  ;;  %v3942_v41 = vpack.c.bf16 %v3678_v17, %v3677_v59  ;;  %v11890_v56 = vunpack.i.h.bf16 %v11888_v0 }
 0x9fd   : > { %4083 = vrot.lane.b32.xlu1 %v3941_v7, %s14681_s6 }
 0x9fe   : > { %4087 = vrot.lane.b32.xlu0 %v3943_v57, %s14681_s6  ;;  %v3585_v63 = vsel %vm2978_vm6, %v11844_v34, %v11889_v16  ;;  %v11854_v57 = vunpack.i.l.bf16 %v16362_v61  ;;  %v3586_v61 = vsel %vm2978_vm6, %v11889_v16, %v11890_v56 }
 0x9ff   : > { %v11893_v14 = vpop.permute.xlu1 %11892 }
 0xa00   : > { %v16384_v1 = vpop.permute.xlu0 %11922  ;;  %v11894_v12 = vunpack.i.l.bf16 %v11893_v14  ;;  %v11895_v48 = vunpack.i.h.bf16 %v11893_v14 }
 0xa01   : > { %4051 = vrot.lane.b32.xlu1 %v3925_v60, %s14681_s6 }
 0xa02   : > { %4049 = vrot.lane.b32.xlu0 %v3924_v33, %s14681_s6  ;;  %v3641_v52 = vsel %vm2993_vm7, %v11854_v57, %v11894_v12 }
 0xa03   : > { %v16389_v21 = vpop.permute.xlu1 %11902 }
 0xa04   : > { %v11928_v44 = vpop.permute.xlu0 %11927 }
 0xa05   : > { %v11930_v13 = vunpack.i.h.bf16 %v11928_v44  ;;  %v11929_v51 = vunpack.i.l.bf16 %v11928_v44  ;;  %4085 = vrot.lane.b32.xlu1 %v3942_v41, %s14681_s6 }
 0xa07   : > { %v3931_v26 = vpack.c.bf16 %v11930_v13, %v11890_v56  ;;  %v3587_v5 = vsel %vm2978_vm6, %v11845_v32, %v11929_v51  ;;  %v16394_v8 = vpop.permute.xlu1 %11907  ;;  %v3588_v41 = vsel %vm2978_vm6, %v11929_v51, %v11930_v13 }
 0xa08   : > { %v11933_v22 = vpop.permute.xlu0 %11932  ;;  %v3929_v31 = vpack.c.bf16 %v3587_v5, %v3585_v63  ;;  %v3930_v44 = vpack.c.bf16 %v3588_v41, %v3586_v61  ;;  %v3642_v63 = vsel %vm2993_vm7, %v11894_v12, %v11895_v48 }
 0xa09   : > { %v11935_v7 = vunpack.i.h.bf16 %v11933_v22  ;;  %v11934_v0 = vunpack.i.l.bf16 %v11933_v22  ;;  %4063 = vrot.lane.b32.xlu0 %v3931_v26, %s14681_s6 }
 0xa0a   : > { %4059 = vrot.lane.b32.xlu1 %v3929_v31, %s14681_s6 }
 0xa0b   : > { %v3937_v9 = vpack.c.bf16 %v11935_v7, %v11895_v48  ;;  %v3643_v60 = vsel %vm2993_vm7, %v11855_v36, %v11934_v0  ;;  %v16402_v17 = vpop.permute.xlu1 %11912  ;;  %v3644_v34 = vsel %vm2993_vm7, %v11934_v0, %v11935_v7  ;;  %v11840_v7 = vunpack.i.h.bf16 %v16358_v11 }
 0xa0c   : > { %v4040_v33 = vpop.permute.xlu0 %4039  ;;  %v3935_v59 = vpack.c.bf16 %v3643_v60, %v3641_v52  ;;  %v3936_v13 = vpack.c.bf16 %v3644_v34, %v3642_v63  ;;  %v11839_v52 = vunpack.i.l.bf16 %v16358_v11 }
 0xa0d   : > { %4075 = vrot.lane.b32.xlu0 %v3937_v9, %s14681_s6 }
 0xa0e   : > { %4071 = vrot.lane.b32.xlu1 %v3935_v59, %s14681_s6 }
 0xa0f   : > { %v16408_v14 = vpop.permute.xlu1 %11937 }
 0xa10   : > { %v11948_v32 = vpop.permute.xlu0 %11947 }
 0xa11   : > { %v11949_v48 = vunpack.i.l.bf16 %v11948_v32  ;;  %v11950_v9 = vunpack.i.h.bf16 %v11948_v32 }
 0xa12   : > { %4061 = vrot.lane.b32.xlu1 %v3930_v44, %s14681_s6 }
 0xa13   : > { %v16413_v26 = vpop.permute.xlu1 %11942  ;;  %v3533_v59 = vsel %vm2910_vm0, %v11839_v52, %v11949_v48 }
 0xa14   : > { %v16415_v5 = vpop.permute.xlu0 %11957 }
 0xa16   : > { %4073 = vrot.lane.b32.xlu1 %v3936_v13, %s14681_s6 }
 0xa17   : > { %v4038_v51 = vpop.permute.xlu1 %4037 }
 0xa18   : > { %v16418_v36 = vpop.permute.xlu0 %11972  ;;  %v4144_v16 = vsel %vm2947_vm4, %v4038_v51, %v4040_v33  ;;  %v4143_v56 = vsel %vm2947_vm4, %v16366_v62, %v4038_v51 }
 0xa19   : > { %4219 = vmatprep.subr.bf16.mxu1 %v4144_v16  ;;  %v3534_v16 = vsel %vm2910_vm0, %v11949_v48, %v11950_v9 }
 0xa1a   : > { %4220 = vmatpush1.bf16.msra.mxu1 %v4143_v56 }
 0xa1b   : > { %v16423_v22 = vpop.permute.xlu1 %11952 }
 0xa1c   : > { %v16425_v12 = vpop.permute.xlu0 %11977  ;;  %v11955_v13 = vunpack.i.h.bf16 %v16423_v22  ;;  %v18676_v56 = vunpack.i.l.bf16 %v16423_v22 }
 0xa1e   : > { %v3679_v48 = vsel %vm2866_vm5, %v18676_v56, %v11955_v13 }
 0xa1f   : > { %v16427_v31 = vpop.permute.xlu1 %11962 }
 0xa20   : > { %v16429_v57 = vpop.permute.xlu0 %11982 }
 0xa21   : > { %v11985_v41 = vunpack.i.h.bf16 %v16429_v57  ;;  %v18675_v51 = vunpack.i.l.bf16 %v16429_v57 }
 0xa23   : > { %v11968_v0 = vpop.permute.xlu1 %11967 }
 0xa24   : > { %v11970_v60 = vunpack.i.h.bf16 %v11968_v0  ;;  %v11969_v33 = vunpack.i.l.bf16 %v11968_v0  ;;  %v16433_v62 = vpop.permute.xlu0 %11987 }
 0xa26   : > { %v3928_v61 = vpack.c.bf16 %v11970_v60, %v11950_v9  ;;  %v3535_v44 = vsel %vm2910_vm0, %v11840_v7, %v11969_v33  ;;  %v3536_v11 = vsel %vm2910_vm0, %v11969_v33, %v11970_v60  ;;  %v3946_v7 = vpack.c.bf16 %v11985_v41, %v11955_v13 }
 0xa27   : > { %v16438_v34 = vpop.permute.xlu1 %12002  ;;  %v3926_v63 = vpack.c.bf16 %v3535_v44, %v3533_v59  ;;  %v3927_v52 = vpack.c.bf16 %v3536_v11, %v3534_v16  ;;  %v3680_v59 = vsel %vm2866_vm5, %v18675_v51, %v11985_v41  ;;  %v11974_v60 = vunpack.i.l.bf16 %v16418_v36 }
 0xa28   : > { %v16443_v32 = vpop.permute.xlu0 %11992  ;;  %4057 = vrot.lane.b32.xlu1 %v3928_v61, %s14681_s6  ;;  %v11850_v9 = vunpack.i.h.bf16 %v16360_v18  ;;  %v3945_v61 = vpack.c.bf16 %v3680_v59, %v3679_v48  ;;  %v11975_v41 = vunpack.i.h.bf16 %v16418_v36  ;;  %v11860_v36 = vunpack.i.h.bf16 %v16364_v43 }
 0xa29   : > { %4053 = vrot.lane.b32.xlu0 %v3926_v63, %s14681_s6  ;;  %v11849_v63 = vunpack.i.l.bf16 %v16360_v18  ;;  %v11979_v18 = vunpack.i.l.bf16 %v16425_v12  ;;  %v11939_v59 = vunpack.i.l.bf16 %v16408_v14 }
 0xa2b   : > { %v16449_v0 = vpop.permute.xlu1 %12007 }
 0xa2c   : > { %v16454_v44 = vpop.permute.xlu0 %11997  ;;  %4093 = vrot.lane.b32.xlu1 %v3946_v7, %s14681_s6  ;;  %v3589_v7 = vsel %vm2978_vm6, %v11849_v63, %v11974_v60 }
 0xa2d   : > { %4055 = vrot.lane.b32.xlu0 %v3927_v52, %s14681_s6 }
 0xa2f   : > { %v12013_v33 = vpop.permute.xlu1 %12012 }
 0xa30   : > { %v12015_v11 = vunpack.i.h.bf16 %v12013_v33  ;;  %v12014_v16 = vunpack.i.l.bf16 %v12013_v33  ;;  %v16465_v6 = vpop.permute.xlu0 %12022  ;;  %v11859_v33 = vunpack.i.l.bf16 %v16364_v43 }
 0xa31   : > { %4091 = vrot.lane.b32.xlu0 %v3945_v61, %s14681_s6 }
 0xa32   : > { %v3934_v52 = vpack.c.bf16 %v12015_v11, %v11975_v41  ;;  %v3591_v51 = vsel %vm2978_vm6, %v11850_v9, %v12014_v16  ;;  %v11980_v9 = vunpack.i.h.bf16 %v16425_v12 }
 0xa33   : > { %v16470_v13 = vpop.permute.xlu1 %12017  ;;  %v3932_v56 = vpack.c.bf16 %v3591_v51, %v3589_v7  ;;  %v11920_v51 = vunpack.i.h.bf16 %v16377_v15  ;;  %v11905_v7 = vunpack.i.h.bf16 %v16389_v21 }
 0xa34   : > { %v16472_v4 = vpop.permute.xlu0 %12042  ;;  %4069 = vrot.lane.b32.xlu1 %v3934_v52, %s14681_s6  ;;  %v11904_v52 = vunpack.i.l.bf16 %v16389_v21  ;;  %v3590_v21 = vsel %vm2978_vm6, %v11974_v60, %v11975_v41  ;;  %v18845_v60 = vunpack.i.l.bf16 %v16429_v57 }
 0xa35   : > { %4065 = vrot.lane.b32.xlu0 %v3932_v56, %s14681_s6  ;;  %v3645_v56 = vsel %vm2993_vm7, %v11859_v33, %v11979_v18  ;;  %v3731_v45 = vsel %vm3016_vm8, %v11920_v51, %v11939_v59 }
 0xa36   : > { %v3729_v39 = vsel %vm3016_vm8, %v11904_v52, %v11905_v7 }
 0xa37   : > { %v12028_v48 = vpop.permute.xlu1 %12027  ;;  %v3948_v33 = vpack.c.bf16 %v3731_v45, %v3729_v39  ;;  %v18844_v45 = vunpack.i.l.bf16 %v16423_v22 }
 0xa38   : > { %v12030_v61 = vunpack.i.h.bf16 %v12028_v48  ;;  %v12029_v63 = vunpack.i.l.bf16 %v12028_v48  ;;  %v16486_v49 = vpop.permute.xlu0 %12047  ;;  %v3592_v48 = vsel %vm2978_vm6, %v12014_v16, %v12015_v11  ;;  %v11909_v11 = vunpack.i.l.bf16 %v16394_v8 }
 0xa39   : > { %v3933_v30 = vpack.c.bf16 %v3592_v48, %v3590_v21  ;;  %v3947_v16 = vpack.c.bf16 %v11920_v51, %v11904_v52  ;;  %v3944_v41 = vpack.c.bf16 %v18845_v60, %v18844_v45  ;;  %v12050_v22 = vunpack.i.h.bf16 %v16486_v49 }
 0xa3a   : > { %v3940_v3 = vpack.c.bf16 %v12030_v61, %v11980_v9  ;;  %v3647_v46 = vsel %vm2993_vm7, %v11860_v36, %v12029_v63  ;;  %v11944_v36 = vunpack.i.l.bf16 %v16413_v26  ;;  %v3648_v48 = vsel %vm2993_vm7, %v12029_v63, %v12030_v61 }
 0xa3b   : > { %v16489_v43 = vpop.permute.xlu1 %12032  ;;  %v3938_v12 = vpack.c.bf16 %v3647_v46, %v3645_v56  ;;  %v11925_v46 = vunpack.i.h.bf16 %v16384_v1  ;;  %v12049_v57 = vunpack.i.l.bf16 %v16486_v49 }
 0xa3c   : > { %4081 = vrot.lane.b32.xlu1 %v3940_v3, %s14681_s6  ;;  %v16499_v54 = vpop.permute.xlu0 %12052  ;;  %v11910_v3 = vunpack.i.h.bf16 %v16394_v8 }
 0xa3d   : > { %4077 = vrot.lane.b32.xlu0 %v3938_v12, %s14681_s6  ;;  %v3787_v39 = vsel %vm3031_vm9, %v11925_v46, %v11944_v36  ;;  %v11940_v12 = vunpack.i.h.bf16 %v16408_v14  ;;  %v11919_v14 = vunpack.i.l.bf16 %v16377_v15  ;;  %v11990_v15 = vunpack.i.h.bf16 %v16433_v62 }
 0xa3e   : > { %v3785_v8 = vsel %vm3031_vm9, %v11909_v11, %v11910_v3  ;;  %v3736_v45 = vsel %vm3016_vm8, %v12049_v57, %v12050_v22 }
 0xa3f   : > { %v16497_v55 = vpop.permute.xlu1 %12037  ;;  %v3954_v52 = vpack.c.bf16 %v3787_v39, %v3785_v8  ;;  %v3732_v61 = vsel %vm3016_vm8, %v11939_v59, %v11940_v12  ;;  %v3730_v49 = vsel %vm3016_vm8, %v11905_v7, %v11919_v14  ;;  %v11914_v39 = vunpack.i.l.bf16 %v16402_v17 }
 0xa40   : > { %4097 = vrot.lane.b32.xlu1 %v3948_v33, %s14681_s6  ;;  %v4044_v51 = vpop.permute.xlu0 %4043  ;;  %v12005_v59 = vunpack.i.h.bf16 %v16438_v34  ;;  %v3949_v60 = vpack.c.bf16 %v3732_v61, %v3730_v49  ;;  %v11945_v12 = vunpack.i.h.bf16 %v16413_v26  ;;  %v11874_v7 = vunpack.i.l.bf16 %v16374_v2 }
 0xa41   : > { %4067 = vrot.lane.b32.xlu0 %v3933_v30, %s14681_s6  ;;  %v3646_v30 = vsel %vm2993_vm7, %v11979_v18, %v11980_v9  ;;  %v4145_v18 = vsel %vm2947_vm4, %v16368_v50, %v4044_v51  ;;  %v3953_v9 = vpack.c.bf16 %v11925_v46, %v11909_v11  ;;  %v11875_v50 = vunpack.i.h.bf16 %v16374_v2 }
 0xa42   : > { %v3939_v33 = vpack.c.bf16 %v3648_v48, %v3646_v30  ;;  %v11989_v46 = vunpack.i.l.bf16 %v16433_v62  ;;  %v12055_v26 = vunpack.i.h.bf16 %v16499_v54  ;;  %v12054_v30 = vunpack.i.l.bf16 %v16499_v54 }
 0xa43   : > { %v16511_v56 = vpop.permute.xlu1 %12057  ;;  %v3788_v2 = vsel %vm3031_vm9, %v11944_v36, %v11945_v12  ;;  %v3841_v62 = vsel %vm3044_vm10, %v11874_v7, %v11875_v50  ;;  %v11915_v12 = vunpack.i.h.bf16 %v16402_v17 }
 0xa44   : > { %4095 = vrot.lane.b32.xlu1 %v3947_v16, %s14681_s6  ;;  %v12004_v16 = vunpack.i.l.bf16 %v16438_v34  ;;  %v3950_v8 = vpack.c.bf16 %v12005_v59, %v11989_v46  ;;  %v3792_v14 = vsel %vm3031_vm9, %v12054_v30, %v12055_v26  ;;  %v3733_v61 = vsel %vm3016_vm8, %v11989_v46, %v11990_v15 }
 0xa45   : > { %4089 = vrot.lane.b32.xlu0 %v3944_v41, %s14681_s6  ;;  %v11880_v41 = vunpack.i.h.bf16 %v16370_v10 }
 0xa46   : > { %v3734_v11 = vsel %vm3016_vm8, %v11990_v15, %v12004_v16  ;;  %v12010_v16 = vunpack.i.h.bf16 %v16449_v0 }
 0xa47   : > { %v4046_v21 = vpop.permute.xlu1 %4045  ;;  %v3952_v34 = vpack.c.bf16 %v3736_v45, %v3734_v11  ;;  %v3843_v48 = vsel %vm3044_vm10, %v11880_v41, %v11914_v39  ;;  %v11960_v45 = vunpack.i.h.bf16 %v16415_v5  ;;  %v12020_v11 = vunpack.i.h.bf16 %v16470_v13 }
 0xa48   : > { %4109 = vrot.lane.b32.xlu1 %v3954_v52, %s14681_s6  ;;  %v4146_v63 = vsel %vm2947_vm4, %v4044_v51, %v4046_v21  ;;  %v11924_v51 = vunpack.i.l.bf16 %v16384_v1  ;;  %v12009_v52 = vunpack.i.l.bf16 %v16449_v0  ;;  %v3960_v21 = vpack.c.bf16 %v3843_v48, %v3841_v62 }
 0xa49   : > { %4079 = vrot.lane.b32.xlu0 %v3939_v33, %s14681_s6  ;;  %4221 = vmatprep.subr.bf16.mxu1 %v4146_v63  ;;  %v11995_v33 = vunpack.i.h.bf16 %v16443_v32  ;;  %v3735_v1 = vsel %vm3016_vm8, %v12005_v59, %v12049_v57  ;;  %v11964_v57 = vunpack.i.l.bf16 %v16427_v31  ;;  %v3959_v59 = vpack.c.bf16 %v11880_v41, %v11874_v7 }
 0xa4a   : > { %4222 = vmatpush1.bf16.msra.mxu1 %v4145_v18  ;;  %v3786_v22 = vsel %vm3031_vm9, %v11910_v3, %v11924_v51  ;;  %v12000_v3 = vunpack.i.h.bf16 %v16454_v44  ;;  %v11999_v18 = vunpack.i.l.bf16 %v16454_v44  ;;  %v3951_v49 = vpack.c.bf16 %v3735_v1, %v3733_v61 }
 0xa4b   : > { %v3955_v54 = vpack.c.bf16 %v3788_v2, %v3786_v22  ;;  %v3790_v36 = vsel %vm3031_vm9, %v11995_v33, %v12009_v52  ;;  %v12034_v0 = vunpack.i.l.bf16 %v16489_v43  ;;  %v3791_v44 = vsel %vm3031_vm9, %v12010_v16, %v12054_v30  ;;  %v16589_v2 = vld [vmem:[#allocation19] sm:$0xff] }
 0xa4c   : > { %4107 = vrot.lane.b32.xlu1 %v3953_v9, %s14681_s6  ;;  %v3958_v63 = vpack.c.bf16 %v3792_v14, %v3790_v36  ;;  %v11994_v9 = vunpack.i.l.bf16 %v16443_v32  ;;  %v3846_v46 = vsel %vm3044_vm10, %v11960_v45, %v11964_v57  ;;  %v12025_v32 = vunpack.i.h.bf16 %v16465_v6 }
 0xa4d   : > { %4099 = vrot.lane.b32.xlu0 %v3949_v60, %s14681_s6  ;;  %v3848_v60 = vsel %vm3044_vm10, %v11999_v18, %v12000_v3  ;;  %v12019_v41 = vunpack.i.l.bf16 %v16470_v13  ;;  %v11879_v48 = vunpack.i.l.bf16 %v16370_v10  ;;  %v3844_v30 = vsel %vm3044_vm10, %v11914_v39, %v11915_v12 }
 0xa4e   : > { %v3956_v15 = vpack.c.bf16 %v12010_v16, %v11994_v9  ;;  %v3789_v7 = vsel %vm3031_vm9, %v11994_v9, %v11995_v33  ;;  %v11959_v62 = vunpack.i.l.bf16 %v16415_v5  ;;  %v11965_v10 = vunpack.i.h.bf16 %v16427_v31 }
 0xa4f   : > { %v3957_v26 = vpack.c.bf16 %v3791_v44, %v3789_v7  ;;  %v3842_v51 = vsel %vm3044_vm10, %v11875_v50, %v11879_v48  ;;  %v3897_v13 = vsel %vm3059_vm11, %v12019_v41, %v12020_v11  ;;  %v10855_v17 = vcombine.high %v16589_v2, %v16589_v2  ;;  %v4302_v7 = vld [vmem:[#allocation20 + $0x8] sm:$0xff]  ;;  %v4305_v48 = vld [vmem:[#allocation22 + $0x8] sm:$0xff] }
 0xa50   : > { %4105 = vrot.lane.b32.xlu1 %v3952_v34, %s14681_s6  ;;  %v3964_v34 = vpack.c.bf16 %v3848_v60, %v3846_v46  ;;  %v12060_v39 = vunpack.i.h.bf16 %v16511_v56  ;;  %v12059_v22 = vunpack.i.l.bf16 %v16511_v56  ;;  %v3847_v50 = vsel %vm3044_vm10, %v11965_v10, %v11999_v18  ;;  %v4304_v60 = vld [vmem:[#allocation22] sm:$0xff] }
 0xa51   : > { %4101 = vrot.lane.b32.xlu0 %v3950_v8, %s14681_s6  ;;  %v3899_v8 = vsel %vm3059_vm11, %v12025_v32, %v12034_v0  ;;  %4251 = vmatprep.mubr.bf16.mxu1 %v10855_v17  ;;  %v12040_v33 = vunpack.i.h.bf16 %v16497_v55  ;;  %v3845_v5 = vsel %vm3044_vm10, %v11959_v62, %v11960_v45  ;;  %v3965_v31 = vpack.c.bf16 %v12025_v32, %v12019_v41  ;;  %v4303_v32 = vld [vmem:[#allocation20 + $0x10] sm:$0xff]  ;;  %v4311_v41 = vld [vmem:[#allocation25] sm:$0xff] }
 0xa52   : > { %v3966_v52 = vpack.c.bf16 %v3899_v8, %v3897_v13  ;;  %v12044_v14 = vunpack.i.l.bf16 %v16472_v4  ;;  %v3963_v1 = vpack.c.bf16 %v3847_v50, %v3845_v5  ;;  %v12035_v56 = vunpack.i.h.bf16 %v16489_v43  ;;  %v4313_v8 = vld [vmem:[#allocation25 + $0x10] sm:$0xff]  ;;  %v4312_v13 = vld [vmem:[#allocation25 + $0x8] sm:$0xff] }
 0xa53   : > { %v12024_v16 = vunpack.i.l.bf16 %v16465_v6  ;;  %v12045_v57 = vunpack.i.h.bf16 %v16472_v4  ;;  %v12039_v9 = vunpack.i.l.bf16 %v16497_v55  ;;  %v4545_v17 = vmul.f32 %v16292_v27, %v15979_v19 }
 0xa54   : > { %4121 = vrot.lane.b32.xlu1 %v3960_v21, %s14681_s6  ;;  %v3961_v21 = vpack.c.bf16 %v3844_v30, %v3842_v51  ;;  %v3902_v36 = vsel %vm3059_vm11, %v12040_v33, %v12044_v14  ;;  %v3900_v3 = vsel %vm3059_vm11, %v12034_v0, %v12035_v56  ;;  %v4317_v51 = vld [vmem:[#allocation26 + $0x10] sm:$0xff]  ;;  %v4533_v14 = vmul.f32 %v16292_v27, %v16067_v53 }
 0xa55   : > { %4111 = vrot.lane.b32.xlu0 %v3955_v54, %s14681_s6  ;;  %v3904_v54 = vsel %vm3059_vm11, %v12059_v22, %v12060_v39  ;;  %v3898_v43 = vsel %vm3059_vm11, %v12020_v11, %v12024_v16  ;;  %v3901_v0 = vsel %vm3059_vm11, %v12039_v9, %v12040_v33  ;;  %v3968_v11 = vpack.c.bf16 %v12045_v57, %v12039_v9 }
 0xa56   : > { %v3970_v61 = vpack.c.bf16 %v3904_v54, %v3902_v36  ;;  %v3967_v45 = vpack.c.bf16 %v3900_v3, %v3898_v43  ;;  %v12071_v39 = vpack.i.bf16 %v4545_v17, %v4545_v17  ;;  %v5041_v54 = vpack.c.bf16 %v4533_v14, %v4533_v14 }
 0xa58   : > { %4117 = vrot.lane.b32.xlu1 %v3958_v63, %s14681_s6  ;;  %v3962_v63 = vpack.c.bf16 %v11965_v10, %v11959_v62  ;;  %v12061_v62 = vpack.i.bf16 %v16292_v27, %v16292_v27 }
 0xa59   : > { %4103 = vrot.lane.b32.xlu0 %v3951_v49, %s14681_s6  ;;  %v4301_v49 = vld [vmem:[#allocation20] sm:$0xff] }
 0xa5c   : > { %4119 = vrot.lane.b32.xlu1 %v3959_v59, %s14681_s6 }
 0xa5d   : > { %4113 = vrot.lane.b32.xlu0 %v3956_v15, %s14681_s6  ;;  %v3903_v15 = vsel %vm3059_vm11, %v12045_v57, %v12059_v22  ;;  %v4314_v22 = vld [vmem:[#allocation25 + $0x18] sm:$0xff] }
 0xa5e   : > { %v3969_v44 = vpack.c.bf16 %v3903_v15, %v3901_v0 }
 0xa60   : > { %4129 = vrot.lane.b32.xlu1 %v3964_v34, %s14681_s6  ;;  %v4315_v34 = vld [vmem:[#allocation26] sm:$0xff] }
 0xa61   : > { %4115 = vrot.lane.b32.xlu0 %v3957_v26, %s14681_s6  ;;  %v4306_v26 = vld [vmem:[#allocation22 + $0x10] sm:$0xff] }
 0xa64   : > { %4133 = vrot.lane.b32.xlu1 %v3966_v52, %s14681_s6  ;;  %v4316_v52 = vld [vmem:[#allocation26 + $0x8] sm:$0xff] }
 0xa65   : > { %4123 = vrot.lane.b32.xlu0 %v3961_v21, %s14681_s6  ;;  %v4557_v21 = vmul.f32 %v16292_v27, %v15981_v20 }
 0xa67   : > { %v12081_v5 = vpack.i.bf16 %v4557_v21, %v4557_v21 }
 0xa68   : > { %4131 = vrot.lane.b32.xlu1 %v3965_v31, %s14681_s6  ;;  %v4318_v31 = vld [vmem:[#allocation26 + $0x18] sm:$0xff] }
 0xa69   : > { %4127 = vrot.lane.b32.xlu0 %v3963_v1, %s14681_s6 }
 0xa6c   : > { %v4048_v18 = vpop.permute.xlu0 %4047  ;;  %4141 = vrot.lane.b32.xlu1 %v3970_v61, %s14681_s6 }
 0xa6d   : > { %4125 = vrot.lane.b32.xlu0 %v3962_v63, %s14681_s6 }
 0xa6f   : > { %v16615_v59 = vpop.permute.xlu1 %4083 }
 0xa70   : > { %v16618_v6 = vpop.permute.xlu0 %4087  ;;  %4323 = vperm.xlu1 %11830, %v4301_v49  }
 0xa71   : > { %4135 = vrot.lane.b32.xlu0 %v3967_v45, %s14681_s6 }
 0xa73   : > { %v4052_v12 = vpop.permute.xlu1 %4051 }
 0xa74   : > { %v4050_v46 = vpop.permute.xlu0 %4049  ;;  %4344 = vperm.xlu1 %11830, %v4304_v60  }
 0xa75   : > { %4139 = vrot.lane.b32.xlu0 %v3969_v44, %s14681_s6  ;;  %v4148_v4 = vsel %vm2947_vm4, %v4050_v46, %v4052_v12  ;;  %v4147_v55 = vsel %vm2947_vm4, %v4048_v18, %v4050_v46 }
 0xa76   : > { %4223 = vmatprep.subr.bf16.mxu1 %v4148_v4 }
 0xa77   : > { %4224 = vmatpush1.bf16.msra.mxu1 %v4147_v55  ;;  %v16626_v30 = vpop.permute.xlu1 %4085 }
 0xa78   : > { %4333 = vperm.xlu1 %11830, %v4303_v32  }
 0xa79   : > { %4137 = vrot.lane.b32.xlu0 %v3968_v11, %s14681_s6 }
 0xa7b   : > { %v4064_v33 = vpop.permute.xlu0 %4063 }
 0xa7c   : > { %4451 = vperm.xlu1 %11830, %v4311_v41   ;;  %v4060_v10 = vpop.permute.xlu1 %4059 }
 0xa7d   : > { %4328 = vperm.xlu0 %11829, %v4302_v7  }
 0xa7f   : > { %v4076_v1 = vpop.permute.xlu0 %4075 }
 0xa80   : > { %4479 = vperm.xlu1 %11830, %v4315_v34   ;;  %v4072_v50 = vpop.permute.xlu1 %4071  ;;  %v4160_v34 = vsel %vm2947_vm4, %v16626_v30, %v16618_v6 }
 0xa81   : > { %4349 = vperm.xlu0 %11829, %v4305_v48  }
 0xa84   : > { %4461 = vperm.xlu1 %11830, %v4313_v8   ;;  %v4062_v19 = vpop.permute.xlu1 %4061  ;;  %v4159_v8 = vsel %vm2947_vm4, %v16615_v59, %v16626_v30 }
 0xa85   : > { %4354 = vperm.xlu0 %11829, %v4306_v26   ;;  %v4152_v27 = vsel %vm2947_vm4, %v4062_v19, %v4064_v33  ;;  %v4151_v3 = vsel %vm2947_vm4, %v4060_v10, %v4062_v19 }
 0xa88   : > { %4489 = vperm.xlu1 %11830, %v4317_v51   ;;  %v4074_v20 = vpop.permute.xlu1 %4073 }
 0xa89   : > { %4456 = vperm.xlu0 %11829, %v4312_v13   ;;  %v4156_v44 = vsel %vm2947_vm4, %v4074_v20, %v4076_v1  ;;  %v4155_v4 = vsel %vm2947_vm4, %v4072_v50, %v4074_v20 }
 0xa8c   : > { %12062 = vrot.lane.b32.xlu1 %v12061_v62, %s18716_s28 }
 0xa8d   : > { %4484 = vperm.xlu0 %11829, %v4316_v52  }
 0xa90   : > { %12072 = vrot.lane.b32.xlu1 %v12071_v39, %s18713_s12 }
 0xa91   : > { %4466 = vperm.xlu0 %11829, %v4314_v22  }
 0xa94   : > { %12082 = vrot.lane.b32.xlu1 %v12081_v5, %s14683_s13 }
 0xa95   : > { %4494 = vperm.xlu0 %11829, %v4318_v31  }
 0xa98   : > { %5159 = vrot.lane.b32.xlu1 %v5041_v54, %s14681_s6 }
 0xa99   : > { %12067 = vrot.lane.b32.xlu0 %v12061_v62, %s18716_s28 }
 0xa9a   : > { %v4058_v36 = vpop.permute.xlu1 %4057 }
 0xa9b   : > { %v4054_v56 = vpop.permute.xlu0 %4053 }
 0xa9d   : > { %12077 = vrot.lane.b32.xlu0 %v12071_v39, %s18713_s12 }
 0xa9e   : > { %v4094_v18 = vpop.permute.xlu1 %4093 }
 0xa9f   : > { %v4056_v61 = vpop.permute.xlu0 %4055 }
 0xaa0   : > { %v4150_v63 = vsel %vm2947_vm4, %v4056_v61, %v4058_v36  ;;  %v4149_v53 = vsel %vm2947_vm4, %v4054_v56, %v4056_v61 }
 0xaa1   : > { %12087 = vrot.lane.b32.xlu0 %v12081_v5, %s14683_s13  ;;  %4225 = vmatprep.subr.bf16.mxu1 %v4150_v63 }
 0xaa2   : > { %4226 = vmatpush1.bf16.msra.mxu1 %v4149_v53 }
 0xaa3   : > { %4227 = vmatprep.subr.bf16.mxu1 %v4152_v27  ;;  %v4092_v16 = vpop.permute.xlu0 %4091 }
 0xaa4   : > { %v4162_v51 = vsel %vm2947_vm4, %v4092_v16, %v4094_v18 }
 0xaa5   : > { %5165 = vrot.lane.b32.xlu0 %v5041_v54, %s14681_s6 }
 0xaa6   : > { %4228 = vmatpush1.bf16.msra.mxu1 %v4151_v3  ;;  %v4070_v49 = vpop.permute.xlu1 %4069 }
 0xaa7   : > { %v4066_v43 = vpop.permute.xlu0 %4065 }
 0xaae   : > { %v4082_v57 = vpop.permute.xlu1 %4081 }
 0xaaf   : > { %v4078_v9 = vpop.permute.xlu0 %4077 }
 0xab2   : > { %v4098_v45 = vpop.permute.xlu1 %4097 }
 0xab3   : > { %v4068_v15 = vpop.permute.xlu0 %4067 }
 0xab4   : > { %v4154_v60 = vsel %vm2947_vm4, %v4068_v15, %v4070_v49  ;;  %v4153_v0 = vsel %vm2947_vm4, %v4066_v43, %v4068_v15 }
 0xab5   : > { %4229 = vmatprep.subr.bf16.mxu1 %v4154_v60 }
 0xab6   : > { %4230 = vmatpush1.bf16.msra.mxu1 %v4153_v0  ;;  %v4096_v12 = vpop.permute.xlu1 %4095  ;;  %v12956_v0 = vld [vmem:[#allocation19 + $0x8] ss:$0 sps:$4 sm:$0xff]  }
 0xab7   : > { %v4090_v46 = vpop.permute.xlu0 %4089  ;;  %4231 = vmatprep.subr.bf16.mxu1 %v4156_v44  ;;  %v4163_v6 = vsel %vm2947_vm4, %v4096_v12, %v4098_v45 }
 0xab8   : > { %v4161_v62 = vsel %vm2947_vm4, %v4090_v46, %v4092_v16  ;;  %v10854_v16 = vcombine.low %v16589_v2, %v16589_v2 }
 0xaba   : > { %4232 = vmatpush1.bf16.msra.mxu1 %v4155_v4  ;;  %v4110_v55 = vpop.permute.xlu1 %4109 }
 0xabb   : > { %v4080_v32 = vpop.permute.xlu0 %4079 }
 0xabc   : > { %v4158_v11 = vsel %vm2947_vm4, %v4080_v32, %v4082_v57  ;;  %v4157_v41 = vsel %vm2947_vm4, %v4078_v9, %v4080_v32  ;;  %v18846_v57 = vmov 0  }
 0xabd   : > { %4233 = vmatprep.subr.bf16.mxu1 %v4158_v11 }
 0xabe   : > { %4234 = vmatpush1.bf16.msra.mxu1 %v4157_v41  ;;  %v4108_v7 = vpop.permute.xlu1 %4107 }
 0xabf   : > { %v4100_v48 = vpop.permute.xlu0 %4099  ;;  %4235 = vmatprep.subr.bf16.mxu1 %v4160_v34  ;;  %v4167_v5 = vsel %vm2947_vm4, %v4108_v7, %v4110_v55 }
 0xac0   : > { %v4164_v52 = vsel %vm2947_vm4, %v4098_v45, %v4100_v48 }
 0xac2   : > { %4236 = vmatpush1.bf16.msra.mxu1 %v4159_v8  ;;  %v4106_v26 = vpop.permute.xlu1 %4105 }
 0xac3   : > { %v4102_v13 = vpop.permute.xlu0 %4101  ;;  %4237 = vmatprep.subr.bf16.mxu1 %v4162_v51 }
 0xac6   : > { %4238 = vmatpush1.bf16.msra.mxu1 %v4161_v62  ;;  %v4122_v10 = vpop.permute.xlu1 %4121 }
 0xac7   : > { %v4112_v17 = vpop.permute.xlu0 %4111  ;;  %4239 = vmatprep.subr.bf16.mxu1 %v4164_v52 }
 0xac8   : > { %v4168_v21 = vsel %vm2947_vm4, %v4110_v55, %v4112_v17 }
 0xaca   : > { %4240 = vmatpush1.bf16.msra.mxu1 %v4163_v6  ;;  %v4118_v39 = vpop.permute.xlu1 %4117 }
 0xacb   : > { %v4104_v22 = vpop.permute.xlu0 %4103 }
 0xacc   : > { %v4166_v59 = vsel %vm2947_vm4, %v4104_v22, %v4106_v26  ;;  %v4165_v30 = vsel %vm2947_vm4, %v4102_v13, %v4104_v22 }
 0xacd   : > { %4241 = vmatprep.subr.bf16.mxu1 %v4166_v59 }
 0xace   : > { %4242 = vmatpush1.bf16.msra.mxu1 %v4165_v30  ;;  %v4120_v50 = vpop.permute.xlu1 %4119 }
 0xacf   : > { %v4114_v33 = vpop.permute.xlu0 %4113  ;;  %4243 = vmatprep.subr.bf16.mxu1 %v4168_v21  ;;  %v4171_v56 = vsel %vm2947_vm4, %v4120_v50, %v4122_v10 }
 0xad2   : > { %4244 = vmatpush1.bf16.msra.mxu1 %v4167_v5  ;;  %v4130_v54 = vpop.permute.xlu1 %4129 }
 0xad3   : > { %v4116_v31 = vpop.permute.xlu0 %4115 }
 0xad4   : > { %v4170_v14 = vsel %vm2947_vm4, %v4116_v31, %v4118_v39  ;;  %v4169_v19 = vsel %vm2947_vm4, %v4114_v33, %v4116_v31 }
 0xad5   : > { %4245 = vmatprep.subr.bf16.mxu1 %v4170_v14 }
 0xad6   : > { %4246 = vmatpush1.bf16.msra.mxu1 %v4169_v19  ;;  %v4134_v36 = vpop.permute.xlu1 %4133 }
 0xad7   : > { %v4124_v1 = vpop.permute.xlu0 %4123 }
 0xad8   : > { %v4172_v20 = vsel %vm2947_vm4, %v4122_v10, %v4124_v1 }
 0xad9   : > { %4247 = vmatprep.subr.bf16.mxu1 %v4172_v20  ;;  %v12957_v20 = vld [vmem:[#allocation23] sm:$0xff]  }
 0xada   : > { %4248 = vmatpush1.bf16.msra.mxu1 %v4171_v56  ;;  %v4132_v3 = vpop.permute.xlu1 %4131  ;;  %v12958_v56 = vld [vmem:[#allocation23 + $0x8] sm:$0xff]  }
 0xadb   : > { %v4128_v61 = vpop.permute.xlu0 %4127  ;;  %v4175_v43 = vsel %vm2947_vm4, %v4132_v3, %v4134_v36 }
 0xadc   : > { %v4174_v63 = vsel %vm2947_vm4, %v4128_v61, %v4130_v54 }
 0xadd   : > { %4249 = vmatprep.subr.bf16.mxu1 %v4174_v63 }
 0xade   : > { %v4142_v9 = vpop.permute.xlu1 %4141 }
 0xadf   : > { %v4126_v53 = vpop.permute.xlu0 %4125 }
 0xae0   : > { %v4173_v27 = vsel %vm2947_vm4, %v4126_v53, %v4128_v61 }
 0xae1   : > { %4250 = vmatpush1.bf16.msra.mxu1 %v4173_v27 }
 0xae3   : > { %v4136_v18 = vpop.permute.xlu0 %4135 }
 0xae4   : > { %4252 = vmatmul.mubr.bf16.vlgmr.msra.gmra.mrb[8].mxu1 %v10854_v16  ;;  %v4176_v49 = vsel %vm2947_vm4, %v4134_v36, %v4136_v18 }
 0xae5   : > { %4260 = vmatprep.subr.bf16.mxu1 %v4176_v49  ;;  %4292 = vmatprep.mubr.bf16.mxu1 %v18846_v57 }
 0xae6   : > { %4261 = vmatpush1.bf16.msra.mxu1 %v4175_v43 }
 0xae7   : > { %v4140_v45 = vpop.permute.xlu0 %4139 }
 0xae8   : > { %v4178_v15 = vsel %vm2947_vm4, %v4140_v45, %v4142_v9 }
 0xae9   : > { %4262 = vmatprep.subr.bf16.mxu1 %v4178_v15 }
 0xaeb   : > { %v4138_v60 = vpop.permute.xlu0 %4137 }
 0xaec   : > { %v4177_v2 = vsel %vm2947_vm4, %v4138_v60, %v4140_v45 }
 0xaed   : > { %4263 = vmatpush1.bf16.msra.mxu1 %v4177_v2 }
 0xaef   : > { %v4324_v12 = vpop.permute.xlu1 %4323 }
 0xaf0   : > { %10857 = vmatmul.mubr.msk.bf16.vlgmr.msra.gmra.mrb[8].mxu1 %vm4215_vm15, %v12956_v0  ;;  %v4336_v4 = vmul.f32 %v4324_v12, %v16156_v47  ;;  %v4337_v55 = vmul.f32 %v4324_v12, %v16159_v40 }
 0xaf1   : > { %5574 = vmatprep.mubr.bf16.mxu1 %v18846_v57 }
 0xaf3   : > { %v4345_v44 = vpop.permute.xlu1 %4344 }
 0xaf4   : > { %v4357_v32 = vadd.f32 %v4345_v44, %v4336_v4  ;;  %v4358_v11 = vadd.f32 %v4345_v44, %v4337_v55 }
 0xaf6   : > { %v4363_v26 = vmax.f32 %v4357_v32, 0.0  ;;  %v4364_v51 = vmax.f32 %v4358_v11, 0.0 }
 0xaf7   : > { %v4334_v17 = vpop.permute.xlu1 %4333 }
 0xafb   : > { %v4452_v36 = vpop.permute.xlu1 %4451 }
 0xafc   : > { %v4329_v46 = vpop.permute.xlu0 %4328 }
 0xafd   : > { %v4338_v41 = vmul.f32 %v4329_v46, %v16162_v37  ;;  %v4339_v7 = vmul.f32 %v4329_v46, %v16165_v58 }
 0xaff   : > { %v4480_v63 = vpop.permute.xlu1 %4479 }
 0xb00   : > { %v4350_v34 = vpop.permute.xlu0 %4349 }
 0xb01   : > { %v4359_v48 = vadd.f32 %v4350_v34, %v4338_v41  ;;  %v4360_v8 = vadd.f32 %v4350_v34, %v4339_v7 }
 0xb03   : > { %v4365_v13 = vmax.f32 %v4359_v48, 0.0  ;;  %v4366_v62 = vmax.f32 %v4360_v8, 0.0  ;;  %v4462_v15 = vpop.permute.xlu1 %4461 }
 0xb04   : > { %v4355_v59 = vpop.permute.xlu0 %4354 }
 0xb05   : > { %v4369_v10 = vpack.c.bf16 %v4365_v13, %v4363_v26  ;;  %v4370_v52 = vpack.c.bf16 %v4366_v62, %v4364_v51  ;;  %v16722_v13 = vld [vmem:[#allocation2 + $0x18] sm:$0xff] }
 0xb07   : > { %4396 = vmatprep.subr.bf16.mxu0 %v4370_v52  ;;  %v4490_v52 = vpop.permute.xlu1 %4489 }
 0xb08   : > { %4397 = vmatpush1.bf16.msra.mxu0 %v4369_v10  ;;  %v4457_v61 = vpop.permute.xlu0 %4456 }
 0xb0c   : > { %v4485_v53 = vpop.permute.xlu0 %4484 }
 0xb10   : > { %v4467_v44 = vpop.permute.xlu0 %4466 }
 0xbc3   : > { %v16687_v6 = vpop.f32.mrb[8].mxu1 }
 0xbc4   : > { %v4340_v39 = vmul.f32 %v4334_v17, %v16687_v6  ;;  %v16690_v22 = vpop.f32.mrb[9].mxu1 }
 0xbc5   : > { %v4341_v30 = vmul.f32 %v4334_v17, %v16690_v22  ;;  %v4298_v21 = vpop.f32.mrb[10].mxu1 }
 0xbc6   : > { %v4361_v50 = vadd.f32 %v4355_v59, %v4340_v39  ;;  %v4299_v33 = vpop.f32.mrb[11].mxu1 }
 0xbc7   : > { %v4362_v5 = vadd.f32 %v4355_v59, %v4341_v30 }
 0xbc8   : > { %v4367_v31 = vmax.f32 %v4361_v50, 0.0 }
 0xbc9   : > { %v4368_v14 = vmax.f32 %v4362_v5, 0.0 }
 0xbca   : > { %v4371_v19 = vpack.c.bf16 %v4367_v31, %v4367_v31  ;;  %v4495_v31 = vpop.permute.xlu0 %4494 }
 0xbcb   : > { %v4372_v54 = vpack.c.bf16 %v4368_v14, %v4368_v14 }
 0xbcc   : > { %v4391_v1 = vsel %vm3153_vm12, %v4371_v19, 0 }
 0xbcd   : > { %10860 = vmatprep.subr.msk.bf16.mxu0 %vm3153_vm12, %v4372_v54 }
 0xbce   : > { %4399 = vmatpush1.bf16.msra.mxu0 %v4391_v1 }
 0xbd1   : > { %10861 = vmatmul.mubr.msk.bf16.vlgmr.msra.gmra.mrb[4].mxu0 %vm4383_vm1, %v12957_v20 }
 0xbd2   : > { %4438 = vmatprep.mubr.bf16.mxu0 %v18846_v57 }
 0xbd9   : > { %10862 = vmatmul.mubr.msk.bf16.gmra.mrb[8].mxu0 %vm4383_vm1, %v12958_v56 }
 0xca4   : > { %v4430_v27 = vpop.f32.mrb[4].mxu0 }
 0xca5   : > { %v4469_v16 = vmul.f32 %v4452_v36, %v4430_v27  ;;  %v4432_v3 = vpop.f32.mrb[5].mxu0 }
 0xca6   : > { %v4470_v18 = vmul.f32 %v4452_v36, %v4432_v3  ;;  %v4434_v49 = vpop.f32.mrb[6].mxu0 }
 0xca7   : > { %v4497_v43 = vadd.f32 %v4480_v63, %v4469_v16  ;;  %v4471_v9 = vmul.f32 %v4457_v61, %v4434_v49  ;;  %v4436_v45 = vpop.f32.mrb[7].mxu0 }
 0xca8   : > { %v4498_v60 = vadd.f32 %v4480_v63, %v4470_v18  ;;  %v4472_v2 = vmul.f32 %v4457_v61, %v4436_v45 }
 0xca9   : > { %v16698_v0 = vmax.f32 %v4497_v43, 0.0  ;;  %v4499_v12 = vadd.f32 %v4485_v53, %v4471_v9 }
 0xcaa   : > { %v16700_v46 = vmax.f32 %v4498_v60, 0.0  ;;  %v4500_v4 = vadd.f32 %v4485_v53, %v4472_v2  ;;  %v18847_v2 = vld [vmem:[#allocation180_spill] sm:$0xff] }
 0xcab   : > { %v16702_v55 = vmax.f32 %v4499_v12, 0.0  ;;  %v16706_v32 = vmul.f32 %v16698_v0, %v16008_v28  ;;  %v16710_v11 = vmul.f32 %v16698_v0, %v16000_v25  ;;  %v16728_v10 = vmul.f32 %v16698_v0, %v16011_v29 }
 0xcac   : > { %v16712_v41 = vmax.f32 %v4500_v4, 0.0  ;;  %v4440_v7 = vpop.f32.mrb[8].mxu0  ;;  %v12091_v34 = vpack.i.bf16 %v16700_v46, %v16698_v0  ;;  %v4547_v48 = vmul.f32 %v16700_v46, %v15993_v23  ;;  %v16720_v8 = vmul.f32 %v16700_v46, %v15995_v24 }
 0xcad   : > { %v4473_v26 = vmul.f32 %v4462_v15, %v4440_v7  ;;  %v4442_v51 = vpop.f32.mrb[9].mxu0  ;;  %v12106_v62 = vpack.i.bf16 %v16702_v55, %v16722_v13  ;;  %v16739_v54 = vmul.f32 %v16700_v46, %v16025_v35  ;;  %v16743_v1 = vmul.f32 %v16702_v55, %v16008_v28  ;;  %v18849_v7 = vld [vmem:[#allocation181_spill] sm:$0xff] }
 0xcae   : > { %v4474_v17 = vmul.f32 %v4462_v15, %v4442_v51  ;;  %v4444_v39 = vpop.f32.mrb[10].mxu0  ;;  %12092 = vrot.lane.b32.xlu1 %v12091_v34, %s18716_s28  ;;  %v12111_v59 = vpack.i.bf16 %v16712_v41, %v16702_v55  ;;  %v12116_v30 = vpack.i.bf16 %v4547_v48, %v16706_v32  ;;  %v12121_v21 = vpack.i.bf16 %v16720_v8, %v16710_v11  ;;  %v18848_v32 = vld [vmem:[#allocation175_spill] sm:$0xff] }
 0xcaf   : > { %v4501_v50 = vadd.f32 %v4490_v52, %v4473_v26  ;;  %v4475_v33 = vmul.f32 %v4467_v44, %v4444_v39  ;;  %v4446_v5 = vpop.f32.mrb[11].mxu0  ;;  %12107 = vrot.lane.b32.xlu0 %v12106_v62, %s14685_s10  ;;  %v4550_v36 = vmul.f32 %v16712_v41, %v15993_v23  ;;  %v16749_v61 = vmul.f32 %v16698_v0, %v16034_v38 }
 0xcb0   : > { %v4502_v14 = vadd.f32 %v4490_v52, %v4474_v17  ;;  %v4476_v19 = vmul.f32 %v4467_v44, %v4446_v5  ;;  %v12131_v27 = vpack.i.bf16 %v16739_v54, %v16728_v10  ;;  %v4594_v16 = vmul.f32 %v16700_v46, %v16040_v42  ;;  %v18850_v54 = vld [vmem:[#allocation176_spill] sm:$0xff] }
 0xcb1   : > { %v4509_v20 = vmax.f32 %v4501_v50, 0.0  ;;  %v4503_v56 = vadd.f32 %v4495_v31, %v4475_v33  ;;  %v12156_v3 = vpack.i.bf16 %v4550_v36, %v16743_v1  ;;  %v4561_v18 = vmul.f32 %v16702_v55, %v16000_v25 }
 0xcb2   : > { %v4510_v63 = vmax.f32 %v4502_v14, 0.0  ;;  %v4504_v53 = vadd.f32 %v4495_v31, %v4476_v19  ;;  %12097 = vrot.lane.b32.xlu1 %v12091_v34, %s14682_s11  ;;  %v4562_v49 = vmul.f32 %v16712_v41, %v15995_v24  ;;  %v4584_v45 = vmul.f32 %v16702_v55, %v16011_v29 }
 0xcb3   : > { %12112 = vrot.lane.b32.xlu0 %v12111_v59, %s18716_s28  ;;  %v16762_v43 = vmax.f32 %v4503_v56, 0.0  ;;  %v12136_v15 = vpack.i.bf16 %v4594_v16, %v16749_v61  ;;  %v4535_v12 = vmul.f32 %v16700_v46, %v18847_v2  ;;  %v4538_v44 = vmul.f32 %v16712_v41, %v18847_v2  ;;  %v18851_v16 = vld [vmem:[#allocation177_spill] sm:$0xff] }
 0xcb4   : > { %v16764_v9 = vmax.f32 %v4504_v53, 0.0  ;;  %v12161_v60 = vpack.i.bf16 %v4562_v49, %v4561_v18  ;;  %v16773_v4 = vpack.i.bf16 %v4510_v63, %v4509_v20  ;;  %v16778_v11 = vmul.f32 %v16722_v13, %v18848_v32  ;;  %v18852_v49 = vld [vmem:[#allocation179_spill] sm:$0xff] }
 0xcb5   : > { %v4534_v48 = vmul.f32 %v16698_v0, %v18849_v7  ;;  %v4537_v8 = vmul.f32 %v16702_v55, %v18849_v7  ;;  %v4552_v26 = vmul.f32 %v4509_v20, %v16008_v28  ;;  %v5043_v51 = vpack.c.bf16 %v4538_v44, %v4535_v12 }
 0xcb6   : > { %12102 = vrot.lane.b32.xlu1 %v12091_v34, %s14685_s10  ;;  %v4553_v62 = vmul.f32 %v4510_v63, %v15993_v23  ;;  %v4564_v10 = vmul.f32 %v4509_v20, %v16000_v25  ;;  %v12146_v34 = vpack.i.bf16 %v4584_v45, %v16778_v11  ;;  %v4596_v52 = vmul.f32 %v16702_v55, %v16034_v38 }
 0xcb7   : > { %12127 = vrot.lane.b32.xlu0 %v12111_v59, %s14682_s11  ;;  %v5042_v17 = vpack.c.bf16 %v4537_v8, %v4534_v48  ;;  %v4565_v39 = vmul.f32 %v4510_v63, %v15995_v24  ;;  %v12211_v33 = vpack.i.bf16 %v16764_v9, %v16762_v43  ;;  %v4587_v5 = vmul.f32 %v4509_v20, %v16011_v29 }
 0xcb8   : > { %v12201_v50 = vpack.i.bf16 %v4553_v62, %v4552_v26  ;;  %v4588_v59 = vmul.f32 %v4510_v63, %v16025_v35  ;;  %v4599_v14 = vmul.f32 %v4509_v20, %v16034_v38  ;;  %v4600_v19 = vmul.f32 %v4510_v63, %v16040_v42 }
 0xcb9   : > { %v12206_v31 = vpack.i.bf16 %v4565_v39, %v4564_v10  ;;  %v16802_v1 = vmul.f32 %v16722_v13, %v18850_v54  ;;  %v4555_v36 = vmul.f32 %v16762_v43, %v16008_v28  ;;  %v4556_v53 = vmul.f32 %v16764_v9, %v15993_v23 }
 0xcba   : > { %12117 = vrot.lane.b32.xlu1 %v12116_v30, %s18713_s12  ;;  %v12216_v56 = vpack.i.bf16 %v4588_v59, %v4587_v5  ;;  %v12221_v61 = vpack.i.bf16 %v4600_v19, %v4599_v14  ;;  %v4605_v18 = vmul.f32 %v16698_v0, %v18851_v16  ;;  %v4606_v45 = vmul.f32 %v16700_v46, %v18852_v49 }
 0xcbb   : > { %12147 = vrot.lane.b32.xlu0 %v12146_v34, %s14686_s16  ;;  %v12151_v30 = vpack.i.bf16 %v4596_v52, %v16802_v1  ;;  %v12241_v12 = vpack.i.bf16 %v4556_v53, %v4555_v36  ;;  %v4567_v44 = vmul.f32 %v16762_v43, %v16000_v25  ;;  %v4568_v28 = vmul.f32 %v16764_v9, %v15995_v24  ;;  %v18853_v34 = vld [vmem:[#allocation178_spill] sm:$0xff] }
 0xcbc   : > { %v12246_v23 = vpack.i.bf16 %v4606_v45, %v4605_v18  ;;  %v4611_v48 = vmul.f32 %v4509_v20, %v18851_v16  ;;  %v4612_v0 = vmul.f32 %v4510_v63, %v18852_v49  ;;  %v4540_v8 = vmul.f32 %v4509_v20, %v18849_v7 }
 0xcbd   : > { %v12256_v32 = vpack.i.bf16 %v4568_v28, %v4567_v44  ;;  %v4543_v46 = vmul.f32 %v16762_v43, %v18849_v7  ;;  %v4541_v24 = vmul.f32 %v4510_v63, %v18847_v2  ;;  %v4544_v26 = vmul.f32 %v16764_v9, %v18847_v2 }
 0xcbe   : > { %12122 = vrot.lane.b32.xlu1 %v12121_v21, %s14683_s13  ;;  %v12266_v21 = vpack.i.bf16 %v4612_v0, %v4611_v48  ;;  %v12141_v20 = vpack.i.bf16 %v16722_v13, %v16712_v41  ;;  %v4590_v2 = vmul.f32 %v16762_v43, %v16011_v29  ;;  %v12226_v10 = vpack.i.bf16 %v16722_v13, %v16764_v9 }
 0xcbf   : > { %12152 = vrot.lane.b32.xlu0 %v12151_v30, %s14687_s1  ;;  %v5045_v25 = vpack.c.bf16 %v4543_v46, %v4540_v8  ;;  %v5046_v62 = vpack.c.bf16 %v4544_v26, %v4541_v24  ;;  %v4608_v29 = vmul.f32 %v16702_v55, %v18851_v16  ;;  %v4607_v52 = vmul.f32 %v16722_v13, %v18853_v34 }
 0xcc0   : > { %v12231_v7 = vpack.i.bf16 %v4590_v2, %v16778_v11  ;;  %v4609_v55 = vmul.f32 %v16712_v41, %v18852_v49 }
 0xcc2   : > { %12132 = vrot.lane.b32.xlu1 %v12131_v27, %s14686_s16  ;;  %v4585_v27 = vmul.f32 %v16712_v41, %v16025_v35 }
 0xcc3   : > { %12157 = vrot.lane.b32.xlu0 %v12156_v3, %s18713_s12  ;;  %v4597_v3 = vmul.f32 %v16712_v41, %v16040_v42 }
 0xcc4   : > { %v12166_v63 = vpack.i.bf16 %v16778_v11, %v4585_v27 }
 0xcc6   : > { %12137 = vrot.lane.b32.xlu1 %v12136_v15, %s14687_s1  ;;  %v12171_v15 = vpack.i.bf16 %v16802_v1, %v4597_v3 }
 0xcc7   : > { %12162 = vrot.lane.b32.xlu0 %v12161_v60, %s14683_s13  ;;  %v12191_v60 = vpack.i.bf16 %v16762_v43, %v16722_v13 }
 0xcca   : > { %12142 = vrot.lane.b32.xlu1 %v12141_v20, %s14685_s10 }
 0xccb   : > { %5163 = vrot.lane.b32.xlu0 %v5043_v51, %s14681_s6 }
 0xcce   : > { %12167 = vrot.lane.b32.xlu1 %v12166_v63, %s14686_s16 }
 0xccf   : > { %12177 = vrot.lane.b32.xlu0 %v16773_v4, %s18716_s28 }
 0xcd2   : > { %12172 = vrot.lane.b32.xlu1 %v12171_v15, %s14687_s1 }
 0xcd3   : > { %12187 = vrot.lane.b32.xlu0 %v16773_v4, %s14685_s10 }
 0xcd6   : > { %5161 = vrot.lane.b32.xlu1 %v5042_v17, %s14681_s6  ;;  %v4614_v17 = vmul.f32 %v16762_v43, %v18851_v16 }
 0xcd7   : > { %12202 = vrot.lane.b32.xlu0 %v12201_v50, %s18713_s12  ;;  %v4591_v50 = vmul.f32 %v16764_v9, %v16025_v35  ;;  %v4615_v35 = vmul.f32 %v16764_v9, %v18852_v49 }
 0xcd8   : > { %v12271_v39 = vpack.i.bf16 %v4614_v17, %v4607_v52 }
 0xcd9   : > { %v12276_v13 = vpack.i.bf16 %v16778_v11, %v4591_v50  ;;  %v12286_v41 = vpack.i.bf16 %v4607_v52, %v4615_v35  ;;  %v16898_v11 = vpop.permute.xlu0 %12067 }
 0xcda   : > { %12182 = vrot.lane.b32.xlu1 %v16773_v4, %s14682_s11  ;;  %v4602_v4 = vmul.f32 %v16762_v43, %v16034_v38  ;;  %v12251_v38 = vpack.i.bf16 %v4608_v29, %v4607_v52  ;;  %v4603_v43 = vmul.f32 %v16764_v9, %v16040_v42  ;;  %v12063_v42 = vpop.permute.xlu1 %12062 }
 0xcdb   : > { %12207 = vrot.lane.b32.xlu0 %v12206_v31, %s14683_s13  ;;  %v12065_v30 = vunpack.i.h.bf16 %v12063_v42  ;;  %v12064_v16 = vunpack.i.l.bf16 %v12063_v42 }
 0xcdc   : > { %v12236_v51 = vpack.i.bf16 %v4602_v4, %v16802_v1  ;;  %v12281_v5 = vpack.i.bf16 %v16802_v1, %v4603_v43 }
 0xcdd   : > { %v16900_v31 = vpop.permute.xlu0 %12077 }
 0xcde   : > { %12192 = vrot.lane.b32.xlu1 %v12191_v60, %s14685_s10  ;;  %v12073_v59 = vpop.permute.xlu1 %12072 }
 0xcdf   : > { %12212 = vrot.lane.b32.xlu0 %v12211_v33, %s14682_s11  ;;  %v12074_v34 = vunpack.i.l.bf16 %v12073_v59 }
 0xce1   : > { %v16904_v19 = vpop.permute.xlu0 %12087 }
 0xce2   : > { %12197 = vrot.lane.b32.xlu1 %v12211_v33, %s18716_s28  ;;  %v12261_v33 = vpack.i.bf16 %v4607_v52, %v4609_v55  ;;  %v16902_v14 = vpop.permute.xlu1 %12082 }
 0xce3   : > { %12217 = vrot.lane.b32.xlu0 %v12216_v56, %s14686_s16 }
 0xce5   : > { %v16908_v54 = vpop.permute.xlu0 %5165 }
 0xce6   : > { %12232 = vrot.lane.b32.xlu1 %v12231_v7, %s14686_s16  ;;  %v16906_v9 = vpop.permute.xlu1 %5159 }
 0xce7   : > { %12222 = vrot.lane.b32.xlu0 %v12221_v61, %s14687_s1 }
 0xcea   : > { %12237 = vrot.lane.b32.xlu1 %v12236_v51, %s14687_s1 }
 0xceb   : > { %12227 = vrot.lane.b32.xlu0 %v12226_v10, %s14685_s10  ;;  %v12075_v10 = vunpack.i.h.bf16 %v12073_v59  ;;  %s14691_s10 = smov 7  }
 0xcee   : > { %12242 = vrot.lane.b32.xlu1 %v12241_v12, %s18713_s12 }
 0xcef   : > { %12252 = vrot.lane.b32.xlu0 %v12251_v38, %s14688_s2 }
 0xcf2   : > { %12247 = vrot.lane.b32.xlu1 %v12246_v23, %s14688_s2 }
 0xcf3   : > { %12272 = vrot.lane.b32.xlu0 %v12271_v39, %s14688_s2 }
 0xcf6   : > { %12257 = vrot.lane.b32.xlu1 %v12256_v32, %s14683_s13 }
 0xcf7   : > { %12277 = vrot.lane.b32.xlu0 %v12276_v13, %s14686_s16 }
 0xcfa   : > { %12262 = vrot.lane.b32.xlu1 %v12261_v33, %s14688_s2  ;;  %v12085_v33 = vunpack.i.h.bf16 %v16902_v14 }
 0xcfb   : > { %12282 = vrot.lane.b32.xlu0 %v12281_v5, %s14687_s1  ;;  %s14692_s1 = smov 9  }
 0xcfe   : > { %12267 = vrot.lane.b32.xlu1 %v12266_v21, %s14688_s2 }
 0xcff   : > { %5167 = vrot.lane.b32.xlu0 %v5045_v25, %s14681_s6 }
 0xd02   : > { %12287 = vrot.lane.b32.xlu1 %v12286_v41, %s14688_s2  ;;  %v12084_v41 = vunpack.i.l.bf16 %v16902_v14  ;;  %s18695_s2 = smov 119  }
 0xd06   : > { %5169 = vrot.lane.b32.xlu1 %v5046_v62, %s14681_s6 }
 0xd20   : > { %v12093_v1 = vpop.permute.xlu1 %12092 }
 0xd21   : > { %v16910_v56 = vpop.permute.xlu0 %12107  ;;  %v12094_v36 = vunpack.i.l.bf16 %v12093_v1  ;;  %v12095_v46 = vunpack.i.h.bf16 %v12093_v1 }
 0xd23   : > { %v4653_v49 = vsel %vm2910_vm0, %v12064_v16, %v12094_v36  ;;  %v4654_v20 = vsel %vm2910_vm0, %v12094_v36, %v12095_v46 }
 0xd24   : > { %v12098_v61 = vpop.permute.xlu1 %12097 }
 0xd25   : > { %v12113_v53 = vpop.permute.xlu0 %12112  ;;  %v12100_v44 = vunpack.i.h.bf16 %v12098_v61  ;;  %v12099_v32 = vunpack.i.l.bf16 %v12098_v61 }
 0xd26   : > { %v12114_v18 = vunpack.i.l.bf16 %v12113_v53  ;;  %v12115_v48 = vunpack.i.h.bf16 %v12113_v53 }
 0xd27   : > { %v4801_v2 = vsel %vm2866_vm5, %v12099_v32, %v12100_v44 }
 0xd28   : > { %v4655_v45 = vsel %vm2910_vm0, %v12065_v30, %v12114_v18  ;;  %v16914_v12 = vpop.permute.xlu1 %12102  ;;  %v4656_v62 = vsel %vm2910_vm0, %v12114_v18, %v12115_v48  ;;  %v5049_v27 = vpack.c.bf16 %v12115_v48, %v12095_v46 }
 0xd29   : > { %v12128_v28 = vpop.permute.xlu0 %12127  ;;  %v5047_v23 = vpack.c.bf16 %v4655_v45, %v4653_v49  ;;  %v5048_v60 = vpack.c.bf16 %v4656_v62, %v4654_v20 }
 0xd2a   : > { %v12130_v0 = vunpack.i.h.bf16 %v12128_v28  ;;  %v12129_v8 = vunpack.i.l.bf16 %v12128_v28 }
 0xd2b   : > { %5171 = vrot.lane.b32.xlu0 %v5047_v23, %s14681_s6 }
 0xd2c   : > { %v5065_v21 = vpack.c.bf16 %v12129_v8, %v12099_v32  ;;  %v5067_v25 = vpack.c.bf16 %v12130_v0, %v12100_v44  ;;  %v12118_v24 = vpop.permute.xlu1 %12117  ;;  %v4802_v3 = vsel %vm2866_vm5, %v12129_v8, %v12130_v0 }
 0xd2d   : > { %v16917_v26 = vpop.permute.xlu0 %12147  ;;  %v12119_v7 = vunpack.i.l.bf16 %v12118_v24  ;;  %v5066_v51 = vpack.c.bf16 %v4802_v3, %v4801_v2  ;;  %v12120_v52 = vunpack.i.h.bf16 %v12118_v24 }
 0xd2e   : > { %5207 = vrot.lane.b32.xlu1 %v5065_v21, %s14681_s6 }
 0xd2f   : > { %5211 = vrot.lane.b32.xlu0 %v5067_v25, %s14681_s6  ;;  %v4709_v39 = vsel %vm2978_vm6, %v12074_v34, %v12119_v7  ;;  %v4710_v14 = vsel %vm2978_vm6, %v12119_v7, %v12120_v52  ;;  %v12069_v7 = vunpack.i.l.bf16 %v16898_v11 }
 0xd30   : > { %v12123_v63 = vpop.permute.xlu1 %12122 }
 0xd31   : > { %v16924_v15 = vpop.permute.xlu0 %12152  ;;  %v12124_v50 = vunpack.i.l.bf16 %v12123_v63  ;;  %v12125_v42 = vunpack.i.h.bf16 %v12123_v63 }
 0xd32   : > { %5175 = vrot.lane.b32.xlu1 %v5049_v27, %s14681_s6 }
 0xd33   : > { %5173 = vrot.lane.b32.xlu0 %v5048_v60, %s14681_s6  ;;  %v4765_v36 = vsel %vm2993_vm7, %v12084_v41, %v12124_v50  ;;  %v4766_v32 = vsel %vm2993_vm7, %v12124_v50, %v12125_v42  ;;  %v12070_v60 = vunpack.i.h.bf16 %v16898_v11 }
 0xd34   : > { %v16929_v4 = vpop.permute.xlu1 %12132 }
 0xd35   : > { %v12158_v29 = vpop.permute.xlu0 %12157 }
 0xd36   : > { %v12160_v38 = vunpack.i.h.bf16 %v12158_v29  ;;  %v12159_v17 = vunpack.i.l.bf16 %v12158_v29  ;;  %5209 = vrot.lane.b32.xlu1 %v5066_v51, %s14681_s6 }
 0xd38   : > { %v4711_v55 = vsel %vm2978_vm6, %v12075_v10, %v12159_v17  ;;  %v5055_v13 = vpack.c.bf16 %v12160_v38, %v12120_v52  ;;  %v16934_v43 = vpop.permute.xlu1 %12137  ;;  %v4712_v49 = vsel %vm2978_vm6, %v12159_v17, %v12160_v38 }
 0xd39   : > { %v12163_v5 = vpop.permute.xlu0 %12162  ;;  %v5053_v35 = vpack.c.bf16 %v4711_v55, %v4709_v39  ;;  %v5054_v28 = vpack.c.bf16 %v4712_v49, %v4710_v14  ;;  %v12079_v14 = vunpack.i.l.bf16 %v16900_v31 }
 0xd3a   : > { %v12165_v59 = vunpack.i.h.bf16 %v12163_v5  ;;  %v12164_v1 = vunpack.i.l.bf16 %v12163_v5  ;;  %5187 = vrot.lane.b32.xlu0 %v5055_v13, %s14681_s6 }
 0xd3b   : > { %5183 = vrot.lane.b32.xlu1 %v5053_v35, %s14681_s6 }
 0xd3c   : > { %v4767_v61 = vsel %vm2993_vm7, %v12085_v33, %v12164_v1  ;;  %v5061_v53 = vpack.c.bf16 %v12165_v59, %v12125_v42  ;;  %v16942_v30 = vpop.permute.xlu1 %12142  ;;  %v4768_v23 = vsel %vm2993_vm7, %v12164_v1, %v12165_v59 }
 0xd3d   : > { %v5164_v16 = vpop.permute.xlu0 %5163  ;;  %v5059_v18 = vpack.c.bf16 %v4767_v61, %v4765_v36  ;;  %v5060_v8 = vpack.c.bf16 %v4768_v23, %v4766_v32 }
 0xd3e   : > { %5199 = vrot.lane.b32.xlu0 %v5061_v53, %s14681_s6 }
 0xd3f   : > { %5195 = vrot.lane.b32.xlu1 %v5059_v18, %s14681_s6 }
 0xd40   : > { %v16948_v45 = vpop.permute.xlu1 %12167 }
 0xd41   : > { %v12178_v44 = vpop.permute.xlu0 %12177 }
 0xd42   : > { %v12179_v3 = vunpack.i.l.bf16 %v12178_v44  ;;  %v12180_v51 = vunpack.i.h.bf16 %v12178_v44 }
 0xd43   : > { %5185 = vrot.lane.b32.xlu1 %v5054_v28, %s14681_s6 }
 0xd44   : > { %v16953_v48 = vpop.permute.xlu1 %12172  ;;  %v4657_v34 = vsel %vm2910_vm0, %v12069_v7, %v12179_v3  ;;  %v4658_v5 = vsel %vm2910_vm0, %v12179_v3, %v12180_v51 }
 0xd45   : > { %v16955_v0 = vpop.permute.xlu0 %12187 }
 0xd47   : > { %5197 = vrot.lane.b32.xlu1 %v5060_v8, %s14681_s6 }
 0xd48   : > { %v5162_v46 = vpop.permute.xlu1 %5161 }
 0xd49   : > { %v16958_v21 = vpop.permute.xlu0 %12202  ;;  %v5268_v25 = vsel %vm2947_vm4, %v5162_v46, %v5164_v16  ;;  %v5267_v24 = vsel %vm2947_vm4, %v16906_v9, %v5162_v46  ;;  %v12080_v16 = vunpack.i.h.bf16 %v16900_v31 }
 0xd4a   : > { %5342 = vmatprep.subr.bf16.mxu0 %v5268_v25  ;;  %v12204_v61 = vunpack.i.l.bf16 %v16958_v21  ;;  %v12205_v44 = vunpack.i.h.bf16 %v16958_v21  ;;  %v12090_v21 = vunpack.i.h.bf16 %v16904_v19 }
 0xd4b   : > { %5343 = vmatpush1.bf16.msra.mxu0 %v5267_v24 }
 0xd4c   : > { %v16963_v62 = vpop.permute.xlu1 %12182  ;;  %v4713_v8 = vsel %vm2978_vm6, %v12079_v14, %v12204_v61 }
 0xd4d   : > { %v16965_v20 = vpop.permute.xlu0 %12207  ;;  %v12185_v55 = vunpack.i.h.bf16 %v16963_v62  ;;  %v12184_v35 = vunpack.i.l.bf16 %v16963_v62 }
 0xd4e   : > { %v12209_v31 = vunpack.i.l.bf16 %v16965_v20 }
 0xd4f   : > { %v4803_v53 = vsel %vm2866_vm5, %v12184_v35, %v12185_v55 }
 0xd50   : > { %v16967_v27 = vpop.permute.xlu1 %12192 }
 0xd51   : > { %v16969_v63 = vpop.permute.xlu0 %12212 }
 0xd52   : > { %v12215_v52 = vunpack.i.h.bf16 %v16969_v63  ;;  %v12214_v13 = vunpack.i.l.bf16 %v16969_v63 }
 0xd54   : > { %v12198_v2 = vpop.permute.xlu1 %12197  ;;  %v5070_v41 = vpack.c.bf16 %v12215_v52, %v12185_v55  ;;  %v4804_v1 = vsel %vm2866_vm5, %v12214_v13, %v12215_v52  ;;  %v12150_v52 = vunpack.i.h.bf16 %v16917_v26  ;;  %vm14696_vm5 = vmmov 0  }
 0xd55   : > { %v12200_v10 = vunpack.i.h.bf16 %v12198_v2  ;;  %v12199_v29 = vunpack.i.l.bf16 %v12198_v2  ;;  %v16973_v9 = vpop.permute.xlu0 %12217  ;;  %v5069_v49 = vpack.c.bf16 %v4804_v1, %v4803_v53  ;;  %v12169_v2 = vunpack.i.l.bf16 %v16948_v45 }
 0xd57   : > { %v5052_v38 = vpack.c.bf16 %v12200_v10, %v12180_v51  ;;  %v4659_v17 = vsel %vm2910_vm0, %v12070_v60, %v12199_v29  ;;  %v4660_v11 = vsel %vm2910_vm0, %v12199_v29, %v12200_v10  ;;  %v12089_v51 = vunpack.i.l.bf16 %v16904_v19 }
 0xd58   : > { %v16978_v39 = vpop.permute.xlu1 %12232  ;;  %v5050_v50 = vpack.c.bf16 %v4659_v17, %v4657_v34  ;;  %v5051_v59 = vpack.c.bf16 %v4660_v11, %v4658_v5  ;;  %v12210_v10 = vunpack.i.h.bf16 %v16965_v20  ;;  %v12134_v17 = vunpack.i.l.bf16 %v16929_v4 }
 0xd59   : > { %v16983_v33 = vpop.permute.xlu0 %12222  ;;  %5181 = vrot.lane.b32.xlu1 %v5052_v38, %s14681_s6  ;;  %v12135_v38 = vunpack.i.h.bf16 %v16929_v4  ;;  %v4714_v4 = vsel %vm2978_vm6, %v12204_v61, %v12205_v44 }
 0xd5a   : > { %5177 = vrot.lane.b32.xlu0 %v5050_v50, %s14681_s6  ;;  %v4769_v50 = vsel %vm2993_vm7, %v12089_v51, %v12209_v31 }
 0xd5b   : > { %v4853_v1 = vsel %vm3016_vm8, %v12134_v17, %v12135_v38 }
 0xd5c   : > { %v16989_v42 = vpop.permute.xlu1 %12237 }
 0xd5d   : > { %v16994_v36 = vpop.permute.xlu0 %12227  ;;  %5217 = vrot.lane.b32.xlu1 %v5070_v41, %s14681_s6  ;;  %v4855_v41 = vsel %vm3016_vm8, %v12150_v52, %v12169_v2 }
 0xd5e   : > { %5179 = vrot.lane.b32.xlu0 %v5051_v59, %s14681_s6  ;;  %v5072_v53 = vpack.c.bf16 %v4855_v41, %v4853_v1  ;;  %v12110_v41 = vunpack.i.h.bf16 %v16910_v56 }
 0xd60   : > { %v12243_v18 = vpop.permute.xlu1 %12242 }
 0xd61   : > { %v12245_v28 = vunpack.i.h.bf16 %v12243_v18  ;;  %v12244_v23 = vunpack.i.l.bf16 %v12243_v18  ;;  %v17005_v32 = vpop.permute.xlu0 %12252 }
 0xd62   : > { %5215 = vrot.lane.b32.xlu0 %v5069_v49, %s14681_s6 }
 0xd63   : > { %v5058_v46 = vpack.c.bf16 %v12245_v28, %v12205_v44  ;;  %v4715_v25 = vsel %vm2978_vm6, %v12080_v16, %v12244_v23  ;;  %v4716_v59 = vsel %vm2978_vm6, %v12244_v23, %v12245_v28  ;;  %v12174_v16 = vunpack.i.l.bf16 %v16953_v48 }
 0xd64   : > { %v17010_v24 = vpop.permute.xlu1 %12247  ;;  %v5056_v3 = vpack.c.bf16 %v4715_v25, %v4713_v8  ;;  %v5057_v49 = vpack.c.bf16 %v4716_v59, %v4714_v4  ;;  %v12155_v28 = vunpack.i.h.bf16 %v16924_v15  ;;  %v12140_v23 = vunpack.i.h.bf16 %v16934_v43 }
 0xd65   : > { %v17012_v60 = vpop.permute.xlu0 %12272  ;;  %5193 = vrot.lane.b32.xlu1 %v5058_v46, %s14681_s6  ;;  %v12139_v8 = vunpack.i.l.bf16 %v16934_v43  ;;  %v5071_v46 = vpack.c.bf16 %v12150_v52, %v12134_v17  ;;  %v5068_v44 = vpack.c.bf16 %v12214_v13, %v12184_v35  ;;  %v12234_v17 = vunpack.i.l.bf16 %v16978_v39 }
 0xd66   : > { %5189 = vrot.lane.b32.xlu0 %v5056_v3, %s14681_s6  ;;  %v4911_v61 = vsel %vm3031_vm9, %v12155_v28, %v12174_v16  ;;  %v12170_v3 = vunpack.i.h.bf16 %v16948_v45  ;;  %v12149_v45 = vunpack.i.l.bf16 %v16917_v26  ;;  %v12220_v26 = vunpack.i.h.bf16 %v16973_v9 }
 0xd67   : > { %v4909_v43 = vsel %vm3031_vm9, %v12139_v8, %v12140_v23  ;;  %v12219_v59 = vunpack.i.l.bf16 %v16973_v9 }
 0xd68   : > { %v12258_v7 = vpop.permute.xlu1 %12257  ;;  %v5078_v52 = vpack.c.bf16 %v4911_v61, %v4909_v43  ;;  %v4858_v1 = vsel %vm3016_vm8, %v12220_v26, %v12234_v17 }
 0xd69   : > { %v12260_v29 = vunpack.i.h.bf16 %v12258_v7  ;;  %v12259_v34 = vunpack.i.l.bf16 %v12258_v7  ;;  %v17026_v5 = vpop.permute.xlu0 %12277  ;;  %v4770_v7 = vsel %vm2993_vm7, %v12209_v31, %v12210_v10 }
 0xd6a   : > { %v12280_v62 = vunpack.i.h.bf16 %v17026_v5  ;;  %v12279_v63 = vunpack.i.l.bf16 %v17026_v5 }
 0xd6b   : > { %v5064_v55 = vpack.c.bf16 %v12260_v29, %v12210_v10  ;;  %v4771_v11 = vsel %vm2993_vm7, %v12090_v21, %v12259_v34  ;;  %v4772_v21 = vsel %vm2993_vm7, %v12259_v34, %v12260_v29  ;;  %v4856_v29 = vsel %vm3016_vm8, %v12169_v2, %v12170_v3 }
 0xd6c   : > { %v17029_v19 = vpop.permute.xlu1 %12262  ;;  %v5062_v20 = vpack.c.bf16 %v4771_v11, %v4769_v50  ;;  %v5063_v35 = vpack.c.bf16 %v4772_v21, %v4770_v7  ;;  %v4854_v10 = vsel %vm3016_vm8, %v12135_v38, %v12149_v45  ;;  %v5077_v50 = vpack.c.bf16 %v12155_v28, %v12139_v8 }
 0xd6d   : > { %5205 = vrot.lane.b32.xlu1 %v5064_v55, %s14681_s6  ;;  %v17039_v14 = vpop.permute.xlu0 %12282  ;;  %v12144_v55 = vunpack.i.l.bf16 %v16942_v30  ;;  %v12235_v2 = vunpack.i.h.bf16 %v16978_v39  ;;  %v4860_v11 = vsel %vm3016_vm8, %v12279_v63, %v12280_v62  ;;  %v5073_v5 = vpack.c.bf16 %v4856_v29, %v4854_v10 }
 0xd6e   : > { %5201 = vrot.lane.b32.xlu0 %v5062_v20, %s14681_s6  ;;  %v12175_v20 = vunpack.i.h.bf16 %v16953_v48  ;;  %v12104_v38 = vunpack.i.l.bf16 %v16914_v12  ;;  %v5076_v39 = vpack.c.bf16 %v4860_v11, %v4858_v1  ;;  %v12285_v48 = vunpack.i.h.bf16 %v17039_v14 }
 0xd6f   : > { %v4967_v4 = vsel %vm3044_vm10, %v12110_v41, %v12144_v55  ;;  %v12154_v28 = vunpack.i.l.bf16 %v16924_v15  ;;  %v12239_v8 = vunpack.i.l.bf16 %v16989_v42  ;;  %v4859_v15 = vsel %vm3016_vm8, %v12235_v2, %v12279_v63 }
 0xd70   : > { %v17037_v18 = vpop.permute.xlu1 %12267  ;;  %v4857_v21 = vsel %vm3016_vm8, %v12219_v59, %v12220_v26  ;;  %v12240_v7 = vunpack.i.h.bf16 %v16989_v42  ;;  %v12194_v62 = vunpack.i.l.bf16 %v16967_v27  ;;  %v12224_v63 = vunpack.i.l.bf16 %v16983_v33 }
 0xd71   : > { %5221 = vrot.lane.b32.xlu1 %v5072_v53, %s14681_s6  ;;  %v5168_v51 = vpop.permute.xlu0 %5167  ;;  %v5074_v53 = vpack.c.bf16 %v12235_v2, %v12219_v59  ;;  %v12264_v42 = vunpack.i.l.bf16 %v17029_v19  ;;  %v12249_v10 = vunpack.i.l.bf16 %v17010_v24  ;;  %v12109_v2 = vunpack.i.l.bf16 %v16910_v56 }
 0xd72   : > { %5191 = vrot.lane.b32.xlu0 %v5057_v49, %s14681_s6  ;;  %v5269_v31 = vsel %vm2947_vm4, %v16908_v54, %v5168_v51  ;;  %v12105_v54 = vunpack.i.h.bf16 %v16914_v12  ;;  %v12284_v49 = vunpack.i.l.bf16 %v17039_v14  ;;  %v4912_v12 = vsel %vm3031_vm9, %v12174_v16, %v12175_v20 }
 0xd73   : > { %v5080_v45 = vpack.c.bf16 %v12240_v7, %v12224_v63  ;;  %v12189_v59 = vunpack.i.l.bf16 %v16955_v0  ;;  %v12195_v56 = vunpack.i.h.bf16 %v16967_v27  ;;  %vm6274_vm7 = vcmask 72704  }
 0xd74   : > { %v17051_v25 = vpop.permute.xlu1 %12287  ;;  %v4965_v9 = vsel %vm3044_vm10, %v12104_v38, %v12105_v54  ;;  %v4916_v3 = vsel %vm3031_vm9, %v12284_v49, %v12285_v48  ;;  %v4966_v20 = vsel %vm3044_vm10, %v12105_v54, %v12109_v2  ;;  %v12274_v48 = vunpack.i.l.bf16 %v17012_v60  ;;  %v5750_v2 = vld [vmem:[#allocation38 + $0x10] sm:$0xff] }
 0xd75   : > { %5219 = vrot.lane.b32.xlu1 %v5071_v46, %s14681_s6  ;;  %v4910_v46 = vsel %vm3031_vm9, %v12140_v23, %v12154_v28  ;;  %v5084_v61 = vpack.c.bf16 %v4967_v4, %v4965_v9  ;;  %v12230_v23 = vunpack.i.h.bf16 %v16994_v36  ;;  %vm7556_vm8 = vcmask 1014784  }
 0xd76   : > { %5213 = vrot.lane.b32.xlu0 %v5068_v44, %s14681_s6  ;;  %v12225_v44 = vunpack.i.h.bf16 %v16983_v33  ;;  %v5079_v14 = vpack.c.bf16 %v4912_v12, %v4910_v46  ;;  %v12255_v33 = vunpack.i.h.bf16 %v17005_v32  ;;  %v12254_v46 = vunpack.i.l.bf16 %v17005_v32 }
 0xd78   : > { %v5170_v13 = vpop.permute.xlu1 %5169  ;;  %v4914_v16 = vsel %vm3031_vm9, %v12225_v44, %v12239_v8  ;;  %v5023_v11 = vsel %vm3059_vm11, %v12255_v33, %v12264_v42  ;;  %v5089_v27 = vpack.c.bf16 %v12255_v33, %v12249_v10  ;;  %v5086_v8 = vpack.c.bf16 %v12195_v56, %v12189_v59  ;;  %v5748_v33 = vld [vmem:[#allocation38] sm:$0xff] }
 0xd79   : > { %5233 = vrot.lane.b32.xlu1 %v5078_v52, %s14681_s6  ;;  %v5270_v34 = vsel %vm2947_vm4, %v5168_v51, %v5170_v13  ;;  %v5082_v43 = vpack.c.bf16 %v4916_v3, %v4914_v16  ;;  %v12229_v51 = vunpack.i.l.bf16 %v16994_v36  ;;  %v5075_v52 = vpack.c.bf16 %v4859_v15, %v4857_v21  ;;  %v5424_v3 = vld [vmem:[#allocation29] sm:$0xff] }
 0xd7a   : > { %5344 = vmatprep.subr.bf16.mxu0 %v5270_v34  ;;  %5203 = vrot.lane.b32.xlu0 %v5063_v35, %s14681_s6  ;;  %v5083_v13 = vpack.c.bf16 %v12110_v41, %v12104_v38  ;;  %v12190_v35 = vunpack.i.h.bf16 %v16955_v0  ;;  %v12145_v34 = vunpack.i.h.bf16 %v16942_v30  ;;  %v4915_v36 = vsel %vm3031_vm9, %v12240_v7, %v12284_v49  ;;  %v17129_v38 = vld [vmem:[#allocation28] sm:$0xff]  ;;  %v5428_v7 = vld [vmem:[#allocation31] sm:$0xff] }
 0xd7b   : > { %5345 = vmatpush1.bf16.msra.mxu0 %v5269_v31  ;;  %v4972_v29 = vsel %vm3044_vm10, %v12229_v51, %v12230_v23  ;;  %v12250_v31 = vunpack.i.h.bf16 %v17010_v24  ;;  %v10864_v30 = vcombine.high %v17129_v38, %v17129_v38  ;;  %v4971_v54 = vsel %vm3044_vm10, %v12195_v56, %v12229_v51  ;;  %v5753_v56 = vld [vmem:[#allocation40 + $0x8] sm:$0xff] }
 0xd7c   : > { %v4970_v17 = vsel %vm3044_vm10, %v12190_v35, %v12194_v62  ;;  %v4968_v41 = vsel %vm3044_vm10, %v12144_v55, %v12145_v34  ;;  %v12290_v55 = vunpack.i.h.bf16 %v17051_v25  ;;  %v4969_v0 = vsel %vm3044_vm10, %v12189_v59, %v12190_v35  ;;  %v5430_v35 = vld [vmem:[#allocation31 + $0x10] sm:$0xff]  ;;  %v5742_v34 = vld [vmem:[#allocation35] sm:$0xff] }
 0xd7d   : > { %5231 = vrot.lane.b32.xlu1 %v5077_v50, %s14681_s6  ;;  %v4913_v50 = vsel %vm3031_vm9, %v12224_v63, %v12225_v44  ;;  %v5088_v26 = vpack.c.bf16 %v4972_v29, %v4970_v17  ;;  %v5021_v24 = vsel %vm3059_vm11, %v12249_v10, %v12250_v31  ;;  %v5085_v4 = vpack.c.bf16 %v4968_v41, %v4966_v20  ;;  %v5426_v63 = vld [vmem:[#allocation29 + $0x10] sm:$0xff]  ;;  %v5740_v29 = vld [vmem:[#allocation34] sm:$0xff] }
 0xd7e   : > { %5223 = vrot.lane.b32.xlu0 %v5073_v5, %s14681_s6  ;;  %v5081_v5 = vpack.c.bf16 %v4915_v36, %v4913_v50  ;;  %v5090_v1 = vpack.c.bf16 %v5023_v11, %v5021_v24  ;;  %5374 = vmatprep.mubr.bf16.mxu0 %v10864_v30  ;;  %v5087_v28 = vpack.c.bf16 %v4971_v54, %v4969_v0  ;;  %v12269_v15 = vunpack.i.l.bf16 %v17037_v18  ;;  %v5427_v36 = vld [vmem:[#allocation29 + $0x18] sm:$0xff]  ;;  %v5743_v11 = vld [vmem:[#allocation35 + $0x8] sm:$0xff]  ;;  %v5754_v20 = vld [vmem:[#allocation40 + $0x10] sm:$0xff] }
 0xd7f   : > { %v5752_v50 = vld [vmem:[#allocation40] sm:$0xff]  ;;  %v5749_v24 = vld [vmem:[#allocation38 + $0x8] sm:$0xff]  ;;  %v5751_v30 = vld [vmem:[#allocation38 + $0x18] sm:$0xff]  ;;  %vm7755_vm9 = vcmask 39936   ;;  %vm8841_vm10 = vcmask 31744  }
 0xd81   : > { %5229 = vrot.lane.b32.xlu1 %v5076_v39, %s14681_s6  ;;  %v12289_v39 = vunpack.i.l.bf16 %v17051_v25  ;;  %v12265_v25 = vunpack.i.h.bf16 %v17029_v19  ;;  %v5022_v19 = vsel %vm3059_vm11, %v12250_v31, %v12254_v46  ;;  %v5431_v31 = vld [vmem:[#allocation31 + $0x18] sm:$0xff] }
 0xd82   : > { %5225 = vrot.lane.b32.xlu0 %v5074_v53, %s14681_s6  ;;  %v12270_v53 = vunpack.i.h.bf16 %v17037_v18 }
 0xd83   : > { %v5028_v49 = vsel %vm3059_vm11, %v12289_v39, %v12290_v55 }
 0xd84   : > { %v5026_v12 = vsel %vm3059_vm11, %v12270_v53, %v12274_v48  ;;  %v5025_v23 = vsel %vm3059_vm11, %v12269_v15, %v12270_v53 }
 0xd85   : > { %5245 = vrot.lane.b32.xlu1 %v5084_v61, %s14681_s6  ;;  %v5094_v9 = vpack.c.bf16 %v5028_v49, %v5026_v12  ;;  %v5024_v61 = vsel %vm3059_vm11, %v12264_v42, %v12265_v25  ;;  %v5429_v42 = vld [vmem:[#allocation31 + $0x8] sm:$0xff] }
 0xd86   : > { %5235 = vrot.lane.b32.xlu0 %v5079_v14, %s14681_s6  ;;  %v12275_v14 = vunpack.i.h.bf16 %v17012_v60  ;;  %v5091_v21 = vpack.c.bf16 %v5024_v61, %v5022_v19 }
 0xd89   : > { %5241 = vrot.lane.b32.xlu1 %v5082_v43, %s14681_s6  ;;  %v5027_v43 = vsel %vm3059_vm11, %v12275_v14, %v12289_v39  ;;  %vm9212_vm11 = vcmask 23552  }
 0xd8a   : > { %5227 = vrot.lane.b32.xlu0 %v5075_v52, %s14681_s6  ;;  %v5093_v52 = vpack.c.bf16 %v5027_v43, %v5025_v23 }
 0xd8d   : > { %5243 = vrot.lane.b32.xlu1 %v5083_v13, %s14681_s6  ;;  %v5092_v13 = vpack.c.bf16 %v12275_v14, %v12269_v15 }
 0xd8e   : > { %5237 = vrot.lane.b32.xlu0 %v5080_v45, %s14681_s6  ;;  %v5425_v45 = vld [vmem:[#allocation29 + $0x8] sm:$0xff] }
 0xd91   : > { %5253 = vrot.lane.b32.xlu1 %v5088_v26, %s14681_s6  ;;  %v5741_v26 = vld [vmem:[#allocation34 + $0x8] sm:$0xff] }
 0xd92   : > { %5239 = vrot.lane.b32.xlu0 %v5081_v5, %s14681_s6 }
 0xd95   : > { %5257 = vrot.lane.b32.xlu1 %v5090_v1, %s14681_s6 }
 0xd96   : > { %5247 = vrot.lane.b32.xlu0 %v5085_v4, %s14681_s6  ;;  %v5755_v4 = vld [vmem:[#allocation40 + $0x18] sm:$0xff] }
 0xd99   : > { %5255 = vrot.lane.b32.xlu1 %v5089_v27, %s14681_s6 }
 0xd9a   : > { %5251 = vrot.lane.b32.xlu0 %v5087_v28, %s14681_s6 }
 0xd9d   : > { %5265 = vrot.lane.b32.xlu1 %v5094_v9, %s14681_s6  ;;  %v5172_v44 = vpop.permute.xlu0 %5171 }
 0xd9e   : > { %5249 = vrot.lane.b32.xlu0 %v5086_v8, %s14681_s6 }
 0xda0   : > { %v17155_v16 = vpop.permute.xlu1 %5207 }
 0xda1   : > { %5468 = vperm.xlu1 %11830, %v5424_v3   ;;  %v17158_v32 = vpop.permute.xlu0 %5211 }
 0xda2   : > { %5259 = vrot.lane.b32.xlu0 %v5091_v21, %s14681_s6 }
 0xda4   : > { %v5176_v51 = vpop.permute.xlu1 %5175 }
 0xda5   : > { %5496 = vperm.xlu1 %11830, %v5428_v7   ;;  %v5174_v62 = vpop.permute.xlu0 %5173 }
 0xda6   : > { %5263 = vrot.lane.b32.xlu0 %v5093_v52, %s14681_s6  ;;  %v5272_v60 = vsel %vm2947_vm4, %v5174_v62, %v5176_v51  ;;  %v5271_v18 = vsel %vm2947_vm4, %v5172_v44, %v5174_v62 }
 0xda7   : > { %5346 = vmatprep.subr.bf16.mxu0 %v5272_v60 }
 0xda8   : > { %5347 = vmatpush1.bf16.msra.mxu0 %v5271_v18  ;;  %v17166_v17 = vpop.permute.xlu1 %5209 }
 0xda9   : > { %5478 = vperm.xlu1 %11830, %v5426_v63   ;;  %v5284_v60 = vsel %vm2947_vm4, %v17166_v17, %v17158_v32  ;;  %v5283_v63 = vsel %vm2947_vm4, %v17155_v16, %v17166_v17 }
 0xdaa   : > { %5261 = vrot.lane.b32.xlu0 %v5092_v13, %s14681_s6  ;;  %s14690_s6 = smov 121  }
 0xdac   : > { %v5188_v41 = vpop.permute.xlu0 %5187 }
 0xdad   : > { %5506 = vperm.xlu1 %11830, %v5430_v35   ;;  %v5184_v10 = vpop.permute.xlu1 %5183 }
 0xdae   : > { %5473 = vperm.xlu0 %11829, %v5425_v45  }
 0xdb0   : > { %v5200_v1 = vpop.permute.xlu0 %5199 }
 0xdb1   : > { %5760 = vperm.xlu1 %11830, %v5740_v29   ;;  %v5196_v5 = vpop.permute.xlu1 %5195 }
 0xdb2   : > { %5501 = vperm.xlu0 %11829, %v5429_v42  }
 0xdb5   : > { %5772 = vperm.xlu1 %11830, %v5742_v34   ;;  %v5186_v59 = vpop.permute.xlu1 %5185 }
 0xdb6   : > { %5483 = vperm.xlu0 %11829, %v5427_v36   ;;  %v5276_v48 = vsel %vm2947_vm4, %v5186_v59, %v5188_v41  ;;  %v5275_v28 = vsel %vm2947_vm4, %v5184_v10, %v5186_v59 }
 0xdb9   : > { %5852 = vperm.xlu1 %11830, %v5748_v33   ;;  %v5198_v55 = vpop.permute.xlu1 %5197 }
 0xdba   : > { %5511 = vperm.xlu0 %11829, %v5431_v31   ;;  %v5280_v15 = vsel %vm2947_vm4, %v5198_v55, %v5200_v1  ;;  %v5279_v43 = vsel %vm2947_vm4, %v5196_v5, %v5198_v55 }
 0xdbd   : > { %5876 = vperm.xlu1 %11830, %v5752_v50  }
 0xdbe   : > { %5765 = vperm.xlu0 %11829, %v5741_v26  }
 0xdc1   : > { %5862 = vperm.xlu1 %11830, %v5750_v2  }
 0xdc2   : > { %5777 = vperm.xlu0 %11829, %v5743_v11  }
 0xdc5   : > { %5886 = vperm.xlu1 %11830, %v5754_v20  }
 0xdc6   : > { %5857 = vperm.xlu0 %11829, %v5749_v24  }
 0xdca   : > { %5881 = vperm.xlu0 %11829, %v5753_v56  }
 0xdcb   : > { %v5182_v54 = vpop.permute.xlu1 %5181 }
 0xdcc   : > { %v5178_v39 = vpop.permute.xlu0 %5177 }
 0xdce   : > { %5867 = vperm.xlu0 %11829, %v5751_v30  }
 0xdcf   : > { %v5218_v25 = vpop.permute.xlu1 %5217 }
 0xdd0   : > { %v5180_v53 = vpop.permute.xlu0 %5179 }
 0xdd1   : > { %v5274_v0 = vsel %vm2947_vm4, %v5180_v53, %v5182_v54  ;;  %v5273_v27 = vsel %vm2947_vm4, %v5178_v39, %v5180_v53  ;;  %v10863_v54 = vcombine.low %v17129_v38, %v17129_v38 }
 0xdd2   : > { %5891 = vperm.xlu0 %11829, %v5755_v4   ;;  %5348 = vmatprep.subr.bf16.mxu0 %v5274_v0 }
 0xdd3   : > { %5349 = vmatpush1.bf16.msra.mxu0 %v5273_v27 }
 0xdd4   : > { %5350 = vmatprep.subr.bf16.mxu0 %v5276_v48  ;;  %v5216_v49 = vpop.permute.xlu0 %5215 }
 0xdd5   : > { %v5286_v35 = vsel %vm2947_vm4, %v5216_v49, %v5218_v25 }
 0xdd7   : > { %5351 = vmatpush1.bf16.msra.mxu0 %v5275_v28  ;;  %v5194_v12 = vpop.permute.xlu1 %5193 }
 0xdd8   : > { %v5190_v9 = vpop.permute.xlu0 %5189 }
 0xddf   : > { %v5206_v8 = vpop.permute.xlu1 %5205 }
 0xde0   : > { %v5202_v46 = vpop.permute.xlu0 %5201 }
 0xde3   : > { %v5222_v61 = vpop.permute.xlu1 %5221 }
 0xde4   : > { %v5192_v44 = vpop.permute.xlu0 %5191 }
 0xde5   : > { %v5278_v3 = vsel %vm2947_vm4, %v5192_v44, %v5194_v12  ;;  %v5277_v19 = vsel %vm2947_vm4, %v5190_v9, %v5192_v44  ;;  %v12961_v9 = vld [vmem:[#allocation28 + $0x8] ss:$0 sps:$4 sm:$0xff]  }
 0xde6   : > { %5352 = vmatprep.subr.bf16.mxu0 %v5278_v3 }
 0xde7   : > { %v5220_v14 = vpop.permute.xlu1 %5219  ;;  %5353 = vmatpush1.bf16.msra.mxu0 %v5277_v19 }
 0xde8   : > { %5354 = vmatprep.subr.bf16.mxu0 %v5280_v15  ;;  %v5214_v21 = vpop.permute.xlu0 %5213  ;;  %v5287_v36 = vsel %vm2947_vm4, %v5220_v14, %v5222_v61 }
 0xde9   : > { %v5285_v29 = vsel %vm2947_vm4, %v5214_v21, %v5216_v49 }
 0xdeb   : > { %v5234_v7 = vpop.permute.xlu1 %5233  ;;  %5355 = vmatpush1.bf16.msra.mxu0 %v5279_v43 }
 0xdec   : > { %v5204_v23 = vpop.permute.xlu0 %5203 }
 0xded   : > { %v5282_v51 = vsel %vm2947_vm4, %v5204_v23, %v5206_v8  ;;  %v5281_v52 = vsel %vm2947_vm4, %v5202_v46, %v5204_v23 }
 0xdee   : > { %5356 = vmatprep.subr.bf16.mxu0 %v5282_v51 }
 0xdef   : > { %v5232_v62 = vpop.permute.xlu1 %5231  ;;  %5357 = vmatpush1.bf16.msra.mxu0 %v5281_v52 }
 0xdf0   : > { %5358 = vmatprep.subr.bf16.mxu0 %v5284_v60  ;;  %v5224_v18 = vpop.permute.xlu0 %5223  ;;  %v5291_v2 = vsel %vm2947_vm4, %v5232_v62, %v5234_v7 }
 0xdf1   : > { %v5288_v34 = vsel %vm2947_vm4, %v5222_v61, %v5224_v18 }
 0xdf3   : > { %v5230_v13 = vpop.permute.xlu1 %5229  ;;  %5359 = vmatpush1.bf16.msra.mxu0 %v5283_v63 }
 0xdf4   : > { %5360 = vmatprep.subr.bf16.mxu0 %v5286_v35  ;;  %v5226_v45 = vpop.permute.xlu0 %5225 }
 0xdf7   : > { %v5246_v42 = vpop.permute.xlu1 %5245  ;;  %5361 = vmatpush1.bf16.msra.mxu0 %v5285_v29 }
 0xdf8   : > { %5362 = vmatprep.subr.bf16.mxu0 %v5288_v34  ;;  %v5236_v32 = vpop.permute.xlu0 %5235 }
 0xdf9   : > { %v5292_v10 = vsel %vm2947_vm4, %v5234_v7, %v5236_v32 }
 0xdfb   : > { %v5242_v33 = vpop.permute.xlu1 %5241  ;;  %5363 = vmatpush1.bf16.msra.mxu0 %v5287_v36 }
 0xdfc   : > { %v5228_v31 = vpop.permute.xlu0 %5227 }
 0xdfd   : > { %v5290_v16 = vsel %vm2947_vm4, %v5228_v31, %v5230_v13  ;;  %v5289_v17 = vsel %vm2947_vm4, %v5226_v45, %v5228_v31 }
 0xdfe   : > { %5364 = vmatprep.subr.bf16.mxu0 %v5290_v16 }
 0xdff   : > { %5365 = vmatpush1.bf16.msra.mxu0 %v5289_v17  ;;  %v5244_v50 = vpop.permute.xlu1 %5243 }
 0xe00   : > { %5366 = vmatprep.subr.bf16.mxu0 %v5292_v10  ;;  %v5238_v26 = vpop.permute.xlu0 %5237  ;;  %v5295_v56 = vsel %vm2947_vm4, %v5244_v50, %v5246_v42 }
 0xe03   : > { %5367 = vmatpush1.bf16.msra.mxu0 %v5291_v2  ;;  %v5254_v20 = vpop.permute.xlu1 %5253  ;;  %v12963_v2 = vld [vmem:[%s18854_s5 + $0x40] sm:$0xff]  }
 0xe04   : > { %v5240_v11 = vpop.permute.xlu0 %5239 }
 0xe05   : > { %v5294_v5 = vsel %vm2947_vm4, %v5240_v11, %v5242_v33  ;;  %v5293_v41 = vsel %vm2947_vm4, %v5238_v26, %v5240_v11  ;;  %v12962_v11 = vld [vmem:[#allocation32] sm:$0xff]  }
 0xe06   : > { %5368 = vmatprep.subr.bf16.mxu0 %v5294_v5  ;;  %v12964_v5 = vld [vmem:[%s18854_s5] sm:$0xff]  }
 0xe07   : > { %5369 = vmatpush1.bf16.msra.mxu0 %v5293_v41  ;;  %v5258_v1 = vpop.permute.xlu1 %5257  ;;  %v12965_v41 = vld [vmem:[%s18854_s5 + $0x48] sm:$0xff]  }
 0xe08   : > { %v5248_v24 = vpop.permute.xlu0 %5247 }
 0xe09   : > { %v5296_v59 = vsel %vm2947_vm4, %v5246_v42, %v5248_v24  ;;  %v12967_v24 = vld [vmem:[%s18854_s5 + $0x50] sm:$0xff]  }
 0xe0a   : > { %5370 = vmatprep.subr.bf16.mxu0 %v5296_v59  ;;  %v12968_v59 = vld [vmem:[%s18854_s5 + $0x10] sm:$0xff]  }
 0xe0b   : > { %5371 = vmatpush1.bf16.msra.mxu0 %v5295_v56  ;;  %v5256_v53 = vpop.permute.xlu1 %5255  ;;  %v12969_v56 = vld [vmem:[%s18854_s5 + $0x58] sm:$0xff]  }
 0xe0c   : > { %v5252_v30 = vpop.permute.xlu0 %5251  ;;  %v5299_v48 = vsel %vm2947_vm4, %v5256_v53, %v5258_v1  ;;  %v12976_v53 = vld [vmem:[%s18854_s5 + $0x30] sm:$0xff]  }
 0xe0d   : > { %v5298_v55 = vsel %vm2947_vm4, %v5252_v30, %v5254_v20  ;;  %v12966_v20 = vld [vmem:[%s18854_s5 + $0x8] sm:$0xff]  }
 0xe0e   : > { %5372 = vmatprep.subr.bf16.mxu0 %v5298_v55  ;;  %v12972_v55 = vld [vmem:[%s18854_s5 + $0x20] sm:$0xff]  }
 0xe0f   : > { %v5266_v49 = vpop.permute.xlu1 %5265 }
 0xe10   : > { %v5250_v39 = vpop.permute.xlu0 %5249 }
 0xe11   : > { %v5297_v4 = vsel %vm2947_vm4, %v5250_v39, %v5252_v30  ;;  %v12971_v30 = vld [vmem:[%s18854_s5 + $0x60] sm:$0xff]   ;;  %v12973_v39 = vld [vmem:[%s18854_s5 + $0x68] sm:$0xff]  }
 0xe12   : > { %5373 = vmatpush1.bf16.msra.mxu0 %v5297_v4  ;;  %v12974_v4 = vld [vmem:[%s18854_s5 + $0x28] sm:$0xff]  }
 0xe14   : > { %v5260_v0 = vpop.permute.xlu0 %5259 }
 0xe15   : > { %5375 = vmatmul.mubr.bf16.vlgmr.msra.gmra.mrb[12].mxu0 %v10863_v54  ;;  %v5300_v27 = vsel %vm2947_vm4, %v5258_v1, %v5260_v0  ;;  %v12970_v1 = vld [vmem:[%s18854_s5 + $0x18] sm:$0xff]   ;;  %v12975_v54 = vld [vmem:[%s18854_s5 + $0x70] sm:$0xff]  }
 0xe16   : > { %5383 = vmatprep.subr.bf16.mxu0 %v5300_v27  ;;  %5415 = vmatprep.mubr.bf16.mxu0 %v18846_v57  ;;  %v12977_v0 = vld [vmem:[%s18854_s5 + $0x78] sm:$0xff]  }
 0xe17   : > { %5384 = vmatpush1.bf16.msra.mxu0 %v5299_v48  ;;  %v12978_v27 = vld [vmem:[%s18854_s5 + $0x38] sm:$0xff]   ;;  %s18877_s5 = sld [smem:[#allocation169_spill]] }
 0xe18   : > { %v5264_v28 = vpop.permute.xlu0 %5263  ;;  %v17229_v48 = vld [vmem:[#allocation2 + $0x18] sm:$0xff] }
 0xe19   : > { %v5302_v25 = vsel %vm2947_vm4, %v5264_v28, %v5266_v49 }
 0xe1a   : > { %5385 = vmatprep.subr.bf16.mxu0 %v5302_v25 }
 0xe1c   : > { %v5262_v12 = vpop.permute.xlu0 %5261 }
 0xe1d   : > { %v5301_v38 = vsel %vm2947_vm4, %v5262_v12, %v5264_v28  ;;  %vm6075_vm4 = vcmask 982016  }
 0xe1e   : > { %5386 = vmatpush1.bf16.msra.mxu0 %v5301_v38 }
 0xe20   : > { %v5469_v8 = vpop.permute.xlu1 %5468 }
 0xe21   : > { %10866 = vmatmul.mubr.msk.bf16.vlgmr.msra.gmra.mrb[12].mxu0 %vm4215_vm15, %v12961_v9  ;;  %v5486_v44 = vmul.f32 %v5469_v8, %v16156_v47  ;;  %v5487_v57 = vmul.f32 %v5469_v8, %v16159_v40  ;;  %v12979_v8 = vld [vmem:[#allocation37] sm:$0xff]  }
 0xe22   : > { %11161 = vmatprep.mubr.msk.bf16.mxu0 %vm3265_vm14, %v12979_v8 }
 0xe24   : > { %v5497_v46 = vpop.permute.xlu1 %5496 }
 0xe25   : > { %v5514_v3 = vadd.f32 %v5497_v46, %v5486_v44  ;;  %v5515_v19 = vadd.f32 %v5497_v46, %v5487_v57  ;;  %v2815_v46 = vld [vmem:[#allocation7] sm:$0x3]  ;;  %v18856_v57 = vld [vmem:[#allocation174_spill] sm:$0xff] }
 0xe27   : > { %v5522_v23 = vmax.f32 %v5514_v3, 0.0  ;;  %v5523_v51 = vmax.f32 %v5515_v19, 0.0  ;;  %v5918_v3 = vrot.slane %v2815_v46, %v18856_v57 }
 0xe28   : > { %v5479_v47 = vpop.permute.xlu1 %5478 }
 0xe29   : > { %v5490_v13 = vmul.f32 %v5479_v47, %v16687_v6 }
 0xe2c   : > { %v5507_v40 = vpop.permute.xlu1 %5506 }
 0xe2d   : > { %v5474_v61 = vpop.permute.xlu0 %5473 }
 0xe2e   : > { %v5488_v14 = vmul.f32 %v5474_v61, %v16162_v37  ;;  %v5489_v15 = vmul.f32 %v5474_v61, %v16165_v58  ;;  %v5491_v37 = vmul.f32 %v5479_v47, %v16690_v22  ;;  %v5518_v58 = vadd.f32 %v5507_v40, %v5490_v13  ;;  %v18855_v61 = vld [vmem:[#allocation173_spill] sm:$0xff] }
 0xe2f   : > { %v5934_v44 = vrot.slane %v2815_v46, %v18855_v61 }
 0xe30   : > { %v5519_v42 = vadd.f32 %v5507_v40, %v5491_v37  ;;  %v5526_v17 = vmax.f32 %v5518_v58, 0.0  ;;  %v5761_v19 = vpop.permute.xlu1 %5760 }
 0xe31   : > { %v5502_v21 = vpop.permute.xlu0 %5501  ;;  %5958 = vrot.lane.b32.xlu1 %v5934_v44, %s18701_s7  ;;  %5936 = vrot.lane.b32.xlu0 %v5934_v44, %s14690_s6  ;;  %s18693_s6 = smov 118  }
 0xe32   : > { %v5516_v43 = vadd.f32 %v5502_v21, %v5488_v14  ;;  %v5517_v7 = vadd.f32 %v5502_v21, %v5489_v15  ;;  %v5527_v6 = vmax.f32 %v5519_v42, 0.0 }
 0xe34   : > { %v5524_v52 = vmax.f32 %v5516_v43, 0.0  ;;  %v5525_v62 = vmax.f32 %v5517_v7, 0.0 }
 0xe35   : > { %v5484_v63 = vpop.permute.xlu0 %5483  ;;  %5965 = vrot.lane.b32.xlu1 %v5918_v3, %s14691_s10  ;;  %5947 = vrot.lane.b32.xlu0 %v5918_v3, %s18716_s28  ;;  %s18703_s10 = smov 120  }
 0xe36   : > { %v5530_v60 = vpack.c.bf16 %v5524_v52, %v5522_v23  ;;  %v5531_v18 = vpack.c.bf16 %v5525_v62, %v5523_v51  ;;  %v5773_v62 = vpop.permute.xlu1 %5772 }
 0xe38   : > { %5542 = vmatprep.subr.bf16.mxu1 %v5531_v18 }
 0xe39   : > { %5543 = vmatpush1.bf16.msra.mxu1 %v5530_v60  ;;  %v5512_v34 = vpop.permute.xlu0 %5511  ;;  %5972 = vrot.lane.b32.xlu1 %v5934_v44, %s14692_s1 }
 0xe3a   : > { %5920 = vrot.lane.b32.xlu0 %v5918_v3, %s18695_s2  ;;  %v5853_v58 = vpop.permute.xlu1 %5852 }
 0xe3d   : > { %v5766_v15 = vpop.permute.xlu0 %5765 }
 0xe41   : > { %v5778_v47 = vpop.permute.xlu0 %5777 }
 0xef4   : > { %v5417_v35 = vpop.f32.mrb[12].mxu0 }
 0xef5   : > { %v5492_v45 = vmul.f32 %v5484_v63, %v5417_v35  ;;  %v5419_v29 = vpop.f32.mrb[13].mxu0  ;;  %v12980_v35 = vld [vmem:[#allocation37 + $0x8] sm:$0xff]  }
 0xef6   : > { %v5493_v32 = vmul.f32 %v5484_v63, %v5419_v29  ;;  %v5421_v36 = vpop.f32.mrb[14].mxu0  ;;  %v5877_v29 = vpop.permute.xlu1 %5876 }
 0xef7   : > { %v5520_v33 = vadd.f32 %v5512_v34, %v5492_v45  ;;  %v5422_v31 = vpop.f32.mrb[15].mxu0  ;;  %v5858_v45 = vpop.permute.xlu0 %5857 }
 0xef8   : > { %v5521_v16 = vadd.f32 %v5512_v34, %v5493_v32 }
 0xef9   : > { %v5528_v10 = vmax.f32 %v5520_v33, 0.0 }
 0xefa   : > { %v5529_v22 = vmax.f32 %v5521_v16, 0.0  ;;  %v5863_v34 = vpop.permute.xlu1 %5862 }
 0xefb   : > { %v5532_v50 = vpack.c.bf16 %v5528_v10, %v5526_v17  ;;  %v5882_v42 = vpop.permute.xlu0 %5881 }
 0xefc   : > { %v5533_v26 = vpack.c.bf16 %v5529_v22, %v5527_v6 }
 0xefe   : > { %5544 = vmatprep.subr.bf16.mxu1 %v5533_v26  ;;  %v5887_v16 = vpop.permute.xlu1 %5886 }
 0xeff   : > { %5545 = vmatpush1.bf16.msra.mxu1 %v5532_v50  ;;  %v5868_v32 = vpop.permute.xlu0 %5867 }
 0xf00   : > { %10950 = vmatprep.subr.bf16.mxu1 %v12963_v2 }
 0xf02   : > { %10868 = vmatmul.mubr.msk.bf16.vlgmr.msra.gmra.mrb[12].mxu1 %vm4215_vm15, %v12962_v11 }
 0xf03   : > { %10951 = vmatpush3.bf16.msra.mxu1 %v12964_v5  ;;  %v5892_v26 = vpop.permute.xlu0 %5891 }
 0xf04   : > { %10952 = vmatprep.subr.bf16.mxu1 %v12965_v41 }
 0xf07   : > { %10953 = vmatpush3.bf16.msra.mxu1 %v12966_v20 }
 0xf08   : > { %10954 = vmatprep.subr.bf16.mxu1 %v12967_v24 }
 0xf0b   : > { %10955 = vmatpush3.bf16.msra.mxu1 %v12968_v59 }
 0xf0c   : > { %10956 = vmatprep.subr.bf16.mxu1 %v12969_v56 }
 0xf0f   : > { %10957 = vmatpush3.bf16.msra.mxu1 %v12970_v1 }
 0xf10   : > { %10958 = vmatprep.subr.bf16.mxu1 %v12971_v30 }
 0xf13   : > { %10959 = vmatpush3.bf16.msra.mxu1 %v12972_v55 }
 0xf14   : > { %10960 = vmatprep.subr.bf16.mxu1 %v12973_v39 }
 0xf17   : > { %10961 = vmatpush3.bf16.msra.mxu1 %v12974_v4 }
 0xf18   : > { %10962 = vmatprep.subr.bf16.mxu1 %v12975_v54  ;;  %v17261_v54 = vpop.permute.xlu0 %5936 }
 0xf1b   : > { %10963 = vmatpush3.bf16.msra.mxu1 %v12976_v53 }
 0xf1c   : > { %10964 = vmatprep.subr.bf16.mxu1 %v12977_v0  ;;  %v17268_v0 = vmul.f32 %v17229_v48, %v17261_v54 }
 0xf1f   : > { %10965 = vmatpush3.bf16.msra.mxu1 %v12978_v27 }
 0xf20   : > { %11165 = vmatprep.subr.bf16.mxu1 %v17229_v48 }
 0xfd5   : > { %v5576_v49 = vpop.f32.mrb[12].mxu1 }
 0xfd6   : > { %v5578_v28 = vpop.f32.mrb[13].mxu1 }
 0xfd7   : > { %v5580_v25 = vpop.f32.mrb[14].mxu1 }
 0xfd8   : > { %v5585_v12 = vpack.c.bf16 %v5580_v25, %v5576_v49  ;;  %v5582_v38 = vpop.f32.mrb[15].mxu1 }
 0xfd9   : > { %v5586_v9 = vpack.c.bf16 %v5582_v38, %v5578_v28 }
 0xfdb   : > { %5715 = vmatprep.mubr.bf16.mxu1 %v5586_v9  ;;  %v17284_v9 = vpop.permute.xlu1 %5958 }
 0xfdc   : > { %5716 = vmatmul.mubr.bf16.vlgmr.msra.gmra.mrb[16].mxu1 %v5585_v12 }
 0xfdd   : > { %11169 = vmatprep.mubr.msk.bf16.mxu1 %vm14696_vm5, %v17229_v48 }
0x10af   : > { %v10966_v14 = vpop.f32.mrb[16].mxu1 }
0x10b0   : > { %v10967_v21 = vpop.f32.mrb[17].mxu1 }
0x10b1   : > { %v17239_v43 = vadd.f32 %v10967_v21, %v10966_v14  ;;  %v10969_v7 = vpop.f32.mrb[18].mxu1 }
0x10b2   : > { %v10970_v23 = vpop.f32.mrb[19].mxu1 }
0x10b3   : > { %v5768_v51 = vmul.f32 %v17239_v43, %v5761_v19  ;;  %v17242_v52 = vadd.f32 %v10970_v23, %v10969_v7  ;;  %v17304_v23 = vpop.permute.xlu1 %5965 }
0x10b5   : > { %v5769_v60 = vmul.f32 %v17242_v52, %v5766_v15  ;;  %v5780_v18 = vadd.f32 %v5773_v62, %v5768_v51  ;;  %v17309_v62 = vpop.permute.xlu0 %5947 }
0x10b7   : > { %v5781_v63 = vadd.f32 %v5778_v47, %v5769_v60  ;;  %v5782_v40 = vmax.f32 %v5780_v18, 0.0 }
0x10b9   : > { %v5783_v13 = vmax.f32 %v5781_v63, 0.0  ;;  %v17316_v63 = vmul.f32 %v17229_v48, %v17309_v62 }
0x10bb   : > { %v5784_v37 = vpack.c.bf16 %v5783_v13, %v5782_v40 }
0x10bd   : > { %11159 = vmatprep.subr.bf16.mxu0 %v5784_v37 }
0x10be   : > { %11160 = vmatpush3.bf16.msra.mxu0 %v5784_v37 }
0x10c1   : > { %11162 = vmatmul.mubr.msk.bf16.vlgmr.msra.gmra.mrb[16].mxu0 %vm3265_vm14, %v12980_v35 }
0x1194   : > { %v11163_v36 = vpop.f32.mrb[16].mxu0 }
0x1195   : > { %v5872_v33 = vmul.f32 %v11163_v36, %v5863_v34  ;;  %v5835_v31 = vpop.f32.mrb[17].mxu0 }
0x1196   : > { %v5870_v17 = vmul.f32 %v5853_v58, %v5835_v31  ;;  %v11164_v10 = vpop.f32.mrb[18].mxu0  ;;  %v17342_v31 = vpop.permute.xlu1 %5972 }
0x1197   : > { %v5896_v6 = vadd.f32 %v5887_v16, %v5872_v33  ;;  %v5873_v22 = vmul.f32 %v11164_v10, %v5868_v32  ;;  %v5838_v50 = vpop.f32.mrb[19].mxu0 }
0x1198   : > { %v5894_v2 = vadd.f32 %v5877_v29, %v5870_v17  ;;  %v5871_v11 = vmul.f32 %v5858_v45, %v5838_v50  ;;  %v17347_v17 = vpop.permute.xlu0 %5920 }
0x1199   : > { %v5900_v5 = vmax.f32 %v5896_v6, 0.0  ;;  %v5897_v41 = vadd.f32 %v5892_v26, %v5873_v22  ;;  %v5927_v50 = vmul.f32 %v17229_v48, %v17347_v17 }
0x119a   : > { %v5898_v20 = vmax.f32 %v5894_v2, 0.0  ;;  %v5895_v24 = vadd.f32 %v5882_v42, %v5871_v11 }
0x119b   : > { %5905 = vst.msk [vmem:[#allocation2 + $0x48] sm:$0xff] %vm5902_vm3, %v5900_v5  ;;  %v5901_v59 = vmax.f32 %v5897_v41, 0.0  ;;  %v6162_v5 = vpack.c.bf16 %v5927_v50, %v5927_v50 }
0x119c   : > { %5903 = vst.msk [vmem:[#allocation2 + $0x8] sm:$0xff] %vm5902_vm3, %v5898_v20  ;;  %v5899_v56 = vmax.f32 %v5895_v24, 0.0 }
0x119d   : > { %5906 = vst.msk [vmem:[#allocation2 + $0x68] sm:$0xff] %vm5902_vm3, %v5901_v59 }
0x119e   : > { %5904 = vst.msk [vmem:[#allocation2 + $0x28] sm:$0xff] %vm5902_vm3, %v5899_v56 }
0x11a2   : > { %v17250_v1 = vld [vmem:[#allocation2 + $0x48] sm:$0xff] }
0x11a3   : > { %v12291_v30 = vpack.i.bf16 %v17250_v1, %v17229_v48  ;;  %v17254_v55 = vld [vmem:[#allocation2 + $0x8] sm:$0xff]  ;;  %v5944_v27 = vmul.f32 %v17261_v54, %v17250_v1  ;;  %v5963_v19 = vmul.f32 %v17284_v9, %v17250_v1  ;;  %v5970_v13 = vmul.f32 %v17304_v23, %v17250_v1 }
0x11a4   : > { %v12296_v39 = vpack.i.bf16 %v17254_v55, %v17229_v48  ;;  %v17258_v4 = vld [vmem:[#allocation2 + $0x68] sm:$0xff]  ;;  %v5940_v38 = vmul.f32 %v17261_v54, %v17254_v55  ;;  %v5961_v51 = vmul.f32 %v17284_v9, %v17254_v55  ;;  %v5951_v40 = vmul.f32 %v17309_v62, %v17254_v55 }
0x11a5   : > { %12292 = vrot.lane.b32.xlu0 %v12291_v30, %s18716_s28  ;;  %v12301_v53 = vpack.i.bf16 %v17258_v4, %v17250_v1  ;;  %v12306_v49 = vpack.i.bf16 %v17258_v4, %v17229_v48  ;;  %v17275_v28 = vld [vmem:[#allocation2 + $0x28] sm:$0xff]  ;;  %v12311_v25 = vpack.i.bf16 %v5944_v27, %v17268_v0  ;;  %v5964_v46 = vmul.f32 %v17284_v9, %v17258_v4 }
0x11a6   : > { %12297 = vrot.lane.b32.xlu1 %v12296_v39, %s18716_s28  ;;  %v12316_v12 = vpack.i.bf16 %v17275_v28, %v17254_v55  ;;  %v12321_v8 = vpack.i.bf16 %v17275_v28, %v17229_v48  ;;  %v12326_v44 = vpack.i.bf16 %v5940_v38, %v17268_v0  ;;  %v5946_v3 = vmul.f32 %v17261_v54, %v17258_v4 }
0x11a7   : > { %v12331_v14 = vpack.i.bf16 %v5964_v46, %v5963_v19  ;;  %v5942_v15 = vmul.f32 %v17261_v54, %v17275_v28  ;;  %v5962_v7 = vmul.f32 %v17284_v9, %v17275_v28  ;;  %v5971_v18 = vmul.f32 %v17304_v23, %v17258_v4 }
0x11a8   : > { %v12336_v21 = vpack.i.bf16 %v5946_v3, %v17268_v0  ;;  %v5953_v35 = vmul.f32 %v17309_v62, %v17275_v28  ;;  %v12356_v58 = vpack.i.bf16 %v5951_v40, %v17316_v63  ;;  %v5969_v45 = vmul.f32 %v17304_v23, %v17275_v28 }
0x11a9   : > { %12302 = vrot.lane.b32.xlu0 %v12301_v53, %s18695_s2  ;;  %v12346_v60 = vpack.i.bf16 %v5942_v15, %v17268_v0  ;;  %v12341_v47 = vpack.i.bf16 %v5962_v7, %v5961_v51  ;;  %v12351_v37 = vpack.i.bf16 %v5971_v18, %v5970_v13  ;;  %v5968_v29 = vmul.f32 %v17304_v23, %v17254_v55 }
0x11aa   : > { %12307 = vrot.lane.b32.xlu1 %v12306_v49, %s18716_s28  ;;  %v12371_v42 = vpack.i.bf16 %v5953_v35, %v17316_v63  ;;  %v5955_v34 = vmul.f32 %v17309_v62, %v17250_v1  ;;  %v5957_v33 = vmul.f32 %v17309_v62, %v17258_v4  ;;  %v5978_v16 = vmul.f32 %v17342_v31, %v17258_v4 }
0x11ab   : > { %v12361_v32 = vpack.i.bf16 %v5969_v45, %v5968_v29  ;;  %v5976_v6 = vmul.f32 %v17342_v31, %v17275_v28  ;;  %v5977_v22 = vmul.f32 %v17342_v31, %v17250_v1  ;;  %v5975_v26 = vmul.f32 %v17342_v31, %v17254_v55 }
0x11ac   : > { %v12376_v36 = vpack.i.bf16 %v5955_v34, %v17316_v63  ;;  %v12381_v10 = vpack.i.bf16 %v5957_v33, %v17316_v63  ;;  %v5926_v41 = vmul.f32 %v17347_v17, %v17275_v28  ;;  %v5930_v20 = vmul.f32 %v17347_v17, %v17258_v4 }
0x11ad   : > { %12312 = vrot.lane.b32.xlu0 %v12311_v25, %s18713_s12  ;;  %v12396_v2 = vpack.i.bf16 %v5978_v16, %v5977_v22  ;;  %v12391_v11 = vpack.i.bf16 %v5976_v6, %v5975_v26  ;;  %v5924_v24 = vmul.f32 %v17347_v17, %v17254_v55  ;;  %v5928_v59 = vmul.f32 %v17347_v17, %v17250_v1 }
0x11ae   : > { %12317 = vrot.lane.b32.xlu1 %v12316_v12, %s18695_s2 }
0x11af   : > { %v6161_v56 = vpack.c.bf16 %v5926_v41, %v5924_v24  ;;  %v6163_v30 = vpack.c.bf16 %v5930_v20, %v5928_v59 }
0x11b1   : > { %12322 = vrot.lane.b32.xlu0 %v12321_v8, %s18716_s28 }
0x11b2   : > { %12327 = vrot.lane.b32.xlu1 %v12326_v44, %s18713_s12 }
0x11b5   : > { %12332 = vrot.lane.b32.xlu0 %v12331_v14, %s18693_s6 }
0x11b6   : > { %12337 = vrot.lane.b32.xlu1 %v12336_v21, %s18713_s12 }
0x11b9   : > { %12347 = vrot.lane.b32.xlu0 %v12346_v60, %s18713_s12 }
0x11ba   : > { %12342 = vrot.lane.b32.xlu1 %v12341_v47, %s18693_s6 }
0x11bd   : > { %12352 = vrot.lane.b32.xlu0 %v12351_v37, %s14683_s13 }
0x11be   : > { %12357 = vrot.lane.b32.xlu1 %v12356_v58, %s18703_s10 }
0x11c1   : > { %12372 = vrot.lane.b32.xlu0 %v12371_v42, %s18703_s10 }
0x11c2   : > { %12362 = vrot.lane.b32.xlu1 %v12361_v32, %s14683_s13 }
0x11c5   : > { %12377 = vrot.lane.b32.xlu0 %v12376_v36, %s18703_s10 }
0x11c6   : > { %12367 = vrot.lane.b32.xlu1 %v12316_v12, %s14682_s11 }
0x11c9   : > { %12387 = vrot.lane.b32.xlu0 %v12301_v53, %s14682_s11 }
0x11ca   : > { %12382 = vrot.lane.b32.xlu1 %v12381_v10, %s18703_s10 }
0x11cd   : > { %12397 = vrot.lane.b32.xlu0 %v12396_v2, %s14686_s16 }
0x11ce   : > { %12392 = vrot.lane.b32.xlu1 %v12391_v11, %s14686_s16 }
0x11d1   : > { %6226 = vrot.lane.b32.xlu0 %v6162_v5, %s14692_s1 }
0x11d2   : > { %6222 = vrot.lane.b32.xlu1 %v6162_v5, %s14692_s1 }
0x11d5   : > { %6224 = vrot.lane.b32.xlu0 %v6161_v56, %s14692_s1 }
0x11d6   : > { %6228 = vrot.lane.b32.xlu1 %v6163_v30, %s14692_s1 }
0x1217   : > { %v12293_v39 = vpop.permute.xlu0 %12292 }
0x1218   : > { %v17374_v53 = vpop.permute.xlu1 %12297  ;;  %v12295_v25 = vunpack.i.h.bf16 %v12293_v39  ;;  %v12294_v51 = vunpack.i.l.bf16 %v12293_v39 }
0x1219   : > { %v12300_v15 = vunpack.i.h.bf16 %v17374_v53 }
0x121a   : > { %v6005_v13 = vsel %vm2910_vm0, %v12294_v51, %v12295_v25 }
0x121b   : > { %v12303_v4 = vpop.permute.xlu0 %12302 }
0x121c   : > { %v12305_v27 = vunpack.i.h.bf16 %v12303_v4  ;;  %v12304_v49 = vunpack.i.l.bf16 %v12303_v4  ;;  %v12308_v28 = vpop.permute.xlu1 %12307 }
0x121d   : > { %v12310_v55 = vunpack.i.h.bf16 %v12308_v28  ;;  %v12309_v3 = vunpack.i.l.bf16 %v12308_v28 }
0x121e   : > { %v6177_v12 = vpack.c.bf16 %v12305_v27, %v12304_v49  ;;  %v12299_v27 = vunpack.i.l.bf16 %v17374_v53 }
0x121f   : > { %v6167_v38 = vpack.c.bf16 %v12310_v55, %v12295_v25  ;;  %v17376_v8 = vpop.permute.xlu0 %12312  ;;  %v6006_v18 = vsel %vm2910_vm0, %v12309_v3, %v12310_v55 }
0x1220   : > { %v12318_v1 = vpop.permute.xlu1 %12317  ;;  %6256 = vrot.lane.b32.xlu0 %v6177_v12, %s14692_s1  ;;  %v6166_v58 = vpack.c.bf16 %v6006_v18, %v6005_v13  ;;  %v12315_v11 = vunpack.i.h.bf16 %v17376_v8  ;;  %v12314_v5 = vunpack.i.l.bf16 %v17376_v8  ;;  %v6003_v53 = vsel %vm2910_vm0, %v12299_v27, %v12300_v15 }
0x1221   : > { %v12320_v46 = vunpack.i.h.bf16 %v12318_v1  ;;  %v12319_v44 = vunpack.i.l.bf16 %v12318_v1  ;;  %6236 = vrot.lane.b32.xlu1 %v6167_v38, %s14692_s1 }
0x1222   : > { %v6041_v30 = vsel %vm2978_vm6, %v12314_v5, %v12315_v11  ;;  %v6385_v5 = vld [vmem:[#allocation43 + $0x8] sm:$0xff] }
0x1223   : > { %v6176_v19 = vpack.c.bf16 %v12320_v46, %v12319_v44  ;;  %v12323_v14 = vpop.permute.xlu0 %12322 }
0x1224   : > { %v12325_v21 = vunpack.i.h.bf16 %v12323_v14  ;;  %v17381_v7 = vpop.permute.xlu1 %12327  ;;  %v12324_v59 = vunpack.i.l.bf16 %v12323_v14 }
0x1225   : > { %6254 = vrot.lane.b32.xlu1 %v6176_v19, %s14692_s1  ;;  %v12330_v26 = vunpack.i.h.bf16 %v17381_v7 }
0x1226   : > { %v6165_v60 = vpack.c.bf16 %v12325_v21, %v12300_v15  ;;  %v6004_v55 = vsel %vm2910_vm0, %v12324_v59, %v12325_v21 }
0x1227   : > { %v12333_v47 = vpop.permute.xlu0 %12332  ;;  %v6164_v21 = vpack.c.bf16 %v6004_v55, %v6003_v53  ;;  %v6397_v55 = vld [vmem:[#allocation46 + $0x18] sm:$0xff] }
0x1228   : > { %v12338_v40 = vpop.permute.xlu1 %12337  ;;  %6232 = vrot.lane.b32.xlu0 %v6165_v60, %s14692_s1  ;;  %v12335_v37 = vunpack.i.h.bf16 %v12333_v47  ;;  %v12334_v35 = vunpack.i.l.bf16 %v12333_v47 }
0x1229   : > { %v12340_v6 = vunpack.i.h.bf16 %v12338_v40  ;;  %v12339_v22 = vunpack.i.l.bf16 %v12338_v40 }
0x122a   : > { %v6179_v42 = vpack.c.bf16 %v12335_v37, %v12334_v35 }
0x122b   : > { %v17387_v45 = vpop.permute.xlu0 %12347  ;;  %v6042_v20 = vsel %vm2978_vm6, %v12339_v22, %v12340_v6  ;;  %v6171_v40 = vpack.c.bf16 %v12340_v6, %v12315_v11  ;;  %v12329_v6 = vunpack.i.l.bf16 %v17381_v7  ;;  %v6388_v7 = vld [vmem:[#allocation44 + $0x8] sm:$0xff] }
0x122c   : > { %v12343_v29 = vpop.permute.xlu1 %12342  ;;  %6234 = vrot.lane.b32.xlu0 %v6166_v58, %s14692_s1  ;;  %v12350_v16 = vunpack.i.h.bf16 %v17387_v45  ;;  %v6170_v28 = vpack.c.bf16 %v6042_v20, %v6041_v30 }
0x122d   : > { %v12345_v13 = vunpack.i.h.bf16 %v12343_v29  ;;  %v12344_v37 = vunpack.i.l.bf16 %v12343_v29 }
0x122e   : > { %v6169_v41 = vpack.c.bf16 %v12350_v16, %v12330_v26 }
0x122f   : > { %v12353_v34 = vpop.permute.xlu0 %12352 }
0x1230   : > { %v12355_v32 = vunpack.i.h.bf16 %v12353_v34  ;;  %v12354_v36 = vunpack.i.l.bf16 %v12353_v34  ;;  %v17390_v33 = vpop.permute.xlu1 %12357  ;;  %6260 = vrot.lane.b32.xlu0 %v6179_v42, %s14692_s1  ;;  %v6178_v34 = vpack.c.bf16 %v12345_v13, %v12344_v37 }
0x1231   : > { %v12360_v12 = vunpack.i.h.bf16 %v17390_v33 }
0x1232   : > { %v6181_v10 = vpack.c.bf16 %v12355_v32, %v12354_v36 }
0x1233   : > { %v17394_v50 = vpop.permute.xlu0 %12372 }
0x1234   : > { %v12363_v2 = vpop.permute.xlu1 %12362  ;;  %6264 = vrot.lane.b32.xlu0 %v6181_v10, %s14692_s1  ;;  %v12375_v49 = vunpack.i.h.bf16 %v17394_v50  ;;  %v12349_v10 = vunpack.i.l.bf16 %v17387_v45  ;;  %v12374_v20 = vunpack.i.l.bf16 %v17394_v50  ;;  %v12359_v45 = vunpack.i.l.bf16 %v17390_v33  ;;  %v6389_v50 = vld [vmem:[#allocation44 + $0x10] sm:$0xff]  ;;  %v6395_v33 = vld [vmem:[#allocation46 + $0x8] sm:$0xff] }
0x1235   : > { %v12365_v32 = vunpack.i.h.bf16 %v12363_v2  ;;  %v12364_v36 = vunpack.i.l.bf16 %v12363_v2  ;;  %v6039_v2 = vsel %vm2978_vm6, %v12329_v6, %v12330_v26 }
0x1236   : > { %v6173_v19 = vpack.c.bf16 %v12375_v49, %v12360_v12  ;;  %v6040_v11 = vsel %vm2978_vm6, %v12349_v10, %v12350_v16  ;;  %v6076_v26 = vsel %vm6075_vm4, %v12359_v45, %v12360_v12  ;;  %v6387_v12 = vld [vmem:[#allocation44] sm:$0xff] }
0x1237   : > { %v17403_v24 = vpop.permute.xlu0 %12377  ;;  %v6180_v22 = vpack.c.bf16 %v12365_v32, %v12364_v36 }
0x1238   : > { %v12368_v56 = vpop.permute.xlu1 %12367  ;;  %6240 = vrot.lane.b32.xlu0 %v6169_v41, %s14692_s1  ;;  %v12380_v8 = vunpack.i.h.bf16 %v17403_v24  ;;  %v12379_v1 = vunpack.i.l.bf16 %v17403_v24  ;;  %v6168_v41 = vpack.c.bf16 %v6040_v11, %v6039_v2  ;;  %v17434_v24 = vld [vmem:[#allocation41] sm:$0xff] }
0x1239   : > { %v12370_v39 = vunpack.i.h.bf16 %v12368_v56  ;;  %v12369_v4 = vunpack.i.l.bf16 %v12368_v56  ;;  %v10890_v16 = vcombine.high %v17434_v24, %v17434_v24  ;;  %v6077_v56 = vsel %vm6075_vm4, %v12374_v20, %v12375_v49 }
0x123a   : > { %v6078_v51 = vsel %vm6075_vm4, %v12379_v1, %v12380_v8  ;;  %v6172_v27 = vpack.c.bf16 %v6077_v56, %v6076_v26  ;;  %v6394_v1 = vld [vmem:[#allocation46] sm:$0xff] }
0x123b   : > { %v6182_v25 = vpack.c.bf16 %v12370_v39, %v12369_v4  ;;  %v12388_v46 = vpop.permute.xlu0 %12387  ;;  %6336 = vmatprep.mubr.bf16.mxu0 %v10890_v16 }
0x123c   : > { %v12383_v38 = vpop.permute.xlu1 %12382  ;;  %6242 = vrot.lane.b32.xlu0 %v6170_v28, %s14692_s1  ;;  %v12390_v60 = vunpack.i.h.bf16 %v12388_v46  ;;  %v12389_v18 = vunpack.i.l.bf16 %v12388_v46  ;;  %v6399_v28 = vld [vmem:[#allocation47 + $0x8] sm:$0xff]  ;;  %v6398_v46 = vld [vmem:[#allocation47] sm:$0xff] }
0x123d   : > { %v12385_v44 = vunpack.i.h.bf16 %v12383_v38  ;;  %v12384_v3 = vunpack.i.l.bf16 %v12383_v38  ;;  %6266 = vrot.lane.b32.xlu1 %v6182_v25, %s14692_s1  ;;  %v6384_v25 = vld [vmem:[#allocation43] sm:$0xff]  ;;  %v6401_v38 = vld [vmem:[#allocation47 + $0x18] sm:$0xff] }
0x123e   : > { %v6183_v15 = vpack.c.bf16 %v12390_v60, %v12389_v18 }
0x123f   : > { %v6079_v14 = vsel %vm6075_vm4, %v12384_v3, %v12385_v44  ;;  %v12398_v35 = vpop.permute.xlu0 %12397  ;;  %v6175_v59 = vpack.c.bf16 %v12385_v44, %v12380_v8  ;;  %v6386_v8 = vld [vmem:[#allocation43 + $0x10] sm:$0xff]  ;;  %v6396_v44 = vld [vmem:[#allocation46 + $0x10] sm:$0xff] }
0x1240   : > { %6248 = vrot.lane.b32.xlu0 %v6173_v19, %s14692_s1  ;;  %v6174_v47 = vpack.c.bf16 %v6079_v14, %v6078_v51  ;;  %v12400_v58 = vunpack.i.h.bf16 %v12398_v35  ;;  %v12399_v42 = vunpack.i.l.bf16 %v12398_v35  ;;  %v12393_v30 = vpop.permute.xlu1 %12392  ;;  %v6400_v3 = vld [vmem:[#allocation47 + $0x10] sm:$0xff] }
0x1241   : > { %6230 = vrot.lane.b32.xlu1 %v6164_v21, %s14692_s1  ;;  %v12395_v39 = vunpack.i.h.bf16 %v12393_v30  ;;  %v12394_v4 = vunpack.i.l.bf16 %v12393_v30 }
0x1242   : > { %v6185_v29 = vpack.c.bf16 %v12400_v58, %v12399_v42 }
0x1243   : > { %v6184_v49 = vpack.c.bf16 %v12395_v39, %v12394_v4  ;;  %v6227_v19 = vpop.permute.xlu0 %6226  ;;  %v12983_v39 = vld [vmem:[#allocation41 + $0x8] ss:$0 sps:$4 sm:$0xff]  }
0x1244   : > { %6250 = vrot.lane.b32.xlu0 %v6174_v47, %s14692_s1  ;;  %v6223_v53 = vpop.permute.xlu1 %6222 }
0x1245   : > { %6244 = vrot.lane.b32.xlu1 %v6171_v40, %s14692_s1 }
0x1247   : > { %v6225_v51 = vpop.permute.xlu0 %6224 }
0x1248   : > { %6268 = vrot.lane.b32.xlu0 %v6183_v15, %s14692_s1  ;;  %v6229_v14 = vpop.permute.xlu1 %6228  ;;  %v6275_v18 = vsel %vm6274_vm7, %v6223_v53, %v6225_v51 }
0x1249   : > { %6258 = vrot.lane.b32.xlu1 %v6178_v34, %s14692_s1  ;;  %v6276_v40 = vsel %vm6274_vm7, %v6227_v19, %v6229_v14 }
0x124c   : > { %6272 = vrot.lane.b32.xlu0 %v6185_v29, %s14692_s1 }
0x124d   : > { %6262 = vrot.lane.b32.xlu1 %v6180_v22, %s14692_s1 }
0x1250   : > { %6411 = vperm.xlu0 %11829, %v6385_v5  }
0x1251   : > { %6238 = vrot.lane.b32.xlu1 %v6168_v41, %s14692_s1 }
0x1254   : > { %6429 = vperm.xlu0 %11829, %v6388_v7  }
0x1255   : > { %6252 = vrot.lane.b32.xlu1 %v6175_v59, %s14692_s1 }
0x1258   : > { %6434 = vperm.xlu0 %11829, %v6389_v50   ;;  %v10889_v50 = vcombine.low %v17434_v24, %v17434_v24 }
0x1259   : > { %6246 = vrot.lane.b32.xlu1 %v6172_v27, %s14692_s1 }
0x125c   : > { %6520 = vperm.xlu0 %11829, %v6395_v33  }
0x125d   : > { %6270 = vrot.lane.b32.xlu1 %v6184_v49, %s14692_s1 }
0x1260   : > { %6544 = vperm.xlu0 %11829, %v6399_v28  }
0x1261   : > { %6406 = vperm.xlu1 %11830, %v6384_v25  }
0x1264   : > { %6530 = vperm.xlu0 %11829, %v6397_v55  }
0x1265   : > { %6424 = vperm.xlu1 %11830, %v6387_v12  }
0x1268   : > { %6554 = vperm.xlu0 %11829, %v6401_v38  }
0x1269   : > { %6416 = vperm.xlu1 %11830, %v6386_v8  }
0x126d   : > { %6515 = vperm.xlu1 %11830, %v6394_v1   ;;  %v12984_v1 = vld [vmem:[%s18857_s3] sm:$0xff]  }
0x1271   : > { %6539 = vperm.xlu1 %11830, %v6398_v46  }
0x1275   : > { %6525 = vperm.xlu1 %11830, %v6396_v44  }
0x1279   : > { %6549 = vperm.xlu1 %11830, %v6400_v3  }
0x1292   : > { %v6257_v47 = vpop.permute.xlu0 %6256 }
0x1293   : > { %v6237_v21 = vpop.permute.xlu1 %6236 }
0x1297   : > { %v6255_v60 = vpop.permute.xlu1 %6254 }
0x1298   : > { %10975 = vmatprep.subr.bf16.mxu0 %v6255_v60 }
0x1299   : > { %10976 = vmatpush3.bf16.msra.mxu0 %v6275_v18 }
0x129a   : > { %10977 = vmatprep.subr.bf16.mxu0 %v6257_v47  ;;  %v6233_v13 = vpop.permute.xlu0 %6232 }
0x129d   : > { %10978 = vmatpush3.bf16.msra.mxu0 %v6276_v40 }
0x129e   : > { %v6235_v37 = vpop.permute.xlu0 %6234 }
0x129f   : > { %v6278_v22 = vsel %vm6274_vm7, %v6235_v37, %v6237_v21 }
0x12a2   : > { %v6261_v35 = vpop.permute.xlu0 %6260 }
0x12a6   : > { %v6265_v15 = vpop.permute.xlu0 %6264 }
0x12aa   : > { %v6241_v34 = vpop.permute.xlu0 %6240 }
0x12ae   : > { %v6243_v36 = vpop.permute.xlu0 %6242 }
0x12af   : > { %v6267_v58 = vpop.permute.xlu1 %6266 }
0x12b2   : > { %v6249_v11 = vpop.permute.xlu0 %6248 }
0x12b3   : > { %v6231_v42 = vpop.permute.xlu1 %6230 }
0x12b4   : > { %v6277_v6 = vsel %vm6274_vm7, %v6231_v42, %v6233_v13  ;;  %v12985_v42 = vld [vmem:[%s18857_s3 + $0x8] sm:$0xff]   ;;  %s18875_s3 = smov 122  }
0x12b6   : > { %v6251_v41 = vpop.permute.xlu0 %6250 }
0x12b7   : > { %v6245_v32 = vpop.permute.xlu1 %6244 }
0x12b8   : > { %v6280_v7 = vsel %vm6274_vm7, %v6243_v36, %v6245_v32 }
0x12ba   : > { %v6269_v59 = vpop.permute.xlu0 %6268 }
0x12bb   : > { %v6259_v10 = vpop.permute.xlu1 %6258 }
0x12bc   : > { %10979 = vmatprep.subr.bf16.mxu0 %v6259_v10 }
0x12bd   : > { %10980 = vmatpush3.bf16.msra.mxu0 %v6277_v6 }
0x12be   : > { %10981 = vmatprep.subr.bf16.mxu0 %v6261_v35  ;;  %v6273_v26 = vpop.permute.xlu0 %6272 }
0x12bf   : > { %v6263_v29 = vpop.permute.xlu1 %6262 }
0x12c1   : > { %10982 = vmatpush3.bf16.msra.mxu0 %v6278_v22 }
0x12c2   : > { %10983 = vmatprep.subr.bf16.mxu0 %v6263_v29 }
0x12c3   : > { %v6239_v5 = vpop.permute.xlu1 %6238 }
0x12c4   : > { %v6279_v2 = vsel %vm6274_vm7, %v6239_v5, %v6241_v34 }
0x12c5   : > { %10984 = vmatpush3.bf16.msra.mxu0 %v6279_v2 }
0x12c6   : > { %10985 = vmatprep.subr.bf16.mxu0 %v6265_v15 }
0x12c7   : > { %v6253_v20 = vpop.permute.xlu1 %6252 }
0x12c8   : > { %v6282_v30 = vsel %vm6274_vm7, %v6251_v41, %v6253_v20 }
0x12c9   : > { %10986 = vmatpush3.bf16.msra.mxu0 %v6280_v7 }
0x12ca   : > { %10987 = vmatprep.subr.bf16.mxu0 %v6267_v58 }
0x12cb   : > { %v6247_v45 = vpop.permute.xlu1 %6246 }
0x12cc   : > { %v6281_v16 = vsel %vm6274_vm7, %v6247_v45, %v6249_v11 }
0x12cd   : > { %10988 = vmatpush3.bf16.msra.mxu0 %v6281_v16 }
0x12ce   : > { %10989 = vmatprep.subr.bf16.mxu0 %v6269_v59 }
0x12cf   : > { %v6271_v56 = vpop.permute.xlu1 %6270  ;;  %v6412_v4 = vpop.permute.xlu0 %6411 }
0x12d0   : > { %11166 = vmatpush3.bf16.msra.mxu1 %v6271_v56  ;;  %v6420_v24 = vmul.f32 %v17242_v52, %v6412_v4 }
0x12d1   : > { %10990 = vmatpush3.bf16.msra.mxu0 %v6282_v30  ;;  %11167 = vmatprep.subr.bf16.mxu1 %v17229_v48 }
0x12d2   : > { %11181 = vmatprep.subr.bf16.mxu0 %v17229_v48 }
0x12d3   : > { %v6430_v27 = vpop.permute.xlu0 %6429 }
0x12d4   : > { %6337 = vmatmul.mubr.bf16.vlgmr.msra.gmra.mrb[20].mxu0 %v10889_v50  ;;  %11168 = vmatpush3.bf16.msra.mxu1 %v6273_v26  ;;  %v6438_v49 = vadd.f32 %v6430_v27, %v6420_v24 }
0x12d5   : > { %11185 = vmatprep.mubr.msk.bf16.mxu0 %vm14696_vm5, %v17229_v48 }
0x12d6   : > { %v6441_v12 = vmax.f32 %v6438_v49, 0.0 }
0x12d7   : > { %11170 = vmatmul.mubr.msk.bf16.vlgmr.msra.gmra.mrb[20].mxu1 %vm4215_vm15, %v12983_v39  ;;  %v6435_v13 = vpop.permute.xlu0 %6434 }
0x12d8   : > { %11177 = vmatprep.mubr.msk.bf16.mxu1 %vm4383_vm1, %v12984_v1 }
0x12db   : > { %v6521_v32 = vpop.permute.xlu0 %6520 }
0x12df   : > { %v6545_v10 = vpop.permute.xlu0 %6544 }
0x12e0   : > { %v6407_v33 = vpop.permute.xlu1 %6406 }
0x12e1   : > { %v6419_v28 = vmul.f32 %v17239_v43, %v6407_v33 }
0x12e3   : > { %v6531_v29 = vpop.permute.xlu0 %6530 }
0x12e4   : > { %v6425_v25 = vpop.permute.xlu1 %6424 }
0x12e5   : > { %v6437_v55 = vadd.f32 %v6425_v25, %v6419_v28 }
0x12e7   : > { %v6440_v38 = vmax.f32 %v6437_v55, 0.0  ;;  %v6555_v59 = vpop.permute.xlu0 %6554 }
0x12e8   : > { %v6417_v60 = vpop.permute.xlu1 %6416 }
0x12e9   : > { %v6443_v8 = vpack.c.bf16 %v6441_v12, %v6440_v38 }
0x12eb   : > { %11173 = vmatprep.subr.bf16.mxu1 %v6443_v8 }
0x12ec   : > { %11174 = vmatpush3.bf16.msra.mxu1 %v6443_v8  ;;  %v6516_v34 = vpop.permute.xlu1 %6515 }
0x12f0   : > { %v6540_v36 = vpop.permute.xlu1 %6539 }
0x12f4   : > { %v6526_v6 = vpop.permute.xlu1 %6525 }
0x12f8   : > { %v6550_v2 = vpop.permute.xlu1 %6549 }
0x13a7   : > { %v10991_v46 = vpop.f32.mrb[20].mxu0 }
0x13a8   : > { %v10992_v44 = vpop.f32.mrb[21].mxu0 }
0x13a9   : > { %v10993_v3 = vadd.f32 %v10992_v44, %v10991_v46  ;;  %v10994_v53 = vpop.f32.mrb[22].mxu0 }
0x13aa   : > { %v10995_v19 = vpop.f32.mrb[23].mxu0  ;;  %v6378_v14 = vpop.f32.mrb[20].mxu1 }
0x13ab   : > { %v17465_v21 = vadd.f32 %v10993_v3, %v6378_v14  ;;  %v11171_v51 = vpop.f32.mrb[21].mxu1 }
0x13ac   : > { %v6381_v18 = vpop.f32.mrb[22].mxu1 }
0x13ad   : > { %v6421_v47 = vmul.f32 %v6417_v60, %v17465_v21  ;;  %v11172_v40 = vpop.f32.mrb[23].mxu1 }
0x13af   : > { %v6439_v37 = vadd.f32 %v6435_v13, %v6421_v47 }
0x13b1   : > { %v6442_v35 = vmax.f32 %v6439_v37, 0.0 }
0x13b3   : > { %v6444_v15 = vpack.c.bf16 %v6442_v35, %v6442_v35 }
0x13b5   : > { %11299 = vmatprep.subr.msk.bf16.mxu1 %vm3153_vm12, %v6444_v15  ;;  %v6462_v58 = vsel %vm3153_vm12, %v6444_v15, 0 }
0x13b6   : > { %11176 = vmatpush3.bf16.msra.mxu1 %v6462_v58 }
0x13b9   : > { %11178 = vmatmul.mubr.msk.bf16.vlgmr.msra.gmra.mrb[24].mxu1 %vm4383_vm1, %v12985_v42 }
0x148c   : > { %v11179_v22 = vpop.f32.mrb[24].mxu1 }
0x148d   : > { %v6535_v11 = vmul.f32 %v11179_v22, %v6526_v6  ;;  %v6498_v5 = vpop.f32.mrb[25].mxu1 }
0x148e   : > { %v6533_v41 = vmul.f32 %v6516_v34, %v6498_v5  ;;  %v11180_v20 = vpop.f32.mrb[26].mxu1 }
0x148f   : > { %v6559_v7 = vadd.f32 %v6550_v2, %v6535_v11  ;;  %v6536_v45 = vmul.f32 %v11180_v20, %v6531_v29  ;;  %v6501_v16 = vpop.f32.mrb[27].mxu1  ;;  %v17568_v20 = vld [vmem:[#allocation2 + $0x18] sm:$0xff] }
0x1490   : > { %v6557_v56 = vadd.f32 %v6540_v36, %v6533_v41  ;;  %v6534_v30 = vmul.f32 %v6521_v32, %v6501_v16 }
0x1491   : > { %v6563_v50 = vmax.f32 %v6559_v7, 0.0  ;;  %v6560_v26 = vadd.f32 %v6555_v59, %v6536_v45  ;;  %v6581_v7 = vmul.f32 %v17568_v20, %v17347_v17 }
0x1492   : > { %v6561_v39 = vmax.f32 %v6557_v56, 0.0  ;;  %v6558_v4 = vadd.f32 %v6545_v10, %v6534_v30 }
0x1493   : > { %6567 = vst.msk [vmem:[#allocation2 + $0x48] sm:$0xff] %vm5902_vm3, %v6563_v50  ;;  %v6564_v27 = vmax.f32 %v6560_v26, 0.0  ;;  %v6795_v45 = vpack.c.bf16 %v6581_v7, %v6581_v7 }
0x1494   : > { %6565 = vst.msk [vmem:[#allocation2 + $0x8] sm:$0xff] %vm5902_vm3, %v6561_v39  ;;  %v6562_v33 = vmax.f32 %v6558_v4, 0.0 }
0x1495   : > { %6568 = vst.msk [vmem:[#allocation2 + $0x68] sm:$0xff] %vm5902_vm3, %v6564_v27 }
0x1496   : > { %6566 = vst.msk [vmem:[#allocation2 + $0x28] sm:$0xff] %vm5902_vm3, %v6562_v33 }
0x149a   : > { %v17476_v24 = vld [vmem:[#allocation2 + $0x48] sm:$0xff] }
0x149b   : > { %v12401_v49 = vpack.i.bf16 %v17476_v24, %v17229_v48  ;;  %7215 = vst [vmem:[#allocation2 + $0x48] sm:$0xff] %v17229_v48  ;;  %v17481_v28 = vld [vmem:[#allocation2 + $0x8] sm:$0xff]  ;;  %v6590_v8 = vmul.f32 %v17476_v24, %v17261_v54  ;;  %v6603_v60 = vmul.f32 %v17476_v24, %v17284_v9  ;;  %v6607_v58 = vmul.f32 %v17476_v24, %v17304_v23 }
0x149c   : > { %v12406_v25 = vpack.i.bf16 %v17481_v28, %v17229_v48  ;;  %7207 = vst [vmem:[#allocation2 + $0x8] sm:$0xff] %v17229_v48  ;;  %v17486_v55 = vld [vmem:[#allocation2 + $0x68] sm:$0xff]  ;;  %v6586_v3 = vmul.f32 %v17481_v28, %v17261_v54  ;;  %v6601_v13 = vmul.f32 %v17481_v28, %v17284_v9  ;;  %v6605_v32 = vmul.f32 %v17481_v28, %v17304_v23 }
0x149d   : > { %12402 = vrot.lane.b32.xlu0 %v12401_v49, %s18716_s28  ;;  %7219 = vst [vmem:[#allocation2 + $0x68] sm:$0xff] %v17229_v48  ;;  %v17490_v12 = vld [vmem:[#allocation2 + $0x28] sm:$0xff]  ;;  %v12411_v38 = vpack.i.bf16 %v17486_v55, %v17476_v24  ;;  %v12416_v1 = vpack.i.bf16 %v17486_v55, %v17229_v48  ;;  %v12421_v46 = vpack.i.bf16 %v6590_v8, %v17268_v0 }
0x149e   : > { %12407 = vrot.lane.b32.xlu1 %v12406_v25, %s18716_s28  ;;  %7211 = vst [vmem:[#allocation2 + $0x28] sm:$0xff] %v17229_v48  ;;  %v12426_v44 = vpack.i.bf16 %v17490_v12, %v17481_v28  ;;  %v12431_v53 = vpack.i.bf16 %v17490_v12, %v17229_v48  ;;  %v6604_v19 = vmul.f32 %v17486_v55, %v17284_v9 }
0x149f   : > { %v12436_v14 = vpack.i.bf16 %v6586_v3, %v17268_v0  ;;  %v6592_v51 = vmul.f32 %v17486_v55, %v17261_v54  ;;  %v6588_v47 = vmul.f32 %v17490_v12, %v17261_v54  ;;  %v6602_v40 = vmul.f32 %v17490_v12, %v17284_v9 }
0x14a0   : > { %v12441_v18 = vpack.i.bf16 %v6604_v19, %v6603_v60  ;;  %v6608_v35 = vmul.f32 %v17486_v55, %v17304_v23  ;;  %v6594_v54 = vmul.f32 %v17481_v28, %v17309_v62  ;;  %v6596_v9 = vmul.f32 %v17490_v12, %v17309_v62 }
0x14a1   : > { %12412 = vrot.lane.b32.xlu0 %v12411_v38, %s18695_s2  ;;  %v12446_v48 = vpack.i.bf16 %v6592_v51, %v17268_v0  ;;  %v12456_v37 = vpack.i.bf16 %v6588_v47, %v17268_v0  ;;  %v12451_v15 = vpack.i.bf16 %v6602_v40, %v6601_v13  ;;  %v6606_v34 = vmul.f32 %v17490_v12, %v17304_v23 }
0x14a2   : > { %12417 = vrot.lane.b32.xlu1 %v12416_v1, %s18716_s28  ;;  %v12461_v42 = vpack.i.bf16 %v6608_v35, %v6607_v58  ;;  %v12466_v0 = vpack.i.bf16 %v6594_v54, %v17316_v63  ;;  %v12481_v36 = vpack.i.bf16 %v6596_v9, %v17316_v63  ;;  %v6598_v10 = vmul.f32 %v17476_v24, %v17309_v62 }
0x14a3   : > { %v12471_v6 = vpack.i.bf16 %v6606_v34, %v6605_v32  ;;  %v6600_v22 = vmul.f32 %v17486_v55, %v17309_v62  ;;  %v6612_v23 = vmul.f32 %v17486_v55, %v17342_v31  ;;  %v6610_v5 = vmul.f32 %v17490_v12, %v17342_v31 }
0x14a4   : > { %v12486_v29 = vpack.i.bf16 %v6598_v10, %v17316_v63  ;;  %v6611_v2 = vmul.f32 %v17476_v24, %v17342_v31  ;;  %v6609_v62 = vmul.f32 %v17481_v28, %v17342_v31  ;;  %v6580_v16 = vmul.f32 %v17490_v12, %v17347_v17 }
0x14a5   : > { %12422 = vrot.lane.b32.xlu0 %v12421_v46, %s18713_s12  ;;  %v12491_v11 = vpack.i.bf16 %v6600_v22, %v17316_v63  ;;  %v6584_v59 = vmul.f32 %v17486_v55, %v17347_v17  ;;  %v6578_v31 = vmul.f32 %v17481_v28, %v17347_v17  ;;  %v6582_v56 = vmul.f32 %v17476_v24, %v17347_v17 }
0x14a6   : > { %12427 = vrot.lane.b32.xlu1 %v12426_v44, %s18695_s2  ;;  %v12506_v41 = vpack.i.bf16 %v6612_v23, %v6611_v2  ;;  %v12501_v63 = vpack.i.bf16 %v6610_v5, %v6609_v62  ;;  %s18707_s2 = smov 123  }
0x14a7   : > { %v6794_v30 = vpack.c.bf16 %v6580_v16, %v6578_v31  ;;  %v6796_v50 = vpack.c.bf16 %v6584_v59, %v6582_v56 }
0x14a9   : > { %12432 = vrot.lane.b32.xlu0 %v12431_v53, %s18716_s28 }
0x14aa   : > { %12437 = vrot.lane.b32.xlu1 %v12436_v14, %s18713_s12 }
0x14ad   : > { %12442 = vrot.lane.b32.xlu0 %v12441_v18, %s18693_s6 }
0x14ae   : > { %12447 = vrot.lane.b32.xlu1 %v12446_v48, %s18713_s12 }
0x14b1   : > { %12457 = vrot.lane.b32.xlu0 %v12456_v37, %s18713_s12 }
0x14b2   : > { %12452 = vrot.lane.b32.xlu1 %v12451_v15, %s18693_s6  ;;  %s18705_s6 = smov 5  }
0x14b5   : > { %12462 = vrot.lane.b32.xlu0 %v12461_v42, %s14683_s13 }
0x14b6   : > { %12467 = vrot.lane.b32.xlu1 %v12466_v0, %s18703_s10 }
0x14b9   : > { %12482 = vrot.lane.b32.xlu0 %v12481_v36, %s18703_s10 }
0x14ba   : > { %12472 = vrot.lane.b32.xlu1 %v12471_v6, %s14683_s13  ;;  %s18859_s13 = sld [smem:[#allocation146_spill]] }
0x14bd   : > { %12487 = vrot.lane.b32.xlu0 %v12486_v29, %s18703_s10 }
0x14be   : > { %12477 = vrot.lane.b32.xlu1 %v12426_v44, %s14682_s11 }
0x14c1   : > { %12497 = vrot.lane.b32.xlu0 %v12411_v38, %s14682_s11  ;;  %s18858_s11 = sld [smem:[#allocation143_spill]] }
0x14c2   : > { %12492 = vrot.lane.b32.xlu1 %v12491_v11, %s18703_s10 }
0x14c5   : > { %12507 = vrot.lane.b32.xlu0 %v12506_v41, %s14686_s16 }
0x14c6   : > { %12502 = vrot.lane.b32.xlu1 %v12501_v63, %s14686_s16  ;;  %s18697_s16 = smov 125  }
0x14c9   : > { %6859 = vrot.lane.b32.xlu0 %v6795_v45, %s14692_s1 }
0x14ca   : > { %6855 = vrot.lane.b32.xlu1 %v6795_v45, %s14692_s1 }
0x14cd   : > { %6857 = vrot.lane.b32.xlu0 %v6794_v30, %s14692_s1 }
0x14ce   : > { %6861 = vrot.lane.b32.xlu1 %v6796_v50, %s14692_s1 }
0x150f   : > { %v12403_v26 = vpop.permute.xlu0 %12402 }
0x1510   : > { %v17586_v39 = vpop.permute.xlu1 %12407  ;;  %v12405_v25 = vunpack.i.h.bf16 %v12403_v26  ;;  %v12404_v14 = vunpack.i.l.bf16 %v12403_v26 }
0x1511   : > { %v12410_v3 = vunpack.i.h.bf16 %v17586_v39  ;;  %v12409_v59 = vunpack.i.l.bf16 %v17586_v39 }
0x1512   : > { %v6639_v48 = vsel %vm2910_vm0, %v12404_v14, %v12405_v25 }
0x1513   : > { %v12413_v4 = vpop.permute.xlu0 %12412  ;;  %v6637_v39 = vsel %vm2910_vm0, %v12409_v59, %v12410_v3  ;;  %v7018_v59 = vld [vmem:[#allocation50 + $0x10] sm:$0xff] }
0x1514   : > { %v12415_v27 = vunpack.i.h.bf16 %v12413_v4  ;;  %v12414_v33 = vunpack.i.l.bf16 %v12413_v4  ;;  %v12418_v49 = vpop.permute.xlu1 %12417 }
0x1515   : > { %v12420_v28 = vunpack.i.h.bf16 %v12418_v49  ;;  %v12419_v1 = vunpack.i.l.bf16 %v12418_v49 }
0x1516   : > { %v6810_v55 = vpack.c.bf16 %v12415_v27, %v12414_v33 }
0x1517   : > { %v6800_v12 = vpack.c.bf16 %v12420_v28, %v12405_v25  ;;  %v17588_v38 = vpop.permute.xlu0 %12422  ;;  %v6640_v60 = vsel %vm2910_vm0, %v12419_v1, %v12420_v28 }
0x1518   : > { %v12428_v17 = vpop.permute.xlu1 %12427  ;;  %6889 = vrot.lane.b32.xlu0 %v6810_v55, %s14692_s1  ;;  %v6799_v37 = vpack.c.bf16 %v6640_v60, %v6639_v48  ;;  %v12425_v23 = vunpack.i.h.bf16 %v17588_v38  ;;  %v12424_v11 = vunpack.i.l.bf16 %v17588_v38 }
0x1519   : > { %v12430_v24 = vunpack.i.h.bf16 %v12428_v17  ;;  %v12429_v8 = vunpack.i.l.bf16 %v12428_v17  ;;  %6869 = vrot.lane.b32.xlu1 %v6800_v12, %s14692_s1 }
0x151a   : > { %v6675_v63 = vsel %vm2978_vm6, %v12424_v11, %v12425_v23 }
0x151b   : > { %v6809_v46 = vpack.c.bf16 %v12430_v24, %v12429_v8  ;;  %v12433_v44 = vpop.permute.xlu0 %12432 }
0x151c   : > { %v12435_v53 = vunpack.i.h.bf16 %v12433_v44  ;;  %v17593_v19 = vpop.permute.xlu1 %12437  ;;  %v12434_v41 = vunpack.i.l.bf16 %v12433_v44 }
0x151d   : > { %6887 = vrot.lane.b32.xlu1 %v6809_v46, %s14692_s1  ;;  %v12440_v29 = vunpack.i.h.bf16 %v17593_v19 }
0x151e   : > { %v6798_v51 = vpack.c.bf16 %v12435_v53, %v12410_v3  ;;  %v6638_v50 = vsel %vm2910_vm0, %v12434_v41, %v12435_v53  ;;  %v7223_v41 = vld [vmem:[#allocation55 + $0x8] sm:$0xff] }
0x151f   : > { %v12443_v18 = vpop.permute.xlu0 %12442  ;;  %v6797_v38 = vpack.c.bf16 %v6638_v50, %v6637_v39  ;;  %v7222_v50 = vld [vmem:[#allocation55] sm:$0xff] }
0x1520   : > { %v12448_v47 = vpop.permute.xlu1 %12447  ;;  %6865 = vrot.lane.b32.xlu0 %v6798_v51, %s14692_s1  ;;  %v12445_v40 = vunpack.i.h.bf16 %v12443_v18  ;;  %v12444_v13 = vunpack.i.l.bf16 %v12443_v18 }
0x1521   : > { %v12450_v36 = vunpack.i.h.bf16 %v12448_v47  ;;  %v12449_v10 = vunpack.i.l.bf16 %v12448_v47 }
0x1522   : > { %v6812_v54 = vpack.c.bf16 %v12445_v40, %v12444_v13  ;;  %v12439_v13 = vunpack.i.l.bf16 %v17593_v19 }
0x1523   : > { %v17599_v35 = vpop.permute.xlu0 %12457  ;;  %v6676_v2 = vsel %vm2978_vm6, %v12449_v10, %v12450_v36  ;;  %v6804_v46 = vpack.c.bf16 %v12450_v36, %v12425_v23  ;;  %v17642_v36 = vld [vmem:[#allocation49] sm:$0xff] }
0x1524   : > { %v12453_v15 = vpop.permute.xlu1 %12452  ;;  %6867 = vrot.lane.b32.xlu0 %v6799_v37, %s14692_s1  ;;  %v12460_v34 = vunpack.i.h.bf16 %v17599_v35  ;;  %v6803_v56 = vpack.c.bf16 %v6676_v2, %v6675_v63  ;;  %v12459_v40 = vunpack.i.l.bf16 %v17599_v35  ;;  %v7225_v63 = vld [vmem:[#allocation56 + $0x8] sm:$0xff] }
0x1525   : > { %v12455_v44 = vunpack.i.h.bf16 %v12453_v15  ;;  %v12454_v53 = vunpack.i.l.bf16 %v12453_v15 }
0x1526   : > { %v6802_v5 = vpack.c.bf16 %v12460_v34, %v12440_v29 }
0x1527   : > { %v12463_v58 = vpop.permute.xlu0 %12462  ;;  %v6811_v18 = vpack.c.bf16 %v12455_v44, %v12454_v53 }
0x1528   : > { %v12465_v42 = vunpack.i.h.bf16 %v12463_v58  ;;  %v12464_v9 = vunpack.i.l.bf16 %v12463_v58  ;;  %v17602_v0 = vpop.permute.xlu1 %12467  ;;  %6893 = vrot.lane.b32.xlu0 %v6812_v54, %s14692_s1  ;;  %v6674_v54 = vsel %vm2978_vm6, %v12459_v40, %v12460_v34  ;;  %v7017_v58 = vld [vmem:[#allocation50 + $0x8] sm:$0xff]  ;;  %v10898_v34 = vcombine.high %v17642_v36, %v17642_v36 }
0x1529   : > { %v12470_v26 = vunpack.i.h.bf16 %v17602_v0  ;;  %v12469_v19 = vunpack.i.l.bf16 %v17602_v0  ;;  %v7023_v0 = vld [vmem:[#allocation52 + $0x18] sm:$0xff] }
0x152a   : > { %v6814_v32 = vpack.c.bf16 %v12465_v42, %v12464_v9  ;;  %v6673_v42 = vsel %vm2978_vm6, %v12439_v13, %v12440_v29  ;;  %6968 = vmatprep.mubr.bf16.mxu1 %v10898_v34 }
0x152b   : > { %v17606_v6 = vpop.permute.xlu0 %12482  ;;  %v6801_v9 = vpack.c.bf16 %v6674_v54, %v6673_v42  ;;  %v6709_v29 = vsel %vm6075_vm4, %v12469_v19, %v12470_v26 }
0x152c   : > { %v12473_v22 = vpop.permute.xlu1 %12472  ;;  %6897 = vrot.lane.b32.xlu0 %v6814_v32, %s14692_s1  ;;  %v12485_v31 = vunpack.i.h.bf16 %v17606_v6  ;;  %v12484_v35 = vunpack.i.l.bf16 %v17606_v6  ;;  %v7021_v32 = vld [vmem:[#allocation52 + $0x8] sm:$0xff]  ;;  %v7019_v6 = vld [vmem:[#allocation50 + $0x18] sm:$0xff] }
0x152d   : > { %v12475_v47 = vunpack.i.h.bf16 %v12473_v22  ;;  %v12474_v48 = vunpack.i.l.bf16 %v12473_v22 }
0x152e   : > { %v6806_v55 = vpack.c.bf16 %v12485_v31, %v12470_v26  ;;  %v6710_v22 = vsel %vm6075_vm4, %v12484_v35, %v12485_v31  ;;  %v7235_v31 = vld [vmem:[#allocation59 + $0x8] sm:$0xff]  ;;  %v7237_v26 = vld [vmem:[#allocation59 + $0x18] sm:$0xff] }
0x152f   : > { %v17613_v62 = vpop.permute.xlu0 %12487  ;;  %v6813_v15 = vpack.c.bf16 %v12475_v47, %v12474_v48  ;;  %v6805_v2 = vpack.c.bf16 %v6710_v22, %v6709_v29  ;;  %v12988_v29 = vld [vmem:[#allocation49 + $0x8] ss:$0 sps:$4 sm:$0xff]  }
0x1530   : > { %v12478_v7 = vpop.permute.xlu1 %12477  ;;  %6873 = vrot.lane.b32.xlu0 %v6802_v5, %s14692_s1  ;;  %v12490_v27 = vunpack.i.h.bf16 %v17613_v62  ;;  %v12489_v33 = vunpack.i.l.bf16 %v17613_v62 }
0x1531   : > { %v12480_v45 = vunpack.i.h.bf16 %v12478_v7  ;;  %v12479_v16 = vunpack.i.l.bf16 %v12478_v7  ;;  %v7016_v7 = vld [vmem:[#allocation50] sm:$0xff] }
0x1532   : > { %v6711_v17 = vsel %vm6075_vm4, %v12489_v33, %v12490_v27  ;;  %v7234_v33 = vld [vmem:[#allocation59] sm:$0xff] }
0x1533   : > { %v6815_v30 = vpack.c.bf16 %v12480_v45, %v12479_v16  ;;  %v12498_v49 = vpop.permute.xlu0 %12497  ;;  %v7020_v45 = vld [vmem:[#allocation52] sm:$0xff]  ;;  %v7231_v16 = vld [vmem:[#allocation58 + $0x8] sm:$0xff] }
0x1534   : > { %v12493_v4 = vpop.permute.xlu1 %12492  ;;  %6875 = vrot.lane.b32.xlu0 %v6803_v56, %s14692_s1  ;;  %v12500_v24 = vunpack.i.h.bf16 %v12498_v49  ;;  %v12499_v8 = vunpack.i.l.bf16 %v12498_v49  ;;  %v7022_v56 = vld [vmem:[#allocation52 + $0x10] sm:$0xff]  ;;  %v7232_v49 = vld [vmem:[#allocation58 + $0x10] sm:$0xff] }
0x1535   : > { %v12495_v25 = vunpack.i.h.bf16 %v12493_v4  ;;  %v12494_v28 = vunpack.i.l.bf16 %v12493_v4  ;;  %6899 = vrot.lane.b32.xlu1 %v6815_v30, %s14692_s1  ;;  %v7233_v30 = vld [vmem:[#allocation58 + $0x18] sm:$0xff]  ;;  %v7224_v4 = vld [vmem:[#allocation56] sm:$0xff] }
0x1536   : > { %v6816_v3 = vpack.c.bf16 %v12500_v24, %v12499_v8 }
0x1537   : > { %v6712_v12 = vsel %vm6075_vm4, %v12494_v28, %v12495_v25  ;;  %v12508_v14 = vpop.permute.xlu0 %12507  ;;  %v6808_v10 = vpack.c.bf16 %v12495_v25, %v12490_v27  ;;  %v7230_v27 = vld [vmem:[#allocation58] sm:$0xff]  ;;  %v7236_v25 = vld [vmem:[#allocation59 + $0x10] sm:$0xff] }
0x1538   : > { %6881 = vrot.lane.b32.xlu0 %v6806_v55, %s14692_s1  ;;  %v6807_v1 = vpack.c.bf16 %v6712_v12, %v6711_v17  ;;  %v12510_v51 = vunpack.i.h.bf16 %v12508_v14  ;;  %v12509_v60 = vunpack.i.l.bf16 %v12508_v14  ;;  %v12503_v23 = vpop.permute.xlu1 %12502 }
0x1539   : > { %6863 = vrot.lane.b32.xlu1 %v6797_v38, %s14692_s1  ;;  %v12505_v11 = vunpack.i.h.bf16 %v12503_v23  ;;  %v12504_v5 = vunpack.i.l.bf16 %v12503_v23  ;;  %v10897_v23 = vcombine.low %v17642_v36, %v17642_v36 }
0x153a   : > { %v6818_v37 = vpack.c.bf16 %v12510_v51, %v12509_v60 }
0x153b   : > { %v6817_v62 = vpack.c.bf16 %v12505_v11, %v12504_v5  ;;  %v6860_v39 = vpop.permute.xlu0 %6859 }
0x153c   : > { %6883 = vrot.lane.b32.xlu0 %v6807_v1, %s14692_s1  ;;  %v6856_v28 = vpop.permute.xlu1 %6855 }
0x153d   : > { %6877 = vrot.lane.b32.xlu1 %v6804_v46, %s14692_s1 }
0x153f   : > { %v6858_v38 = vpop.permute.xlu0 %6857 }
0x1540   : > { %6901 = vrot.lane.b32.xlu0 %v6816_v3, %s14692_s1  ;;  %v6862_v55 = vpop.permute.xlu1 %6861  ;;  %v6907_v24 = vsel %vm6274_vm7, %v6856_v28, %v6858_v38 }
0x1541   : > { %6891 = vrot.lane.b32.xlu1 %v6811_v18, %s14692_s1  ;;  %v6908_v1 = vsel %vm6274_vm7, %v6860_v39, %v6862_v55 }
0x1544   : > { %6905 = vrot.lane.b32.xlu0 %v6818_v37, %s14692_s1 }
0x1545   : > { %6895 = vrot.lane.b32.xlu1 %v6813_v15, %s14692_s1 }
0x1548   : > { %7041 = vperm.xlu0 %11829, %v7017_v58  }
0x1549   : > { %6871 = vrot.lane.b32.xlu1 %v6801_v9, %s14692_s1 }
0x154c   : > { %7065 = vperm.xlu0 %11829, %v7021_v32  }
0x154d   : > { %6885 = vrot.lane.b32.xlu1 %v6808_v10, %s14692_s1 }
0x1550   : > { %7051 = vperm.xlu0 %11829, %v7019_v6  }
0x1551   : > { %6879 = vrot.lane.b32.xlu1 %v6805_v2, %s14692_s1 }
0x1554   : > { %7075 = vperm.xlu0 %11829, %v7023_v0  }
0x1555   : > { %6903 = vrot.lane.b32.xlu1 %v6817_v62, %s14692_s1  ;;  %s18699_s1 = smov 3  }
0x1558   : > { %7247 = vperm.xlu0 %11829, %v7223_v41  }
0x1559   : > { %7036 = vperm.xlu1 %11830, %v7016_v7  }
0x155c   : > { %7259 = vperm.xlu0 %11829, %v7225_v63  }
0x155d   : > { %7060 = vperm.xlu1 %11830, %v7020_v45  }
0x1560   : > { %7339 = vperm.xlu0 %11829, %v7231_v16  }
0x1561   : > { %7046 = vperm.xlu1 %11830, %v7018_v59  }
0x1564   : > { %7363 = vperm.xlu0 %11829, %v7235_v31  }
0x1565   : > { %7070 = vperm.xlu1 %11830, %v7022_v56  }
0x1568   : > { %7349 = vperm.xlu0 %11829, %v7233_v30  }
0x1569   : > { %7242 = vperm.xlu1 %11830, %v7222_v50  }
0x156c   : > { %7373 = vperm.xlu0 %11829, %v7237_v26  }
0x156d   : > { %7254 = vperm.xlu1 %11830, %v7224_v4  }
0x1571   : > { %7334 = vperm.xlu1 %11830, %v7230_v27  }
0x1575   : > { %7358 = vperm.xlu1 %11830, %v7234_v33  }
0x1579   : > { %7344 = vperm.xlu1 %11830, %v7232_v49  }
0x157d   : > { %7368 = vperm.xlu1 %11830, %v7236_v25  }
0x158a   : > { %v6890_v8 = vpop.permute.xlu0 %6889 }
0x158b   : > { %v6870_v12 = vpop.permute.xlu1 %6869 }
0x158f   : > { %v6888_v17 = vpop.permute.xlu1 %6887 }
0x1590   : > { %11004 = vmatprep.subr.bf16.mxu1 %v6888_v17 }
0x1591   : > { %11005 = vmatpush3.bf16.msra.mxu1 %v6907_v24 }
0x1592   : > { %11006 = vmatprep.subr.bf16.mxu1 %v6890_v8  ;;  %v6866_v46 = vpop.permute.xlu0 %6865 }
0x1595   : > { %11007 = vmatpush3.bf16.msra.mxu1 %v6908_v1  ;;  %v12989_v1 = vld [vmem:[#allocation53] sm:$0xff]  }
0x1596   : > { %v6868_v44 = vpop.permute.xlu0 %6867 }
0x1597   : > { %v6910_v37 = vsel %vm6274_vm7, %v6868_v44, %v6870_v12  ;;  %v12992_v44 = vld [vmem:[%s18858_s11 + $0x10] sm:$0xff]  }
0x159a   : > { %v6894_v53 = vpop.permute.xlu0 %6893 }
0x159e   : > { %v6898_v14 = vpop.permute.xlu0 %6897 }
0x15a2   : > { %v6874_v60 = vpop.permute.xlu0 %6873 }
0x15a6   : > { %v6876_v47 = vpop.permute.xlu0 %6875 }
0x15a7   : > { %v6900_v3 = vpop.permute.xlu1 %6899 }
0x15aa   : > { %v6882_v15 = vpop.permute.xlu0 %6881 }
0x15ab   : > { %v6864_v51 = vpop.permute.xlu1 %6863 }
0x15ac   : > { %v6909_v40 = vsel %vm6274_vm7, %v6864_v51, %v6866_v46  ;;  %v12990_v46 = vld [vmem:[%s18858_s11] sm:$0xff]  }
0x15ae   : > { %v6884_v42 = vpop.permute.xlu0 %6883 }
0x15af   : > { %v6878_v18 = vpop.permute.xlu1 %6877 }
0x15b0   : > { %v6912_v35 = vsel %vm6274_vm7, %v6876_v47, %v6878_v18  ;;  %v12994_v47 = vld [vmem:[%s18859_s13] sm:$0xff]  }
0x15b2   : > { %v6902_v34 = vpop.permute.xlu0 %6901 }
0x15b3   : > { %v6892_v48 = vpop.permute.xlu1 %6891 }
0x15b4   : > { %11008 = vmatprep.subr.bf16.mxu1 %v6892_v48  ;;  %v2816_v48 = vld [vmem:[#allocation8] sm:$0x3] }
0x15b5   : > { %11009 = vmatpush3.bf16.msra.mxu1 %v6909_v40  ;;  %v7415_v40 = vrot.slane %v2816_v48, %v18855_v61 }
0x15b6   : > { %11010 = vmatprep.subr.bf16.mxu1 %v6894_v53  ;;  %v6906_v6 = vpop.permute.xlu0 %6905  ;;  %v12993_v53 = vld [vmem:[%s18858_s11 + $0x18] sm:$0xff]  }
0x15b7   : > { %v6896_v13 = vpop.permute.xlu1 %6895  ;;  %7439 = vrot.lane.b32.xlu1 %v7415_v40, %s18701_s7  ;;  %7417 = vrot.lane.b32.xlu0 %v7415_v40, %s18697_s16  ;;  %s18709_s16 = smov 122   ;;  %s18860_s7 = smov 119  }
0x15b9   : > { %11011 = vmatpush3.bf16.msra.mxu1 %v6910_v37 }
0x15ba   : > { %11012 = vmatprep.subr.bf16.mxu1 %v6896_v13  ;;  %v7399_v13 = vrot.slane %v2816_v48, %v18856_v57 }
0x15bb   : > { %v6872_v54 = vpop.permute.xlu1 %6871 }
0x15bc   : > { %v6911_v58 = vsel %vm6274_vm7, %v6872_v54, %v6874_v60  ;;  %7446 = vrot.lane.b32.xlu1 %v7399_v13, %s18699_s1  ;;  %7428 = vrot.lane.b32.xlu0 %v7399_v13, %s18716_s28  ;;  %s18711_s1 = smov 124  }
0x15bd   : > { %11013 = vmatpush3.bf16.msra.mxu1 %v6911_v58 }
0x15be   : > { %11014 = vmatprep.subr.bf16.mxu1 %v6898_v14 }
0x15bf   : > { %v6886_v9 = vpop.permute.xlu1 %6885 }
0x15c0   : > { %v6914_v22 = vsel %vm6274_vm7, %v6884_v42, %v6886_v9  ;;  %7453 = vrot.lane.b32.xlu1 %v7415_v40, %s18705_s6  ;;  %7401 = vrot.lane.b32.xlu0 %v7399_v13, %s18707_s2 }
0x15c1   : > { %11015 = vmatpush3.bf16.msra.mxu1 %v6912_v35 }
0x15c2   : > { %11016 = vmatprep.subr.bf16.mxu1 %v6900_v3 }
0x15c3   : > { %v6880_v32 = vpop.permute.xlu1 %6879 }
0x15c4   : > { %v6913_v19 = vsel %vm6274_vm7, %v6880_v32, %v6882_v15 }
0x15c5   : > { %11017 = vmatpush3.bf16.msra.mxu1 %v6913_v19 }
0x15c6   : > { %11018 = vmatprep.subr.bf16.mxu1 %v6902_v34 }
0x15c7   : > { %v6904_v10 = vpop.permute.xlu1 %6903  ;;  %v7042_v11 = vpop.permute.xlu0 %7041 }
0x15c8   : > { %11182 = vmatpush3.bf16.msra.mxu0 %v6904_v10  ;;  %v7055_v0 = vmul.f32 %v17242_v52, %v7042_v11  ;;  %v12995_v11 = vld [vmem:[%s18859_s13 + $0x8] sm:$0xff]  }
0x15c9   : > { %11019 = vmatpush3.bf16.msra.mxu1 %v6914_v22  ;;  %11183 = vmatprep.subr.bf16.mxu0 %v17568_v20 }
0x15cb   : > { %v7066_v5 = vpop.permute.xlu0 %7065 }
0x15cc   : > { %6969 = vmatmul.mubr.bf16.vlgmr.msra.gmra.mrb[28].mxu1 %v10897_v23  ;;  %11184 = vmatpush3.bf16.msra.mxu0 %v6906_v6  ;;  %v7079_v36 = vadd.f32 %v7066_v5, %v7055_v0 }
0x15cd   : > { %11189 = vmatprep.subr.bf16.mxu0 %v17568_v20  ;;  %11211 = vmatprep.mubr.msk.bf16.mxu1 %vm3265_vm14, %v12994_v47 }
0x15ce   : > { %v7083_v63 = vmax.f32 %v7079_v36, 0.0 }
0x15cf   : > { %11186 = vmatmul.mubr.msk.bf16.vlgmr.msra.gmra.mrb[24].mxu0 %vm4215_vm15, %v12988_v29  ;;  %v7052_v56 = vpop.permute.xlu0 %7051 }
0x15d0   : > { %11193 = vmatprep.mubr.msk.bf16.mxu0 %vm14696_vm5, %v17568_v20 }
0x15d3   : > { %v7076_v12 = vpop.permute.xlu0 %7075 }
0x15d7   : > { %v7248_v15 = vpop.permute.xlu0 %7247 }
0x15d8   : > { %v7037_v2 = vpop.permute.xlu1 %7036 }
0x15d9   : > { %v7054_v62 = vmul.f32 %v17239_v43, %v7037_v2 }
0x15db   : > { %v7260_v10 = vpop.permute.xlu0 %7259 }
0x15dc   : > { %v7061_v41 = vpop.permute.xlu1 %7060 }
0x15dd   : > { %v7078_v7 = vadd.f32 %v7061_v41, %v7054_v62 }
0x15df   : > { %v7082_v45 = vmax.f32 %v7078_v7, 0.0  ;;  %v7340_v2 = vpop.permute.xlu0 %7339 }
0x15e0   : > { %v7047_v59 = vpop.permute.xlu1 %7046 }
0x15e1   : > { %v7086_v16 = vpack.c.bf16 %v7083_v63, %v7082_v45  ;;  %v7056_v43 = vmul.f32 %v7047_v59, %v17465_v21  ;;  %v12991_v21 = vld [vmem:[%s18858_s11 + $0x8] sm:$0xff]  }
0x15e3   : > { %11190 = vmatpush3.bf16.msra.mxu0 %v7086_v16  ;;  %v7364_v36 = vpop.permute.xlu0 %7363 }
0x15e4   : > { %11191 = vmatprep.subr.bf16.mxu0 %v17568_v20  ;;  %v7071_v50 = vpop.permute.xlu1 %7070 }
0x15e5   : > { %v7080_v28 = vadd.f32 %v7071_v50, %v7056_v43 }
0x15e7   : > { %v7084_v17 = vmax.f32 %v7080_v28, 0.0  ;;  %v7350_v41 = vpop.permute.xlu0 %7349 }
0x15e8   : > { %v7243_v37 = vpop.permute.xlu1 %7242 }
0x15ec   : > { %v7255_v9 = vpop.permute.xlu1 %7254 }
0x15f0   : > { %v7335_v5 = vpop.permute.xlu1 %7334 }
0x15f4   : > { %v7359_v0 = vpop.permute.xlu1 %7358 }
0x15f8   : > { %v7345_v62 = vpop.permute.xlu1 %7344 }
0x15fc   : > { %v7369_v16 = vpop.permute.xlu1 %7368 }
0x169f   : > { %v11020_v31 = vpop.f32.mrb[28].mxu1 }
0x16a0   : > { %v11021_v30 = vpop.f32.mrb[29].mxu1 }
0x16a1   : > { %v11022_v26 = vadd.f32 %v11021_v30, %v11020_v31  ;;  %v11023_v4 = vpop.f32.mrb[30].mxu1 }
0x16a2   : > { %v11024_v27 = vpop.f32.mrb[31].mxu1  ;;  %v7010_v52 = vpop.f32.mrb[24].mxu0 }
0x16a3   : > { %v7011_v33 = vadd.f32 %v11022_v26, %v7010_v52  ;;  %v11187_v49 = vpop.f32.mrb[25].mxu0  ;;  %v7374_v26 = vpop.permute.xlu0 %7373 }
0x16a4   : > { %v7013_v25 = vpop.f32.mrb[26].mxu0 }
0x16a5   : > { %v7057_v39 = vmul.f32 %v7052_v56, %v7011_v33  ;;  %v11188_v55 = vpop.f32.mrb[27].mxu0 }
0x16a7   : > { %v7081_v38 = vadd.f32 %v7076_v12, %v7057_v39 }
0x16a9   : > { %v7085_v24 = vmax.f32 %v7081_v38, 0.0 }
0x16ab   : > { %v7087_v8 = vpack.c.bf16 %v7085_v24, %v7084_v17  ;;  %v17719_v24 = vpop.permute.xlu0 %7417 }
0x16ad   : > { %11192 = vmatpush3.bf16.msra.mxu0 %v7087_v8 }
0x16ae   : > { %11197 = vmatprep.subr.bf16.mxu0 %v17568_v20 }
0x16b0   : > { %11194 = vmatmul.mubr.msk.bf16.vlgmr.msra.gmra.mrb[28].mxu0 %vm4215_vm15, %v12989_v1  ;;  %v7424_v1 = vmul.f32 %v17568_v20, %v17719_v24 }
0x16b1   : > { %11198 = vmatpush3.bf16.msra.mxu0 %v12990_v46  ;;  %11205 = vmatprep.mubr.msk.bf16.mxu0 %vm14696_vm5, %v17568_v20 }
0x16b2   : > { %11199 = vmatprep.subr.bf16.mxu0 %v17568_v20 }
0x16b5   : > { %11200 = vmatpush3.bf16.msra.mxu0 %v12991_v21 }
0x16b6   : > { %11201 = vmatprep.subr.bf16.mxu0 %v17568_v20 }
0x16b9   : > { %11202 = vmatpush3.bf16.msra.mxu0 %v12992_v44 }
0x16ba   : > { %11203 = vmatprep.subr.bf16.mxu0 %v17568_v20 }
0x16bd   : > { %11204 = vmatpush3.bf16.msra.mxu0 %v12993_v53 }
0x1783   : > { %v7130_v14 = vpop.f32.mrb[28].mxu0 }
0x1784   : > { %v11195_v3 = vpop.f32.mrb[29].mxu0 }
0x1785   : > { %v7133_v51 = vpop.f32.mrb[30].mxu0 }
0x1786   : > { %v7137_v60 = vpack.c.bf16 %v7133_v51, %v7130_v14  ;;  %v11196_v18 = vpop.f32.mrb[31].mxu0  ;;  %v17739_v51 = vpop.permute.xlu1 %7439 }
0x1788   : > { %11206 = vmatmul.mubr.msk.bf16.vlgmr.msra.gmra.mrb[32].mxu0 %vm5902_vm3, %v7137_v60 }
0x185b   : > { %v17693_v54 = vpop.f32.mrb[32].mxu0 }
0x185c   : > { %v7250_v58 = vmul.f32 %v7243_v37, %v17693_v54  ;;  %v11207_v42 = vpop.f32.mrb[33].mxu0 }
0x185d   : > { %v17696_v35 = vpop.f32.mrb[34].mxu0  ;;  %v17757_v42 = vpop.permute.xlu1 %7446 }
0x185e   : > { %v7262_v32 = vadd.f32 %v7255_v9, %v7250_v58  ;;  %v7251_v19 = vmul.f32 %v7248_v15, %v17696_v35  ;;  %v11208_v34 = vpop.f32.mrb[35].mxu0 }
0x1860   : > { %v7263_v22 = vadd.f32 %v7260_v10, %v7251_v19  ;;  %v7264_v23 = vmax.f32 %v7262_v32, 0.0  ;;  %v17762_v32 = vpop.permute.xlu0 %7428 }
0x1862   : > { %v7265_v6 = vmax.f32 %v7263_v22, 0.0  ;;  %v7431_v22 = vmul.f32 %v17568_v20, %v17762_v32 }
0x1864   : > { %v7266_v29 = vpack.c.bf16 %v7265_v6, %v7264_v23 }
0x1866   : > { %11209 = vmatprep.subr.bf16.mxu1 %v7266_v29 }
0x1867   : > { %11210 = vmatpush3.bf16.msra.mxu1 %v7266_v29 }
0x1868   : > { %11215 = vmatprep.subr.bf16.mxu1 %v17568_v20 }
0x186a   : > { %11212 = vmatmul.mubr.msk.bf16.vlgmr.msra.gmra.mrb[32].mxu1 %vm3265_vm14, %v12995_v11 }
0x186b   : > { %11219 = vmatprep.mubr.msk.bf16.mxu1 %vm14696_vm5, %v17568_v20 }
0x193d   : > { %v11213_v7 = vpop.f32.mrb[32].mxu1 }
0x193e   : > { %v7354_v63 = vmul.f32 %v11213_v7, %v7345_v62  ;;  %v7317_v45 = vpop.f32.mrb[33].mxu1 }
0x193f   : > { %v7352_v59 = vmul.f32 %v7335_v5, %v7317_v45  ;;  %v11214_v31 = vpop.f32.mrb[34].mxu1  ;;  %v17789_v45 = vpop.permute.xlu1 %7453 }
0x1940   : > { %v7378_v56 = vadd.f32 %v7369_v16, %v7354_v63  ;;  %v7355_v30 = vmul.f32 %v11214_v31, %v7350_v41  ;;  %v7320_v50 = vpop.f32.mrb[35].mxu1 }
0x1941   : > { %v7376_v4 = vadd.f32 %v7359_v0, %v7352_v59  ;;  %v7353_v27 = vmul.f32 %v7340_v2, %v7320_v50  ;;  %v17794_v59 = vpop.permute.xlu0 %7401 }
0x1942   : > { %v7382_v52 = vmax.f32 %v7378_v56, 0.0  ;;  %v7379_v43 = vadd.f32 %v7374_v26, %v7355_v30  ;;  %v7408_v50 = vmul.f32 %v17568_v20, %v17794_v59 }
0x1943   : > { %v7380_v33 = vmax.f32 %v7376_v4, 0.0  ;;  %v7377_v49 = vadd.f32 %v7364_v36, %v7353_v27 }
0x1944   : > { %7386 = vst.msk [vmem:[#allocation2 + $0x48] sm:$0xff] %vm3265_vm14, %v7382_v52  ;;  %v7383_v25 = vmax.f32 %v7379_v43, 0.0  ;;  %v7643_v52 = vpack.c.bf16 %v7408_v50, %v7408_v50 }
0x1945   : > { %7384 = vst.msk [vmem:[#allocation2 + $0x8] sm:$0xff] %vm3265_vm14, %v7380_v33  ;;  %v7381_v28 = vmax.f32 %v7377_v49, 0.0 }
0x1946   : > { %7387 = vst.msk [vmem:[#allocation2 + $0x68] sm:$0xff] %vm3265_vm14, %v7383_v25 }
0x1947   : > { %7385 = vst.msk [vmem:[#allocation2 + $0x28] sm:$0xff] %vm3265_vm14, %v7381_v28 }
0x194b   : > { %v17708_v39 = vld [vmem:[#allocation2 + $0x48] sm:$0xff] }
0x194c   : > { %v12511_v55 = vpack.i.bf16 %v17708_v39, %v17568_v20  ;;  %v17712_v12 = vld [vmem:[#allocation2 + $0x8] sm:$0xff]  ;;  %v7425_v46 = vmul.f32 %v17719_v24, %v17708_v39  ;;  %v7444_v40 = vmul.f32 %v17739_v51, %v17708_v39  ;;  %v7451_v6 = vmul.f32 %v17757_v42, %v17708_v39 }
0x194d   : > { %v12516_v38 = vpack.i.bf16 %v17712_v12, %v17568_v20  ;;  %v17716_v17 = vld [vmem:[#allocation2 + $0x68] sm:$0xff]  ;;  %v7421_v3 = vmul.f32 %v17719_v24, %v17712_v12  ;;  %v7442_v9 = vmul.f32 %v17739_v51, %v17712_v12  ;;  %v7432_v23 = vmul.f32 %v17762_v32, %v17712_v12 }
0x194e   : > { %12512 = vrot.lane.b32.xlu0 %v12511_v55, %s18716_s28  ;;  %v12521_v8 = vpack.i.bf16 %v17716_v17, %v17708_v39  ;;  %v12526_v21 = vpack.i.bf16 %v17716_v17, %v17568_v20  ;;  %v17731_v44 = vld [vmem:[#allocation2 + $0x28] sm:$0xff]  ;;  %v12531_v53 = vpack.i.bf16 %v7425_v46, %v7424_v1  ;;  %v7445_v18 = vmul.f32 %v17739_v51, %v17716_v17 }
0x194f   : > { %12517 = vrot.lane.b32.xlu1 %v12516_v38, %s18716_s28  ;;  %v12536_v14 = vpack.i.bf16 %v17731_v44, %v17712_v12  ;;  %v12541_v60 = vpack.i.bf16 %v17731_v44, %v17568_v20  ;;  %v12546_v47 = vpack.i.bf16 %v7421_v3, %v7424_v1  ;;  %v7427_v48 = vmul.f32 %v17719_v24, %v17716_v17 }
0x1950   : > { %v12551_v13 = vpack.i.bf16 %v7445_v18, %v7444_v40  ;;  %v7423_v37 = vmul.f32 %v17719_v24, %v17731_v44  ;;  %v7443_v58 = vmul.f32 %v17739_v51, %v17731_v44  ;;  %v7452_v34 = vmul.f32 %v17757_v42, %v17716_v17 }
0x1951   : > { %v12556_v15 = vpack.i.bf16 %v7427_v48, %v7424_v1  ;;  %v7434_v11 = vmul.f32 %v17762_v32, %v17731_v44  ;;  %v12576_v5 = vpack.i.bf16 %v7432_v23, %v7431_v22  ;;  %v7450_v2 = vmul.f32 %v17757_v42, %v17731_v44 }
0x1952   : > { %12522 = vrot.lane.b32.xlu0 %v12521_v8, %s18707_s2  ;;  %v12566_v19 = vpack.i.bf16 %v7423_v37, %v7424_v1  ;;  %v12561_v10 = vpack.i.bf16 %v7443_v58, %v7442_v9  ;;  %v12571_v29 = vpack.i.bf16 %v7452_v34, %v7451_v6  ;;  %v7449_v0 = vmul.f32 %v17757_v42, %v17712_v12 }
0x1953   : > { %12527 = vrot.lane.b32.xlu1 %v12526_v21, %s18716_s28  ;;  %v12591_v36 = vpack.i.bf16 %v7434_v11, %v7431_v22  ;;  %v7436_v62 = vmul.f32 %v17762_v32, %v17708_v39  ;;  %v7438_v63 = vmul.f32 %v17762_v32, %v17716_v17  ;;  %v7459_v16 = vmul.f32 %v17789_v45, %v17716_v17 }
0x1954   : > { %v12581_v41 = vpack.i.bf16 %v7450_v2, %v7449_v0  ;;  %v7457_v56 = vmul.f32 %v17789_v45, %v17731_v44  ;;  %v7458_v30 = vmul.f32 %v17789_v45, %v17708_v39  ;;  %v7456_v26 = vmul.f32 %v17789_v45, %v17712_v12 }
0x1955   : > { %v12596_v7 = vpack.i.bf16 %v7436_v62, %v7431_v22  ;;  %v12601_v31 = vpack.i.bf16 %v7438_v63, %v7431_v22  ;;  %v7407_v43 = vmul.f32 %v17794_v59, %v17731_v44  ;;  %v7411_v33 = vmul.f32 %v17794_v59, %v17716_v17 }
0x1956   : > { %12532 = vrot.lane.b32.xlu0 %v12531_v53, %s18713_s12  ;;  %v12616_v4 = vpack.i.bf16 %v7459_v16, %v7458_v30  ;;  %v12611_v27 = vpack.i.bf16 %v7457_v56, %v7456_v26  ;;  %v7405_v20 = vmul.f32 %v17794_v59, %v17712_v12  ;;  %v7409_v49 = vmul.f32 %v17794_v59, %v17708_v39 }
0x1957   : > { %12537 = vrot.lane.b32.xlu1 %v12536_v14, %s18707_s2 }
0x1958   : > { %v7642_v25 = vpack.c.bf16 %v7407_v43, %v7405_v20  ;;  %v7644_v28 = vpack.c.bf16 %v7411_v33, %v7409_v49 }
0x195a   : > { %12542 = vrot.lane.b32.xlu0 %v12541_v60, %s18716_s28 }
0x195b   : > { %12547 = vrot.lane.b32.xlu1 %v12546_v47, %s18713_s12 }
0x195e   : > { %12552 = vrot.lane.b32.xlu0 %v12551_v13, %s18709_s16 }
0x195f   : > { %12557 = vrot.lane.b32.xlu1 %v12556_v15, %s18713_s12 }
0x1962   : > { %12567 = vrot.lane.b32.xlu0 %v12566_v19, %s18713_s12 }
0x1963   : > { %12562 = vrot.lane.b32.xlu1 %v12561_v10, %s18709_s16 }
0x1966   : > { %12572 = vrot.lane.b32.xlu0 %v12571_v29, %s18703_s10 }
0x1967   : > { %12577 = vrot.lane.b32.xlu1 %v12576_v5, %s18711_s1 }
0x196a   : > { %12592 = vrot.lane.b32.xlu0 %v12591_v36, %s18711_s1 }
0x196b   : > { %12582 = vrot.lane.b32.xlu1 %v12581_v41, %s18703_s10  ;;  %s18861_s10 = smov 118  }
0x196e   : > { %12597 = vrot.lane.b32.xlu0 %v12596_v7, %s18711_s1 }
0x196f   : > { %12587 = vrot.lane.b32.xlu1 %v12536_v14, %s18860_s7 }
0x1972   : > { %12607 = vrot.lane.b32.xlu0 %v12521_v8, %s18860_s7 }
0x1973   : > { %12602 = vrot.lane.b32.xlu1 %v12601_v31, %s18711_s1 }
0x1976   : > { %12617 = vrot.lane.b32.xlu0 %v12616_v4, %s18861_s10 }
0x1977   : > { %12612 = vrot.lane.b32.xlu1 %v12611_v27, %s18861_s10 }
0x197a   : > { %7707 = vrot.lane.b32.xlu0 %v7643_v52, %s18705_s6 }
0x197b   : > { %7703 = vrot.lane.b32.xlu1 %v7643_v52, %s18705_s6 }
0x197e   : > { %7705 = vrot.lane.b32.xlu0 %v7642_v25, %s18705_s6 }
0x197f   : > { %7709 = vrot.lane.b32.xlu1 %v7644_v28, %s18705_s6 }
0x19c0   : > { %v12513_v55 = vpop.permute.xlu0 %12512 }
0x19c1   : > { %v17820_v38 = vpop.permute.xlu1 %12517  ;;  %v12515_v21 = vunpack.i.h.bf16 %v12513_v55  ;;  %v12514_v15 = vunpack.i.l.bf16 %v12513_v55 }
0x19c2   : > { %v12520_v40 = vunpack.i.h.bf16 %v17820_v38  ;;  %v12519_v28 = vunpack.i.l.bf16 %v17820_v38 }
0x19c3   : > { %v7486_v10 = vsel %vm2910_vm0, %v12514_v15, %v12515_v21 }
0x19c4   : > { %v12523_v17 = vpop.permute.xlu0 %12522  ;;  %v7484_v38 = vsel %vm2910_vm0, %v12519_v28, %v12520_v40  ;;  %v7865_v28 = vld [vmem:[#allocation62] sm:$0xff] }
0x19c5   : > { %v12525_v8 = vunpack.i.h.bf16 %v12523_v17  ;;  %v12524_v1 = vunpack.i.l.bf16 %v12523_v17  ;;  %v12528_v46 = vpop.permute.xlu1 %12527 }
0x19c6   : > { %v12530_v12 = vunpack.i.h.bf16 %v12528_v46  ;;  %v12529_v18 = vunpack.i.l.bf16 %v12528_v46 }
0x19c7   : > { %v7658_v44 = vpack.c.bf16 %v12525_v8, %v12524_v1 }
0x19c8   : > { %v7648_v53 = vpack.c.bf16 %v12530_v12, %v12515_v21  ;;  %v17822_v14 = vpop.permute.xlu0 %12532  ;;  %v7487_v9 = vsel %vm2910_vm0, %v12529_v18, %v12530_v12 }
0x19c9   : > { %v12538_v39 = vpop.permute.xlu1 %12537  ;;  %7737 = vrot.lane.b32.xlu0 %v7658_v44, %s18705_s6  ;;  %v7647_v6 = vpack.c.bf16 %v7487_v9, %v7486_v10  ;;  %v12535_v50 = vunpack.i.h.bf16 %v17822_v14  ;;  %v12534_v26 = vunpack.i.l.bf16 %v17822_v14 }
0x19ca   : > { %v12540_v3 = vunpack.i.h.bf16 %v12538_v39  ;;  %v12539_v60 = vunpack.i.l.bf16 %v12538_v39  ;;  %7717 = vrot.lane.b32.xlu1 %v7648_v53, %s18705_s6 }
0x19cb   : > { %v7522_v20 = vsel %vm2978_vm6, %v12534_v26, %v12535_v50  ;;  %v17880_v26 = vld [vmem:[#allocation61] sm:$0xff] }
0x19cc   : > { %v7657_v47 = vpack.c.bf16 %v12540_v3, %v12539_v60  ;;  %v12543_v48 = vpop.permute.xlu0 %12542 }
0x19cd   : > { %v12545_v13 = vunpack.i.h.bf16 %v12543_v48  ;;  %v17827_v37 = vpop.permute.xlu1 %12547  ;;  %v12544_v43 = vunpack.i.l.bf16 %v12543_v48 }
0x19ce   : > { %7735 = vrot.lane.b32.xlu1 %v7657_v47, %s18705_s6  ;;  %v12550_v56 = vunpack.i.h.bf16 %v17827_v37 }
0x19cf   : > { %v7646_v58 = vpack.c.bf16 %v12545_v13, %v12520_v40  ;;  %v7485_v1 = vsel %vm2910_vm0, %v12544_v43, %v12545_v13 }
0x19d0   : > { %v12553_v19 = vpop.permute.xlu0 %12552  ;;  %v7645_v18 = vpack.c.bf16 %v7485_v1, %v7484_v38  ;;  %v7867_v1 = vld [vmem:[#allocation62 + $0x10] sm:$0xff] }
0x19d1   : > { %v12558_v34 = vpop.permute.xlu1 %12557  ;;  %7713 = vrot.lane.b32.xlu0 %v7646_v58, %s18705_s6  ;;  %v12555_v22 = vunpack.i.h.bf16 %v12553_v19  ;;  %v12554_v23 = vunpack.i.l.bf16 %v12553_v19 }
0x19d2   : > { %v12560_v63 = vunpack.i.h.bf16 %v12558_v34  ;;  %v12559_v16 = vunpack.i.l.bf16 %v12558_v34 }
0x19d3   : > { %v7660_v5 = vpack.c.bf16 %v12555_v22, %v12554_v23 }
0x19d4   : > { %v17833_v29 = vpop.permute.xlu0 %12567  ;;  %v7523_v27 = vsel %vm2978_vm6, %v12559_v16, %v12560_v63  ;;  %v7652_v58 = vpack.c.bf16 %v12560_v63, %v12535_v50  ;;  %v7866_v63 = vld [vmem:[#allocation62 + $0x8] sm:$0xff] }
0x19d5   : > { %v12563_v11 = vpop.permute.xlu1 %12562  ;;  %7715 = vrot.lane.b32.xlu0 %v7647_v6, %s18705_s6  ;;  %v12570_v41 = vunpack.i.h.bf16 %v17833_v29  ;;  %v7651_v17 = vpack.c.bf16 %v7523_v27, %v7522_v20 }
0x19d6   : > { %v12565_v9 = vunpack.i.h.bf16 %v12563_v11  ;;  %v12564_v19 = vunpack.i.l.bf16 %v12563_v11 }
0x19d7   : > { %v7650_v4 = vpack.c.bf16 %v12570_v41, %v12550_v56 }
0x19d8   : > { %v12573_v2 = vpop.permute.xlu0 %12572  ;;  %v7659_v23 = vpack.c.bf16 %v12565_v9, %v12564_v19 }
0x19d9   : > { %v12575_v0 = vunpack.i.h.bf16 %v12573_v2  ;;  %v12574_v36 = vunpack.i.l.bf16 %v12573_v2  ;;  %v17836_v62 = vpop.permute.xlu1 %12577  ;;  %7741 = vrot.lane.b32.xlu0 %v7660_v5, %s18705_s6  ;;  %v12569_v2 = vunpack.i.l.bf16 %v17833_v29 }
0x19da   : > { %v12580_v46 = vunpack.i.h.bf16 %v17836_v62  ;;  %v12579_v29 = vunpack.i.l.bf16 %v17836_v62  ;;  %v7876_v62 = vld [vmem:[#allocation65 + $0x8] sm:$0xff] }
0x19db   : > { %v7662_v7 = vpack.c.bf16 %v12575_v0, %v12574_v36  ;;  %v12549_v0 = vunpack.i.l.bf16 %v17827_v37  ;;  %v7869_v37 = vld [vmem:[#allocation64 + $0x8] sm:$0xff] }
0x19dc   : > { %v17840_v31 = vpop.permute.xlu0 %12592 }
0x19dd   : > { %v12583_v30 = vpop.permute.xlu1 %12582  ;;  %7745 = vrot.lane.b32.xlu0 %v7662_v7, %s18705_s6  ;;  %v12595_v55 = vunpack.i.h.bf16 %v17840_v31  ;;  %v7521_v7 = vsel %vm2978_vm6, %v12569_v2, %v12570_v41  ;;  %v7520_v16 = vsel %vm2978_vm6, %v12549_v0, %v12550_v56  ;;  %v12594_v50 = vunpack.i.l.bf16 %v17840_v31  ;;  %v7870_v31 = vld [vmem:[#allocation64 + $0x10] sm:$0xff] }
0x19de   : > { %v12585_v6 = vunpack.i.h.bf16 %v12583_v30  ;;  %v12584_v5 = vunpack.i.l.bf16 %v12583_v30  ;;  %v7649_v30 = vpack.c.bf16 %v7521_v7, %v7520_v16  ;;  %v10913_v41 = vcombine.high %v17880_v26, %v17880_v26 }
0x19df   : > { %v7654_v3 = vpack.c.bf16 %v12595_v55, %v12580_v46  ;;  %v7558_v27 = vsel %vm7556_vm8, %v12594_v50, %v12595_v55  ;;  %v7557_v56 = vsel %vm7556_vm8, %v12579_v29, %v12580_v46  ;;  %v7878_v55 = vld [vmem:[#allocation65 + $0x18] sm:$0xff]  ;;  %v7875_v46 = vld [vmem:[#allocation65] sm:$0xff] }
0x19e0   : > { %v17849_v52 = vpop.permute.xlu0 %12597  ;;  %v7661_v36 = vpack.c.bf16 %v12585_v6, %v12584_v5  ;;  %7817 = vmatprep.mubr.bf16.mxu0 %v10913_v41  ;;  %v7653_v20 = vpack.c.bf16 %v7558_v27, %v7557_v56  ;;  %v17900_v27 = vld [vmem:[#allocation2 + $0x18] sm:$0xff] }
0x19e1   : > { %v12588_v33 = vpop.permute.xlu1 %12587  ;;  %7721 = vrot.lane.b32.xlu0 %v7650_v4, %s18705_s6  ;;  %v12600_v12 = vunpack.i.h.bf16 %v17849_v52  ;;  %v12599_v44 = vunpack.i.l.bf16 %v17849_v52 }
0x19e2   : > { %v12590_v49 = vunpack.i.h.bf16 %v12588_v33  ;;  %v12589_v25 = vunpack.i.l.bf16 %v12588_v33 }
0x19e3   : > { %v7559_v47 = vsel %vm7556_vm8, %v12599_v44, %v12600_v12  ;;  %v7881_v44 = vld [vmem:[#allocation67 + $0x10] sm:$0xff] }
0x19e4   : > { %v7663_v8 = vpack.c.bf16 %v12590_v49, %v12589_v25  ;;  %v12608_v53 = vpop.permute.xlu0 %12607  ;;  %v7880_v25 = vld [vmem:[#allocation67 + $0x8] sm:$0xff] }
0x19e5   : > { %v12603_v21 = vpop.permute.xlu1 %12602  ;;  %7723 = vrot.lane.b32.xlu0 %v7651_v17, %s18705_s6  ;;  %v12610_v48 = vunpack.i.h.bf16 %v12608_v53  ;;  %v12609_v13 = vunpack.i.l.bf16 %v12608_v53  ;;  %v7868_v17 = vld [vmem:[#allocation64] sm:$0xff] }
0x19e6   : > { %v12605_v14 = vunpack.i.h.bf16 %v12603_v21  ;;  %v12604_v39 = vunpack.i.l.bf16 %v12603_v21  ;;  %7747 = vrot.lane.b32.xlu1 %v7663_v8, %s18705_s6  ;;  %v7882_v8 = vld [vmem:[#allocation67 + $0x18] sm:$0xff]  ;;  %v7879_v21 = vld [vmem:[#allocation67] sm:$0xff] }
0x19e7   : > { %v7664_v40 = vpack.c.bf16 %v12610_v48, %v12609_v13 }
0x19e8   : > { %v7560_v60 = vsel %vm7556_vm8, %v12604_v39, %v12605_v14  ;;  %v12618_v34 = vpop.permute.xlu0 %12617  ;;  %v7656_v4 = vpack.c.bf16 %v12605_v14, %v12600_v12  ;;  %v7877_v12 = vld [vmem:[#allocation65 + $0x10] sm:$0xff] }
0x19e9   : > { %7729 = vrot.lane.b32.xlu0 %v7654_v3, %s18705_s6  ;;  %v7655_v15 = vpack.c.bf16 %v7560_v60, %v7559_v47  ;;  %v12620_v10 = vunpack.i.h.bf16 %v12618_v34  ;;  %v12619_v22 = vunpack.i.l.bf16 %v12618_v34  ;;  %v12613_v52 = vpop.permute.xlu1 %12612 }
0x19ea   : > { %7711 = vrot.lane.b32.xlu1 %v7645_v18, %s18705_s6  ;;  %v12615_v43 = vunpack.i.h.bf16 %v12613_v52  ;;  %v12614_v33 = vunpack.i.l.bf16 %v12613_v52 }
0x19eb   : > { %v7666_v11 = vpack.c.bf16 %v12620_v10, %v12619_v22 }
0x19ec   : > { %v7665_v49 = vpack.c.bf16 %v12615_v43, %v12614_v33  ;;  %v7708_v14 = vpop.permute.xlu0 %7707 }
0x19ed   : > { %7731 = vrot.lane.b32.xlu0 %v7655_v15, %s18705_s6  ;;  %v7704_v53 = vpop.permute.xlu1 %7703 }
0x19ee   : > { %7725 = vrot.lane.b32.xlu1 %v7652_v58, %s18705_s6 }
0x19f0   : > { %v7706_v3 = vpop.permute.xlu0 %7705 }
0x19f1   : > { %7749 = vrot.lane.b32.xlu0 %v7664_v40, %s18705_s6  ;;  %v7710_v39 = vpop.permute.xlu1 %7709  ;;  %v7756_v18 = vsel %vm7755_vm9, %v7704_v53, %v7706_v3 }
0x19f2   : > { %7739 = vrot.lane.b32.xlu1 %v7659_v23, %s18705_s6  ;;  %v7757_v48 = vsel %vm7755_vm9, %v7708_v14, %v7710_v39 }
0x19f5   : > { %7753 = vrot.lane.b32.xlu0 %v7666_v11, %s18705_s6 }
0x19f6   : > { %7743 = vrot.lane.b32.xlu1 %v7661_v36, %s18705_s6 }
0x19f9   : > { %7892 = vperm.xlu0 %11829, %v7866_v63  }
0x19fa   : > { %7719 = vrot.lane.b32.xlu1 %v7649_v30, %s18705_s6 }
0x19fd   : > { %7910 = vperm.xlu0 %11829, %v7869_v37  }
0x19fe   : > { %7733 = vrot.lane.b32.xlu1 %v7656_v4, %s18705_s6  ;;  %v10912_v4 = vcombine.low %v17880_v26, %v17880_v26 }
0x1a01   : > { %7915 = vperm.xlu0 %11829, %v7870_v31   ;;  %v12998_v31 = vld [vmem:[#allocation61 + $0x8] ss:$0 sps:$4 sm:$0xff]  }
0x1a02   : > { %7727 = vrot.lane.b32.xlu1 %v7653_v20, %s18705_s6 }
0x1a05   : > { %8001 = vperm.xlu0 %11829, %v7876_v62  }
0x1a06   : > { %7751 = vrot.lane.b32.xlu1 %v7665_v49, %s18705_s6  ;;  %s18862_s6 = sld [smem:[#allocation152_spill]] }
0x1a09   : > { %8025 = vperm.xlu0 %11829, %v7880_v25  }
0x1a0a   : > { %7887 = vperm.xlu1 %11830, %v7865_v28  }
0x1a0d   : > { %8011 = vperm.xlu0 %11829, %v7878_v55  }
0x1a0e   : > { %7905 = vperm.xlu1 %11830, %v7868_v17  }
0x1a11   : > { %8035 = vperm.xlu0 %11829, %v7882_v8   ;;  %v12999_v8 = vld [vmem:[%s18862_s6] sm:$0xff]  }
0x1a12   : > { %7897 = vperm.xlu1 %11830, %v7867_v1  }
0x1a16   : > { %7996 = vperm.xlu1 %11830, %v7875_v46  }
0x1a1a   : > { %8020 = vperm.xlu1 %11830, %v7879_v21  }
0x1a1e   : > { %8006 = vperm.xlu1 %11830, %v7877_v12  }
0x1a22   : > { %8030 = vperm.xlu1 %11830, %v7881_v44  }
0x1a3b   : > { %v7738_v47 = vpop.permute.xlu0 %7737 }
0x1a3c   : > { %v7718_v38 = vpop.permute.xlu1 %7717 }
0x1a40   : > { %v7736_v60 = vpop.permute.xlu1 %7735 }
0x1a41   : > { %11040 = vmatprep.subr.bf16.mxu0 %v7736_v60 }
0x1a42   : > { %11041 = vmatpush3.bf16.msra.mxu0 %v7756_v18 }
0x1a43   : > { %11042 = vmatprep.subr.bf16.mxu0 %v7738_v47  ;;  %v7714_v13 = vpop.permute.xlu0 %7713 }
0x1a46   : > { %11043 = vmatpush3.bf16.msra.mxu0 %v7757_v48 }
0x1a47   : > { %v7716_v15 = vpop.permute.xlu0 %7715 }
0x1a48   : > { %v7759_v2 = vsel %vm7755_vm9, %v7716_v15, %v7718_v38 }
0x1a4b   : > { %v7742_v58 = vpop.permute.xlu0 %7741 }
0x1a4f   : > { %v7746_v9 = vpop.permute.xlu0 %7745 }
0x1a53   : > { %v7722_v40 = vpop.permute.xlu0 %7721 }
0x1a57   : > { %v7724_v22 = vpop.permute.xlu0 %7723 }
0x1a58   : > { %v7748_v19 = vpop.permute.xlu1 %7747 }
0x1a5b   : > { %v7730_v0 = vpop.permute.xlu0 %7729 }
0x1a5c   : > { %v7712_v34 = vpop.permute.xlu1 %7711 }
0x1a5d   : > { %v7758_v6 = vsel %vm7755_vm9, %v7712_v34, %v7714_v13 }
0x1a5f   : > { %v7732_v7 = vpop.permute.xlu0 %7731 }
0x1a60   : > { %v7726_v10 = vpop.permute.xlu1 %7725 }
0x1a61   : > { %v7761_v16 = vsel %vm7755_vm9, %v7724_v22, %v7726_v10 }
0x1a63   : > { %v7750_v37 = vpop.permute.xlu0 %7749 }
0x1a64   : > { %v7740_v23 = vpop.permute.xlu1 %7739 }
0x1a65   : > { %11044 = vmatprep.subr.bf16.mxu0 %v7740_v23 }
0x1a66   : > { %11045 = vmatpush3.bf16.msra.mxu0 %v7758_v6 }
0x1a67   : > { %11046 = vmatprep.subr.bf16.mxu0 %v7742_v58  ;;  %v7754_v52 = vpop.permute.xlu0 %7753 }
0x1a68   : > { %v7744_v5 = vpop.permute.xlu1 %7743 }
0x1a6a   : > { %11047 = vmatpush3.bf16.msra.mxu0 %v7759_v2 }
0x1a6b   : > { %11048 = vmatprep.subr.bf16.mxu0 %v7744_v5 }
0x1a6c   : > { %v7720_v11 = vpop.permute.xlu1 %7719 }
0x1a6d   : > { %v7760_v36 = vsel %vm7755_vm9, %v7720_v11, %v7722_v40 }
0x1a6e   : > { %11049 = vmatpush3.bf16.msra.mxu0 %v7760_v36 }
0x1a6f   : > { %11050 = vmatprep.subr.bf16.mxu0 %v7746_v9  ;;  %v13000_v9 = vld [vmem:[%s18862_s6 + $0x8] sm:$0xff]   ;;  %s18878_s6 = sld [smem:[#allocation170_spill]] }
0x1a70   : > { %v7734_v63 = vpop.permute.xlu1 %7733 }
0x1a71   : > { %v7763_v41 = vsel %vm7755_vm9, %v7732_v7, %v7734_v63 }
0x1a72   : > { %11051 = vmatpush3.bf16.msra.mxu0 %v7761_v16 }
0x1a73   : > { %11052 = vmatprep.subr.bf16.mxu0 %v7748_v19 }
0x1a74   : > { %v7728_v30 = vpop.permute.xlu1 %7727 }
0x1a75   : > { %v7762_v50 = vsel %vm7755_vm9, %v7728_v30, %v7730_v0 }
0x1a76   : > { %11053 = vmatpush3.bf16.msra.mxu0 %v7762_v50 }
0x1a77   : > { %11054 = vmatprep.subr.bf16.mxu0 %v7750_v37 }
0x1a78   : > { %v7752_v29 = vpop.permute.xlu1 %7751  ;;  %v7893_v56 = vpop.permute.xlu0 %7892 }
0x1a79   : > { %11216 = vmatpush3.bf16.msra.mxu1 %v7752_v29  ;;  %v7901_v33 = vmul.f32 %v7893_v56, %v17696_v35 }
0x1a7a   : > { %11055 = vmatpush3.bf16.msra.mxu0 %v7763_v41  ;;  %11217 = vmatprep.subr.bf16.mxu1 %v17900_v27 }
0x1a7b   : > { %11231 = vmatprep.subr.bf16.mxu0 %v17900_v27 }
0x1a7c   : > { %v7911_v43 = vpop.permute.xlu0 %7910 }
0x1a7d   : > { %7818 = vmatmul.mubr.bf16.vlgmr.msra.gmra.mrb[36].mxu0 %v10912_v4  ;;  %11218 = vmatpush3.bf16.msra.mxu1 %v7754_v52  ;;  %v7919_v20 = vadd.f32 %v7911_v43, %v7901_v33 }
0x1a7e   : > { %11235 = vmatprep.mubr.msk.bf16.mxu0 %vm14696_vm5, %v17900_v27 }
0x1a7f   : > { %v7922_v28 = vmax.f32 %v7919_v20, 0.0 }
0x1a80   : > { %11220 = vmatmul.mubr.msk.bf16.vlgmr.msra.gmra.mrb[36].mxu1 %vm4215_vm15, %v12998_v31  ;;  %v7916_v47 = vpop.permute.xlu0 %7915 }
0x1a81   : > { %11227 = vmatprep.mubr.msk.bf16.mxu1 %vm4383_vm1, %v12999_v8 }
0x1a84   : > { %v8002_v34 = vpop.permute.xlu0 %8001 }
0x1a88   : > { %v8026_v10 = vpop.permute.xlu0 %8025 }
0x1a89   : > { %v7888_v26 = vpop.permute.xlu1 %7887 }
0x1a8a   : > { %v7900_v62 = vmul.f32 %v7888_v26, %v17693_v54 }
0x1a8c   : > { %v8012_v23 = vpop.permute.xlu0 %8011 }
0x1a8d   : > { %v7906_v49 = vpop.permute.xlu1 %7905 }
0x1a8e   : > { %v7918_v25 = vadd.f32 %v7906_v49, %v7900_v62 }
0x1a90   : > { %v7921_v55 = vmax.f32 %v7918_v25, 0.0  ;;  %v8036_v30 = vpop.permute.xlu0 %8035 }
0x1a91   : > { %v7898_v38 = vpop.permute.xlu1 %7897 }
0x1a92   : > { %v7924_v17 = vpack.c.bf16 %v7922_v28, %v7921_v55 }
0x1a94   : > { %11223 = vmatprep.subr.bf16.mxu1 %v7924_v17 }
0x1a95   : > { %11224 = vmatpush3.bf16.msra.mxu1 %v7924_v17  ;;  %v7997_v19 = vpop.permute.xlu1 %7996  ;;  %v8070_v17 = vmul.f32 %v17900_v27, %v17719_v24 }
0x1a99   : > { %v8021_v40 = vpop.permute.xlu1 %8020 }
0x1a9d   : > { %v8007_v22 = vpop.permute.xlu1 %8006 }
0x1aa1   : > { %v8031_v0 = vpop.permute.xlu1 %8030 }
0x1b50   : > { %v11056_v1 = vpop.f32.mrb[36].mxu0 }
0x1b51   : > { %v11057_v46 = vpop.f32.mrb[37].mxu0 }
0x1b52   : > { %v11058_v21 = vadd.f32 %v11057_v46, %v11056_v1  ;;  %v11059_v12 = vpop.f32.mrb[38].mxu0 }
0x1b53   : > { %v11060_v44 = vpop.f32.mrb[39].mxu0  ;;  %v7859_v53 = vpop.f32.mrb[36].mxu1 }
0x1b54   : > { %v17911_v14 = vadd.f32 %v11058_v21, %v7859_v53  ;;  %v11221_v39 = vpop.f32.mrb[37].mxu1 }
0x1b55   : > { %v7862_v3 = vpop.f32.mrb[38].mxu1 }
0x1b56   : > { %v7902_v60 = vmul.f32 %v7898_v38, %v17911_v14  ;;  %v11222_v18 = vpop.f32.mrb[39].mxu1 }
0x1b58   : > { %v7920_v48 = vadd.f32 %v7916_v47, %v7902_v60 }
0x1b5a   : > { %v7923_v13 = vmax.f32 %v7920_v48, 0.0 }
0x1b5c   : > { %v7925_v15 = vpack.c.bf16 %v7923_v13, %v7923_v13 }
0x1b5e   : > { %11300 = vmatprep.subr.msk.bf16.mxu1 %vm3153_vm12, %v7925_v15  ;;  %v7943_v58 = vsel %vm3153_vm12, %v7925_v15, 0 }
0x1b5f   : > { %11226 = vmatpush3.bf16.msra.mxu1 %v7943_v58 }
0x1b62   : > { %11228 = vmatmul.mubr.msk.bf16.vlgmr.msra.gmra.mrb[40].mxu1 %vm4383_vm1, %v13000_v9  ;;  %v8074_v9 = vmul.f32 %v17900_v27, %v17762_v32 }
0x1c35   : > { %v11229_v6 = vpop.f32.mrb[40].mxu1 }
0x1c36   : > { %v8016_v5 = vmul.f32 %v11229_v6, %v8007_v22  ;;  %v7979_v2 = vpop.f32.mrb[41].mxu1 }
0x1c37   : > { %v8014_v11 = vmul.f32 %v7997_v19, %v7979_v2  ;;  %v11230_v36 = vpop.f32.mrb[42].mxu1 }
0x1c38   : > { %v8040_v7 = vadd.f32 %v8031_v0, %v8016_v5  ;;  %v8017_v63 = vmul.f32 %v11230_v36, %v8012_v23  ;;  %v7982_v16 = vpop.f32.mrb[43].mxu1 }
0x1c39   : > { %v8038_v50 = vadd.f32 %v8021_v40, %v8014_v11  ;;  %v8015_v37 = vmul.f32 %v8002_v34, %v7982_v16 }
0x1c3a   : > { %v8044_v29 = vmax.f32 %v8040_v7, 0.0  ;;  %v8041_v41 = vadd.f32 %v8036_v30, %v8017_v63  ;;  %v8062_v63 = vmul.f32 %v17900_v27, %v17794_v59 }
0x1c3b   : > { %v8042_v4 = vmax.f32 %v8038_v50, 0.0  ;;  %v8039_v52 = vadd.f32 %v8026_v10, %v8015_v37 }
0x1c3c   : > { %8048 = vst.msk [vmem:[#allocation2 + $0x48] sm:$0xff] %vm3265_vm14, %v8044_v29  ;;  %v8045_v31 = vmax.f32 %v8041_v41, 0.0  ;;  %v8276_v30 = vpack.c.bf16 %v8062_v63, %v8062_v63 }
0x1c3d   : > { %8046 = vst.msk [vmem:[#allocation2 + $0x8] sm:$0xff] %vm3265_vm14, %v8042_v4  ;;  %v8043_v56 = vmax.f32 %v8039_v52, 0.0 }
0x1c3e   : > { %8049 = vst.msk [vmem:[#allocation2 + $0x68] sm:$0xff] %vm3265_vm14, %v8045_v31 }
0x1c3f   : > { %8047 = vst.msk [vmem:[#allocation2 + $0x28] sm:$0xff] %vm3265_vm14, %v8043_v56 }
0x1c43   : > { %v17922_v43 = vld [vmem:[#allocation2 + $0x48] sm:$0xff] }
0x1c44   : > { %v12621_v26 = vpack.i.bf16 %v17922_v43, %v17900_v27  ;;  %8672 = vst [vmem:[#allocation2 + $0x48] sm:$0xff] %v17900_v27  ;;  %v17927_v33 = vld [vmem:[#allocation2 + $0x8] sm:$0xff]  ;;  %v8071_v28 = vmul.f32 %v17922_v43, %v17719_v24  ;;  %v8084_v39 = vmul.f32 %v17922_v43, %v17739_v51  ;;  %v8079_v23 = vmul.f32 %v17922_v43, %v17762_v32 }
0x1c45   : > { %v12626_v20 = vpack.i.bf16 %v17927_v33, %v17900_v27  ;;  %8664 = vst [vmem:[#allocation2 + $0x8] sm:$0xff] %v17900_v27  ;;  %v17932_v62 = vld [vmem:[#allocation2 + $0x68] sm:$0xff]  ;;  %v8067_v46 = vmul.f32 %v17927_v33, %v17719_v24  ;;  %v8082_v47 = vmul.f32 %v17927_v33, %v17739_v51  ;;  %v8075_v58 = vmul.f32 %v17927_v33, %v17762_v32 }
0x1c46   : > { %12622 = vrot.lane.b32.xlu0 %v12621_v26, %s18716_s28  ;;  %8676 = vst [vmem:[#allocation2 + $0x68] sm:$0xff] %v17900_v27  ;;  %v17936_v49 = vld [vmem:[#allocation2 + $0x28] sm:$0xff]  ;;  %v12631_v25 = vpack.i.bf16 %v17932_v62, %v17922_v43  ;;  %v12636_v55 = vpack.i.bf16 %v17932_v62, %v17900_v27  ;;  %v12641_v8 = vpack.i.bf16 %v8071_v28, %v8070_v17 }
0x1c47   : > { %12627 = vrot.lane.b32.xlu1 %v12626_v20, %s18716_s28  ;;  %8668 = vst [vmem:[#allocation2 + $0x28] sm:$0xff] %v17900_v27  ;;  %v12646_v1 = vpack.i.bf16 %v17936_v49, %v17927_v33  ;;  %v12651_v21 = vpack.i.bf16 %v17936_v49, %v17900_v27  ;;  %v8085_v12 = vmul.f32 %v17932_v62, %v17739_v51 }
0x1c48   : > { %v12656_v44 = vpack.i.bf16 %v8067_v46, %v8070_v17  ;;  %v8073_v53 = vmul.f32 %v17932_v62, %v17719_v24  ;;  %v8069_v3 = vmul.f32 %v17936_v49, %v17719_v24  ;;  %v8083_v18 = vmul.f32 %v17936_v49, %v17739_v51 }
0x1c49   : > { %v12661_v38 = vpack.i.bf16 %v8085_v12, %v8084_v39  ;;  %v8089_v13 = vmul.f32 %v17932_v62, %v17757_v42  ;;  %v8088_v24 = vmul.f32 %v17922_v43, %v17757_v42  ;;  %v8077_v51 = vmul.f32 %v17936_v49, %v17762_v32 }
0x1c4a   : > { %12632 = vrot.lane.b32.xlu0 %v12631_v25, %s18707_s2  ;;  %v12666_v60 = vpack.i.bf16 %v8073_v53, %v8070_v17  ;;  %v12676_v48 = vpack.i.bf16 %v8069_v3, %v8070_v17  ;;  %v12671_v15 = vpack.i.bf16 %v8083_v18, %v8082_v47  ;;  %v12686_v34 = vpack.i.bf16 %v8075_v58, %v8074_v9 }
0x1c4b   : > { %12637 = vrot.lane.b32.xlu1 %v12636_v55, %s18716_s28  ;;  %v12681_v19 = vpack.i.bf16 %v8089_v13, %v8088_v24  ;;  %v8087_v40 = vmul.f32 %v17936_v49, %v17757_v42  ;;  %v8086_v10 = vmul.f32 %v17927_v33, %v17757_v42  ;;  %v12701_v22 = vpack.i.bf16 %v8077_v51, %v8074_v9 }
0x1c4c   : > { %v12706_v5 = vpack.i.bf16 %v8079_v23, %v8074_v9  ;;  %v8081_v2 = vmul.f32 %v17932_v62, %v17762_v32  ;;  %v8093_v42 = vmul.f32 %v17932_v62, %v17789_v45  ;;  %v8091_v11 = vmul.f32 %v17936_v49, %v17789_v45 }
0x1c4d   : > { %v12691_v6 = vpack.i.bf16 %v8087_v40, %v8086_v10  ;;  %v8092_v36 = vmul.f32 %v17922_v43, %v17789_v45  ;;  %v8090_v32 = vmul.f32 %v17927_v33, %v17789_v45  ;;  %v8061_v50 = vmul.f32 %v17936_v49, %v17794_v59 }
0x1c4e   : > { %12642 = vrot.lane.b32.xlu0 %v12641_v8, %s18713_s12  ;;  %v12711_v0 = vpack.i.bf16 %v8081_v2, %v8074_v9  ;;  %v8065_v37 = vmul.f32 %v17932_v62, %v17794_v59  ;;  %v8059_v45 = vmul.f32 %v17927_v33, %v17794_v59  ;;  %v8063_v29 = vmul.f32 %v17922_v43, %v17794_v59 }
0x1c4f   : > { %12647 = vrot.lane.b32.xlu1 %v12646_v1, %s18707_s2  ;;  %s18863_s2 = smov 120   ;;  %v12726_v7 = vpack.i.bf16 %v8093_v42, %v8092_v36  ;;  %v12721_v16 = vpack.i.bf16 %v8091_v11, %v8090_v32 }
0x1c50   : > { %v8275_v41 = vpack.c.bf16 %v8061_v50, %v8059_v45  ;;  %v8277_v4 = vpack.c.bf16 %v8065_v37, %v8063_v29 }
0x1c52   : > { %12652 = vrot.lane.b32.xlu0 %v12651_v21, %s18716_s28 }
0x1c53   : > { %12657 = vrot.lane.b32.xlu1 %v12656_v44, %s18713_s12 }
0x1c56   : > { %12662 = vrot.lane.b32.xlu0 %v12661_v38, %s18709_s16 }
0x1c57   : > { %12667 = vrot.lane.b32.xlu1 %v12666_v60, %s18713_s12 }
0x1c5a   : > { %12677 = vrot.lane.b32.xlu0 %v12676_v48, %s18713_s12  ;;  %s18871_s12 = smov 125  }
0x1c5b   : > { %12672 = vrot.lane.b32.xlu1 %v12671_v15, %s18709_s16  ;;  %s18868_s16 = sld [smem:[#allocation162_spill]] }
0x1c5e   : > { %12682 = vrot.lane.b32.xlu0 %v12681_v19, %s18863_s2 }
0x1c5f   : > { %12687 = vrot.lane.b32.xlu1 %v12686_v34, %s18711_s1 }
0x1c62   : > { %12702 = vrot.lane.b32.xlu0 %v12701_v22, %s18711_s1 }
0x1c63   : > { %12692 = vrot.lane.b32.xlu1 %v12691_v6, %s18863_s2  ;;  %s18865_s2 = sld [smem:[#allocation163_spill]] }
0x1c66   : > { %12707 = vrot.lane.b32.xlu0 %v12706_v5, %s18711_s1 }
0x1c67   : > { %12697 = vrot.lane.b32.xlu1 %v12646_v1, %s18860_s7 }
0x1c6a   : > { %12717 = vrot.lane.b32.xlu0 %v12631_v25, %s18860_s7  ;;  %s18864_s7 = smov 5  }
0x1c6b   : > { %12712 = vrot.lane.b32.xlu1 %v12711_v0, %s18711_s1  ;;  %s18869_s1 = smov 1  }
0x1c6e   : > { %12727 = vrot.lane.b32.xlu0 %v12726_v7, %s18861_s10 }
0x1c6f   : > { %12722 = vrot.lane.b32.xlu1 %v12721_v16, %s18861_s10  ;;  %s18866_s10 = sld [smem:[#allocation164_spill]] }
0x1c72   : > { %8340 = vrot.lane.b32.xlu0 %v8276_v30, %s18864_s7 }
0x1c73   : > { %8336 = vrot.lane.b32.xlu1 %v8276_v30, %s18864_s7 }
0x1c76   : > { %8338 = vrot.lane.b32.xlu0 %v8275_v41, %s18864_s7 }
0x1c77   : > { %8342 = vrot.lane.b32.xlu1 %v8277_v4, %s18864_s7 }
0x1cb8   : > { %v12623_v52 = vpop.permute.xlu0 %12622 }
0x1cb9   : > { %v18026_v31 = vpop.permute.xlu1 %12627  ;;  %v12625_v49 = vunpack.i.h.bf16 %v12623_v52  ;;  %v12624_v53 = vunpack.i.l.bf16 %v12623_v52 }
0x1cba   : > { %v12630_v21 = vunpack.i.h.bf16 %v18026_v31  ;;  %v12629_v37 = vunpack.i.l.bf16 %v18026_v31 }
0x1cbb   : > { %v8120_v18 = vsel %vm2910_vm0, %v12624_v53, %v12625_v49 }
0x1cbc   : > { %v12633_v56 = vpop.permute.xlu0 %12632  ;;  %v8118_v31 = vsel %vm2910_vm0, %v12629_v37, %v12630_v21  ;;  %v8499_v37 = vld [vmem:[#allocation70 + $0x10] sm:$0xff] }
0x1cbd   : > { %v12635_v26 = vunpack.i.h.bf16 %v12633_v56  ;;  %v12634_v20 = vunpack.i.l.bf16 %v12633_v56  ;;  %v12638_v62 = vpop.permute.xlu1 %12637 }
0x1cbe   : > { %v12640_v33 = vunpack.i.h.bf16 %v12638_v62  ;;  %v12639_v8 = vunpack.i.l.bf16 %v12638_v62 }
0x1cbf   : > { %v8291_v25 = vpack.c.bf16 %v12635_v26, %v12634_v20 }
0x1cc0   : > { %v8281_v28 = vpack.c.bf16 %v12640_v33, %v12625_v49  ;;  %v18028_v55 = vpop.permute.xlu0 %12642  ;;  %v8121_v38 = vsel %vm2910_vm0, %v12639_v8, %v12640_v33 }
0x1cc1   : > { %v12648_v59 = vpop.permute.xlu1 %12647  ;;  %8370 = vrot.lane.b32.xlu0 %v8291_v25, %s18864_s7  ;;  %v8280_v13 = vpack.c.bf16 %v8121_v38, %v8120_v18  ;;  %v12645_v42 = vunpack.i.h.bf16 %v18028_v55  ;;  %v12644_v0 = vunpack.i.l.bf16 %v18028_v55 }
0x1cc2   : > { %v12650_v43 = vunpack.i.h.bf16 %v12648_v59  ;;  %v12649_v17 = vunpack.i.l.bf16 %v12648_v59  ;;  %8350 = vrot.lane.b32.xlu1 %v8281_v28, %s18864_s7 }
0x1cc3   : > { %v8156_v16 = vsel %vm2978_vm6, %v12644_v0, %v12645_v42 }
0x1cc4   : > { %v8290_v1 = vpack.c.bf16 %v12650_v43, %v12649_v17  ;;  %v12653_v46 = vpop.permute.xlu0 %12652 }
0x1cc5   : > { %v12655_v12 = vunpack.i.h.bf16 %v12653_v46  ;;  %v18033_v44 = vpop.permute.xlu1 %12657  ;;  %v12654_v7 = vunpack.i.l.bf16 %v12653_v46 }
0x1cc6   : > { %8368 = vrot.lane.b32.xlu1 %v8290_v1, %s18864_s7  ;;  %v12660_v5 = vunpack.i.h.bf16 %v18033_v44 }
0x1cc7   : > { %v8279_v39 = vpack.c.bf16 %v12655_v12, %v12630_v21  ;;  %v8119_v4 = vsel %vm2910_vm0, %v12654_v7, %v12655_v12  ;;  %v8680_v7 = vld [vmem:[#allocation74 + $0x8] sm:$0xff] }
0x1cc8   : > { %v12663_v3 = vpop.permute.xlu0 %12662  ;;  %v8278_v55 = vpack.c.bf16 %v8119_v4, %v8118_v31  ;;  %v8679_v4 = vld [vmem:[#allocation74] sm:$0xff] }
0x1cc9   : > { %v12668_v60 = vpop.permute.xlu1 %12667  ;;  %8346 = vrot.lane.b32.xlu0 %v8279_v39, %s18864_s7  ;;  %v12665_v47 = vunpack.i.h.bf16 %v12663_v3  ;;  %v12664_v48 = vunpack.i.l.bf16 %v12663_v3 }
0x1cca   : > { %v12670_v22 = vunpack.i.h.bf16 %v12668_v60  ;;  %v12669_v23 = vunpack.i.l.bf16 %v12668_v60 }
0x1ccb   : > { %v8293_v24 = vpack.c.bf16 %v12665_v47, %v12664_v48  ;;  %v12659_v48 = vunpack.i.l.bf16 %v18033_v44 }
0x1ccc   : > { %v18039_v15 = vpop.permute.xlu0 %12677  ;;  %v8157_v36 = vsel %vm2978_vm6, %v12669_v23, %v12670_v22  ;;  %v8285_v1 = vpack.c.bf16 %v12670_v22, %v12645_v42  ;;  %v18082_v22 = vld [vmem:[#allocation68] sm:$0xff] }
0x1ccd   : > { %v12673_v58 = vpop.permute.xlu1 %12672  ;;  %8348 = vrot.lane.b32.xlu0 %v8280_v13, %s18864_s7  ;;  %v12680_v40 = vunpack.i.h.bf16 %v18039_v15  ;;  %v8284_v29 = vpack.c.bf16 %v8157_v36, %v8156_v16  ;;  %v12679_v47 = vunpack.i.l.bf16 %v18039_v15  ;;  %v8682_v16 = vld [vmem:[#allocation76 + $0x8] sm:$0xff] }
0x1cce   : > { %v12675_v46 = vunpack.i.h.bf16 %v12673_v58  ;;  %v12674_v12 = vunpack.i.l.bf16 %v12673_v58 }
0x1ccf   : > { %v8283_v11 = vpack.c.bf16 %v12680_v40, %v12660_v5 }
0x1cd0   : > { %v12683_v9 = vpop.permute.xlu0 %12682  ;;  %v8292_v3 = vpack.c.bf16 %v12675_v46, %v12674_v12 }
0x1cd1   : > { %v12685_v19 = vunpack.i.h.bf16 %v12683_v9  ;;  %v12684_v51 = vunpack.i.l.bf16 %v12683_v9  ;;  %v18042_v34 = vpop.permute.xlu1 %12687  ;;  %8374 = vrot.lane.b32.xlu0 %v8293_v24, %s18864_s7  ;;  %v8155_v24 = vsel %vm2978_vm6, %v12679_v47, %v12680_v40  ;;  %v8498_v9 = vld [vmem:[#allocation70 + $0x8] sm:$0xff]  ;;  %v10921_v40 = vcombine.high %v18082_v22, %v18082_v22 }
0x1cd2   : > { %v12690_v52 = vunpack.i.h.bf16 %v18042_v34  ;;  %v12689_v44 = vunpack.i.l.bf16 %v18042_v34  ;;  %v8504_v34 = vld [vmem:[#allocation71 + $0x18] sm:$0xff] }
0x1cd3   : > { %v8295_v10 = vpack.c.bf16 %v12685_v19, %v12684_v51  ;;  %v8154_v19 = vsel %vm2978_vm6, %v12659_v48, %v12660_v5  ;;  %8449 = vmatprep.mubr.bf16.mxu1 %v10921_v40 }
0x1cd4   : > { %v18046_v6 = vpop.permute.xlu0 %12702  ;;  %v8282_v51 = vpack.c.bf16 %v8155_v24, %v8154_v19  ;;  %v8190_v5 = vsel %vm7556_vm8, %v12689_v44, %v12690_v52 }
0x1cd5   : > { %v12693_v2 = vpop.permute.xlu1 %12692  ;;  %8378 = vrot.lane.b32.xlu0 %v8295_v10, %s18864_s7  ;;  %v12705_v45 = vunpack.i.h.bf16 %v18046_v6  ;;  %v12704_v15 = vunpack.i.l.bf16 %v18046_v6  ;;  %v8502_v10 = vld [vmem:[#allocation71 + $0x8] sm:$0xff]  ;;  %v8500_v6 = vld [vmem:[#allocation70 + $0x18] sm:$0xff] }
0x1cd6   : > { %v12695_v60 = vunpack.i.h.bf16 %v12693_v2  ;;  %v12694_v18 = vunpack.i.l.bf16 %v12693_v2 }
0x1cd7   : > { %v8287_v25 = vpack.c.bf16 %v12705_v45, %v12690_v52  ;;  %v8191_v2 = vsel %vm7556_vm8, %v12704_v15, %v12705_v45  ;;  %v8692_v45 = vld [vmem:[%s18866_s10 + $0x8] sm:$0xff]  ;;  %v8694_v52 = vld [vmem:[%s18866_s10 + $0x18] sm:$0xff] }
0x1cd8   : > { %v18053_v32 = vpop.permute.xlu0 %12707  ;;  %v8294_v58 = vpack.c.bf16 %v12695_v60, %v12694_v18  ;;  %v8286_v36 = vpack.c.bf16 %v8191_v2, %v8190_v5  ;;  %v13003_v5 = vld [vmem:[#allocation68 + $0x8] ss:$0 sps:$4 sm:$0xff]  }
0x1cd9   : > { %v12698_v63 = vpop.permute.xlu1 %12697  ;;  %8354 = vrot.lane.b32.xlu0 %v8283_v11, %s18864_s7  ;;  %v12710_v26 = vunpack.i.h.bf16 %v18053_v32  ;;  %v12709_v20 = vunpack.i.l.bf16 %v18053_v32 }
0x1cda   : > { %v12700_v30 = vunpack.i.h.bf16 %v12698_v63  ;;  %v12699_v50 = vunpack.i.l.bf16 %v12698_v63  ;;  %v8497_v63 = vld [vmem:[#allocation70] sm:$0xff] }
0x1cdb   : > { %v8192_v59 = vsel %vm7556_vm8, %v12709_v20, %v12710_v26  ;;  %v8691_v20 = vld [vmem:[%s18866_s10] sm:$0xff] }
0x1cdc   : > { %v8296_v41 = vpack.c.bf16 %v12700_v30, %v12699_v50  ;;  %v12718_v62 = vpop.permute.xlu0 %12717  ;;  %v8501_v30 = vld [vmem:[#allocation71] sm:$0xff] }
0x1cdd   : > { %v12713_v56 = vpop.permute.xlu1 %12712  ;;  %8356 = vrot.lane.b32.xlu0 %v8284_v29, %s18864_s7  ;;  %v12720_v43 = vunpack.i.h.bf16 %v12718_v62  ;;  %v12719_v17 = vunpack.i.l.bf16 %v12718_v62  ;;  %v8688_v50 = vld [vmem:[%s18865_s2 + $0x8] sm:$0xff]  ;;  %v8503_v29 = vld [vmem:[#allocation71 + $0x10] sm:$0xff]  ;;  %v8689_v62 = vld [vmem:[%s18865_s2 + $0x10] sm:$0xff] }
0x1cde   : > { %v12715_v49 = vunpack.i.h.bf16 %v12713_v56  ;;  %v12714_v33 = vunpack.i.l.bf16 %v12713_v56  ;;  %8380 = vrot.lane.b32.xlu1 %v8296_v41, %s18864_s7  ;;  %v8690_v41 = vld [vmem:[%s18865_s2 + $0x18] sm:$0xff]  ;;  %v8681_v56 = vld [vmem:[#allocation76] sm:$0xff] }
0x1cdf   : > { %v8297_v21 = vpack.c.bf16 %v12720_v43, %v12719_v17 }
0x1ce0   : > { %v8193_v28 = vsel %vm7556_vm8, %v12714_v33, %v12715_v49  ;;  %v12728_v53 = vpop.permute.xlu0 %12727  ;;  %v8289_v23 = vpack.c.bf16 %v12715_v49, %v12710_v26  ;;  %v8687_v26 = vld [vmem:[%s18865_s2] sm:$0xff]  ;;  %v8693_v49 = vld [vmem:[%s18866_s10 + $0x10] sm:$0xff]  ;;  %s18873_s2 = smov 124  }
0x1ce1   : > { %8362 = vrot.lane.b32.xlu0 %v8287_v25, %s18864_s7  ;;  %v8288_v8 = vpack.c.bf16 %v8193_v28, %v8192_v59  ;;  %v12730_v39 = vunpack.i.h.bf16 %v12728_v53  ;;  %v12729_v38 = vunpack.i.l.bf16 %v12728_v53  ;;  %v12723_v42 = vpop.permute.xlu1 %12722 }
0x1ce2   : > { %8344 = vrot.lane.b32.xlu1 %v8278_v55, %s18864_s7  ;;  %v12725_v0 = vunpack.i.h.bf16 %v12723_v42  ;;  %v12724_v11 = vunpack.i.l.bf16 %v12723_v42  ;;  %v10920_v42 = vcombine.low %v18082_v22, %v18082_v22 }
0x1ce3   : > { %v8299_v13 = vpack.c.bf16 %v12730_v39, %v12729_v38 }
0x1ce4   : > { %v8298_v32 = vpack.c.bf16 %v12725_v0, %v12724_v11  ;;  %v8341_v31 = vpop.permute.xlu0 %8340 }
0x1ce5   : > { %8364 = vrot.lane.b32.xlu0 %v8288_v8, %s18864_s7  ;;  %v8337_v33 = vpop.permute.xlu1 %8336 }
0x1ce6   : > { %8358 = vrot.lane.b32.xlu1 %v8285_v1, %s18864_s7 }
0x1ce8   : > { %v8339_v55 = vpop.permute.xlu0 %8338 }
0x1ce9   : > { %8382 = vrot.lane.b32.xlu0 %v8297_v21, %s18864_s7  ;;  %v8343_v25 = vpop.permute.xlu1 %8342  ;;  %v8388_v43 = vsel %vm7755_vm9, %v8337_v33, %v8339_v55 }
0x1cea   : > { %8372 = vrot.lane.b32.xlu1 %v8292_v3, %s18864_s7  ;;  %v8389_v8 = vsel %vm7755_vm9, %v8341_v31, %v8343_v25 }
0x1ced   : > { %8386 = vrot.lane.b32.xlu0 %v8299_v13, %s18864_s7 }
0x1cee   : > { %8376 = vrot.lane.b32.xlu1 %v8294_v58, %s18864_s7 }
0x1cf1   : > { %8516 = vperm.xlu0 %11829, %v8498_v9  }
0x1cf2   : > { %8352 = vrot.lane.b32.xlu1 %v8282_v51, %s18864_s7 }
0x1cf5   : > { %8540 = vperm.xlu0 %11829, %v8502_v10  }
0x1cf6   : > { %8366 = vrot.lane.b32.xlu1 %v8289_v23, %s18864_s7 }
0x1cf9   : > { %8526 = vperm.xlu0 %11829, %v8500_v6  }
0x1cfa   : > { %8360 = vrot.lane.b32.xlu1 %v8286_v36, %s18864_s7 }
0x1cfd   : > { %8550 = vperm.xlu0 %11829, %v8504_v34  }
0x1cfe   : > { %8384 = vrot.lane.b32.xlu1 %v8298_v32, %s18864_s7  ;;  %s18867_s7 = sld [smem:[#allocation159_spill]] }
0x1d01   : > { %8704 = vperm.xlu0 %11829, %v8680_v7  }
0x1d02   : > { %8511 = vperm.xlu1 %11830, %v8497_v63  }
0x1d05   : > { %8716 = vperm.xlu0 %11829, %v8682_v16  }
0x1d06   : > { %8535 = vperm.xlu1 %11830, %v8501_v30  }
0x1d09   : > { %8796 = vperm.xlu0 %11829, %v8688_v50  }
0x1d0a   : > { %8521 = vperm.xlu1 %11830, %v8499_v37  }
0x1d0d   : > { %8820 = vperm.xlu0 %11829, %v8692_v45  }
0x1d0e   : > { %8545 = vperm.xlu1 %11830, %v8503_v29  }
0x1d11   : > { %8806 = vperm.xlu0 %11829, %v8690_v41  }
0x1d12   : > { %8699 = vperm.xlu1 %11830, %v8679_v4  }
0x1d15   : > { %8830 = vperm.xlu0 %11829, %v8694_v52  }
0x1d16   : > { %8711 = vperm.xlu1 %11830, %v8681_v56  }
0x1d1a   : > { %8791 = vperm.xlu1 %11830, %v8687_v26  }
0x1d1e   : > { %8815 = vperm.xlu1 %11830, %v8691_v20  }
0x1d22   : > { %8801 = vperm.xlu1 %11830, %v8689_v62  }
0x1d26   : > { %8825 = vperm.xlu1 %11830, %v8693_v49  }
0x1d33   : > { %v8371_v17 = vpop.permute.xlu0 %8370 }
0x1d34   : > { %v8351_v28 = vpop.permute.xlu1 %8350 }
0x1d38   : > { %v8369_v59 = vpop.permute.xlu1 %8368 }
0x1d39   : > { %11069 = vmatprep.subr.bf16.mxu1 %v8369_v59 }
0x1d3a   : > { %11070 = vmatpush3.bf16.msra.mxu1 %v8388_v43 }
0x1d3b   : > { %11071 = vmatprep.subr.bf16.mxu1 %v8371_v17  ;;  %v8347_v1 = vpop.permute.xlu0 %8346 }
0x1d3e   : > { %11072 = vmatpush3.bf16.msra.mxu1 %v8389_v8  ;;  %v13004_v8 = vld [vmem:[#allocation73] sm:$0xff]  }
0x1d3f   : > { %v8349_v46 = vpop.permute.xlu0 %8348 }
0x1d40   : > { %v8391_v13 = vsel %vm7755_vm9, %v8349_v46, %v8351_v28 }
0x1d43   : > { %v8375_v12 = vpop.permute.xlu0 %8374 }
0x1d47   : > { %v8379_v53 = vpop.permute.xlu0 %8378 }
0x1d4b   : > { %v8355_v38 = vpop.permute.xlu0 %8354 }
0x1d4f   : > { %v8357_v60 = vpop.permute.xlu0 %8356 }
0x1d50   : > { %v8381_v21 = vpop.permute.xlu1 %8380 }
0x1d53   : > { %v8363_v58 = vpop.permute.xlu0 %8362 }
0x1d54   : > { %v8345_v39 = vpop.permute.xlu1 %8344 }
0x1d55   : > { %v8390_v47 = vsel %vm7755_vm9, %v8345_v39, %v8347_v1  ;;  %v13006_v39 = vld [vmem:[%s18868_s16] sm:$0xff]  }
0x1d57   : > { %v8365_v19 = vpop.permute.xlu0 %8364 }
0x1d58   : > { %v8359_v3 = vpop.permute.xlu1 %8358 }
0x1d59   : > { %v8393_v15 = vsel %vm7755_vm9, %v8357_v60, %v8359_v3 }
0x1d5b   : > { %v8383_v40 = vpop.permute.xlu0 %8382 }
0x1d5c   : > { %v8373_v18 = vpop.permute.xlu1 %8372 }
0x1d5d   : > { %11073 = vmatprep.subr.bf16.mxu1 %v8373_v18 }
0x1d5e   : > { %11074 = vmatpush3.bf16.msra.mxu1 %v8390_v47 }
0x1d5f   : > { %11075 = vmatprep.subr.bf16.mxu1 %v8375_v12  ;;  %v8387_v6 = vpop.permute.xlu0 %8386 }
0x1d60   : > { %v8377_v48 = vpop.permute.xlu1 %8376 }
0x1d62   : > { %11076 = vmatpush3.bf16.msra.mxu1 %v8391_v13 }
0x1d63   : > { %11077 = vmatprep.subr.bf16.mxu1 %v8377_v48 }
0x1d64   : > { %v8353_v24 = vpop.permute.xlu1 %8352 }
0x1d65   : > { %v8392_v9 = vsel %vm7755_vm9, %v8353_v24, %v8355_v38  ;;  %v2817_v38 = vld [vmem:[#allocation10] sm:$0x3] }
0x1d66   : > { %11078 = vmatpush3.bf16.msra.mxu1 %v8392_v9  ;;  %v8873_v3 = vrot.slane %v2817_v38, %v18855_v61  ;;  %v8857_v60 = vrot.slane %v2817_v38, %v18856_v57 }
0x1d67   : > { %11079 = vmatprep.subr.bf16.mxu1 %v8379_v53 }
0x1d68   : > { %v8367_v51 = vpop.permute.xlu1 %8366  ;;  %8897 = vrot.lane.b32.xlu1 %v8873_v3, %s18869_s1  ;;  %8875 = vrot.lane.b32.xlu0 %v8873_v3, %s18716_s28 }
0x1d69   : > { %v8395_v2 = vsel %vm7755_vm9, %v8365_v19, %v8367_v51 }
0x1d6a   : > { %11080 = vmatpush3.bf16.msra.mxu1 %v8393_v15 }
0x1d6b   : > { %11081 = vmatprep.subr.bf16.mxu1 %v8381_v21 }
0x1d6c   : > { %v8361_v10 = vpop.permute.xlu1 %8360  ;;  %8904 = vrot.lane.b32.xlu1 %v8857_v60, %s18869_s1  ;;  %8886 = vrot.lane.b32.xlu0 %v8857_v60, %s18716_s28  ;;  %s18872_s1 = smov 126  }
0x1d6d   : > { %v8394_v44 = vsel %vm7755_vm9, %v8361_v10, %v8363_v58 }
0x1d6e   : > { %11082 = vmatpush3.bf16.msra.mxu1 %v8394_v44 }
0x1d6f   : > { %11083 = vmatprep.subr.bf16.mxu1 %v8383_v40 }
0x1d70   : > { %v8385_v23 = vpop.permute.xlu1 %8384  ;;  %v8517_v0 = vpop.permute.xlu0 %8516  ;;  %8859 = vrot.lane.b32.xlu0 %v8857_v60, %s18871_s12 }
0x1d71   : > { %11232 = vmatpush3.bf16.msra.mxu0 %v8385_v23  ;;  %v8530_v34 = vmul.f32 %v8517_v0, %v17696_v35  ;;  %v13007_v23 = vld [vmem:[%s18868_s16 + $0x8] sm:$0xff]  }
0x1d72   : > { %11084 = vmatpush3.bf16.msra.mxu1 %v8395_v2  ;;  %11233 = vmatprep.subr.bf16.mxu0 %v17900_v27 }
0x1d74   : > { %v8541_v11 = vpop.permute.xlu0 %8540 }
0x1d75   : > { %8450 = vmatmul.mubr.bf16.vlgmr.msra.gmra.mrb[44].mxu1 %v10920_v42  ;;  %11234 = vmatpush3.bf16.msra.mxu0 %v8387_v6  ;;  %v8554_v22 = vadd.f32 %v8541_v11, %v8530_v34 }
0x1d76   : > { %11239 = vmatprep.subr.bf16.mxu0 %v17900_v27  ;;  %11255 = vmatprep.mubr.msk.bf16.mxu1 %vm3265_vm14, %v13006_v39 }
0x1d77   : > { %v8558_v16 = vmax.f32 %v8554_v22, 0.0 }
0x1d78   : > { %11236 = vmatmul.mubr.msk.bf16.vlgmr.msra.gmra.mrb[40].mxu0 %vm4215_vm15, %v13003_v5  ;;  %v8527_v29 = vpop.permute.xlu0 %8526 }
0x1d79   : > { %11243 = vmatprep.mubr.msk.bf16.mxu0 %vm14696_vm5, %v17900_v27 }
0x1d7c   : > { %v8551_v28 = vpop.permute.xlu0 %8550 }
0x1d80   : > { %v8705_v47 = vpop.permute.xlu0 %8704 }
0x1d81   : > { %v8512_v36 = vpop.permute.xlu1 %8511 }
0x1d82   : > { %v8529_v32 = vmul.f32 %v8512_v36, %v17693_v54 }
0x1d84   : > { %v8717_v51 = vpop.permute.xlu0 %8716 }
0x1d85   : > { %v8536_v7 = vpop.permute.xlu1 %8535 }
0x1d86   : > { %v8553_v63 = vadd.f32 %v8536_v7, %v8529_v32 }
0x1d88   : > { %v8557_v30 = vmax.f32 %v8553_v63, 0.0  ;;  %v8797_v42 = vpop.permute.xlu0 %8796 }
0x1d89   : > { %v8522_v37 = vpop.permute.xlu1 %8521 }
0x1d8a   : > { %v8561_v50 = vpack.c.bf16 %v8558_v16, %v8557_v30  ;;  %v8531_v20 = vmul.f32 %v8522_v37, %v17911_v14  ;;  %v13005_v14 = vld [vmem:[%s18867_s7] sm:$0xff]   ;;  %s18870_s7 = smov 3  }
0x1d8b   : > { %8911 = vrot.lane.b32.xlu1 %v8873_v3, %s18870_s7 }
0x1d8c   : > { %11240 = vmatpush3.bf16.msra.mxu0 %v8561_v50  ;;  %v8821_v5 = vpop.permute.xlu0 %8820 }
0x1d8d   : > { %11241 = vmatprep.subr.bf16.mxu0 %v17900_v27  ;;  %v8546_v4 = vpop.permute.xlu1 %8545 }
0x1d8e   : > { %v8555_v33 = vadd.f32 %v8546_v4, %v8531_v20 }
0x1d90   : > { %v8559_v59 = vmax.f32 %v8555_v33, 0.0  ;;  %v8807_v11 = vpop.permute.xlu0 %8806 }
0x1d91   : > { %v8700_v18 = vpop.permute.xlu1 %8699 }
0x1d94   : > { %v8831_v37 = vpop.permute.xlu0 %8830 }
0x1d95   : > { %v8712_v58 = vpop.permute.xlu1 %8711 }
0x1d99   : > { %v8792_v2 = vpop.permute.xlu1 %8791 }
0x1d9d   : > { %v8816_v6 = vpop.permute.xlu1 %8815 }
0x1da1   : > { %v8802_v0 = vpop.permute.xlu1 %8801 }
0x1da5   : > { %v8826_v32 = vpop.permute.xlu1 %8825 }
0x1e48   : > { %v11085_v45 = vpop.f32.mrb[44].mxu1 }
0x1e49   : > { %v11086_v41 = vpop.f32.mrb[45].mxu1 }
0x1e4a   : > { %v11087_v52 = vadd.f32 %v11086_v41, %v11085_v45  ;;  %v11088_v56 = vpop.f32.mrb[46].mxu1 }
0x1e4b   : > { %v11089_v26 = vpop.f32.mrb[47].mxu1  ;;  %v8491_v35 = vpop.f32.mrb[40].mxu0 }
0x1e4c   : > { %v8492_v54 = vadd.f32 %v11087_v52, %v8491_v35  ;;  %v11237_v62 = vpop.f32.mrb[41].mxu0 }
0x1e4d   : > { %v8494_v49 = vpop.f32.mrb[42].mxu0 }
0x1e4e   : > { %v8532_v31 = vmul.f32 %v8527_v29, %v8492_v54  ;;  %v11238_v25 = vpop.f32.mrb[43].mxu0 }
0x1e50   : > { %v8556_v55 = vadd.f32 %v8551_v28, %v8532_v31  ;;  %v18161_v31 = vpop.permute.xlu0 %8875 }
0x1e51   : > { %v8882_v28 = vmul.f32 %v17900_v27, %v18161_v31 }
0x1e52   : > { %v8560_v43 = vmax.f32 %v8556_v55, 0.0 }
0x1e54   : > { %v8562_v17 = vpack.c.bf16 %v8560_v43, %v8559_v59 }
0x1e56   : > { %11242 = vmatpush3.bf16.msra.mxu0 %v8562_v17 }
0x1e57   : > { %11247 = vmatprep.subr.bf16.mxu0 %v17900_v27 }
0x1e59   : > { %11244 = vmatmul.mubr.msk.bf16.vlgmr.msra.gmra.mrb[44].mxu0 %vm4215_vm15, %v13004_v8 }
0x1e5a   : > { %11249 = vmatprep.mubr.msk.bf16.mxu0 %vm14696_vm5, %v17900_v27  ;;  %11248 = vmatpush3.bf16.msra.mxu0 %v13005_v14 }
0x1f2c   : > { %v8605_v1 = vpop.f32.mrb[44].mxu0 }
0x1f2d   : > { %v11245_v46 = vpop.f32.mrb[45].mxu0 }
0x1f2e   : > { %v8608_v12 = vpop.f32.mrb[46].mxu0 }
0x1f2f   : > { %v8612_v53 = vpack.c.bf16 %v8608_v12, %v8605_v1  ;;  %v11246_v21 = vpop.f32.mrb[47].mxu0  ;;  %v18181_v1 = vpop.permute.xlu1 %8897 }
0x1f31   : > { %11250 = vmatmul.mubr.msk.bf16.vlgmr.msra.gmra.mrb[48].mxu0 %vm3265_vm14, %v8612_v53 }
0x2004   : > { %v18135_v48 = vpop.f32.mrb[48].mxu0 }
0x2005   : > { %v8707_v61 = vmul.f32 %v8700_v18, %v18135_v48  ;;  %v11251_v13 = vpop.f32.mrb[49].mxu0  ;;  %v18199_v18 = vpop.permute.xlu1 %8904 }
0x2006   : > { %v18138_v24 = vpop.f32.mrb[50].mxu0 }
0x2007   : > { %v8719_v57 = vadd.f32 %v8712_v58, %v8707_v61  ;;  %v8708_v9 = vmul.f32 %v8705_v47, %v18138_v24  ;;  %v11252_v19 = vpop.f32.mrb[51].mxu0  ;;  %v18204_v61 = vpop.permute.xlu0 %8886 }
0x2009   : > { %v8720_v15 = vadd.f32 %v8717_v51, %v8708_v9  ;;  %v8721_v10 = vmax.f32 %v8719_v57, 0.0  ;;  %v18208_v9 = vld [vmem:[#allocation2 + $0x18] sm:$0xff] }
0x200a   : > { %v18212_v19 = vmul.f32 %v18208_v9, %v18204_v61 }
0x200b   : > { %v8722_v44 = vmax.f32 %v8720_v15, 0.0 }
0x200d   : > { %v8723_v40 = vpack.c.bf16 %v8722_v44, %v8721_v10 }
0x200f   : > { %11253 = vmatprep.subr.bf16.mxu1 %v8723_v40 }
0x2010   : > { %11254 = vmatpush3.bf16.msra.mxu1 %v8723_v40 }
0x2011   : > { %11259 = vmatprep.subr.bf16.mxu1 %v17900_v27 }
0x2013   : > { %11256 = vmatmul.mubr.msk.bf16.vlgmr.msra.gmra.mrb[48].mxu1 %vm3265_vm14, %v13007_v23 }
0x2014   : > { %11263 = vmatprep.mubr.msk.bf16.mxu1 %vm14696_vm5, %v17900_v27 }
0x20e6   : > { %v11257_v36 = vpop.f32.mrb[48].mxu1 }
0x20e7   : > { %v8811_v34 = vmul.f32 %v11257_v36, %v8802_v0  ;;  %v8774_v22 = vpop.f32.mrb[49].mxu1  ;;  %v18238_v36 = vpop.permute.xlu1 %8911 }
0x20e8   : > { %v8809_v7 = vmul.f32 %v8792_v2, %v8774_v22  ;;  %v11258_v63 = vpop.f32.mrb[50].mxu1  ;;  %v18243_v22 = vpop.permute.xlu0 %8859 }
0x20e9   : > { %v8835_v16 = vadd.f32 %v8826_v32, %v8811_v34  ;;  %v8812_v30 = vmul.f32 %v11258_v63, %v8807_v11  ;;  %v8777_v50 = vpop.f32.mrb[51].mxu1 }
0x20ea   : > { %v8833_v45 = vadd.f32 %v8816_v6, %v8809_v7  ;;  %v8810_v29 = vmul.f32 %v8797_v42, %v8777_v50 }
0x20eb   : > { %v8839_v41 = vmax.f32 %v8835_v16, 0.0  ;;  %v8836_v4 = vadd.f32 %v8831_v37, %v8812_v30  ;;  %v8866_v16 = vmul.f32 %v18208_v9, %v18243_v22 }
0x20ec   : > { %v8837_v52 = vmax.f32 %v8833_v45, 0.0  ;;  %v8834_v56 = vadd.f32 %v8821_v5, %v8810_v29 }
0x20ed   : > { %8844 = vst.msk [vmem:[#allocation2 + $0x48] sm:$0xff] %vm8841_vm10, %v8839_v41  ;;  %v8840_v26 = vmax.f32 %v8836_v4, 0.0  ;;  %v18257_v45 = vpack.c.bf16 %v8866_v16, %v8866_v16 }
0x20ee   : > { %8842 = vst.msk [vmem:[#allocation2 + $0x8] sm:$0xff] %vm8841_vm10, %v8837_v52  ;;  %v8838_v35 = vmax.f32 %v8834_v56, 0.0 }
0x20ef   : > { %8845 = vst.msk [vmem:[#allocation2 + $0x68] sm:$0xff] %vm8841_vm10, %v8840_v26 }
0x20f0   : > { %8843 = vst.msk [vmem:[#allocation2 + $0x28] sm:$0xff] %vm8841_vm10, %v8838_v35 }
0x20f4   : > { %v18150_v20 = vld [vmem:[#allocation2 + $0x48] sm:$0xff] }
0x20f5   : > { %v12731_v54 = vpack.i.bf16 %v18150_v20, %v17900_v27  ;;  %v18154_v62 = vld [vmem:[#allocation2 + $0x8] sm:$0xff]  ;;  %v8883_v55 = vmul.f32 %v18161_v31, %v18150_v20  ;;  %v8902_v39 = vmul.f32 %v18181_v1, %v18150_v20  ;;  %v8909_v15 = vmul.f32 %v18199_v18, %v18150_v20 }
0x20f6   : > { %v12736_v49 = vpack.i.bf16 %v18154_v62, %v17900_v27  ;;  %v18158_v33 = vld [vmem:[#allocation2 + $0x68] sm:$0xff]  ;;  %v8879_v14 = vmul.f32 %v18161_v31, %v18154_v62  ;;  %v8900_v47 = vmul.f32 %v18181_v1, %v18154_v62  ;;  %v8890_v51 = vmul.f32 %v18204_v61, %v18154_v62 }
0x20f7   : > { %12732 = vrot.lane.b32.xlu0 %v12731_v54, %s18716_s28  ;;  %v12741_v25 = vpack.i.bf16 %v18158_v33, %v18150_v20  ;;  %v12746_v59 = vpack.i.bf16 %v18158_v33, %v17900_v27  ;;  %v18173_v43 = vld [vmem:[#allocation2 + $0x28] sm:$0xff]  ;;  %v12751_v17 = vpack.i.bf16 %v8883_v55, %v8882_v28  ;;  %v8903_v12 = vmul.f32 %v18181_v1, %v18158_v33 }
0x20f8   : > { %12737 = vrot.lane.b32.xlu1 %v12736_v49, %s18716_s28  ;;  %v12756_v8 = vpack.i.bf16 %v18173_v43, %v18154_v62  ;;  %v12761_v46 = vpack.i.bf16 %v18173_v43, %v17900_v27  ;;  %v12766_v53 = vpack.i.bf16 %v8879_v14, %v8882_v28  ;;  %v8885_v21 = vmul.f32 %v18161_v31, %v18158_v33 }
0x20f9   : > { %v12771_v38 = vpack.i.bf16 %v8903_v12, %v8902_v39  ;;  %v8881_v3 = vmul.f32 %v18161_v31, %v18173_v43  ;;  %v8901_v27 = vmul.f32 %v18181_v1, %v18173_v43  ;;  %v8910_v58 = vmul.f32 %v18199_v18, %v18158_v33 }
0x20fa   : > { %v12776_v60 = vpack.i.bf16 %v8885_v21, %v8882_v28  ;;  %v8892_v44 = vmul.f32 %v18204_v61, %v18173_v43  ;;  %v12796_v40 = vpack.i.bf16 %v8890_v51, %v18212_v19  ;;  %v8908_v23 = vmul.f32 %v18199_v18, %v18173_v43 }
0x20fb   : > { %12742 = vrot.lane.b32.xlu0 %v12741_v25, %s18871_s12  ;;  %v12786_v13 = vpack.i.bf16 %v8881_v3, %v8882_v28  ;;  %v12781_v57 = vpack.i.bf16 %v8901_v27, %v8900_v47  ;;  %v12791_v10 = vpack.i.bf16 %v8910_v58, %v8909_v15  ;;  %v8907_v2 = vmul.f32 %v18199_v18, %v18154_v62 }
0x20fc   : > { %12747 = vrot.lane.b32.xlu1 %v12746_v59, %s18716_s28  ;;  %v12811_v42 = vpack.i.bf16 %v8892_v44, %v18212_v19  ;;  %v8894_v6 = vmul.f32 %v18204_v61, %v18150_v20  ;;  %v8896_v11 = vmul.f32 %v18204_v61, %v18158_v33  ;;  %v8917_v34 = vmul.f32 %v18238_v36, %v18158_v33 }
0x20fd   : > { %v12801_v5 = vpack.i.bf16 %v8908_v23, %v8907_v2  ;;  %v8915_v7 = vmul.f32 %v18238_v36, %v18173_v43  ;;  %v8916_v63 = vmul.f32 %v18238_v36, %v18150_v20  ;;  %v8914_v30 = vmul.f32 %v18238_v36, %v18154_v62 }
0x20fe   : > { %v12816_v0 = vpack.i.bf16 %v8894_v6, %v18212_v19  ;;  %v12821_v32 = vpack.i.bf16 %v8896_v11, %v18212_v19  ;;  %v8865_v29 = vmul.f32 %v18243_v22, %v18173_v43  ;;  %v8869_v41 = vmul.f32 %v18243_v22, %v18158_v33 }
0x20ff   : > { %12752 = vrot.lane.b32.xlu0 %v12751_v17, %s18872_s1  ;;  %v12836_v50 = vpack.i.bf16 %v8917_v34, %v8916_v63  ;;  %v12831_v37 = vpack.i.bf16 %v8915_v7, %v8914_v30  ;;  %v8863_v4 = vmul.f32 %v18243_v22, %v18154_v62  ;;  %v8867_v52 = vmul.f32 %v18243_v22, %v18150_v20 }
0x2100   : > { %12757 = vrot.lane.b32.xlu1 %v12756_v8, %s18871_s12 }
0x2101   : > { %v9099_v56 = vpack.c.bf16 %v8865_v29, %v8863_v4  ;;  %v9101_v26 = vpack.c.bf16 %v8869_v41, %v8867_v52 }
0x2103   : > { %12762 = vrot.lane.b32.xlu0 %v12761_v46, %s18716_s28  ;;  %s18874_s28 = smov 123  }
0x2104   : > { %12767 = vrot.lane.b32.xlu1 %v12766_v53, %s18872_s1 }
0x2107   : > { %12772 = vrot.lane.b32.xlu0 %v12771_v38, %s18873_s2 }
0x2108   : > { %12777 = vrot.lane.b32.xlu1 %v12776_v60, %s18872_s1 }
0x210b   : > { %12787 = vrot.lane.b32.xlu0 %v12786_v13, %s18872_s1 }
0x210c   : > { %12782 = vrot.lane.b32.xlu1 %v12781_v57, %s18873_s2 }
0x210f   : > { %12792 = vrot.lane.b32.xlu0 %v12791_v10, %s18873_s2 }
0x2110   : > { %12797 = vrot.lane.b32.xlu1 %v12796_v40, %s18872_s1 }
0x2113   : > { %12812 = vrot.lane.b32.xlu0 %v12811_v42, %s18872_s1 }
0x2114   : > { %12802 = vrot.lane.b32.xlu1 %v12801_v5, %s18873_s2 }
0x2117   : > { %12817 = vrot.lane.b32.xlu0 %v12816_v0, %s18872_s1 }
0x2118   : > { %12807 = vrot.lane.b32.xlu1 %v12756_v8, %s18874_s28 }
0x211b   : > { %12827 = vrot.lane.b32.xlu0 %v12741_v25, %s18874_s28 }
0x211c   : > { %12822 = vrot.lane.b32.xlu1 %v12821_v32, %s18872_s1 }
0x211f   : > { %12837 = vrot.lane.b32.xlu0 %v12836_v50, %s18875_s3 }
0x2120   : > { %12832 = vrot.lane.b32.xlu1 %v12831_v37, %s18875_s3 }
0x2123   : > { %9164 = vrot.lane.b32.xlu0 %v18257_v45, %s18870_s7 }
0x2124   : > { %9160 = vrot.lane.b32.xlu1 %v18257_v45, %s18870_s7 }
0x2127   : > { %9162 = vrot.lane.b32.xlu0 %v9099_v56, %s18870_s7 }
0x2128   : > { %9166 = vrot.lane.b32.xlu1 %v9101_v26, %s18870_s7 }
0x2169   : > { %v12733_v35 = vpop.permute.xlu0 %12732 }
0x216a   : > { %v18274_v54 = vpop.permute.xlu1 %12737  ;;  %v12735_v62 = vunpack.i.h.bf16 %v12733_v35  ;;  %v12734_v3 = vunpack.i.l.bf16 %v12733_v35 }
0x216b   : > { %v12740_v21 = vunpack.i.h.bf16 %v18274_v54  ;;  %v12739_v35 = vunpack.i.l.bf16 %v18274_v54 }
0x216c   : > { %v8944_v58 = vsel %vm2910_vm0, %v12734_v3, %v12735_v62 }
0x216d   : > { %v12743_v49 = vpop.permute.xlu0 %12742  ;;  %v8942_v54 = vsel %vm2910_vm0, %v12739_v35, %v12740_v21  ;;  %v9337_v35 = vld [vmem:[%s18878_s6 + $0x8] sm:$0xff] }
0x216e   : > { %v12745_v33 = vunpack.i.h.bf16 %v12743_v49  ;;  %v12744_v25 = vunpack.i.l.bf16 %v12743_v49  ;;  %v12748_v28 = vpop.permute.xlu1 %12747 }
0x216f   : > { %v12750_v55 = vunpack.i.h.bf16 %v12748_v28  ;;  %v12749_v46 = vunpack.i.l.bf16 %v12748_v28 }
0x2170   : > { %v9115_v59 = vpack.c.bf16 %v12745_v33, %v12744_v25 }
0x2171   : > { %v9105_v43 = vpack.c.bf16 %v12750_v55, %v12735_v62  ;;  %v18276_v17 = vpop.permute.xlu0 %12752  ;;  %v8945_v27 = vsel %vm2910_vm0, %v12749_v46, %v12750_v55 }
0x2172   : > { %v12758_v20 = vpop.permute.xlu1 %12757  ;;  %9194 = vrot.lane.b32.xlu0 %v9115_v59, %s18870_s7  ;;  %v9104_v15 = vpack.c.bf16 %v8945_v27, %v8944_v58  ;;  %v12755_v16 = vunpack.i.h.bf16 %v18276_v17  ;;  %v12754_v30 = vunpack.i.l.bf16 %v18276_v17 }
0x2173   : > { %v12760_v8 = vunpack.i.h.bf16 %v12758_v20  ;;  %v12759_v14 = vunpack.i.l.bf16 %v12758_v20  ;;  %9174 = vrot.lane.b32.xlu1 %v9105_v43, %s18870_s7 }
0x2174   : > { %v8980_v52 = vsel %vm2978_vm6, %v12754_v30, %v12755_v16  ;;  %v9326_v30 = vld [vmem:[%s18876_s4 + $0x8] sm:$0xff] }
0x2175   : > { %v9114_v12 = vpack.c.bf16 %v12760_v8, %v12759_v14  ;;  %v12763_v53 = vpop.permute.xlu0 %12762 }
0x2176   : > { %v12765_v39 = vunpack.i.h.bf16 %v12763_v53  ;;  %v18281_v38 = vpop.permute.xlu1 %12767  ;;  %v12764_v41 = vunpack.i.l.bf16 %v12763_v53 }
0x2177   : > { %9192 = vrot.lane.b32.xlu1 %v9114_v12, %s18870_s7  ;;  %v12770_v7 = vunpack.i.h.bf16 %v18281_v38 }
0x2178   : > { %v9103_v60 = vpack.c.bf16 %v12765_v39, %v12740_v21  ;;  %v8943_v28 = vsel %vm2910_vm0, %v12764_v41, %v12765_v39 }
0x2179   : > { %v12773_v47 = vpop.permute.xlu0 %12772  ;;  %v9102_v12 = vpack.c.bf16 %v8943_v28, %v8942_v54  ;;  %v9339_v28 = vld [vmem:[%s18878_s6 + $0x18] sm:$0xff] }
0x217a   : > { %v12778_v13 = vpop.permute.xlu1 %12777  ;;  %9170 = vrot.lane.b32.xlu0 %v9103_v60, %s18870_s7  ;;  %v12775_v57 = vunpack.i.h.bf16 %v12773_v47  ;;  %v12774_v51 = vunpack.i.l.bf16 %v12773_v47 }
0x217b   : > { %v12780_v11 = vunpack.i.h.bf16 %v12778_v13  ;;  %v12779_v34 = vunpack.i.l.bf16 %v12778_v13 }
0x217c   : > { %v9117_v40 = vpack.c.bf16 %v12775_v57, %v12774_v51 }
0x217d   : > { %v18287_v10 = vpop.permute.xlu0 %12787  ;;  %v8981_v37 = vsel %vm2978_vm6, %v12779_v34, %v12780_v11  ;;  %v9109_v27 = vpack.c.bf16 %v12780_v11, %v12755_v16  ;;  %v9323_v34 = vld [vmem:[#allocation79 + $0x8] sm:$0xff] }
0x217e   : > { %v12783_v44 = vpop.permute.xlu1 %12782  ;;  %9172 = vrot.lane.b32.xlu0 %v9104_v15, %s18870_s7  ;;  %v12790_v5 = vunpack.i.h.bf16 %v18287_v10  ;;  %v9108_v33 = vpack.c.bf16 %v8981_v37, %v8980_v52 }
0x217f   : > { %v12785_v47 = vunpack.i.h.bf16 %v12783_v44  ;;  %v12784_v13 = vunpack.i.l.bf16 %v12783_v44  ;;  %v12769_v44 = vunpack.i.l.bf16 %v18281_v38  ;;  %v18331_v38 = vld [vmem:[#allocation77] sm:$0xff] }
0x2180   : > { %v9107_v50 = vpack.c.bf16 %v12790_v5, %v12770_v7 }
0x2181   : > { %v12793_v23 = vpop.permute.xlu0 %12792  ;;  %v9116_v15 = vpack.c.bf16 %v12785_v47, %v12784_v13 }
0x2182   : > { %v12795_v2 = vunpack.i.h.bf16 %v12793_v23  ;;  %v12794_v42 = vunpack.i.l.bf16 %v12793_v23  ;;  %v18290_v6 = vpop.permute.xlu1 %12797  ;;  %9198 = vrot.lane.b32.xlu0 %v9117_v40, %s18870_s7 }
0x2183   : > { %v12800_v62 = vunpack.i.h.bf16 %v18290_v6 }
0x2184   : > { %v9119_v0 = vpack.c.bf16 %v12795_v2, %v12794_v42  ;;  %v12789_v2 = vunpack.i.l.bf16 %v18287_v10 }
0x2185   : > { %v18294_v32 = vpop.permute.xlu0 %12812 }
0x2186   : > { %v12803_v63 = vpop.permute.xlu1 %12802  ;;  %9202 = vrot.lane.b32.xlu0 %v9119_v0, %s18870_s7  ;;  %v12815_v49 = vunpack.i.h.bf16 %v18294_v32  ;;  %v8979_v11 = vsel %vm2978_vm6, %v12789_v2, %v12790_v5  ;;  %v12814_v10 = vunpack.i.l.bf16 %v18294_v32  ;;  %v12799_v5 = vunpack.i.l.bf16 %v18290_v6  ;;  %v9327_v32 = vld [vmem:[%s18876_s4 + $0x10] sm:$0xff] }
0x2187   : > { %v12805_v40 = vunpack.i.h.bf16 %v12803_v63  ;;  %v12804_v23 = vunpack.i.l.bf16 %v12803_v63  ;;  %v8978_v63 = vsel %vm2978_vm6, %v12769_v44, %v12770_v7 }
0x2188   : > { %v9111_v14 = vpack.c.bf16 %v12815_v49, %v12800_v62  ;;  %v9106_v16 = vpack.c.bf16 %v8979_v11, %v8978_v63  ;;  %v9014_v41 = vsel %vm2978_vm6, %v12799_v5, %v12800_v62  ;;  %v9324_v62 = vld [vmem:[#allocation79 + $0x10] sm:$0xff] }
0x2189   : > { %v18301_v29 = vpop.permute.xlu0 %12817  ;;  %v9118_v0 = vpack.c.bf16 %v12805_v40, %v12804_v23 }
0x218a   : > { %v12808_v4 = vpop.permute.xlu1 %12807  ;;  %9178 = vrot.lane.b32.xlu0 %v9107_v50, %s18870_s7  ;;  %v12820_v59 = vunpack.i.h.bf16 %v18301_v29  ;;  %v12819_v43 = vunpack.i.l.bf16 %v18301_v29  ;;  %v10933_v50 = vcombine.high %v18331_v38, %v18331_v38  ;;  %v9015_v29 = vsel %vm2978_vm6, %v12814_v10, %v12815_v49  ;;  %v9322_v49 = vld [vmem:[#allocation79] sm:$0xff] }
0x218b   : > { %v12810_v56 = vunpack.i.h.bf16 %v12808_v4  ;;  %v12809_v26 = vunpack.i.l.bf16 %v12808_v4  ;;  %v9110_v6 = vpack.c.bf16 %v9015_v29, %v9014_v41  ;;  %v10932_v29 = vcombine.low %v18331_v38, %v18331_v38 }
0x218c   : > { %v9016_v53 = vsel %vm2978_vm6, %v12819_v43, %v12820_v59  ;;  %9274 = vmatprep.mubr.bf16.mxu0 %v10933_v50  ;;  %v9334_v43 = vld [vmem:[%s18877_s5 + $0x10] sm:$0xff] }
0x218d   : > { %v9120_v25 = vpack.c.bf16 %v12810_v56, %v12809_v26  ;;  %v12828_v17 = vpop.permute.xlu0 %12827  ;;  %v9333_v56 = vld [vmem:[%s18877_s5 + $0x8] sm:$0xff] }
0x218e   : > { %v12823_v55 = vpop.permute.xlu1 %12822  ;;  %9180 = vrot.lane.b32.xlu0 %v9108_v33, %s18870_s7  ;;  %v12830_v39 = vunpack.i.h.bf16 %v12828_v17  ;;  %v12829_v3 = vunpack.i.l.bf16 %v12828_v17  ;;  %v9335_v33 = vld [vmem:[%s18877_s5 + $0x18] sm:$0xff]  ;;  %v9338_v17 = vld [vmem:[%s18878_s6 + $0x10] sm:$0xff] }
0x218f   : > { %v12825_v20 = vunpack.i.h.bf16 %v12823_v55  ;;  %v12824_v8 = vunpack.i.l.bf16 %v12823_v55  ;;  %9204 = vrot.lane.b32.xlu1 %v9120_v25, %s18870_s7  ;;  %v9325_v25 = vld [vmem:[%s18876_s4] sm:$0xff]  ;;  %s18879_s4 = sld [smem:[#allocation168_spill]] }
0x2190   : > { %v9121_v21 = vpack.c.bf16 %v12830_v39, %v12829_v3  ;;  %v9332_v55 = vld [vmem:[%s18877_s5] sm:$0xff] }
0x2191   : > { %v9017_v46 = vsel %vm2978_vm6, %v12824_v8, %v12825_v20  ;;  %v12838_v58 = vpop.permute.xlu0 %12837  ;;  %v9113_v37 = vpack.c.bf16 %v12825_v20, %v12820_v59  ;;  %v9336_v59 = vld [vmem:[%s18878_s6] sm:$0xff] }
0x2192   : > { %9186 = vrot.lane.b32.xlu0 %v9111_v14, %s18870_s7  ;;  %v9112_v60 = vpack.c.bf16 %v9017_v46, %v9016_v53  ;;  %v12840_v57 = vunpack.i.h.bf16 %v12838_v58  ;;  %v12839_v51 = vunpack.i.l.bf16 %v12838_v58  ;;  %v12833_v7 = vpop.permute.xlu1 %12832 }
0x2193   : > { %9168 = vrot.lane.b32.xlu1 %v9102_v12, %s18870_s7  ;;  %v12835_v4 = vunpack.i.h.bf16 %v12833_v7  ;;  %v12834_v52 = vunpack.i.l.bf16 %v12833_v7 }
0x2194   : > { %v9123_v42 = vpack.c.bf16 %v12840_v57, %v12839_v51 }
0x2195   : > { %v9122_v26 = vpack.c.bf16 %v12835_v4, %v12834_v52  ;;  %v9165_v8 = vpop.permute.xlu0 %9164 }
0x2196   : > { %9188 = vrot.lane.b32.xlu0 %v9112_v60, %s18870_s7  ;;  %v9161_v20 = vpop.permute.xlu1 %9160 }
0x2197   : > { %9182 = vrot.lane.b32.xlu1 %v9109_v27, %s18870_s7 }
0x2199   : > { %v9163_v46 = vpop.permute.xlu0 %9162 }
0x219a   : > { %9206 = vrot.lane.b32.xlu0 %v9121_v21, %s18870_s7  ;;  %v9167_v54 = vpop.permute.xlu1 %9166  ;;  %v9213_v53 = vsel %vm9212_vm11, %v9161_v20, %v9163_v46 }
0x219b   : > { %9196 = vrot.lane.b32.xlu1 %v9116_v15, %s18870_s7  ;;  %v9214_v3 = vsel %vm9212_vm11, %v9165_v8, %v9167_v54 }
0x219e   : > { %9210 = vrot.lane.b32.xlu0 %v9123_v42, %s18870_s7 }
0x219f   : > { %9200 = vrot.lane.b32.xlu1 %v9118_v0, %s18870_s7 }
0x21a2   : > { %9349 = vperm.xlu0 %11829, %v9323_v34  }
0x21a3   : > { %9176 = vrot.lane.b32.xlu1 %v9106_v16, %s18870_s7 }
0x21a6   : > { %9367 = vperm.xlu0 %11829, %v9326_v30  }
0x21a7   : > { %9190 = vrot.lane.b32.xlu1 %v9113_v37, %s18870_s7 }
0x21aa   : > { %9372 = vperm.xlu0 %11829, %v9327_v32   ;;  %v13010_v32 = vld [vmem:[#allocation77 + $0x8] ss:$0 sps:$4 sm:$0xff]  }
0x21ab   : > { %9184 = vrot.lane.b32.xlu1 %v9110_v6, %s18870_s7 }
0x21ae   : > { %9458 = vperm.xlu0 %11829, %v9333_v56  }
0x21af   : > { %9208 = vrot.lane.b32.xlu1 %v9122_v26, %s18870_s7 }
0x21b2   : > { %9482 = vperm.xlu0 %11829, %v9337_v35  }
0x21b3   : > { %9344 = vperm.xlu1 %11830, %v9322_v49  }
0x21b6   : > { %9468 = vperm.xlu0 %11829, %v9335_v33  }
0x21b7   : > { %9362 = vperm.xlu1 %11830, %v9325_v25  }
0x21ba   : > { %9492 = vperm.xlu0 %11829, %v9339_v28   ;;  %v13011_v28 = vld [vmem:[%s18879_s4] sm:$0xff]  }
0x21bb   : > { %9354 = vperm.xlu1 %11830, %v9324_v62  }
0x21bf   : > { %9453 = vperm.xlu1 %11830, %v9332_v55  }
0x21c3   : > { %9477 = vperm.xlu1 %11830, %v9336_v59  }
0x21c7   : > { %9463 = vperm.xlu1 %11830, %v9334_v43  }
0x21cb   : > { %9487 = vperm.xlu1 %11830, %v9338_v17  }
0x21e4   : > { %v9195_v39 = vpop.permute.xlu0 %9194 }
0x21e5   : > { %v9175_v14 = vpop.permute.xlu1 %9174 }
0x21e9   : > { %v9193_v12 = vpop.permute.xlu1 %9192 }
0x21ea   : > { %11102 = vmatprep.subr.bf16.mxu0 %v9193_v12 }
0x21eb   : > { %11103 = vmatpush3.bf16.msra.mxu0 %v9213_v53 }
0x21ec   : > { %11104 = vmatprep.subr.bf16.mxu0 %v9195_v39  ;;  %v9171_v60 = vpop.permute.xlu0 %9170 }
0x21ef   : > { %11105 = vmatpush3.bf16.msra.mxu0 %v9214_v3 }
0x21f0   : > { %v9173_v27 = vpop.permute.xlu0 %9172 }
0x21f1   : > { %v9216_v44 = vsel %vm9212_vm11, %v9173_v27, %v9175_v14 }
0x21f4   : > { %v9199_v47 = vpop.permute.xlu0 %9198 }
0x21f8   : > { %v9203_v13 = vpop.permute.xlu0 %9202 }
0x21fc   : > { %v9179_v57 = vpop.permute.xlu0 %9178 }
0x2200   : > { %v9181_v15 = vpop.permute.xlu0 %9180 }
0x2201   : > { %v9205_v58 = vpop.permute.xlu1 %9204 }
0x2204   : > { %v9187_v42 = vpop.permute.xlu0 %9186 }
0x2205   : > { %v9169_v21 = vpop.permute.xlu1 %9168 }
0x2206   : > { %v9215_v23 = vsel %vm9212_vm11, %v9169_v21, %v9171_v60 }
0x2208   : > { %v9189_v34 = vpop.permute.xlu0 %9188 }
0x2209   : > { %v9183_v51 = vpop.permute.xlu1 %9182 }
0x220a   : > { %v9218_v16 = vsel %vm9212_vm11, %v9181_v15, %v9183_v51 }
0x220c   : > { %v9207_v5 = vpop.permute.xlu0 %9206 }
0x220d   : > { %v9197_v40 = vpop.permute.xlu1 %9196 }
0x220e   : > { %11106 = vmatprep.subr.bf16.mxu0 %v9197_v40 }
0x220f   : > { %11107 = vmatpush3.bf16.msra.mxu0 %v9215_v23 }
0x2210   : > { %11108 = vmatprep.subr.bf16.mxu0 %v9199_v47  ;;  %v9211_v7 = vpop.permute.xlu0 %9210 }
0x2211   : > { %v9201_v2 = vpop.permute.xlu1 %9200 }
0x2213   : > { %11109 = vmatpush3.bf16.msra.mxu0 %v9216_v44 }
0x2214   : > { %11110 = vmatprep.subr.bf16.mxu0 %v9201_v2 }
0x2215   : > { %v9177_v0 = vpop.permute.xlu1 %9176 }
0x2216   : > { %v9217_v11 = vsel %vm9212_vm11, %v9177_v0, %v9179_v57 }
0x2217   : > { %11111 = vmatpush3.bf16.msra.mxu0 %v9217_v11 }
0x2218   : > { %11112 = vmatprep.subr.bf16.mxu0 %v9203_v13  ;;  %v13012_v13 = vld [vmem:[%s18879_s4 + $0x8] sm:$0xff]   ;;  %s18880_s4 = smov 127  }
0x2219   : > { %v9191_v63 = vpop.permute.xlu1 %9190 }
0x221a   : > { %v9220_v37 = vsel %vm9212_vm11, %v9189_v34, %v9191_v63 }
0x221b   : > { %11113 = vmatpush3.bf16.msra.mxu0 %v9218_v16 }
0x221c   : > { %11114 = vmatprep.subr.bf16.mxu0 %v9205_v58 }
0x221d   : > { %v9185_v10 = vpop.permute.xlu1 %9184 }
0x221e   : > { %v9219_v30 = vsel %vm9212_vm11, %v9185_v10, %v9187_v42 }
0x221f   : > { %11115 = vmatpush3.bf16.msra.mxu0 %v9219_v30 }
0x2220   : > { %11116 = vmatprep.subr.bf16.mxu0 %v9207_v5 }
0x2221   : > { %v9209_v50 = vpop.permute.xlu1 %9208  ;;  %v9350_v41 = vpop.permute.xlu0 %9349 }
0x2222   : > { %11260 = vmatpush3.bf16.msra.mxu1 %v9209_v50  ;;  %v9358_v38 = vmul.f32 %v9350_v41, %v18138_v24 }
0x2223   : > { %11117 = vmatpush3.bf16.msra.mxu0 %v9220_v37  ;;  %11261 = vmatprep.subr.bf16.mxu1 %v18208_v9 }
0x2224   : > { %11275 = vmatprep.subr.bf16.mxu0 %v18208_v9 }
0x2225   : > { %v9368_v4 = vpop.permute.xlu0 %9367 }
0x2226   : > { %9275 = vmatmul.mubr.bf16.vlgmr.msra.gmra.mrb[52].mxu0 %v10932_v29  ;;  %11262 = vmatpush3.bf16.msra.mxu1 %v9211_v7  ;;  %v9376_v6 = vadd.f32 %v9368_v4, %v9358_v38 }
0x2227   : > { %11279 = vmatprep.mubr.msk.bf16.mxu0 %vm14696_vm5, %v18208_v9 }
0x2228   : > { %v9379_v49 = vmax.f32 %v9376_v6, 0.0 }
0x2229   : > { %11264 = vmatmul.mubr.msk.bf16.vlgmr.msra.gmra.mrb[52].mxu1 %vm4215_vm15, %v13010_v32  ;;  %v9373_v39 = vpop.permute.xlu0 %9372 }
0x222a   : > { %11271 = vmatprep.mubr.msk.bf16.mxu1 %vm4383_vm1, %v13011_v28 }
0x222d   : > { %v9459_v21 = vpop.permute.xlu0 %9458 }
0x2231   : > { %v9483_v51 = vpop.permute.xlu0 %9482 }
0x2232   : > { %v9345_v52 = vpop.permute.xlu1 %9344 }
0x2233   : > { %v9357_v56 = vmul.f32 %v9345_v52, %v18135_v48 }
0x2235   : > { %v9469_v40 = vpop.permute.xlu0 %9468 }
0x2236   : > { %v9363_v26 = vpop.permute.xlu1 %9362 }
0x2237   : > { %v9375_v35 = vadd.f32 %v9363_v26, %v9357_v56 }
0x2239   : > { %v9378_v33 = vmax.f32 %v9375_v35, 0.0  ;;  %v9493_v10 = vpop.permute.xlu0 %9492 }
0x223a   : > { %v9355_v14 = vpop.permute.xlu1 %9354 }
0x223b   : > { %v9381_v25 = vpack.c.bf16 %v9379_v49, %v9378_v33  ;;  %v9527_v33 = vmul.f32 %v18208_v9, %v18161_v31 }
0x223d   : > { %11267 = vmatprep.subr.bf16.mxu1 %v9381_v25 }
0x223e   : > { %11268 = vmatpush3.bf16.msra.mxu1 %v9381_v25  ;;  %v9454_v58 = vpop.permute.xlu1 %9453 }
0x2242   : > { %v9478_v57 = vpop.permute.xlu1 %9477 }
0x2246   : > { %v9464_v15 = vpop.permute.xlu1 %9463 }
0x224a   : > { %v9488_v42 = vpop.permute.xlu1 %9487 }
0x22f9   : > { %v11118_v62 = vpop.f32.mrb[52].mxu0 }
0x22fa   : > { %v11119_v55 = vpop.f32.mrb[53].mxu0 }
0x22fb   : > { %v11120_v59 = vadd.f32 %v11119_v55, %v11118_v62  ;;  %v11121_v43 = vpop.f32.mrb[54].mxu0 }
0x22fc   : > { %v9316_v17 = vpop.f32.mrb[52].mxu1  ;;  %v11122_v20 = vpop.f32.mrb[55].mxu0 }
0x22fd   : > { %v18370_v8 = vadd.f32 %v11120_v59, %v9316_v17  ;;  %v11265_v54 = vpop.f32.mrb[53].mxu1 }
0x22fe   : > { %v9319_v46 = vpop.f32.mrb[54].mxu1 }
0x22ff   : > { %v9359_v12 = vmul.f32 %v9355_v14, %v18370_v8  ;;  %v11266_v53 = vpop.f32.mrb[55].mxu1 }
0x2301   : > { %v9377_v3 = vadd.f32 %v9373_v39, %v9359_v12 }
0x2303   : > { %v9380_v60 = vmax.f32 %v9377_v3, 0.0 }
0x2305   : > { %v9382_v27 = vpack.c.bf16 %v9380_v60, %v9380_v60 }
0x2307   : > { %11301 = vmatprep.subr.msk.bf16.mxu1 %vm3153_vm12, %v9382_v27  ;;  %v9400_v47 = vsel %vm3153_vm12, %v9382_v27, 0 }
0x2308   : > { %11270 = vmatpush3.bf16.msra.mxu1 %v9400_v47 }
0x230b   : > { %11272 = vmatmul.mubr.msk.bf16.vlgmr.msra.gmra.mrb[56].mxu1 %vm4383_vm1, %v13012_v13 }
0x23de   : > { %v11273_v23 = vpop.f32.mrb[56].mxu1 }
0x23df   : > { %v9473_v2 = vmul.f32 %v11273_v23, %v9464_v15  ;;  %v9436_v44 = vpop.f32.mrb[57].mxu1 }
0x23e0   : > { %v9471_v0 = vmul.f32 %v9454_v58, %v9436_v44  ;;  %v11274_v11 = vpop.f32.mrb[58].mxu1 }
0x23e1   : > { %v9497_v34 = vadd.f32 %v9488_v42, %v9473_v2  ;;  %v9474_v63 = vmul.f32 %v11274_v11, %v9469_v40  ;;  %v9439_v16 = vpop.f32.mrb[59].mxu1 }
0x23e2   : > { %v9495_v30 = vadd.f32 %v9478_v57, %v9471_v0  ;;  %v9472_v5 = vmul.f32 %v9459_v21, %v9439_v16 }
0x23e3   : > { %v9501_v50 = vmax.f32 %v9497_v34, 0.0  ;;  %v9498_v37 = vadd.f32 %v9493_v10, %v9474_v63 }
0x23e4   : > { %v9499_v29 = vmax.f32 %v9495_v30, 0.0  ;;  %v9496_v7 = vadd.f32 %v9483_v51, %v9472_v5 }
0x23e5   : > { %9505 = vst.msk [vmem:[#allocation2 + $0x48] sm:$0xff] %vm8841_vm10, %v9501_v50  ;;  %v9502_v32 = vmax.f32 %v9498_v37, 0.0 }
0x23e6   : > { %9503 = vst.msk [vmem:[#allocation2 + $0x8] sm:$0xff] %vm8841_vm10, %v9499_v29  ;;  %v9500_v41 = vmax.f32 %v9496_v7, 0.0 }
0x23e7   : > { %9506 = vst.msk [vmem:[#allocation2 + $0x68] sm:$0xff] %vm8841_vm10, %v9502_v32 }
0x23e8   : > { %9504 = vst.msk [vmem:[#allocation2 + $0x28] sm:$0xff] %vm8841_vm10, %v9500_v41 }
0x23ec   : > { %v18381_v4 = vld [vmem:[#allocation2 + $0x48] sm:$0xff] }
0x23ed   : > { %v12841_v52 = vpack.i.bf16 %v18381_v4, %v18208_v9  ;;  %v18385_v38 = vld [vmem:[#allocation2 + $0x8] sm:$0xff]  ;;  %v9528_v35 = vmul.f32 %v18381_v4, %v18161_v31  ;;  %v9541_v54 = vmul.f32 %v18381_v4, %v18181_v1  ;;  %v9536_v51 = vmul.f32 %v18381_v4, %v18204_v61 }
0x23ee   : > { %v12846_v6 = vpack.i.bf16 %v18385_v38, %v18208_v9  ;;  %v18389_v56 = vld [vmem:[#allocation2 + $0x68] sm:$0xff]  ;;  %v9524_v55 = vmul.f32 %v18385_v38, %v18161_v31  ;;  %v9539_v53 = vmul.f32 %v18385_v38, %v18181_v1  ;;  %v9532_v27 = vmul.f32 %v18385_v38, %v18204_v61 }
0x23ef   : > { %12842 = vrot.lane.b32.xlu0 %v12841_v52, %s18880_s4  ;;  %v12851_v26 = vpack.i.bf16 %v18389_v56, %v18381_v4  ;;  %v12856_v49 = vpack.i.bf16 %v18389_v56, %v18208_v9  ;;  %v9510_v25 = vld [vmem:[#allocation2 + $0x28] sm:$0xff]  ;;  %v12861_v28 = vpack.i.bf16 %v9528_v35, %v9527_v33  ;;  %v9542_v43 = vmul.f32 %v18389_v56, %v18181_v1 }
0x23f0   : > { %12847 = vrot.lane.b32.xlu1 %v12846_v6, %s18880_s4  ;;  %v12866_v62 = vpack.i.bf16 %v9510_v25, %v18385_v38  ;;  %v12871_v59 = vpack.i.bf16 %v9510_v25, %v18208_v9  ;;  %v12876_v17 = vpack.i.bf16 %v9524_v55, %v9527_v33  ;;  %v9530_v20 = vmul.f32 %v18389_v56, %v18161_v31 }
0x23f1   : > { %v12881_v14 = vpack.i.bf16 %v9542_v43, %v9541_v54  ;;  %v9526_v46 = vmul.f32 %v9510_v25, %v18161_v31  ;;  %v9540_v9 = vmul.f32 %v9510_v25, %v18181_v1  ;;  %v9546_v3 = vmul.f32 %v18389_v56, %v18199_v18 }
0x23f2   : > { %v12886_v12 = vpack.i.bf16 %v9530_v20, %v9527_v33  ;;  %v9545_v31 = vmul.f32 %v18381_v4, %v18199_v18  ;;  %v9534_v13 = vmul.f32 %v9510_v25, %v18204_v61  ;;  %v12906_v1 = vpack.i.bf16 %v9532_v27, %v18212_v19 }
0x23f3   : > { %12852 = vrot.lane.b32.xlu0 %v12851_v26, %s18871_s12  ;;  %v12896_v39 = vpack.i.bf16 %v9526_v46, %v9527_v33  ;;  %v12891_v60 = vpack.i.bf16 %v9540_v9, %v9539_v53  ;;  %v9544_v58 = vmul.f32 %v9510_v25, %v18199_v18  ;;  %v9543_v21 = vmul.f32 %v18385_v38, %v18199_v18 }
0x23f4   : > { %12857 = vrot.lane.b32.xlu1 %v12856_v49, %s18880_s4  ;;  %v12901_v47 = vpack.i.bf16 %v9546_v3, %v9545_v31  ;;  %v12921_v57 = vpack.i.bf16 %v9534_v13, %v18212_v19  ;;  %v12926_v40 = vpack.i.bf16 %v9536_v51, %v18212_v19  ;;  %v9538_v23 = vmul.f32 %v18389_v56, %v18204_v61 }
0x23f5   : > { %v12911_v15 = vpack.i.bf16 %v9544_v58, %v9543_v21  ;;  %v9550_v18 = vmul.f32 %v18389_v56, %v18238_v36  ;;  %v9548_v44 = vmul.f32 %v9510_v25, %v18238_v36  ;;  %v9549_v42 = vmul.f32 %v18381_v4, %v18238_v36 }
0x23f6   : > { %v12931_v2 = vpack.i.bf16 %v9538_v23, %v18212_v19  ;;  %v9547_v61 = vmul.f32 %v18385_v38, %v18238_v36  ;;  %v9518_v19 = vmul.f32 %v9510_v25, %v18243_v22  ;;  %v9522_v34 = vmul.f32 %v18389_v56, %v18243_v22 }
0x23f7   : > { %12862 = vrot.lane.b32.xlu0 %v12861_v28, %s18872_s1  ;;  %v12946_v0 = vpack.i.bf16 %v9550_v18, %v9549_v42  ;;  %v9516_v63 = vmul.f32 %v18385_v38, %v18243_v22  ;;  %v9520_v36 = vmul.f32 %v18381_v4, %v18243_v22 }
0x23f8   : > { %12867 = vrot.lane.b32.xlu1 %v12866_v62, %s18871_s12  ;;  %v12941_v11 = vpack.i.bf16 %v9548_v44, %v9547_v61 }
0x23f9   : > { %v9732_v16 = vpack.c.bf16 %v9518_v19, %v9516_v63  ;;  %v9734_v10 = vpack.c.bf16 %v9522_v34, %v9520_v36 }
0x23fb   : > { %12872 = vrot.lane.b32.xlu0 %v12871_v59, %s18880_s4  ;;  %s18881_s4 = sld [smem:[#allocation172_spill]] }
0x23fc   : > { %12877 = vrot.lane.b32.xlu1 %v12876_v17, %s18872_s1 }
0x23ff   : > { %12882 = vrot.lane.b32.xlu0 %v12881_v14, %s18873_s2 }
0x2400   : > { %12887 = vrot.lane.b32.xlu1 %v12886_v12, %s18872_s1 }
0x2403   : > { %12897 = vrot.lane.b32.xlu0 %v12896_v39, %s18872_s1 }
0x2404   : > { %12892 = vrot.lane.b32.xlu1 %v12891_v60, %s18873_s2 }
0x2407   : > { %12902 = vrot.lane.b32.xlu0 %v12901_v47, %s18873_s2 }
0x2408   : > { %12907 = vrot.lane.b32.xlu1 %v12906_v1, %s18872_s1 }
0x240b   : > { %12922 = vrot.lane.b32.xlu0 %v12921_v57, %s18872_s1 }
0x240c   : > { %12912 = vrot.lane.b32.xlu1 %v12911_v15, %s18873_s2 }
0x240f   : > { %12927 = vrot.lane.b32.xlu0 %v12926_v40, %s18872_s1 }
0x2410   : > { %12917 = vrot.lane.b32.xlu1 %v12866_v62, %s18874_s28 }
0x2413   : > { %12937 = vrot.lane.b32.xlu0 %v12851_v26, %s18874_s28  ;;  %s18882_s28 = sshll.u32 %s18884_s15, 4 }
0x2414   : > { %12932 = vrot.lane.b32.xlu1 %v12931_v2, %s18872_s1 }
0x2417   : > { %12947 = vrot.lane.b32.xlu0 %v12946_v0, %s18875_s3 }
0x2418   : > { %12942 = vrot.lane.b32.xlu1 %v12941_v11, %s18875_s3  ;;  %s2810_s3 = scalar_lea.vmem %s15061_s24, %s18882_s28 }
0x241b   : > { %9797 = vrot.lane.b32.xlu0 %v18257_v45, %s18870_s7 }
0x241c   : > { %9793 = vrot.lane.b32.xlu1 %v18257_v45, %s18870_s7 }
0x241f   : > { %9795 = vrot.lane.b32.xlu0 %v9732_v16, %s18870_s7 }
0x2420   : > { %9799 = vrot.lane.b32.xlu1 %v9734_v10, %s18870_s7 }
0x2461   : > { %v12843_v30 = vpop.permute.xlu0 %12842 }
0x2462   : > { %v18473_v5 = vpop.permute.xlu1 %12847  ;;  %v12845_v32 = vunpack.i.h.bf16 %v12843_v30  ;;  %v12844_v28 = vunpack.i.l.bf16 %v12843_v30 }
0x2463   : > { %v12850_v49 = vunpack.i.h.bf16 %v18473_v5  ;;  %v12849_v0 = vunpack.i.l.bf16 %v18473_v5 }
0x2464   : > { %v9577_v17 = vsel %vm2910_vm0, %v12844_v28, %v12845_v32 }
0x2465   : > { %v12853_v50 = vpop.permute.xlu0 %12852  ;;  %v9575_v5 = vsel %vm2910_vm0, %v12849_v0, %v12850_v49 }
0x2466   : > { %v12855_v37 = vunpack.i.h.bf16 %v12853_v50  ;;  %v12854_v29 = vunpack.i.l.bf16 %v12853_v50  ;;  %v12858_v7 = vpop.permute.xlu1 %12857 }
0x2467   : > { %v12860_v41 = vunpack.i.h.bf16 %v12858_v7  ;;  %v12859_v56 = vunpack.i.l.bf16 %v12858_v7 }
0x2468   : > { %v9748_v52 = vpack.c.bf16 %v12855_v37, %v12854_v29 }
0x2469   : > { %v9738_v45 = vpack.c.bf16 %v12860_v41, %v12845_v32  ;;  %v18475_v38 = vpop.permute.xlu0 %12862  ;;  %v9578_v55 = vsel %vm2910_vm0, %v12859_v56, %v12860_v41 }
0x246a   : > { %v12868_v22 = vpop.permute.xlu1 %12867  ;;  %9827 = vrot.lane.b32.xlu0 %v9748_v52, %s18870_s7  ;;  %v9737_v20 = vpack.c.bf16 %v9578_v55, %v9577_v17  ;;  %v12865_v57 = vunpack.i.h.bf16 %v18475_v38  ;;  %v12864_v51 = vunpack.i.l.bf16 %v18475_v38 }
0x246b   : > { %v12870_v4 = vunpack.i.h.bf16 %v12868_v22  ;;  %v12869_v6 = vunpack.i.l.bf16 %v12868_v22  ;;  %9807 = vrot.lane.b32.xlu1 %v9738_v45, %s18870_s7 }
0x246c   : > { %v9613_v44 = vsel %vm2978_vm6, %v12864_v51, %v12865_v57 }
0x246d   : > { %v9747_v26 = vpack.c.bf16 %v12870_v4, %v12869_v6  ;;  %v12873_v35 = vpop.permute.xlu0 %12872 }
0x246e   : > { %v12875_v33 = vunpack.i.h.bf16 %v12873_v35  ;;  %v18480_v25 = vpop.permute.xlu1 %12877  ;;  %v12874_v18 = vunpack.i.l.bf16 %v12873_v35 }
0x246f   : > { %9825 = vrot.lane.b32.xlu1 %v9747_v26, %s18870_s7  ;;  %v12880_v58 = vunpack.i.h.bf16 %v18480_v25 }
0x2470   : > { %v9736_v62 = vpack.c.bf16 %v12875_v33, %v12850_v49  ;;  %v9576_v63 = vsel %vm2910_vm0, %v12874_v18, %v12875_v33  ;;  %v9960_v18 = vld [vmem:[%s15046_s17 + $0x10] sm:$0xff]  ;;  %vm10087_vm0 = vcmask 1024  }
0x2471   : > { %v12883_v59 = vpop.permute.xlu0 %12882  ;;  %v9735_v32 = vpack.c.bf16 %v9576_v63, %v9575_v5 }
0x2472   : > { %v12888_v43 = vpop.permute.xlu1 %12887  ;;  %9803 = vrot.lane.b32.xlu0 %v9736_v62, %s18870_s7  ;;  %v12885_v54 = vunpack.i.h.bf16 %v12883_v59  ;;  %v12884_v14 = vunpack.i.l.bf16 %v12883_v59 }
0x2473   : > { %v12890_v47 = vunpack.i.h.bf16 %v12888_v43  ;;  %v12889_v13 = vunpack.i.l.bf16 %v12888_v43  ;;  %v12879_v43 = vunpack.i.l.bf16 %v18480_v25  ;;  %v18531_v25 = vld [vmem:[#allocation80] sm:$0xff] }
0x2474   : > { %v9750_v9 = vpack.c.bf16 %v12885_v54, %v12884_v14  ;;  %v9955_v14 = vld [vmem:[%s18881_s4 + $0x8] sm:$0xff] }
0x2475   : > { %v18486_v46 = vpop.permute.xlu0 %12897  ;;  %v9614_v40 = vsel %vm2978_vm6, %v12889_v13, %v12890_v47  ;;  %v9742_v4 = vpack.c.bf16 %v12890_v47, %v12865_v57  ;;  %v9957_v13 = vld [vmem:[%s18881_s4 + $0x18] sm:$0xff] }
0x2476   : > { %v12893_v12 = vpop.permute.xlu1 %12892  ;;  %9805 = vrot.lane.b32.xlu0 %v9737_v20, %s18870_s7  ;;  %v12900_v27 = vunpack.i.h.bf16 %v18486_v46  ;;  %v9741_v11 = vpack.c.bf16 %v9614_v40, %v9613_v44  ;;  %v12899_v59 = vunpack.i.l.bf16 %v18486_v46  ;;  %v9961_v57 = vld [vmem:[%s15046_s17 + $0x18] sm:$0xff]  ;;  %v9958_v40 = vld [vmem:[%s15046_s17] sm:$0xff] }
0x2477   : > { %v12895_v6 = vunpack.i.h.bf16 %v12893_v12  ;;  %v12894_v56 = vunpack.i.l.bf16 %v12893_v12  ;;  %v9611_v12 = vsel %vm2978_vm6, %v12879_v43, %v12880_v58  ;;  %v10940_v43 = vcombine.low %v18531_v25, %v18531_v25 }
0x2478   : > { %v9740_v15 = vpack.c.bf16 %v12900_v27, %v12880_v58  ;;  %v9612_v54 = vsel %vm2978_vm6, %v12899_v59, %v12900_v27 }
0x2479   : > { %v12903_v53 = vpop.permute.xlu0 %12902  ;;  %v9749_v28 = vpack.c.bf16 %v12895_v6, %v12894_v56 }
0x247a   : > { %v12905_v39 = vunpack.i.h.bf16 %v12903_v53  ;;  %v12904_v3 = vunpack.i.l.bf16 %v12903_v53  ;;  %v18489_v60 = vpop.permute.xlu1 %12907  ;;  %9831 = vrot.lane.b32.xlu0 %v9750_v9, %s18870_s7  ;;  %v9739_v9 = vpack.c.bf16 %v9612_v54, %v9611_v12  ;;  %v9959_v53 = vld [vmem:[%s15046_s17 + $0x8] sm:$0xff] }
0x247b   : > { %v12910_v36 = vunpack.i.h.bf16 %v18489_v60 }
0x247c   : > { %v9752_v31 = vpack.c.bf16 %v12905_v39, %v12904_v3  ;;  %v12909_v39 = vunpack.i.l.bf16 %v18489_v60  ;;  %v10941_v3 = vcombine.high %v18531_v25, %v18531_v25 }
0x247d   : > { %v18493_v1 = vpop.permute.xlu0 %12922 }
0x247e   : > { %v12913_v21 = vpop.permute.xlu1 %12912  ;;  %9835 = vrot.lane.b32.xlu0 %v9752_v31, %s18870_s7  ;;  %v12925_v19 = vunpack.i.h.bf16 %v18493_v1  ;;  %v12924_v46 = vunpack.i.l.bf16 %v18493_v1  ;;  %9906 = vmatprep.mubr.bf16.mxu1 %v10941_v3  ;;  %v9647_v1 = vsel %vm2978_vm6, %v12909_v39, %v12910_v36 }
0x247f   : > { %v12915_v62 = vunpack.i.h.bf16 %v12913_v21  ;;  %v12914_v55 = vunpack.i.l.bf16 %v12913_v21 }
0x2480   : > { %v9744_v7 = vpack.c.bf16 %v12925_v19, %v12910_v36  ;;  %v9648_v31 = vsel %vm2978_vm6, %v12924_v46, %v12925_v19 }
0x2481   : > { %v18500_v23 = vpop.permute.xlu0 %12927  ;;  %v9751_v20 = vpack.c.bf16 %v12915_v62, %v12914_v55  ;;  %v9743_v58 = vpack.c.bf16 %v9648_v31, %v9647_v1 }
0x2482   : > { %v12918_v2 = vpop.permute.xlu1 %12917  ;;  %9811 = vrot.lane.b32.xlu0 %v9740_v15, %s18870_s7  ;;  %v12930_v10 = vunpack.i.h.bf16 %v18500_v23  ;;  %v12929_v30 = vunpack.i.l.bf16 %v18500_v23  ;;  %v9954_v15 = vld [vmem:[%s18881_s4] sm:$0xff]  ;;  %v9956_v23 = vld [vmem:[%s18881_s4 + $0x10] sm:$0xff] }
0x2483   : > { %v12920_v42 = vunpack.i.h.bf16 %v12918_v2  ;;  %v12919_v61 = vunpack.i.l.bf16 %v12918_v2 }
0x2484   : > { %v9649_v52 = vsel %vm2978_vm6, %v12929_v30, %v12930_v10 }
0x2485   : > { %v9753_v34 = vpack.c.bf16 %v12920_v42, %v12919_v61  ;;  %v12938_v50 = vpop.permute.xlu0 %12937 }
0x2486   : > { %v12933_v16 = vpop.permute.xlu1 %12932  ;;  %9813 = vrot.lane.b32.xlu0 %v9741_v11, %s18870_s7  ;;  %v12940_v45 = vunpack.i.h.bf16 %v12938_v50  ;;  %v12939_v38 = vunpack.i.l.bf16 %v12938_v50 }
0x2487   : > { %v12935_v37 = vunpack.i.h.bf16 %v12933_v16  ;;  %v12934_v29 = vunpack.i.l.bf16 %v12933_v16  ;;  %9837 = vrot.lane.b32.xlu1 %v9753_v34, %s18870_s7 }
0x2488   : > { %v9754_v35 = vpack.c.bf16 %v12940_v45, %v12939_v38 }
0x2489   : > { %v9650_v41 = vsel %vm2978_vm6, %v12934_v29, %v12935_v37  ;;  %v12948_v26 = vpop.permute.xlu0 %12947  ;;  %v9746_v27 = vpack.c.bf16 %v12935_v37, %v12930_v10 }
0x248a   : > { %9819 = vrot.lane.b32.xlu0 %v9744_v7, %s18870_s7  ;;  %v9745_v22 = vpack.c.bf16 %v9650_v41, %v9649_v52  ;;  %v12950_v49 = vunpack.i.h.bf16 %v12948_v26  ;;  %v12949_v33 = vunpack.i.l.bf16 %v12948_v26  ;;  %v12943_v47 = vpop.permute.xlu1 %12942 }
0x248b   : > { %9801 = vrot.lane.b32.xlu1 %v9735_v32, %s18870_s7  ;;  %v12945_v60 = vunpack.i.h.bf16 %v12943_v47  ;;  %v12944_v21 = vunpack.i.l.bf16 %v12943_v47 }
0x248c   : > { %v9756_v17 = vpack.c.bf16 %v12950_v49, %v12949_v33 }
0x248d   : > { %v9755_v51 = vpack.c.bf16 %v12945_v60, %v12944_v21  ;;  %v9798_v44 = vpop.permute.xlu0 %9797 }
0x248e   : > { %9821 = vrot.lane.b32.xlu0 %v9745_v22, %s18870_s7  ;;  %v9794_v2 = vpop.permute.xlu1 %9793 }
0x248f   : > { %9815 = vrot.lane.b32.xlu1 %v9742_v4, %s18870_s7 }
0x2491   : > { %v9796_v61 = vpop.permute.xlu0 %9795 }
0x2492   : > { %9839 = vrot.lane.b32.xlu0 %v9754_v35, %s18870_s7  ;;  %v9800_v42 = vpop.permute.xlu1 %9799  ;;  %v9845_v34 = vsel %vm9212_vm11, %v9794_v2, %v9796_v61 }
0x2493   : > { %9829 = vrot.lane.b32.xlu1 %v9749_v28, %s18870_s7  ;;  %v9846_v36 = vsel %vm9212_vm11, %v9798_v44, %v9800_v42 }
0x2496   : > { %9843 = vrot.lane.b32.xlu0 %v9756_v17, %s18870_s7  ;;  %v13023_v17 = vld [vmem:[#allocation2 + $0x18] sm:$0xff] }
0x2497   : > { %9833 = vrot.lane.b32.xlu1 %v9751_v20, %s18870_s7 }
0x249a   : > { %9973 = vperm.xlu0 %11829, %v9955_v14   ;;  %v13015_v14 = vld [vmem:[#allocation80 + $0x8] ss:$0 sps:$4 sm:$0xff]  }
0x249b   : > { %9809 = vrot.lane.b32.xlu1 %v9739_v9, %s18870_s7 }
0x249e   : > { %9997 = vperm.xlu0 %11829, %v9959_v53  }
0x249f   : > { %9823 = vrot.lane.b32.xlu1 %v9746_v27, %s18870_s7 }
0x24a2   : > { %9983 = vperm.xlu0 %11829, %v9957_v13  }
0x24a3   : > { %9817 = vrot.lane.b32.xlu1 %v9743_v58, %s18870_s7 }
0x24a6   : > { %10007 = vperm.xlu0 %11829, %v9961_v57  }
0x24a7   : > { %9841 = vrot.lane.b32.xlu1 %v9755_v51, %s18870_s7 }
0x24ab   : > { %9968 = vperm.xlu1 %11830, %v9954_v15  }
0x24af   : > { %9992 = vperm.xlu1 %11830, %v9958_v40  }
0x24b3   : > { %9978 = vperm.xlu1 %11830, %v9956_v23  }
0x24b7   : > { %10002 = vperm.xlu1 %11830, %v9960_v18  }
0x24dc   : > { %v9828_v11 = vpop.permute.xlu0 %9827 }
0x24dd   : > { %v9808_v0 = vpop.permute.xlu1 %9807 }
0x24e1   : > { %v9826_v19 = vpop.permute.xlu1 %9825 }
0x24e2   : > { %11131 = vmatprep.subr.bf16.mxu1 %v9826_v19 }
0x24e3   : > { %11132 = vmatpush3.bf16.msra.mxu1 %v9845_v34 }
0x24e4   : > { %v9804_v63 = vpop.permute.xlu0 %9803  ;;  %11133 = vmatprep.subr.bf16.mxu1 %v9828_v11 }
0x24e7   : > { %11134 = vmatpush3.bf16.msra.mxu1 %v9846_v36 }
0x24e8   : > { %v9806_v16 = vpop.permute.xlu0 %9805 }
0x24e9   : > { %v9848_v22 = vsel %vm9212_vm11, %v9806_v16, %v9808_v0 }
0x24ec   : > { %v9832_v10 = vpop.permute.xlu0 %9831 }
0x24f0   : > { %v9836_v30 = vpop.permute.xlu0 %9835 }
0x24f4   : > { %v9812_v50 = vpop.permute.xlu0 %9811 }
0x24f8   : > { %v9814_v29 = vpop.permute.xlu0 %9813 }
0x24f9   : > { %v9838_v37 = vpop.permute.xlu1 %9837 }
0x24fc   : > { %v9820_v32 = vpop.permute.xlu0 %9819 }
0x24fd   : > { %v9802_v5 = vpop.permute.xlu1 %9801 }
0x24fe   : > { %v9847_v52 = vsel %vm9212_vm11, %v9802_v5, %v9804_v63 }
0x2500   : > { %v9822_v45 = vpop.permute.xlu0 %9821 }
0x2501   : > { %v9816_v7 = vpop.permute.xlu1 %9815 }
0x2502   : > { %v9850_v35 = vsel %vm9212_vm11, %v9814_v29, %v9816_v7  ;;  %v13016_v7 = vld [vmem:[#allocation82] sm:$0x1f]  }
0x2504   : > { %v9840_v56 = vpop.permute.xlu0 %9839 }
0x2505   : > { %v9830_v41 = vpop.permute.xlu1 %9829 }
0x2506   : > { %11135 = vmatprep.subr.bf16.mxu1 %v9830_v41 }
0x2507   : > { %11136 = vmatpush3.bf16.msra.mxu1 %v9847_v52  ;;  %v9965_v52 = vld [vmem:[#allocation83 + $0x8] sm:$0x3] }
0x2508   : > { %11137 = vmatprep.subr.bf16.mxu1 %v9832_v10  ;;  %v9844_v49 = vpop.permute.xlu0 %9843 }
0x2509   : > { %v9834_v38 = vpop.permute.xlu1 %9833 }
0x250b   : > { %11138 = vmatpush3.bf16.msra.mxu1 %v9848_v22 }
0x250c   : > { %11139 = vmatprep.subr.bf16.mxu1 %v9834_v38 }
0x250d   : > { %v9810_v4 = vpop.permute.xlu1 %9809 }
0x250e   : > { %v9849_v6 = vsel %vm9212_vm11, %v9810_v4, %v9812_v50 }
0x250f   : > { %11140 = vmatpush3.bf16.msra.mxu1 %v9849_v6 }
0x2510   : > { %11141 = vmatprep.subr.bf16.mxu1 %v9836_v30 }
0x2511   : > { %v9824_v26 = vpop.permute.xlu1 %9823 }
0x2512   : > { %v9852_v59 = vsel %vm9212_vm11, %v9822_v45, %v9824_v26 }
0x2513   : > { %11142 = vmatpush3.bf16.msra.mxu1 %v9850_v35 }
0x2514   : > { %11143 = vmatprep.subr.bf16.mxu1 %v9838_v37 }
0x2515   : > { %v9818_v33 = vpop.permute.xlu1 %9817 }
0x2516   : > { %v9851_v28 = vsel %vm9212_vm11, %v9818_v33, %v9820_v32  ;;  %v9964_v32 = vld [vmem:[#allocation83] sm:$0xff] }
0x2517   : > { %11144 = vmatpush3.bf16.msra.mxu1 %v9851_v28 }
0x2518   : > { %11145 = vmatprep.subr.bf16.mxu1 %v9840_v56 }
0x2519   : > { %v9842_v62 = vpop.permute.xlu1 %9841  ;;  %v9974_v55 = vpop.permute.xlu0 %9973 }
0x251a   : > { %11276 = vmatpush3.bf16.msra.mxu0 %v9842_v62  ;;  %v9987_v20 = vmul.f32 %v9974_v55, %v18138_v24 }
0x251b   : > { %11146 = vmatpush3.bf16.msra.mxu1 %v9852_v59  ;;  %11277 = vmatprep.subr.bf16.mxu0 %v13023_v17 }
0x251d   : > { %v9998_v54 = vpop.permute.xlu0 %9997 }
0x251e   : > { %v10011_v12 = vadd.f32 %v9998_v54, %v9987_v20  ;;  %9907 = vmatmul.mubr.bf16.vlgmr.msra.gmra.mrb[60].mxu1 %v10940_v43  ;;  %11278 = vmatpush3.bf16.msra.mxu0 %v9844_v49 }
0x251f   : > { %11283 = vmatprep.subr.bf16.mxu0 %v13023_v17 }
0x2520   : > { %v10015_v9 = vmax.f32 %v10011_v12, 0.0 }
0x2521   : > { %11280 = vmatmul.mubr.msk.bf16.vlgmr.msra.gmra.mrb[56].mxu0 %vm4215_vm15, %v13015_v14  ;;  %v9984_v21 = vpop.permute.xlu0 %9983 }
0x2522   : > { %v10021_v46 = vsel %vm8841_vm10, %v10015_v9, 0.0  ;;  %11287 = vmatprep.mubr.msk.bf16.mxu0 %vm14696_vm5, %v13023_v17 }
0x2523   : > { %10022 = vadd.xlane.f32.xlu0 %v10021_v46 }
0x2525   : > { %v10008_v57 = vpop.permute.xlu0 %10007 }
0x252a   : > { %v9969_v53 = vpop.permute.xlu1 %9968 }
0x252b   : > { %v9986_v25 = vmul.f32 %v9969_v53, %v18135_v48 }
0x252e   : > { %v9993_v39 = vpop.permute.xlu1 %9992 }
0x252f   : > { %v10010_v3 = vadd.f32 %v9993_v39, %v9986_v25 }
0x2531   : > { %v10014_v24 = vmax.f32 %v10010_v3, 0.0 }
0x2532   : > { %v9979_v27 = vpop.permute.xlu1 %9978 }
0x2533   : > { %v10018_v31 = vsel %vm8841_vm10, %v10014_v24, 0.0  ;;  %v9988_v47 = vmul.f32 %v9979_v27, %v18370_v8 }
0x2534   : > { %10019 = vadd.xlane.f32.xlu1 %v10018_v31 }
0x2536   : > { %v10003_v13 = vpop.permute.xlu1 %10002 }
0x2537   : > { %v10012_v1 = vadd.f32 %v10003_v13, %v9988_v47 }
0x2539   : > { %v10016_v58 = vmax.f32 %v10012_v1, 0.0 }
0x253b   : > { %v10024_v60 = vsel %vm8841_vm10, %v10016_v58, 0.0 }
0x253c   : > { %10025 = vadd.xlane.f32.xlu0 %v10024_v60 }
0x25b0   : > { %v10023_v51 = vpop.xlane.xlu0 %10022 }
0x25b1   : > { %v10032_v48 = vmul.f32 0.25, %v10023_v51 }
0x25c1   : > { %v10020_v15 = vpop.xlane.xlu1 %10019 }
0x25c2   : > { %v10031_v40 = vmul.f32 0.25, %v10020_v15 }
0x25c4   : > { %v10035_v23 = vpack.c.bf16 %v10032_v48, %v10031_v40 }
0x25c6   : > { %11284 = vmatpush3.bf16.msra.mxu0 %v10035_v23 }
0x25c7   : > { %11285 = vmatprep.subr.bf16.mxu0 %v13023_v17 }
0x25c9   : > { %v10026_v30 = vpop.xlane.xlu0 %10025 }
0x25ca   : > { %v10033_v37 = vmul.f32 0.25, %v10026_v30 }
0x25f1   : > { %v11147_v18 = vpop.f32.mrb[60].mxu1 }
0x25f2   : > { %v11148_v2 = vpop.f32.mrb[61].mxu1 }
0x25f3   : > { %v11149_v44 = vadd.f32 %v11148_v2, %v11147_v18  ;;  %v11150_v42 = vpop.f32.mrb[62].mxu1 }
0x25f4   : > { %v9948_v8 = vpop.f32.mrb[56].mxu0  ;;  %v11151_v61 = vpop.f32.mrb[63].mxu1 }
0x25f5   : > { %v9949_v0 = vadd.f32 %v11149_v44, %v9948_v8  ;;  %v11281_v11 = vpop.f32.mrb[57].mxu0 }
0x25f6   : > { %v9951_v19 = vpop.f32.mrb[58].mxu0 }
0x25f7   : > { %v9989_v34 = vmul.f32 %v9984_v21, %v9949_v0  ;;  %v11282_v63 = vpop.f32.mrb[59].mxu0 }
0x25f9   : > { %v10013_v36 = vadd.f32 %v10008_v57, %v9989_v34 }
0x25fb   : > { %v10017_v16 = vmax.f32 %v10013_v36, 0.0 }
0x25fd   : > { %v10027_v10 = vsel %vm8841_vm10, %v10017_v16, 0.0 }
0x25fe   : > { %10028 = vadd.xlane.f32.xlu1 %v10027_v10 }
0x268b   : > { %v10029_v50 = vpop.xlane.xlu1 %10028 }
0x268c   : > { %v10034_v29 = vmul.f32 0.25, %v10029_v50 }
0x268e   : > { %v10036_v5 = vpack.c.bf16 %v10034_v29, %v10033_v37 }
0x2690   : > { %11286 = vmatpush3.bf16.msra.mxu0 %v10036_v5 }
0x2693   : > { %11288 = vmatmul.mubr.msk.bf16.vlgmr.msra.gmra.mrb[60].mxu0 %vm4215_vm15, %v13016_v7 }
0x2766   : > { %v10079_v41 = vpop.f32.mrb[60].mxu0 }
0x2767   : > { %v10080_v45 = vadd.f32 %v10079_v41, %v9964_v32  ;;  %v11289_v38 = vpop.f32.mrb[61].mxu0 }
0x2768   : > { %v10082_v22 = vpop.f32.mrb[62].mxu0 }
0x2769   : > { %10086 = vst.msk [vmem:[%s2810_s3] sm:$0xff] %vm2923_vm2, %v10080_v45  ;;  %v10083_v4 = vadd.f32 %v10082_v22, %v9965_v52  ;;  %v11290_v6 = vpop.f32.mrb[63].mxu0 }
0x276b   : > { %10088 = vst.msk [vmem:[%s2810_s3 + $0x8] sm:$0x3] %vm10087_vm0, %v10083_v4 }
0x276c PF: > { %s179_s0 = sadd.s32 1, %s14546_s0  }
0x276d   : > { %p176_p3 = scmp.ge.s32.totalorder %s179_s0, 4  }
0x276f   :  { %178 = sbr.rel (!%p176_p3) target bundleno = 168 (0xa8), region = 617 }
0x2776   :  { %10110 = vsyncpa [#allocation4], 1 }
0x2777   :  { %10112 = vsyncpa [#allocation4 + $0x1], 1 }
0x2778   :  { %10113 = vsyncpa [#allocation6], 1 }
0x2779   :  { %10114 = vsyncpa [#allocation9], 1 }
0x277a   :  { %10115 = vsyncpa [#allocation12], 1 }
0x277b   :  { %10116 = vsyncpa [#allocation15], 1 }
0x277c   :  { %10117 = vsyncpa [#allocation18], 1 }
0x277d   :  { %10118 = vsyncpa [#allocation21], 1 }
0x277e   :  { %10119 = vsyncpa [#allocation24], 1 }
0x277f   :  { %10120 = vsyncpa [#allocation27], 1 }
0x2780   :  { %10121 = vsyncpa [#allocation30], 1 }
0x2781   :  { %10122 = vsyncpa [#allocation33], 1 }
0x2782   :  { %10123 = vsyncpa [#allocation36], 1 }
0x2783   :  { %10124 = vsyncpa [#allocation39], 1 }
0x2784   :  { %10125 = vsyncpa [#allocation42], 1 }
0x2785   :  { %10126 = vsyncpa [#allocation45], 1 }
0x2786   :  { %10127 = vsyncpa [#allocation48], 1 }
0x2787   :  { %10128 = vsyncpa [#allocation51], 1 }
0x2788   :  { %10129 = vsyncpa [#allocation54], 1 }
0x2789   :  { %10130 = vsyncpa [#allocation57], 1 }
0x278a   :  { %10131 = vsyncpa [#allocation60], 1 }
0x278b   :  { %10132 = vsyncpa [#allocation63], 1 }
0x278c   :  { %10133 = vsyncpa [#allocation66], 1 }
0x278d   :  { %10134 = vsyncpa [#allocation69], 1 }
0x278e   :  { %10135 = vsyncpa [#allocation72], 1 }
0x278f   :  { %10136 = vsyncpa [#allocation75], 1 }
0x2790   :  { %10137 = vsyncpa [#allocation78], 1 }
0x2791   :  { %10138 = vsyncpa [#allocation81], 1 }
0x2792   :  { %10139 = vsyncpa [#allocation84], 1 }

</bundles_post_ra>
